<compile_context>
chip_gen: v6e
topology: v6e:2x2x1
jax: 0.10.0
libtpu: 0.0.40
codegen_flags: <defaults>
</compile_context>

<pallas_src>
import functools

import jax
import jax.numpy as jnp
from jax import lax
from jax.experimental import pallas as pl
from jax.experimental.pallas import tpu as pltpu

_LANES = 128  # TPU lane width; channels are padded to a multiple of this.


def _zero_border(pad_ref, H, W, Cp):
    """Zero only the 1-pixel spatial halo of a (H+2, W+2, Cp) VMEM scratch."""
    dt = pad_ref.dtype
    pad_ref[0:1, :, :] = jnp.zeros((1, W + 2, Cp), dt)
    pad_ref[H + 1:H + 2, :, :] = jnp.zeros((1, W + 2, Cp), dt)
    pad_ref[:, 0:1, :] = jnp.zeros((H + 2, 1, Cp), dt)
    pad_ref[:, W + 1:W + 2, :] = jnp.zeros((H + 2, 1, Cp), dt)


def _fill_im2col(col_ref, pad_ref, H, W, Cp):
    """Stage 3x3 taps of a padded (H+2, W+2, Cp) ref into (H*W, 9*Cp) im2col.

    Column blocks are tap-major (dh*3 + dw) and lane-aligned (offsets are
    multiples of Cp = 128), matching the (3,3,Cp,Cp)->(9*Cp,Cp) weight reshape.
    """
    for t, (dh, dw) in enumerate([(a, b) for a in range(3) for b in range(3)]):
        col_ref[:, t * Cp:(t + 1) * Cp] = (
            pad_ref[dh:dh + H, dw:dw + W, :].reshape(H * W, Cp))


def basic_block_kernel(x_ref, w1_ref, w2_ref, s1_ref, b1_ref, s2_ref, b2_ref,
                       out_ref, pad_ref, col_ref, *, H, W, Cp):
    """Fused BasicBlock for one batch element (NHWC, channels padded to Cp).

    x_ref   : (1, H, W, Cp)   f32 input (VMEM) -- also the residual identity
    w1_ref  : (9*Cp, Cp)      bf16 conv1 weights, im2col layout
    w2_ref  : (9*Cp, Cp)      bf16 conv2 weights, im2col layout
    s*/b*   : (1, Cp)         f32 folded BatchNorm scale / bias
    out_ref : (1, H, W, Cp)   f32 output
    pad_ref : (H+2, W+2, Cp)  bf16 scratch (zero-halo activations, reused)
    col_ref : (H*W, 9*Cp)     bf16 scratch (im2col matrix, reused)
    """
    # ---- zero the halo once; interior gets rewritten for each conv ----
    _zero_border(pad_ref, H, W, Cp)

    # ---- conv1: stage bf16 input, one big-K matmul (K = 9*Cp), f32 acc ----
    pad_ref[1:H + 1, 1:W + 1, :] = x_ref[0].astype(jnp.bfloat16)
    _fill_im2col(col_ref, pad_ref, H, W, Cp)
    acc1 = jnp.dot(col_ref[...], w1_ref[...],
                   preferred_element_type=jnp.float32)      # (H*W, Cp) f32
    # bn1 + relu (f32 epilogue, lane-dense)
    out1 = jnp.maximum(acc1 * s1_ref[0] + b1_ref[0], 0.0)

    # ---- conv2: stage relu output into the same padded scratch ----
    pad_ref[1:H + 1, 1:W + 1, :] = out1.reshape(H, W, Cp).astype(jnp.bfloat16)
    _fill_im2col(col_ref, pad_ref, H, W, Cp)
    acc2 = jnp.dot(col_ref[...], w2_ref[...],
                   preferred_element_type=jnp.float32)      # (H*W, Cp) f32

    # ---- bn2 + residual (exact f32 identity) + relu ----
    out2 = acc2 * s2_ref[0] + b2_ref[0]
    out_ref[0] = jnp.maximum(out2.reshape(H, W, Cp) + x_ref[0], 0.0)


def basic_block_forward(x_nchw, w1_hwio, w2_hwio,
                        g1, beta1, m1, v1, g2, beta2, m2, v2, eps=1e-5):
    """x_nchw: (N, C, H, W) float32. Returns (N, C, H, W) float32."""
    N, C, H, W = x_nchw.shape
    P = w1_hwio.shape[-1]
    assert C == P, "BasicBlock with downsample=None requires inplanes == planes"

    Cp = ((C + _LANES - 1) // _LANES) * _LANES
    Cp = max(Cp, _LANES)

    # NCHW -> NHWC, pad channels to the lane width.  Keep f32 (exact residual);
    # the kernel casts to bf16 only on the conv input path.
    x = jnp.transpose(x_nchw, (0, 2, 3, 1)).astype(jnp.float32)
    x = jnp.pad(x, ((0, 0), (0, 0), (0, 0), (0, Cp - C)))

    def pack_w(w):  # (3,3,C,P) -> (9*Cp, Cp), tap-major rows, zero-padded chans
        wp = jnp.zeros((3, 3, Cp, Cp), jnp.float32).at[:, :, :C, :P].set(w)
        return wp.reshape(9 * Cp, Cp).astype(jnp.bfloat16)

    w1m = pack_w(w1_hwio)
    w2m = pack_w(w2_hwio)

    # Fold eval-mode BatchNorm into scale / bias (f32, padded channels -> 0).
    def fold_bn(g, beta, m, v):
        s = g / jnp.sqrt(v + eps)
        b = beta - m * s
        pad = (0, Cp - P)
        return (jnp.pad(s, pad).reshape(1, Cp).astype(jnp.float32),
                jnp.pad(b, pad).reshape(1, Cp).astype(jnp.float32))

    s1, b1 = fold_bn(g1, beta1, m1, v1)
    s2, b2 = fold_bn(g2, beta2, m2, v2)

    kernel = functools.partial(basic_block_kernel, H=H, W=W, Cp=Cp)

    out_nhwc = pl.pallas_call(
        kernel,
        out_shape=jax.ShapeDtypeStruct((N, H, W, Cp), jnp.float32),
        grid_spec=pltpu.PrefetchScalarGridSpec(
            num_scalar_prefetch=0,
            grid=(N,),
            in_specs=[
                pl.BlockSpec((1, H, W, Cp), lambda n: (n, 0, 0, 0)),
                pl.BlockSpec((9 * Cp, Cp), lambda n: (0, 0)),
                pl.BlockSpec((9 * Cp, Cp), lambda n: (0, 0)),
                pl.BlockSpec((1, Cp), lambda n: (0, 0)),
                pl.BlockSpec((1, Cp), lambda n: (0, 0)),
                pl.BlockSpec((1, Cp), lambda n: (0, 0)),
                pl.BlockSpec((1, Cp), lambda n: (0, 0)),
            ],
            out_specs=pl.BlockSpec((1, H, W, Cp), lambda n: (n, 0, 0, 0)),
            scratch_shapes=[
                pltpu.VMEM((H + 2, W + 2, Cp), jnp.bfloat16),   # padded acts
                pltpu.VMEM((H * W, 9 * Cp), jnp.bfloat16),      # im2col (reused)
            ],
        ),
        compiler_params=pltpu.CompilerParams(
            dimension_semantics=("parallel",)),   # shard batch across TCs (v7x)
    )(x, w1m, w2m, s1, b1, s2, b2)

    out = out_nhwc[..., :C]
    return jnp.transpose(out, (0, 3, 1, 2))


def _reference(x_nchw, w1, w2, g1, beta1, m1, v1, g2, beta2, m2, v2, eps=1e-5):
    """Pure-JAX reference. Mirrors the kernel's bf16 rounding of the conv
    inputs (weights, staged input, staged mid activation); the residual
    identity is exact f32, as in the kernel."""
    bf = lambda a: a.astype(jnp.bfloat16).astype(jnp.float32)
    x = jnp.transpose(x_nchw, (0, 2, 3, 1)).astype(jnp.float32)
    dn = ('NHWC', 'HWIO', 'NHWC')
    hi = lax.Precision.HIGHEST
    out = lax.conv_general_dilated(bf(x), bf(w1), (1, 1), 'SAME',
                                   dimension_numbers=dn, precision=hi)
    out = (out - m1) / jnp.sqrt(v1 + eps) * g1 + beta1
    out = bf(jnp.maximum(out, 0.0))
    out = lax.conv_general_dilated(out, bf(w2), (1, 1), 'SAME',
                                   dimension_numbers=dn, precision=hi)
    out = (out - m2) / jnp.sqrt(v2 + eps) * g2 + beta2
    out = jnp.maximum(out + x, 0.0)
    return jnp.transpose(out, (0, 3, 1, 2))


if __name__ == "__main__":
    N, C, H, W = 2, 8, 16, 16      # inplanes == planes == 8, stride=1
    P = C

    key = jax.random.PRNGKey(0)
    kx, kw1, kw2, kg1, kb1, km1, kv1, kg2, kb2, km2, kv2 = jax.random.split(key, 11)

    x = jax.random.normal(kx, (N, C, H, W), jnp.float32)

    # conv weights in HWIO layout (3, 3, in, out)
    w1 = jax.random.normal(kw1, (3, 3, C, P), jnp.float32) * 0.1
    w2 = jax.random.normal(kw2, (3, 3, P, P), jnp.float32) * 0.1

    # BatchNorm params (eval-mode running stats)
    g1 = 1.0 + 0.1 * jax.random.normal(kg1, (P,), jnp.float32)
    beta1 = 0.1 * jax.random.normal(kb1, (P,), jnp.float32)
    m1 = 0.1 * jax.random.normal(km1, (P,), jnp.float32)
    v1 = 0.5 + jnp.abs(jax.random.normal(kv1, (P,), jnp.float32))
    g2 = 1.0 + 0.1 * jax.random.normal(kg2, (P,), jnp.float32)
    beta2 = 0.1 * jax.random.normal(kb2, (P,), jnp.float32)
    m2 = 0.1 * jax.random.normal(km2, (P,), jnp.float32)
    v2 = 0.5 + jnp.abs(jax.random.normal(kv2, (P,), jnp.float32))

    out = basic_block_forward(x, w1, w2, g1, beta1, m1, v1, g2, beta2, m2, v2)
    out = jax.block_until_ready(out)

    ref = _reference(x, w1, w2, g1, beta1, m1, v1, g2, beta2, m2, v2)
    assert out.shape == (N, C, H, W)
    assert jnp.allclose(out, ref, atol=1e-2, rtol=1e-2), \
        float(jnp.max(jnp.abs(out - ref)))

    print("KERNEL_OK")
</pallas_src>

<mosaic_0001>
module attributes {stable_mosaic.version = 11 : i64} {
  func.func @basic_block_kernel(%arg0: i32, %arg1: memref<1x16x16x128xf32, #tpu.memory_space<vmem>>, %arg2: memref<1152x128xbf16, #tpu.memory_space<vmem>>, %arg3: memref<1152x128xbf16, #tpu.memory_space<vmem>>, %arg4: memref<1x128xf32, #tpu.memory_space<vmem>>, %arg5: memref<1x128xf32, #tpu.memory_space<vmem>>, %arg6: memref<1x128xf32, #tpu.memory_space<vmem>>, %arg7: memref<1x128xf32, #tpu.memory_space<vmem>>, %arg8: memref<1x16x16x128xf32, #tpu.memory_space<vmem>>, %arg9: memref<18x18x128xbf16, #tpu.memory_space<vmem>>, %arg10: memref<256x1152xbf16, #tpu.memory_space<vmem>>) attributes {dimension_semantics = [#tpu.dimension_semantics<parallel>], iteration_bounds = array<i64: 2>, scalar_prefetch = 0 : i64, scratch_operands = 2 : i64, tpu.core_type = #tpu.core_type<tc>, window_params = [{transform_indices = @transform_0, window_bounds = array<i64: 1, 16, 16, 128>}, {pipeline_mode = #tpu.pipeline_mode<synchronous>, transform_indices = @transform_1, window_bounds = array<i64: 1152, 128>}, {pipeline_mode = #tpu.pipeline_mode<synchronous>, transform_indices = @transform_2, window_bounds = array<i64: 1152, 128>}, {pipeline_mode = #tpu.pipeline_mode<synchronous>, transform_indices = @transform_3, window_bounds = array<i64: 1, 128>}, {pipeline_mode = #tpu.pipeline_mode<synchronous>, transform_indices = @transform_4, window_bounds = array<i64: 1, 128>}, {pipeline_mode = #tpu.pipeline_mode<synchronous>, transform_indices = @transform_5, window_bounds = array<i64: 1, 128>}, {pipeline_mode = #tpu.pipeline_mode<synchronous>, transform_indices = @transform_6, window_bounds = array<i64: 1, 128>}, {transform_indices = @transform_7, window_bounds = array<i64: 1, 16, 16, 128>}]} {
    %cst = arith.constant 0.000000e+00 : bf16
    %0 = vector.broadcast %cst : bf16 to vector<1x18x128xbf16>
    %c0 = arith.constant 0 : index
    %c0_0 = arith.constant 0 : index
    %c0_1 = arith.constant 0 : index
    %1 = vector.load %arg9[%c0, %c0_0, %c0_1] : memref<18x18x128xbf16, #tpu.memory_space<vmem>>, vector<1x18x128xbf16>
    tpu.vector_store %arg9[%c0, %c0_0, %c0_1], %0 {strides = array<i32>} : memref<18x18x128xbf16, #tpu.memory_space<vmem>>, vector<1x18x128xbf16>,
    %cst_2 = arith.constant 0.000000e+00 : bf16
    %2 = vector.broadcast %cst_2 : bf16 to vector<1x18x128xbf16>
    %c17 = arith.constant 17 : index
    %c0_3 = arith.constant 0 : index
    %c0_4 = arith.constant 0 : index
    %3 = vector.load %arg9[%c17, %c0_3, %c0_4] : memref<18x18x128xbf16, #tpu.memory_space<vmem>>, vector<1x18x128xbf16>
    tpu.vector_store %arg9[%c17, %c0_3, %c0_4], %2 {strides = array<i32>} : memref<18x18x128xbf16, #tpu.memory_space<vmem>>, vector<1x18x128xbf16>,
    %cst_5 = arith.constant 0.000000e+00 : bf16
    %4 = vector.broadcast %cst_5 : bf16 to vector<18x1x128xbf16>
    %c0_6 = arith.constant 0 : index
    %c0_7 = arith.constant 0 : index
    %c0_8 = arith.constant 0 : index
    %5 = vector.load %arg9[%c0_6, %c0_7, %c0_8] : memref<18x18x128xbf16, #tpu.memory_space<vmem>>, vector<18x1x128xbf16>
    tpu.vector_store %arg9[%c0_6, %c0_7, %c0_8], %4 {strides = array<i32>} : memref<18x18x128xbf16, #tpu.memory_space<vmem>>, vector<18x1x128xbf16>,
    %cst_9 = arith.constant 0.000000e+00 : bf16
    %6 = vector.broadcast %cst_9 : bf16 to vector<18x1x128xbf16>
    %c0_10 = arith.constant 0 : index
    %c17_11 = arith.constant 17 : index
    %c0_12 = arith.constant 0 : index
    %7 = vector.load %arg9[%c0_10, %c17_11, %c0_12] : memref<18x18x128xbf16, #tpu.memory_space<vmem>>, vector<18x1x128xbf16>
    tpu.vector_store %arg9[%c0_10, %c17_11, %c0_12], %6 {strides = array<i32>} : memref<18x18x128xbf16, #tpu.memory_space<vmem>>, vector<18x1x128xbf16>,
    %c0_13 = arith.constant 0 : index
    %c0_14 = arith.constant 0 : index
    %c0_15 = arith.constant 0 : index
    %c0_16 = arith.constant 0 : index
    %8 = vector.load %arg1[%c0_13, %c0_14, %c0_15, %c0_16] : memref<1x16x16x128xf32, #tpu.memory_space<vmem>>, vector<1x16x16x128xf32>
    %9 = vector.shape_cast %8 : vector<1x16x16x128xf32> to vector<16x16x128xf32>
    %10 = arith.truncf %9 : vector<16x16x128xf32> to vector<16x16x128xbf16>
    %c1 = arith.constant 1 : index
    %c1_17 = arith.constant 1 : index
    %c0_18 = arith.constant 0 : index
    %11 = vector.load %arg9[%c1, %c1_17, %c0_18] : memref<18x18x128xbf16, #tpu.memory_space<vmem>>, vector<16x16x128xbf16>
    tpu.vector_store %arg9[%c1, %c1_17, %c0_18], %10 {strides = array<i32>} : memref<18x18x128xbf16, #tpu.memory_space<vmem>>, vector<16x16x128xbf16>,
    %c0_19 = arith.constant 0 : index
    %c0_20 = arith.constant 0 : index
    %c0_21 = arith.constant 0 : index
    %12 = vector.load %arg9[%c0_19, %c0_20, %c0_21] : memref<18x18x128xbf16, #tpu.memory_space<vmem>>, vector<16x16x128xbf16>
    %13 = vector.shape_cast %12 : vector<16x16x128xbf16> to vector<256x128xbf16>
    %c0_22 = arith.constant 0 : index
    %c0_23 = arith.constant 0 : index
    %14 = vector.load %arg10[%c0_22, %c0_23] : memref<256x1152xbf16, #tpu.memory_space<vmem>>, vector<256x128xbf16>
    tpu.vector_store %arg10[%c0_22, %c0_23], %13 {strides = array<i32>} : memref<256x1152xbf16, #tpu.memory_space<vmem>>, vector<256x128xbf16>,
    %c0_24 = arith.constant 0 : index
    %c1_25 = arith.constant 1 : index
    %c0_26 = arith.constant 0 : index
    %15 = vector.load %arg9[%c0_24, %c1_25, %c0_26] : memref<18x18x128xbf16, #tpu.memory_space<vmem>>, vector<16x16x128xbf16>
    %16 = vector.shape_cast %15 : vector<16x16x128xbf16> to vector<256x128xbf16>
    %c0_27 = arith.constant 0 : index
    %c128 = arith.constant 128 : index
    %17 = vector.load %arg10[%c0_27, %c128] : memref<256x1152xbf16, #tpu.memory_space<vmem>>, vector<256x128xbf16>
    tpu.vector_store %arg10[%c0_27, %c128], %16 {strides = array<i32>} : memref<256x1152xbf16, #tpu.memory_space<vmem>>, vector<256x128xbf16>,
    %c0_28 = arith.constant 0 : index
    %c2 = arith.constant 2 : index
    %c0_29 = arith.constant 0 : index
    %18 = vector.load %arg9[%c0_28, %c2, %c0_29] : memref<18x18x128xbf16, #tpu.memory_space<vmem>>, vector<16x16x128xbf16>
    %19 = vector.shape_cast %18 : vector<16x16x128xbf16> to vector<256x128xbf16>
    %c0_30 = arith.constant 0 : index
    %c256 = arith.constant 256 : index
    %20 = vector.load %arg10[%c0_30, %c256] : memref<256x1152xbf16, #tpu.memory_space<vmem>>, vector<256x128xbf16>
    tpu.vector_store %arg10[%c0_30, %c256], %19 {strides = array<i32>} : memref<256x1152xbf16, #tpu.memory_space<vmem>>, vector<256x128xbf16>,
    %c1_31 = arith.constant 1 : index
    %c0_32 = arith.constant 0 : index
    %c0_33 = arith.constant 0 : index
    %21 = vector.load %arg9[%c1_31, %c0_32, %c0_33] : memref<18x18x128xbf16, #tpu.memory_space<vmem>>, vector<16x16x128xbf16>
    %22 = vector.shape_cast %21 : vector<16x16x128xbf16> to vector<256x128xbf16>
    %c0_34 = arith.constant 0 : index
    %c384 = arith.constant 384 : index
    %23 = vector.load %arg10[%c0_34, %c384] : memref<256x1152xbf16, #tpu.memory_space<vmem>>, vector<256x128xbf16>
    tpu.vector_store %arg10[%c0_34, %c384], %22 {strides = array<i32>} : memref<256x1152xbf16, #tpu.memory_space<vmem>>, vector<256x128xbf16>,
    %c1_35 = arith.constant 1 : index
    %c1_36 = arith.constant 1 : index
    %c0_37 = arith.constant 0 : index
    %24 = vector.load %arg9[%c1_35, %c1_36, %c0_37] : memref<18x18x128xbf16, #tpu.memory_space<vmem>>, vector<16x16x128xbf16>
    %25 = vector.shape_cast %24 : vector<16x16x128xbf16> to vector<256x128xbf16>
    %c0_38 = arith.constant 0 : index
    %c512 = arith.constant 512 : index
    %26 = vector.load %arg10[%c0_38, %c512] : memref<256x1152xbf16, #tpu.memory_space<vmem>>, vector<256x128xbf16>
    tpu.vector_store %arg10[%c0_38, %c512], %25 {strides = array<i32>} : memref<256x1152xbf16, #tpu.memory_space<vmem>>, vector<256x128xbf16>,
    %c1_39 = arith.constant 1 : index
    %c2_40 = arith.constant 2 : index
    %c0_41 = arith.constant 0 : index
    %27 = vector.load %arg9[%c1_39, %c2_40, %c0_41] : memref<18x18x128xbf16, #tpu.memory_space<vmem>>, vector<16x16x128xbf16>
    %28 = vector.shape_cast %27 : vector<16x16x128xbf16> to vector<256x128xbf16>
    %c0_42 = arith.constant 0 : index
    %c640 = arith.constant 640 : index
    %29 = vector.load %arg10[%c0_42, %c640] : memref<256x1152xbf16, #tpu.memory_space<vmem>>, vector<256x128xbf16>
    tpu.vector_store %arg10[%c0_42, %c640], %28 {strides = array<i32>} : memref<256x1152xbf16, #tpu.memory_space<vmem>>, vector<256x128xbf16>,
    %c2_43 = arith.constant 2 : index
    %c0_44 = arith.constant 0 : index
    %c0_45 = arith.constant 0 : index
    %30 = vector.load %arg9[%c2_43, %c0_44, %c0_45] : memref<18x18x128xbf16, #tpu.memory_space<vmem>>, vector<16x16x128xbf16>
    %31 = vector.shape_cast %30 : vector<16x16x128xbf16> to vector<256x128xbf16>
    %c0_46 = arith.constant 0 : index
    %c768 = arith.constant 768 : index
    %32 = vector.load %arg10[%c0_46, %c768] : memref<256x1152xbf16, #tpu.memory_space<vmem>>, vector<256x128xbf16>
    tpu.vector_store %arg10[%c0_46, %c768], %31 {strides = array<i32>} : memref<256x1152xbf16, #tpu.memory_space<vmem>>, vector<256x128xbf16>,
    %c2_47 = arith.constant 2 : index
    %c1_48 = arith.constant 1 : index
    %c0_49 = arith.constant 0 : index
    %33 = vector.load %arg9[%c2_47, %c1_48, %c0_49] : memref<18x18x128xbf16, #tpu.memory_space<vmem>>, vector<16x16x128xbf16>
    %34 = vector.shape_cast %33 : vector<16x16x128xbf16> to vector<256x128xbf16>
    %c0_50 = arith.constant 0 : index
    %c896 = arith.constant 896 : index
    %35 = vector.load %arg10[%c0_50, %c896] : memref<256x1152xbf16, #tpu.memory_space<vmem>>, vector<256x128xbf16>
    tpu.vector_store %arg10[%c0_50, %c896], %34 {strides = array<i32>} : memref<256x1152xbf16, #tpu.memory_space<vmem>>, vector<256x128xbf16>,
    %c2_51 = arith.constant 2 : index
    %c2_52 = arith.constant 2 : index
    %c0_53 = arith.constant 0 : index
    %36 = vector.load %arg9[%c2_51, %c2_52, %c0_53] : memref<18x18x128xbf16, #tpu.memory_space<vmem>>, vector<16x16x128xbf16>
    %37 = vector.shape_cast %36 : vector<16x16x128xbf16> to vector<256x128xbf16>
    %c0_54 = arith.constant 0 : index
    %c1024 = arith.constant 1024 : index
    %38 = vector.load %arg10[%c0_54, %c1024] : memref<256x1152xbf16, #tpu.memory_space<vmem>>, vector<256x128xbf16>
    tpu.vector_store %arg10[%c0_54, %c1024], %37 {strides = array<i32>} : memref<256x1152xbf16, #tpu.memory_space<vmem>>, vector<256x128xbf16>,
    %c0_55 = arith.constant 0 : index
    %c0_56 = arith.constant 0 : index
    %39 = vector.load %arg10[%c0_55, %c0_56] : memref<256x1152xbf16, #tpu.memory_space<vmem>>, vector<256x1152xbf16>
    %c0_57 = arith.constant 0 : index
    %c0_58 = arith.constant 0 : index
    %40 = vector.load %arg2[%c0_57, %c0_58] : memref<1152x128xbf16, #tpu.memory_space<vmem>>, vector<1152x128xbf16>
    %cst_59 = arith.constant dense<0.000000e+00> : vector<256x128xf32>
    %41 = tpu.matmul %39, %40, %cst_59 {dimension_numbers = #tpu.dot_dimension_numbers<[1], [0], [0], [1], [0, 0, 1, 1], [], []>} : vector<256x1152xbf16>, vector<1152x128xbf16>, vector<256x128xf32> -> vector<256x128xf32>
    %c0_60 = arith.constant 0 : index
    %c0_61 = arith.constant 0 : index
    %42 = vector.load %arg4[%c0_60, %c0_61] : memref<1x128xf32, #tpu.memory_space<vmem>>, vector<1x128xf32>
    %43 = vector.shape_cast %42 : vector<1x128xf32> to vector<128xf32>
    %44 = vector.shape_cast %43 : vector<128xf32> to vector<1x128xf32>
    %45 = vector.broadcast %44 : vector<1x128xf32> to vector<256x128xf32>
    %46 = arith.mulf %41, %45 : vector<256x128xf32>
    %c0_62 = arith.constant 0 : index
    %c0_63 = arith.constant 0 : index
    %47 = vector.load %arg5[%c0_62, %c0_63] : memref<1x128xf32, #tpu.memory_space<vmem>>, vector<1x128xf32>
    %48 = vector.shape_cast %47 : vector<1x128xf32> to vector<128xf32>
    %49 = vector.shape_cast %48 : vector<128xf32> to vector<1x128xf32>
    %50 = vector.broadcast %49 : vector<1x128xf32> to vector<256x128xf32>
    %51 = arith.addf %46, %50 : vector<256x128xf32>
    %cst_64 = arith.constant 0.000000e+00 : f32
    %52 = vector.broadcast %cst_64 : f32 to vector<256x128xf32>
    %53 = arith.maximumf %51, %52 : vector<256x128xf32>
    %54 = vector.shape_cast %53 : vector<256x128xf32> to vector<16x16x128xf32>
    %55 = arith.truncf %54 : vector<16x16x128xf32> to vector<16x16x128xbf16>
    %c1_65 = arith.constant 1 : index
    %c1_66 = arith.constant 1 : index
    %c0_67 = arith.constant 0 : index
    %56 = vector.load %arg9[%c1_65, %c1_66, %c0_67] : memref<18x18x128xbf16, #tpu.memory_space<vmem>>, vector<16x16x128xbf16>
    tpu.vector_store %arg9[%c1_65, %c1_66, %c0_67], %55 {strides = array<i32>} : memref<18x18x128xbf16, #tpu.memory_space<vmem>>, vector<16x16x128xbf16>,
    %c0_68 = arith.constant 0 : index
    %c0_69 = arith.constant 0 : index
    %c0_70 = arith.constant 0 : index
    %57 = vector.load %arg9[%c0_68, %c0_69, %c0_70] : memref<18x18x128xbf16, #tpu.memory_space<vmem>>, vector<16x16x128xbf16>
    %58 = vector.shape_cast %57 : vector<16x16x128xbf16> to vector<256x128xbf16>
    %c0_71 = arith.constant 0 : index
    %c0_72 = arith.constant 0 : index
    %59 = vector.load %arg10[%c0_71, %c0_72] : memref<256x1152xbf16, #tpu.memory_space<vmem>>, vector<256x128xbf16>
    tpu.vector_store %arg10[%c0_71, %c0_72], %58 {strides = array<i32>} : memref<256x1152xbf16, #tpu.memory_space<vmem>>, vector<256x128xbf16>,
    %c0_73 = arith.constant 0 : index
    %c1_74 = arith.constant 1 : index
    %c0_75 = arith.constant 0 : index
    %60 = vector.load %arg9[%c0_73, %c1_74, %c0_75] : memref<18x18x128xbf16, #tpu.memory_space<vmem>>, vector<16x16x128xbf16>
    %61 = vector.shape_cast %60 : vector<16x16x128xbf16> to vector<256x128xbf16>
    %c0_76 = arith.constant 0 : index
    %c128_77 = arith.constant 128 : index
    %62 = vector.load %arg10[%c0_76, %c128_77] : memref<256x1152xbf16, #tpu.memory_space<vmem>>, vector<256x128xbf16>
    tpu.vector_store %arg10[%c0_76, %c128_77], %61 {strides = array<i32>} : memref<256x1152xbf16, #tpu.memory_space<vmem>>, vector<256x128xbf16>,
    %c0_78 = arith.constant 0 : index
    %c2_79 = arith.constant 2 : index
    %c0_80 = arith.constant 0 : index
    %63 = vector.load %arg9[%c0_78, %c2_79, %c0_80] : memref<18x18x128xbf16, #tpu.memory_space<vmem>>, vector<16x16x128xbf16>
    %64 = vector.shape_cast %63 : vector<16x16x128xbf16> to vector<256x128xbf16>
    %c0_81 = arith.constant 0 : index
    %c256_82 = arith.constant 256 : index
    %65 = vector.load %arg10[%c0_81, %c256_82] : memref<256x1152xbf16, #tpu.memory_space<vmem>>, vector<256x128xbf16>
    tpu.vector_store %arg10[%c0_81, %c256_82], %64 {strides = array<i32>} : memref<256x1152xbf16, #tpu.memory_space<vmem>>, vector<256x128xbf16>,
    %c1_83 = arith.constant 1 : index
    %c0_84 = arith.constant 0 : index
    %c0_85 = arith.constant 0 : index
    %66 = vector.load %arg9[%c1_83, %c0_84, %c0_85] : memref<18x18x128xbf16, #tpu.memory_space<vmem>>, vector<16x16x128xbf16>
    %67 = vector.shape_cast %66 : vector<16x16x128xbf16> to vector<256x128xbf16>
    %c0_86 = arith.constant 0 : index
    %c384_87 = arith.constant 384 : index
    %68 = vector.load %arg10[%c0_86, %c384_87] : memref<256x1152xbf16, #tpu.memory_space<vmem>>, vector<256x128xbf16>
    tpu.vector_store %arg10[%c0_86, %c384_87], %67 {strides = array<i32>} : memref<256x1152xbf16, #tpu.memory_space<vmem>>, vector<256x128xbf16>,
    %c1_88 = arith.constant 1 : index
    %c1_89 = arith.constant 1 : index
    %c0_90 = arith.constant 0 : index
    %69 = vector.load %arg9[%c1_88, %c1_89, %c0_90] : memref<18x18x128xbf16, #tpu.memory_space<vmem>>, vector<16x16x128xbf16>
    %70 = vector.shape_cast %69 : vector<16x16x128xbf16> to vector<256x128xbf16>
    %c0_91 = arith.constant 0 : index
    %c512_92 = arith.constant 512 : index
    %71 = vector.load %arg10[%c0_91, %c512_92] : memref<256x1152xbf16, #tpu.memory_space<vmem>>, vector<256x128xbf16>
    tpu.vector_store %arg10[%c0_91, %c512_92], %70 {strides = array<i32>} : memref<256x1152xbf16, #tpu.memory_space<vmem>>, vector<256x128xbf16>,
    %c1_93 = arith.constant 1 : index
    %c2_94 = arith.constant 2 : index
    %c0_95 = arith.constant 0 : index
    %72 = vector.load %arg9[%c1_93, %c2_94, %c0_95] : memref<18x18x128xbf16, #tpu.memory_space<vmem>>, vector<16x16x128xbf16>
    %73 = vector.shape_cast %72 : vector<16x16x128xbf16> to vector<256x128xbf16>
    %c0_96 = arith.constant 0 : index
    %c640_97 = arith.constant 640 : index
    %74 = vector.load %arg10[%c0_96, %c640_97] : memref<256x1152xbf16, #tpu.memory_space<vmem>>, vector<256x128xbf16>
    tpu.vector_store %arg10[%c0_96, %c640_97], %73 {strides = array<i32>} : memref<256x1152xbf16, #tpu.memory_space<vmem>>, vector<256x128xbf16>,
    %c2_98 = arith.constant 2 : index
    %c0_99 = arith.constant 0 : index
    %c0_100 = arith.constant 0 : index
    %75 = vector.load %arg9[%c2_98, %c0_99, %c0_100] : memref<18x18x128xbf16, #tpu.memory_space<vmem>>, vector<16x16x128xbf16>
    %76 = vector.shape_cast %75 : vector<16x16x128xbf16> to vector<256x128xbf16>
    %c0_101 = arith.constant 0 : index
    %c768_102 = arith.constant 768 : index
    %77 = vector.load %arg10[%c0_101, %c768_102] : memref<256x1152xbf16, #tpu.memory_space<vmem>>, vector<256x128xbf16>
    tpu.vector_store %arg10[%c0_101, %c768_102], %76 {strides = array<i32>} : memref<256x1152xbf16, #tpu.memory_space<vmem>>, vector<256x128xbf16>,
    %c2_103 = arith.constant 2 : index
    %c1_104 = arith.constant 1 : index
    %c0_105 = arith.constant 0 : index
    %78 = vector.load %arg9[%c2_103, %c1_104, %c0_105] : memref<18x18x128xbf16, #tpu.memory_space<vmem>>, vector<16x16x128xbf16>
    %79 = vector.shape_cast %78 : vector<16x16x128xbf16> to vector<256x128xbf16>
    %c0_106 = arith.constant 0 : index
    %c896_107 = arith.constant 896 : index
    %80 = vector.load %arg10[%c0_106, %c896_107] : memref<256x1152xbf16, #tpu.memory_space<vmem>>, vector<256x128xbf16>
    tpu.vector_store %arg10[%c0_106, %c896_107], %79 {strides = array<i32>} : memref<256x1152xbf16, #tpu.memory_space<vmem>>, vector<256x128xbf16>,
    %c2_108 = arith.constant 2 : index
    %c2_109 = arith.constant 2 : index
    %c0_110 = arith.constant 0 : index
    %81 = vector.load %arg9[%c2_108, %c2_109, %c0_110] : memref<18x18x128xbf16, #tpu.memory_space<vmem>>, vector<16x16x128xbf16>
    %82 = vector.shape_cast %81 : vector<16x16x128xbf16> to vector<256x128xbf16>
    %c0_111 = arith.constant 0 : index
    %c1024_112 = arith.constant 1024 : index
    %83 = vector.load %arg10[%c0_111, %c1024_112] : memref<256x1152xbf16, #tpu.memory_space<vmem>>, vector<256x128xbf16>
    tpu.vector_store %arg10[%c0_111, %c1024_112], %82 {strides = array<i32>} : memref<256x1152xbf16, #tpu.memory_space<vmem>>, vector<256x128xbf16>,
    %c0_113 = arith.constant 0 : index
    %c0_114 = arith.constant 0 : index
    %84 = vector.load %arg10[%c0_113, %c0_114] : memref<256x1152xbf16, #tpu.memory_space<vmem>>, vector<256x1152xbf16>
    %c0_115 = arith.constant 0 : index
    %c0_116 = arith.constant 0 : index
    %85 = vector.load %arg3[%c0_115, %c0_116] : memref<1152x128xbf16, #tpu.memory_space<vmem>>, vector<1152x128xbf16>
    %cst_117 = arith.constant dense<0.000000e+00> : vector<256x128xf32>
    %86 = tpu.matmul %84, %85, %cst_117 {dimension_numbers = #tpu.dot_dimension_numbers<[1], [0], [0], [1], [0, 0, 1, 1], [], []>} : vector<256x1152xbf16>, vector<1152x128xbf16>, vector<256x128xf32> -> vector<256x128xf32>
    %c0_118 = arith.constant 0 : index
    %c0_119 = arith.constant 0 : index
    %87 = vector.load %arg6[%c0_118, %c0_119] : memref<1x128xf32, #tpu.memory_space<vmem>>, vector<1x128xf32>
    %88 = vector.shape_cast %87 : vector<1x128xf32> to vector<128xf32>
    %89 = vector.shape_cast %88 : vector<128xf32> to vector<1x128xf32>
    %90 = vector.broadcast %89 : vector<1x128xf32> to vector<256x128xf32>
    %91 = arith.mulf %86, %90 : vector<256x128xf32>
    %c0_120 = arith.constant 0 : index
    %c0_121 = arith.constant 0 : index
    %92 = vector.load %arg7[%c0_120, %c0_121] : memref<1x128xf32, #tpu.memory_space<vmem>>, vector<1x128xf32>
    %93 = vector.shape_cast %92 : vector<1x128xf32> to vector<128xf32>
    %94 = vector.shape_cast %93 : vector<128xf32> to vector<1x128xf32>
    %95 = vector.broadcast %94 : vector<1x128xf32> to vector<256x128xf32>
    %96 = arith.addf %91, %95 : vector<256x128xf32>
    %97 = vector.shape_cast %96 : vector<256x128xf32> to vector<16x16x128xf32>
    %c0_122 = arith.constant 0 : index
    %c0_123 = arith.constant 0 : index
    %c0_124 = arith.constant 0 : index
    %c0_125 = arith.constant 0 : index
    %98 = vector.load %arg1[%c0_122, %c0_123, %c0_124, %c0_125] : memref<1x16x16x128xf32, #tpu.memory_space<vmem>>, vector<1x16x16x128xf32>
    %99 = vector.shape_cast %98 : vector<1x16x16x128xf32> to vector<16x16x128xf32>
    %100 = arith.addf %97, %99 : vector<16x16x128xf32>
    %cst_126 = arith.constant 0.000000e+00 : f32
    %101 = vector.broadcast %cst_126 : f32 to vector<16x16x128xf32>
    %102 = arith.maximumf %100, %101 : vector<16x16x128xf32>
    %c0_127 = arith.constant 0 : index
    %c0_128 = arith.constant 0 : index
    %c0_129 = arith.constant 0 : index
    %c0_130 = arith.constant 0 : index
    %103 = vector.load %arg8[%c0_127, %c0_128, %c0_129, %c0_130] : memref<1x16x16x128xf32, #tpu.memory_space<vmem>>, vector<1x16x16x128xf32>
    %104 = vector.shape_cast %103 : vector<1x16x16x128xf32> to vector<16x16x128xf32>
    %105 = vector.shape_cast %102 : vector<16x16x128xf32> to vector<1x16x16x128xf32>
    tpu.vector_store %arg8[%c0_127, %c0_128, %c0_129, %c0_130], %105 {strides = array<i32>} : memref<1x16x16x128xf32, #tpu.memory_space<vmem>>, vector<1x16x16x128xf32>,
    return
  }
  func.func @transform_0(%arg0: i32) -> (i32, i32, i32, i32) {
    %c0_i32 = arith.constant 0 : i32
    %c0_i32_0 = arith.constant 0 : i32
    %c0_i32_1 = arith.constant 0 : i32
    %c0_i32_2 = arith.constant 0 : i32
    return %arg0, %c0_i32, %c0_i32_0, %c0_i32_1 : i32, i32, i32, i32
  }
  func.func @transform_1(%arg0: i32) -> (i32, i32) {
    %c0_i32 = arith.constant 0 : i32
    %c0_i32_0 = arith.constant 0 : i32
    %c0_i32_1 = arith.constant 0 : i32
    return %c0_i32, %c0_i32_0 : i32, i32
  }
  func.func @transform_2(%arg0: i32) -> (i32, i32) {
    %c0_i32 = arith.constant 0 : i32
    %c0_i32_0 = arith.constant 0 : i32
    %c0_i32_1 = arith.constant 0 : i32
    return %c0_i32, %c0_i32_0 : i32, i32
  }
  func.func @transform_3(%arg0: i32) -> (i32, i32) {
    %c0_i32 = arith.constant 0 : i32
    %c0_i32_0 = arith.constant 0 : i32
    %c0_i32_1 = arith.constant 0 : i32
    return %c0_i32, %c0_i32_0 : i32, i32
  }
  func.func @transform_4(%arg0: i32) -> (i32, i32) {
    %c0_i32 = arith.constant 0 : i32
    %c0_i32_0 = arith.constant 0 : i32
    %c0_i32_1 = arith.constant 0 : i32
    return %c0_i32, %c0_i32_0 : i32, i32
  }
  func.func @transform_5(%arg0: i32) -> (i32, i32) {
    %c0_i32 = arith.constant 0 : i32
    %c0_i32_0 = arith.constant 0 : i32
    %c0_i32_1 = arith.constant 0 : i32
    return %c0_i32, %c0_i32_0 : i32, i32
  }
  func.func @transform_6(%arg0: i32) -> (i32, i32) {
    %c0_i32 = arith.constant 0 : i32
    %c0_i32_0 = arith.constant 0 : i32
    %c0_i32_1 = arith.constant 0 : i32
    return %c0_i32, %c0_i32_0 : i32, i32
  }
  func.func @transform_7(%arg0: i32) -> (i32, i32, i32, i32) {
    %c0_i32 = arith.constant 0 : i32
    %c0_i32_0 = arith.constant 0 : i32
    %c0_i32_1 = arith.constant 0 : i32
    %c0_i32_2 = arith.constant 0 : i32
    return %arg0, %c0_i32, %c0_i32_0, %c0_i32_1 : i32, i32, i32, i32
  }
}

</mosaic_0001>

<bundles_post_ra>
// kernel: tpu_custom_call.1
= control target key start
LH: loop header
LB: loop body
LE: loop exit
PB: predicated region body
PF: predicated region fallthrough
CT: control target
= control target key end

     0   :  { %s16839_s0 = inlined_call_operand.hbm [shape: f32[2,16,16,128], index: 0, kind: input, shape index: {}]   ;;  %s16840_s1 = inlined_call_operand.hbm [shape: bf16[1152,128], index: 1, kind: input, shape index: {}]   ;;  %s16841_s2 = inlined_call_operand.hbm [shape: bf16[1152,128], index: 2, kind: input, shape index: {}]   ;;  %s16842_s3 = inlined_call_operand.vmem [shape: f32[1,128], index: 3, kind: input, shape index: {}]   ;;  %s16843_s4 = inlined_call_operand.vmem [shape: f32[1,128], index: 4, kind: input, shape index: {}]   ;;  %s16844_s5 = inlined_call_operand.vmem [shape: f32[1,128], index: 5, kind: input, shape index: {}]   ;;  %s16845_s6 = inlined_call_operand.vmem [shape: f32[1,128], index: 6, kind: input, shape index: {}]   ;;  %s16846_s7 = inlined_call_operand.hbm [shape: f32[2,16,16,128], index: 7, kind: output, shape index: {}]  }
   0x1   :  { %16861 = sst [smem:[#allocation53_spill]] %s16840_s1 }
   0x2   :  { %12 = vsyncpa [#allocation5], 0 }
   0x3   :  { %14 = vsyncpa [#allocation5 + $0x1], 0 }
   0x4   :  { %15 = vsyncpa [#allocation8], 0 }
   0x5   :  { %16 = vsyncpa [#allocation6], 0 }
   0x6   :  { %18 = vsyncpa [#allocation6 + $0x1], 0  ;;  %s14055_s24 = smov 0   ;;  %s14057_s25 = smov 0  }
   0x7   :  { %s14059_s26 = smov 0   ;;  %s14061_s27 = smov 0  }
   0x8 LB: > { %s14076_s28 = sadd.s32 4294967295, %s14002_s27   ;;  %s11515_s29 = sadd.s32 4294967294, %s14002_s27   ;;  %s14002_s27 = sphi %s14061_s27, %s17041_s27   ;;  %s13998_s26 = sphi %s14059_s26, %s17040_s26   ;;  %s13994_s25 = sphi %s14057_s25, %s17039_s25   ;;  %s13990_s24 = sphi %s14055_s24, %s17038_s24  }
   0x9   : > { %p44_p0 = scmp.ne.s32.totalorder %s13994_s25, %s13990_s24  ;;  %p16847_p1 = scmp.eq.s32.totalorder %s14076_s28, 0 }
   0xa   : > { %p200_p3 = scmp.eq.s32.totalorder %s11515_s29, 1  ;;  %p11516_p5 = scmp.ge.s32.totalorder %s14002_s27, 1 }
   0xb   : > { %p14085_p4 = por %p16847_p1, %p44_p0  ;;  %p207_p7 = scmp.lt.s32.totalorder %s14002_s27, 3 }
   0xc   : > { %p14090_p6 = por %p200_p3, %p44_p0  ;;  %s14004_s10 = smov [#allocation7]  }
   0xd   : > { %s16862_s30 = scalar_select %p14085_p4, 1, 0 }
   0xe   : > { %s16863_s8 = scalar_select %p14090_p6, 1, 0 }
   0xf   : > { %p14095_p8 = pnand %p11516_p5, %p207_p7  ;;  %s219_s11 = sshll.u32 %s14004_s10, 4  ;;  %s220_s11 = int_to_ptr.vmem [resolvable:$true] %s219_s11 }
  0x10   : > { %s14005_s13 = smov [#allocation9]   ;;  %s13865_s15 = scalar_lea.vmem %s220_s11, 9216 }
  0x11   : > { %s16864_s9 = scalar_select %p14095_p8, 1, 0 }
  0x12   : > { %p13247_p9 = pneg %p14095_p8  ;;  %s232_s14 = sshll.u32 %s14005_s13, 4  ;;  %s233_s14 = int_to_ptr.vmem [resolvable:$true] %s232_s14 }
  0x13   : > { %p13866_p13 = scmp.ne.s32.totalorder %s220_s11, %s13865_s15  ;;  %p13873_p5 = scmp.lt.s32.totalorder %s220_s11, %s220_s11 }
  0x14   : > { %p14104_p11 = pnand %p13247_p9, %p16847_p1  ;;  %p13874_p7 = scmp.lt.s32.totalorder %s13865_s15, %s13865_s15 }
  0x16   : > { %p13856_p12 = pneg %p14104_p11  ;;  %p13875_p10 = por %p13874_p7, %p13873_p5 }
  0x18   : > { %p13868_p0 = pnand %p13866_p13, %p13856_p12 }
  0x1a   : > { %p13869_p3 = pneg %p13868_p0 }
  0x1c   : > { %p13876_p9 = pnand %p13875_p10, %p13869_p3 }
  0x1e   : > { %13879 = shalt.err (!%p13876_p9)
}
  0x1f   : > { %s14006_s16 = smov 64   ;;  %s14007_s17 = smov 4  }
  0x20   : > { %s16866_s1 = sld [smem:[#allocation53_spill]]  ;;  %s13891_s20 = scalar_lea.vmem %s233_s14, 9216 }
  0x21   : > { %p13892_p1 = scmp.ne.s32.totalorder %s233_s14, %s13891_s20  ;;  %p13899_p2 = scmp.lt.s32.totalorder %s233_s14, %s233_s14 }
  0x22   : > { %p13900_p6 = scmp.lt.s32.totalorder %s13891_s20, %s13891_s20 }
  0x23   : > { %p13894_p13 = pnand %p13892_p1, %p13856_p12 }
  0x24   : > { %p13901_p5 = por %p13900_p6, %p13899_p2 }
  0x25   : > { %p13895_p0 = pneg %p13894_p13 }
  0x26   : > { %13250 = dma.hbm_to_vmem [thread:$0]  (!%p14104_p11), %s16866_s1, 9216, %s220_s11, [#allocation8], %s14006_s16, %s14006_s16, %s14007_s17  }
  0x27   : > { %p13902_p10 = pnand %p13901_p5, %p13895_p0 }
  0x29   : > { %13905 = shalt.err (!%p13902_p10)
}
  0x2a   : > { %13253 = dma.hbm_to_vmem [thread:$0]  (!%p14104_p11), %s16841_s2, 9216, %s233_s14, [#allocation8], %s14006_s16, %s14006_s16, %s14007_s17  }
  0x2b   : > { %s14127_s23 = sadd.s32 1, %s14002_s27   ;;  %s31_s29 = sadd.s32 1, %s13998_s26 }
  0x2c   : > { %s28_s10 = ssub.s32 %s14002_s27, %s14127_s23  ;;  %p38_p1 = scmp.ne.s32.totalorder %s13998_s26, %s13994_s25 }
  0x2d   : > { %p29_p2 = scmp.eq.s32.totalorder %s28_s10, 0  ;;  %p39_p6 = scmp.eq.s32.totalorder %s14002_s27, 0 }
  0x2e   : > { %p16867_p12 = scmp.eq.s32.totalorder %s14076_s28, 1  ;;  %p13264_p7 = scmp.lt.s32.totalorder %s14002_s27, 2 }
  0x2f   : > { %s14143_s12 = scalar_select %p29_p2, %s13998_s26, %s31_s29  }
  0x30   : > { %p14137_p3 = por %p16867_p12, %p38_p1  ;;  %p40_p9 = por %p39_p6, %p38_p1 }
  0x31   : > { %s258_s13 = sand.u32 1, %s13998_s26   ;;  %s12129_s14 = sshll.u32 %s14002_s27, 12 }
  0x32   : > { %s16868_s11 = scalar_select %p14137_p3, 1, 0 }
  0x33   : > { %s11520_s15 = sshll.u32 %s258_s13, 8  ;;  %s14150_s18 = scalar_lea.hbm %s16839_s0, %s12129_s14 }
  0x34   : > { %s262_s19 = scalar_lea.vmem [#allocation4], %s11520_s15  ;;  %p14154_p11 = pnand %p13264_p7, %p40_p9 }
  0x35   : > { %s269_s20 = sshll.u32 %s262_s19, 4  ;;  %s14158_s22 = scalar_lea.sflag [#allocation5], %s258_s13  ;;  %s14152_s20 = int_to_ptr.vmem [resolvable:$true] %s269_s20 }
  0x36   : > { %s13906_s29 = scalar_lea.hbm %s14150_s18, 4096  ;;  %p13908_p0 = pneg %p14154_p11 }
  0x37   : > { %p13907_p13 = scmp.ne.s32.totalorder %s14150_s18, %s13906_s29  ;;  %s13911_s15 = scalar_lea.hbm %s16839_s0, 8192 }
  0x38   : > { %p13912_p1 = scmp.lt.s32.totalorder %s14150_s18, %s16839_s0  ;;  %p13913_p2 = scmp.lt.s32.totalorder %s13911_s15, %s13906_s29 }
  0x39   : > { %p13909_p5 = pnand %p13908_p0, %p13907_p13 }
  0x3a   : > { %p13914_p6 = por %p13913_p2, %p13912_p1 }
  0x3b   : > { %p13910_p10 = pneg %p13909_p5 }
  0x3d   : > { %p13915_p12 = pnand %p13914_p6, %p13910_p10 }
  0x3f   : > { %13918 = shalt.err (!%p13915_p12)
}
  0x40   : > { %s13919_s13 = scalar_lea.vmem %s14152_s20, 4096  ;;  %s14008_s19 = smov [#allocation4]  }
  0x41   : > { %p13920_p7 = scmp.ne.s32.totalorder %s14152_s20, %s13919_s13  ;;  %s13924_s1 = sshll.u32 %s14008_s19, 4  ;;  %s13925_s1 = int_to_ptr.vmem [resolvable:$false] %s13924_s1 }
  0x42   : > { %s13926_s10 = scalar_lea.vmem %s13925_s1, 8192  ;;  %p13927_p5 = scmp.lt.s32.totalorder %s14152_s20, %s13925_s1 }
  0x43   : > { %p13922_p9 = pnand %p13920_p7, %p13908_p0  ;;  %p13928_p3 = scmp.lt.s32.totalorder %s13926_s10, %s13919_s13 }
  0x45   : > { %p13923_p13 = pneg %p13922_p9  ;;  %p13929_p4 = por %p13928_p3, %p13927_p5 }
  0x47   : > { %p13930_p8 = pnand %p13929_p4, %p13923_p13 }
  0x49   : > { %13933 = shalt.err (!%p13930_p8)
}
  0x4a   : > { %s14009_s29 = smov 128   ;;  %s14010_s14 = smov 8  }
  0x4b   : > { %13257 = dma.hbm_to_vmem [thread:$0]  (!%p14154_p11), %s14150_s18, 4096, %s14152_s20, %s14158_s22, %s14009_s29, %s14009_s29, %s14010_s14  }
  0x4c   : > { %p16870_p0 = scmp.ne.s32.totalorder %s16864_s9, 0 }
  0x4e   : > { %281 = sbr.rel (%p16870_p0) target bundleno = 1517 (0x5ed), region = 48 }
  0x53   : > { %s14182_s15 = sand.u32 1, %s13994_s25   ;;  %p16871_p4 = scmp.ne.s32.totalorder %s16862_s30, 0 }
  0x54   : > { %s11524_s1 = sshll.u32 %s14182_s15, 8  ;;  %s284_s16 = scalar_lea.sflag [#allocation5], %s14182_s15 }
  0x55   : > { %s14188_s17 = scalar_lea.vmem [#allocation4], %s11524_s1 }
  0x56   : > { %13977 = dma.done.wait (%p16871_p4), %s284_s16, 4096  }
  0x57   : > { %13979 = vsyncadd (%p16871_p4), %s284_s16, 4294963200  ;;  %p16872_p8 = scmp.eq.s32.totalorder %s14076_s28, 0 }
  0x59   : > { %13981 = dma.done.wait (%p16872_p8), [#allocation8], 18432   ;;  %p16873_p3 = pmov %p16872_p8 }
  0x5a   : > { %v14011_v0 = vmov 0   ;;  %v13309_v1 = vld [vmem:[#allocation7 + $0x78] sm:$0xff]   ;;  %v13313_v5 = vld [vmem:[#allocation7 + $0x70] sm:$0xff]   ;;  %v13317_v9 = vld [vmem:[#allocation7 + $0x68] sm:$0xff]   ;;  %vm335_vm0 = vsmask.f32 256 }
  0x5b   : > { %13983 = vsyncadd (%p16873_p3), [#allocation8], 4294948864  ;;  %327 = vst [vmem:[#allocation2] sm:$0xf] %v14011_v0  ;;  %v13310_v2 = vld [vmem:[#allocation7 + $0xf8] sm:$0xff]   ;;  %12195 = vmatprep.subr.bf16.mxu0 %v13309_v1  ;;  %v13314_v6 = vld [vmem:[#allocation7 + $0xf0] sm:$0xff]  }
  0x5c   : > { %328 = vst [vmem:[#allocation2 + $0x4] sm:$0xf] %v14011_v0  ;;  %329 = vst [vmem:[#allocation2 + $0x8] sm:$0x1] %v14011_v0  ;;  %v13311_v3 = vld [vmem:[#allocation7 + $0x38] sm:$0xff]   ;;  %12307 = vmatprep.subr.bf16.mxu1 %v13310_v2  ;;  %v13315_v7 = vld [vmem:[#allocation7 + $0x30] sm:$0xff]  }
  0x5d   : > { %331 = vst [vmem:[#allocation2 + $0xcc] sm:$0xf] %v14011_v0  ;;  %332 = vst [vmem:[#allocation2 + $0xd0] sm:$0xf] %v14011_v0  ;;  %v13312_v4 = vld [vmem:[#allocation7 + $0xb8] sm:$0xff]   ;;  %12196 = vmatpush3.bf16.msra.mxu0 %v13311_v3  ;;  %v13316_v8 = vld [vmem:[#allocation7 + $0xb0] sm:$0xff]  }
  0x5e   : > { %333 = vst [vmem:[#allocation2 + $0xd4] sm:$0x1] %v14011_v0  ;;  %12308 = vmatpush3.bf16.msra.mxu1 %v13312_v4  ;;  %12197 = vmatprep.subr.bf16.mxu0 %v13313_v5  ;;  %v13318_v10 = vld [vmem:[#allocation7 + $0xe8] sm:$0xff]   ;;  %vm391_vm1 = vsmask.f32 7938  ;;  %v13321_v13 = vld [vmem:[#allocation7 + $0x60] sm:$0xff]  }
  0x5f   : > { %12309 = vmatprep.subr.bf16.mxu1 %v13314_v6  ;;  %v13319_v11 = vld [vmem:[#allocation7 + $0x28] sm:$0xff]   ;;  %v13322_v14 = vld [vmem:[#allocation7 + $0xe0] sm:$0xff]   ;;  %v13325_v17 = vld [vmem:[#allocation7 + $0x58] sm:$0xff]   ;;  %vm334_vm2 = vcmask 1040384   ;;  %v16874_v24 = vmov 0  ;;  %vm898_vm5 = vcmask 1043456  }
  0x60   : > { %v13320_v12 = vld [vmem:[#allocation7 + $0xa8] sm:$0xff]   ;;  %v13323_v15 = vld [vmem:[#allocation7 + $0x20] sm:$0xff]   ;;  %v13326_v18 = vld [vmem:[#allocation7 + $0xd8] sm:$0xff]   ;;  %vm1124_vm6 = vsmask.f32 3328  ;;  %vm1671_vm8 = vcmask 1042432  }
  0x61   : > { %12198 = vmatpush3.bf16.msra.mxu0 %v13315_v7  ;;  %v13324_v16 = vld [vmem:[#allocation7 + $0xa0] sm:$0xff]   ;;  %v13327_v19 = vld [vmem:[#allocation7 + $0x18] sm:$0xff]   ;;  %v13329_v21 = vld [vmem:[#allocation7 + $0x50] sm:$0xff]   ;;  %vm1125_vm7 = vsmask.f32 7440  ;;  %vm1672_vm9 = vcmask 1046532  }
  0x62   : > { %12310 = vmatpush3.bf16.msra.mxu1 %v13316_v8  ;;  %12199 = vmatprep.subr.bf16.mxu0 %v13317_v9  ;;  %v13328_v20 = vld [vmem:[#allocation7 + $0x98] sm:$0xff]   ;;  %v13330_v22 = vld [vmem:[#allocation7 + $0xd0] sm:$0xff]   ;;  %vm14199_vm3 = vmand %vm334_vm2, %vm335_vm0  ;;  %v16879_v60 = vmov 0  ;;  %vm575_vm11 = vsmask.f32 4368  ;;  %s16583_s30 = scalar_lea.vmem [#allocation10], %s11524_s1 }
  0x63   : > { %12311 = vmatprep.subr.bf16.mxu1 %v13318_v10  ;;  %v13331_v23 = vld [vmem:[#allocation7 + $0x10] sm:$0xff]   ;;  %v16875_v24 = vsel %vm14199_vm3, 4294967295, %v16874_v24  ;;  %vm14204_vm4 = vmand %vm334_vm2, %vm391_vm1  ;;  %v13333_v27 = vld [vmem:[#allocation7 + $0x48] sm:$0xff]   ;;  %s12194_s1 = sshll.u32 %s14076_s28, 12  ;;  %s11423_s9 = sshll.u32 %s16583_s30, 4  ;;  %s16794_s9 = int_to_ptr.vmem [resolvable:$true] %s11423_s9 }
  0x64   : > { %16876 = vst [vmem:[#allocation14_spill] sm:$0xff] %v16875_v24  ;;  %v13332_v26 = vld [vmem:[#allocation7 + $0x90] sm:$0xff]   ;;  %v13334_v28 = vld [vmem:[#allocation7 + $0xc8] sm:$0xff]   ;;  %v13337_v31 = vld [vmem:[#allocation7 + $0x40] sm:$0xff]   ;;  %s16792_s21 = scalar_lea.hbm %s16846_s7, %s12194_s1  ;;  %s13934_s28 = scalar_lea.vmem %s16794_s9, 4096 }
  0x65   : > { %12200 = vmatpush3.bf16.msra.mxu0 %v13319_v11  ;;  %v13335_v29 = vld [vmem:[#allocation7 + $0x8] sm:$0xff]   ;;  %v13338_v32 = vld [vmem:[#allocation7 + $0xc0] sm:$0xff]   ;;  %v393_v36 = vld [vmem:[#allocation2 + $0x8] sm:$0x1]  ;;  %p13935_p11 = scmp.ne.s32.totalorder %s16794_s9, %s13934_s28  ;;  %p17035_p10 = scmp.ne.s32.totalorder %s16868_s11, 0 }
  0x66   : > { %12312 = vmatpush3.bf16.msra.mxu1 %v13320_v12  ;;  %12201 = vmatprep.subr.bf16.mxu0 %v13321_v13  ;;  %v13336_v30 = vld [vmem:[#allocation7 + $0x88] sm:$0xff]   ;;  %v13339_v33 = vld [vmem:[#allocation7] sm:$0xff]   ;;  %v394_v39 = vsel %vm14204_vm4, 0, %v393_v36  ;;  %v340_v44 = vld [vmem:[#allocation2 + $0xc] sm:$0x1]  ;;  %v16888_v36 = vmov 0 }
  0x67   : > { %12313 = vmatprep.subr.bf16.mxu1 %v13322_v14  ;;  %v13340_v34 = vld [vmem:[#allocation7 + $0x80] sm:$0xff]   ;;  %v337_v35 = vld [vmem:[#allocation2] sm:$0x1]  ;;  %v1013_v37 = vld [vmem:[#allocation2 + $0x4] sm:$0xf]  ;;  %v341_v47 = vsel %vm14199_vm3, 0, %v340_v44  ;;  %p13936_p1 = pnand %p13935_p11, %p17035_p10 }
  0x68   : > { %v338_v38 = vsel %vm14199_vm3, 0, %v337_v35  ;;  %1045 = vst [vmem:[#allocation3 + $0x24] sm:$0xf] %v1013_v37  ;;  %v1077_v40 = vld [vmem:[#allocation2 + $0x4] sm:$0xf]  ;;  %v447_v49 = vld [vmem:[%s14188_s17] sm:$0xff]  ;;  %vm14224_vm10 = vmor %vm1671_vm8, %vm1672_vm9 }
  0x69   : > { %12202 = vmatpush3.bf16.msra.mxu0 %v13323_v15  ;;  %339 = vst [vmem:[#allocation2] sm:$0x1] %v338_v38  ;;  %395 = vst [vmem:[#allocation2 + $0x8] sm:$0x1] %v394_v39  ;;  %v1137_v41 = vshll.u32 %v1077_v40, 16  ;;  %v1141_v42 = vshrl.u32 %v1077_v40, 16  ;;  %v12130_v54 = vpack.c.bf16 %v447_v49, %v447_v49  ;;  %p13937_p2 = pneg %p13936_p1 }
  0x6a   : > { %12314 = vmatpush3.bf16.msra.mxu1 %v13324_v16  ;;  %12203 = vmatprep.subr.bf16.mxu0 %v13325_v17  ;;  %v6495_v43 = vld [vmem:[#allocation2 + $0x4] sm:$0xf]  ;;  %v396_v48 = vld [vmem:[#allocation2 + $0x14] sm:$0x1]  ;;  %342 = vst [vmem:[#allocation2 + $0xc] sm:$0x1] %v341_v47  ;;  %vm14239_vm12 = vmand %vm898_vm5, %vm391_vm1 }
  0x6b   : > { %12315 = vmatprep.subr.bf16.mxu1 %v13326_v18  ;;  %v6552_v45 = vshll.u32 %v6495_v43, 16  ;;  %v6556_v46 = vshrl.u32 %v6495_v43, 16  ;;  %v14215_v50 = vrot.slane %v1137_v41, 5  ;;  %v1143_v51 = vrot.slane %v1141_v42, 4  ;;  %v448_v53 = vld [vmem:[%s14188_s17 + $0x8] sm:$0xff]  ;;  %v13345_v62 = vld [vmem:[#allocation7 + $0x178] sm:$0xff]   ;;  %vm14247_vm13 = vmor %vm1124_vm6, %vm1125_vm7 }
  0x6c   : > { %v397_v52 = vsel %vm14204_vm4, 0, %v396_v48  ;;  %v1575_v55 = vld [vmem:[#allocation2] sm:$0xe]  ;;  %v12131_v58 = vpack.c.bf16 %v448_v53, %v448_v53  ;;  %v1576_v59 = vld [vmem:[#allocation2 + $0x4] sm:$0xf]  ;;  %v16880_v60 = vsel %vm14224_vm10, 4294967295, %v16879_v60  ;;  %vm14257_vm14 = vmor %vm335_vm0, %vm575_vm11 }
  0x6d   : > { %12204 = vmatpush3.bf16.msra.mxu0 %v13327_v19  ;;  %v14220_v56 = vrot.slane %v6552_v45, 5  ;;  %v6558_v57 = vrot.slane %v6556_v46, 4  ;;  %398 = vst [vmem:[#allocation2 + $0x14] sm:$0x1] %v397_v52  ;;  %16881 = vst [vmem:[#allocation15_spill] sm:$0xff] %v16880_v60  ;;  %v11560_v61 = vrot.slane %v1575_v55, 9  ;;  %v1144_v63 = vor.u32 %v1143_v51, %v14215_v50 }
  0x6e   : > { %12316 = vmatpush3.bf16.msra.mxu1 %v13328_v20  ;;  %12205 = vmatprep.subr.bf16.mxu0 %v13329_v21  ;;  %v578_v0 = vshrl.u32 %v12130_v54, 16  ;;  %v1676_v1 = vrot.slane %v1576_v59, 5  ;;  %v14229_v2 = vld [vmem:[#allocation2] sm:$0xe]  ;;  %v581_v3 = vshll.u32 %v12130_v54, 16  ;;  %v586_v4 = vshrl.u32 %v12131_v58, 16 }
  0x6f   : > { %12317 = vmatprep.subr.bf16.mxu1 %v13330_v22  ;;  %v589_v5 = vshll.u32 %v12131_v58, 16  ;;  %v11858_v6 = vrot.slane %v14229_v2, 9  ;;  %v449_v7 = vld [vmem:[%s14188_s17 + $0x10] sm:$0xff]  ;;  %v1145_v8 = vrot.slane %v1144_v63, 4  ;;  %v450_v12 = vld [vmem:[%s14188_s17 + $0x18] sm:$0xff]  ;;  %v6559_v16 = vor.u32 %v6558_v57, %v14220_v56  ;;  %s14012_s22 = smov [#allocation10]  }
  0x70   : > { %v580_v9 = vrot.slane %v578_v0, 7  ;;  %v1677_v10 = vsel %vm14224_vm10, %v11560_v61, %v1676_v1  ;;  %v1678_v11 = vrot.slane %v1676_v1, 4  ;;  %v1012_v13 = vld [vmem:[#allocation2] sm:$0xf]  ;;  %v1078_v15 = vld [vmem:[#allocation2 + $0x8] sm:$0x1]  ;;  %v14243_v21 = vpack.c.bf16 %v449_v7, %v449_v7 }
  0x71   : > { %12206 = vmatpush3.bf16.msra.mxu0 %v13331_v23  ;;  %v1076_v14 = vld [vmem:[#allocation2] sm:$0xf]  ;;  %1818 = vst [vmem:[#allocation3 + $0x8] sm:$0xf] %v1677_v10  ;;  %v16882_v17 = vmov 0  ;;  %v1147_v20 = vshll.u32 %v1078_v15, 16 }
  0x72   : > { %12318 = vmatpush3.bf16.msra.mxu1 %v13332_v26  ;;  %12207 = vmatprep.subr.bf16.mxu0 %v13333_v27  ;;  %v16883_v17 = vsel %vm14239_vm12, 4294967295, %v16882_v17  ;;  %1044 = vst [vmem:[#allocation3] sm:$0xf] %v1012_v13  ;;  %v1128_v18 = vshrl.u32 %v1076_v14, 16  ;;  %v1131_v19 = vshll.u32 %v1076_v14, 16  ;;  %v16885_v22 = vmov 0 }
  0x73   : > { %12319 = vmatprep.subr.bf16.mxu1 %v13334_v28  ;;  %16884 = vst [vmem:[#allocation16_spill] sm:$0xff] %v16883_v17  ;;  %v16886_v22 = vsel %vm14247_vm13, 4294967295, %v16885_v22  ;;  %v6494_v23 = vld [vmem:[#allocation2] sm:$0xf]  ;;  %v6496_v26 = vld [vmem:[#allocation2 + $0x8] sm:$0x1]  ;;  %v583_v27 = vor.u32 %v581_v3, %v580_v9 }
  0x74   : > { %16887 = vst [vmem:[#allocation17_spill] sm:$0xff] %v16886_v22  ;;  %v584_v28 = vrot.slane %v580_v9, 4  ;;  %v6543_v35 = vshrl.u32 %v6494_v23, 16  ;;  %v16889_v36 = vsel %vm14257_vm14, 4294967295, %v16888_v36  ;;  %v900_v37 = vld [vmem:[#allocation2 + $0xc] sm:$0xf] }
  0x75   : > { %12208 = vmatpush3.bf16.msra.mxu0 %v13335_v29  ;;  %v588_v29 = vrot.slane %v586_v4, 7  ;;  %16890 = vst [vmem:[#allocation18_spill] sm:$0xff] %v16889_v36  ;;  %v6546_v38 = vshll.u32 %v6494_v23, 16  ;;  %v6562_v39 = vshll.u32 %v6496_v26, 16  ;;  %v904_v42 = vld [vmem:[#allocation2 + $0x14] sm:$0x1]  ;;  %v901_v46 = vsel %vm14239_vm12, %v583_v27, %v900_v37 }
  0x76   : > { %12320 = vmatpush3.bf16.msra.mxu1 %v13336_v30  ;;  %12209 = vmatprep.subr.bf16.mxu0 %v13337_v31  ;;  %v14251_v30 = vld [vmem:[#allocation2 + $0x4] sm:$0xf]  ;;  %v14253_v31 = vpack.c.bf16 %v450_v12, %v450_v12  ;;  %v6545_v45 = vrot.slane %v6543_v35, 4  ;;  %v1577_v47 = vld [vmem:[#allocation2 + $0x8] sm:$0x1]  ;;  %v14265_v51 = vrot.slane %v6559_v16, 4 }
  0x77   : > { %12321 = vmatprep.subr.bf16.mxu1 %v13338_v32  ;;  %v1130_v32 = vrot.slane %v1128_v18, 4  ;;  %v591_v40 = vor.u32 %v589_v5, %v588_v29  ;;  %v593_v41 = vrot.slane %v588_v29, 4  ;;  %v6992_v48 = vld [vmem:[#allocation2 + $0x8] sm:$0x1]  ;;  %v6548_v49 = vrot.slane %v6546_v38, 5  ;;  %v451_v13 = vld [vmem:[%s14188_s17 + $0x20] sm:$0xff] }
  0x78   : > { %902 = vst [vmem:[#allocation2 + $0xc] sm:$0xf] %v901_v46  ;;  %v14271_v55 = vrot.slane %v6562_v39, 5  ;;  %v1679_v57 = vrot.slane %v1577_v47, 5  ;;  %v7088_v58 = vrot.slane %v14251_v30, 5  ;;  %v7091_v61 = vrot.slane %v6992_v48, 5 }
  0x79   : > { %12210 = vmatpush3.bf16.msra.mxu0 %v13339_v33  ;;  %v1133_v33 = vrot.slane %v1131_v19, 5  ;;  %v592_v52 = vsel %vm14257_vm14, %v584_v28, %v591_v40  ;;  %v905_v53 = vsel %vm14199_vm3, %v593_v41, %v904_v42  ;;  %v6549_v59 = vor.u32 %v6548_v49, %v6545_v45  ;;  %v399_v0 = vld [vmem:[#allocation2 + $0x20] sm:$0x1]  ;;  %v346_v7 = vld [vmem:[#allocation2 + $0x24] sm:$0x1]  ;;  %v13346_v37 = vld [vmem:[#allocation7 + $0x138] sm:$0xff]  }
  0x7a   : > { %12322 = vmatpush3.bf16.msra.mxu1 %v13340_v34  ;;  %12419 = vmatprep.subr.bf16.mxu0 %v13345_v62  ;;  %v1149_v34 = vrot.slane %v1147_v20, 5  ;;  %903 = vst [vmem:[#allocation2 + $0x10] sm:$0xf] %v592_v52  ;;  %906 = vst [vmem:[#allocation2 + $0x14] sm:$0x1] %v905_v53  ;;  %v595_v63 = vshrl.u32 %v14243_v21, 16  ;;  %v1680_v3 = vsel %vm14224_vm10, %v1678_v11, %v1679_v57 }
  0x7b   : > { %v1134_v43 = vor.u32 %v1133_v33, %v1130_v32  ;;  %v343_v62 = vld [vmem:[#allocation2 + $0x18] sm:$0x1]  ;;  %v7090_v4 = vrot.slane %v7088_v58, 4  ;;  %v598_v5 = vshll.u32 %v14243_v21, 16  ;;  %1819 = vst [vmem:[#allocation3 + $0x2c] sm:$0xf] %v1680_v3  ;;  %v6565_v26 = vsel %vm14247_vm13, %v14265_v51, %v14271_v55 }
  0x7c   : > { %v1150_v44 = vsel %vm14247_vm13, %v1145_v8, %v1149_v34  ;;  %v6550_v8 = vrot.slane %v6549_v59, 4  ;;  %v344_v9 = vsel %vm14199_vm3, 0, %v343_v62  ;;  %v597_v10 = vrot.slane %v595_v63, 7  ;;  %v452_v15 = vld [vmem:[%s14188_s17 + $0x28] sm:$0xff]  ;;  %v402_v19 = vld [vmem:[#allocation2 + $0x2c] sm:$0x1] }
  0x7d   : > { %1544 = vst [vmem:[#allocation3 + $0x28] sm:$0xf] %v1150_v44  ;;  %v1135_v54 = vrot.slane %v1134_v43, 4  ;;  %v603_v12 = vshrl.u32 %v14253_v31, 16  ;;  %345 = vst [vmem:[#allocation2 + $0x18] sm:$0x1] %v344_v9  ;;  %v14301_v28 = vsel %vm14224_vm10, %v11858_v6, %v7088_v58  ;;  %v14310_v33 = vsel %vm14224_vm10, %v7090_v4, %v7091_v61 }
  0x7e   : > { %v400_v11 = vsel %vm14204_vm4, 0, %v399_v0  ;;  %v347_v14 = vsel %vm14199_vm3, 0, %v346_v7  ;;  %v601_v16 = vrot.slane %v597_v10, 4  ;;  %v6430_v21 = vld [vmem:[#allocation2] sm:$0xf]  ;;  %v403_v30 = vsel %vm14204_vm4, 0, %v402_v19 }
  0x7f   : > { %v1140_v1 = vsel %vm14247_vm13, %v1135_v54, %v14215_v50  ;;  %v606_v50 = vshll.u32 %v14253_v31, 16  ;;  %v14291_v18 = vrot.slane %v603_v12, 7  ;;  %401 = vst [vmem:[#allocation2 + $0x20] sm:$0x1] %v400_v11  ;;  %348 = vst [vmem:[#allocation2 + $0x24] sm:$0x1] %v347_v14  ;;  %v6555_v31 = vsel %vm14247_vm13, %v6550_v8, %v14220_v56 }
  0x80   : > { %1543 = vst [vmem:[#allocation3 + $0x4] sm:$0xf] %v1140_v1  ;;  %v6431_v23 = vld [vmem:[#allocation2 + $0x4] sm:$0xf]  ;;  %v1850_v27 = vld [vmem:[#allocation2 + $0xc] sm:$0xf]  ;;  %v600_v35 = vor.u32 %v598_v5, %v597_v10  ;;  %v12134_v41 = vpack.c.bf16 %v451_v13, %v451_v13  ;;  %v14313_v42 = vpack.c.bf16 %v452_v15, %v452_v15 }
  0x81   : > { %v1014_v29 = vld [vmem:[#allocation2 + $0xc] sm:$0xf]  ;;  %v1851_v32 = vld [vmem:[#allocation2 + $0x10] sm:$0xf]  ;;  %1882 = vst [vmem:[#allocation3 + $0xc] sm:$0xf] %v1850_v27  ;;  %v608_v6 = vor.u32 %v606_v50, %v14291_v18 }
  0x82   : > { %v1015_v34 = vld [vmem:[#allocation2 + $0x10] sm:$0xf]  ;;  %1046 = vst [vmem:[#allocation3 + $0x48] sm:$0xf] %v1014_v29  ;;  %v1079_v2 = vld [vmem:[#allocation2 + $0xc] sm:$0xf] }
  0x83   : > { %404 = vst [vmem:[#allocation2 + $0x2c] sm:$0x1] %v403_v30  ;;  %1883 = vst [vmem:[#allocation3 + $0x30] sm:$0xf] %v1851_v32  ;;  %v1080_v38 = vld [vmem:[#allocation2 + $0x10] sm:$0xf]  ;;  %v609_v46 = vsel %vm14257_vm14, %v601_v16, %v608_v6 }
  0x84   : > { %v3520_v20 = vld [vmem:[#allocation3 + $0x24] sm:$0xff]  ;;  %1047 = vst [vmem:[#allocation3 + $0x6c] sm:$0xf] %v1015_v34  ;;  %v1081_v39 = vld [vmem:[#allocation2 + $0x14] sm:$0x1]  ;;  %v1152_v56 = vshrl.u32 %v1079_v2, 16 }
  0x85   : > { %v1155_v40 = vshll.u32 %v1079_v2, 16  ;;  %v1161_v43 = vshll.u32 %v1080_v38, 16  ;;  %v1165_v44 = vshrl.u32 %v1080_v38, 16  ;;  %v1171_v45 = vshll.u32 %v1081_v39, 16  ;;  %v1578_v47 = vld [vmem:[#allocation2 + $0xc] sm:$0xe] }
  0x86   : > { %v453_v48 = vld [vmem:[%s14188_s17 + $0x30] sm:$0xff]  ;;  %v1154_v52 = vrot.slane %v1152_v56, 4  ;;  %v610_v54 = vrot.slane %v14291_v18, 4  ;;  %910 = vst [vmem:[#allocation2 + $0x1c] sm:$0xf] %v609_v46  ;;  %v11561_v5 = vrot.slane %v1578_v47, 9 }
  0x87   : > { %v3515_v49 = vld [vmem:[#allocation3] sm:$0xff]  ;;  %v1157_v53 = vrot.slane %v1155_v40, 5  ;;  %v14319_v55 = vpack.c.bf16 %v453_v48, %v453_v48  ;;  %6463 = vst [vmem:[#allocation3 + $0x24] sm:$0xf] %v6431_v23  ;;  %v1163_v58 = vrot.slane %v1161_v43, 5  ;;  %v1167_v59 = vrot.slane %v1165_v44, 4 }
  0x88   : > { %v13341_v51 = vld [vmem:[#allocation3 + $0x4] ss:$36 sps:$4 sm:$0xff]   ;;  %6462 = vst [vmem:[#allocation3] sm:$0xf] %v6430_v21  ;;  %v11608_v57 = vcombine.low %v3515_v49, %v3520_v20  ;;  %v1173_v61 = vrot.slane %v1171_v45, 5  ;;  %v13357_v63 = vld [vmem:[#allocation7 + $0x170] sm:$0xff]  }
  0x89   : > { %6958 = vst [vmem:[#allocation3 + $0x4] sm:$0xf] %v6555_v31  ;;  %6959 = vst [vmem:[#allocation3 + $0x28] sm:$0xf] %v6565_v26  ;;  %v907_v62 = vld [vmem:[#allocation2 + $0x18] sm:$0xf]  ;;  %5019 = vmatprep.mubr.bf16.mxu0 %v13341_v51  ;;  %v1158_v0 = vor.u32 %v1157_v53, %v1154_v52  ;;  %v1168_v8 = vor.u32 %v1167_v59, %v1163_v58 }
  0x8a   : > { %v908_v1 = vsel %vm14239_vm12, %v600_v35, %v907_v62  ;;  %v1579_v3 = vld [vmem:[#allocation2 + $0x10] sm:$0xf]  ;;  %v1580_v4 = vld [vmem:[#allocation2 + $0x14] sm:$0x1]  ;;  %v612_v7 = vshrl.u32 %v12134_v41, 16  ;;  %5020 = vmatmul.mubr.bf16.vlgmr.msra.gmra.mxu0 %v11608_v57  ;;  %v615_v13 = vshll.u32 %v12134_v41, 16 }
  0x8b   : > { %909 = vst [vmem:[#allocation2 + $0x18] sm:$0xf] %v908_v1  ;;  %v1683_v9 = vrot.slane %v1579_v3, 5  ;;  %v1686_v10 = vrot.slane %v1580_v4, 5  ;;  %v911_v12 = vld [vmem:[#allocation2 + $0x20] sm:$0x1]  ;;  %12420 = vmatpush3.bf16.msra.mxu0 %v13346_v37 }
  0x8c   : > { %v13358_v50 = vld [vmem:[#allocation7 + $0x130] sm:$0xff]   ;;  %v3516_v11 = vld [vmem:[#allocation3 + $0x8] sm:$0xff]  ;;  %v1159_v14 = vrot.slane %v1158_v0, 4  ;;  %v912_v15 = vsel %vm14199_vm3, %v610_v54, %v911_v12  ;;  %v614_v16 = vrot.slane %v612_v7, 7  ;;  %v620_v18 = vshrl.u32 %v14313_v42, 16  ;;  %12421 = vmatprep.subr.bf16.mxu0 %v13357_v63  ;;  %v454_v53 = vld [vmem:[%s14188_s17 + $0x38] sm:$0xff] }
  0x8d   : > { %v914_v19 = vld [vmem:[#allocation2 + $0x24] sm:$0xf]  ;;  %v1169_v23 = vrot.slane %v1168_v8, 4  ;;  %v1684_v26 = vsel %vm14224_vm10, %v11561_v5, %v1683_v9  ;;  %v1685_v27 = vrot.slane %v1683_v9, 4  ;;  %913 = vst [vmem:[#allocation2 + $0x20] sm:$0x1] %v912_v15 }
  0x8e   : > { %v3521_v20 = vld [vmem:[#allocation3 + $0x2c] sm:$0xff]  ;;  %v623_v29 = vshll.u32 %v14313_v42, 16  ;;  %7230 = vst [vmem:[#allocation3 + $0x8] sm:$0xf] %v14301_v28  ;;  %v1164_v31 = vsel %vm14247_vm13, %v1159_v14, %v1163_v58  ;;  %1820 = vst [vmem:[#allocation3 + $0x50] sm:$0xf] %v1684_v26  ;;  %v617_v32 = vor.u32 %v615_v13, %v614_v16 }
  0x8f   : > { %v13343_v21 = vld [vmem:[#allocation3 + $0xc] ss:$36 sps:$4 sm:$0xff]   ;;  %7231 = vst [vmem:[#allocation3 + $0x2c] sm:$0xf] %v14310_v33  ;;  %v11610_v30 = vcombine.low %v3516_v11, %v3521_v20  ;;  %v618_v34 = vrot.slane %v614_v16, 4  ;;  %v1174_v35 = vsel %vm14247_vm13, %v1169_v23, %v1173_v61  ;;  %v1687_v6 = vsel %vm14224_vm10, %v1685_v27, %v1686_v10  ;;  %12422 = vmatpush3.bf16.msra.mxu0 %v13358_v50  ;;  %v13585_v60 = vld [vmem:[#allocation9 + $0xb8] sm:$0xff]  }
  0x90   : > { %v349_v2 = vld [vmem:[#allocation2 + $0x30] sm:$0x1]  ;;  %5180 = vmatprep.mubr.bf16.mxu1 %v13343_v21  ;;  %1545 = vst [vmem:[#allocation3 + $0x4c] sm:$0xf] %v1164_v31  ;;  %v1853_v37 = vld [vmem:[#allocation2 + $0x1c] sm:$0xf]  ;;  %v915_v40 = vsel %vm14239_vm12, %v617_v32, %v914_v19  ;;  %v12137_v20 = vpack.c.bf16 %v454_v53, %v454_v53 }
  0x91   : > { %v1017_v28 = vld [vmem:[#allocation2 + $0x1c] sm:$0xf]  ;;  %5181 = vmatmul.mubr.bf16.vlgmr.msra.gmra.mxu1 %v11610_v30  ;;  %1546 = vst [vmem:[#allocation3 + $0x70] sm:$0xf] %v1174_v35  ;;  %1821 = vst [vmem:[#allocation3 + $0x74] sm:$0xf] %v1687_v6 }
  0x92   : > { %v1083_v38 = vld [vmem:[#allocation2 + $0x1c] sm:$0xf]  ;;  %1885 = vst [vmem:[#allocation3 + $0x78] sm:$0xf] %v1853_v37  ;;  %1049 = vst [vmem:[#allocation3 + $0xb4] sm:$0xf] %v1017_v28 }
  0x93   : > { %v1185_v33 = vshll.u32 %v1083_v38, 16  ;;  %v1189_v39 = vshrl.u32 %v1083_v38, 16  ;;  %v622_v56 = vrot.slane %v620_v18, 7  ;;  %v1582_v41 = vld [vmem:[#allocation2 + $0x1c] sm:$0xf]  ;;  %v13369_v42 = vld [vmem:[#allocation7 + $0x168] sm:$0xff]  }
  0x94   : > { %916 = vst [vmem:[#allocation2 + $0x24] sm:$0xf] %v915_v40  ;;  %v1690_v43 = vrot.slane %v1582_v41, 5  ;;  %v918_v44 = vld [vmem:[#allocation2 + $0x2c] sm:$0x1]  ;;  %v350_v45 = vsel %vm14199_vm3, 0, %v349_v2  ;;  %12423 = vmatprep.subr.bf16.mxu0 %v13369_v42 }
  0x95   : > { %v629_v46 = vshrl.u32 %v14319_v55, 16  ;;  %v632_v47 = vshll.u32 %v14319_v55, 16  ;;  %v1852_v48 = vld [vmem:[#allocation2 + $0x18] sm:$0xf]  ;;  %v625_v52 = vor.u32 %v623_v29, %v622_v56  ;;  %351 = vst [vmem:[#allocation2 + $0x30] sm:$0x1] %v350_v45 }
  0x96   : > { %v1016_v49 = vld [vmem:[#allocation2 + $0x18] sm:$0xf]  ;;  %1884 = vst [vmem:[#allocation3 + $0x54] sm:$0xf] %v1852_v48  ;;  %v1187_v58 = vrot.slane %v1185_v33, 5  ;;  %v1191_v59 = vrot.slane %v1189_v39, 4 }
  0x97   : > { %v1082_v51 = vld [vmem:[#allocation2 + $0x18] sm:$0xf]  ;;  %1048 = vst [vmem:[#allocation3 + $0x90] sm:$0xf] %v1016_v49  ;;  %v1084_v62 = vld [vmem:[#allocation2 + $0x20] sm:$0x1]  ;;  %v626_v63 = vsel %vm14257_vm14, %v618_v34, %v625_v52 }
  0x98   : > { %v1176_v54 = vshrl.u32 %v1082_v51, 16  ;;  %v1179_v57 = vshll.u32 %v1082_v51, 16  ;;  %v1581_v61 = vld [vmem:[#allocation2 + $0x18] sm:$0xe]  ;;  %v627_v0 = vrot.slane %v622_v56, 4  ;;  %v1192_v7 = vor.u32 %v1191_v59, %v1187_v58  ;;  %v13370_v9 = vld [vmem:[#allocation7 + $0x128] sm:$0xff]  }
  0x99   : > { %v1583_v1 = vld [vmem:[#allocation2 + $0x20] sm:$0x1]  ;;  %v11562_v3 = vrot.slane %v1581_v61, 9  ;;  %v1195_v8 = vshll.u32 %v1084_v62, 16  ;;  %917 = vst [vmem:[#allocation2 + $0x28] sm:$0xf] %v626_v63  ;;  %12424 = vmatpush3.bf16.msra.mxu0 %v13370_v9 }
  0x9a   : > { %v1178_v4 = vrot.slane %v1176_v54, 4  ;;  %v1181_v5 = vrot.slane %v1179_v57, 5  ;;  %v3525_v10 = vld [vmem:[#allocation3 + $0x48] sm:$0xff]  ;;  %v1692_v13 = vrot.slane %v1690_v43, 4  ;;  %v1693_v50 = vrot.slane %v1583_v1, 5  ;;  %v455_v35 = vld [vmem:[%s14188_s17 + $0x40] sm:$0xff] }
  0x9b   : > { %v1691_v12 = vsel %vm14224_vm10, %v11562_v3, %v1690_v43  ;;  %v919_v11 = vsel %vm14199_vm3, %v627_v0, %v918_v44  ;;  %v3530_v14 = vld [vmem:[#allocation3 + $0x6c] sm:$0xff]  ;;  %v1193_v18 = vrot.slane %v1192_v7, 4  ;;  %v1197_v19 = vrot.slane %v1195_v8, 5  ;;  %v405_v54 = vld [vmem:[#allocation2 + $0x38] sm:$0x1]  ;;  %s13938_s13 = sshll.u32 %s14012_s22, 4  ;;  %s13939_s13 = int_to_ptr.vmem [resolvable:$false] %s13938_s13 }
  0x9c   : > { %v13347_v15 = vld [vmem:[#allocation3 + $0x4c] ss:$36 sps:$4 sm:$0xff]   ;;  %v1182_v16 = vor.u32 %v1181_v5, %v1178_v4  ;;  %1822 = vst [vmem:[#allocation3 + $0x98] sm:$0xf] %v1691_v12  ;;  %920 = vst [vmem:[#allocation2 + $0x2c] sm:$0x1] %v919_v11  ;;  %v11617_v21 = vcombine.low %v3525_v10, %v3530_v14  ;;  %v1694_v23 = vsel %vm14224_vm10, %v1692_v13, %v1693_v50  ;;  %p13941_p6 = scmp.lt.s32.totalorder %s16794_s9, %s13939_s13 }
  0x9d   : > { %v1854_v26 = vld [vmem:[#allocation2 + $0x24] sm:$0xf]  ;;  %5027 = vmatprep.mubr.bf16.mxu0 %v13347_v15  ;;  %v1198_v31 = vsel %vm14247_vm13, %v1193_v18, %v1197_v19  ;;  %1823 = vst [vmem:[#allocation3 + $0xbc] sm:$0xf] %v1694_v23  ;;  %v921_v2 = vld [vmem:[#allocation2 + $0x30] sm:$0xf]  ;;  %v14360_v48 = vpack.c.bf16 %v455_v35, %v455_v35 }
  0x9e   : > { %v1018_v27 = vld [vmem:[#allocation2 + $0x24] sm:$0xf]  ;;  %v1183_v30 = vrot.slane %v1182_v16, 4  ;;  %1886 = vst [vmem:[#allocation3 + $0x9c] sm:$0xf] %v1854_v26  ;;  %5028 = vmatmul.mubr.bf16.gmra.mxu0 %v11617_v21  ;;  %v631_v28 = vrot.slane %v629_v46, 7 }
  0x9f   : > { %v1085_v29 = vld [vmem:[#allocation2 + $0x24] sm:$0xf]  ;;  %1050 = vst [vmem:[#allocation3 + $0xd8] sm:$0xf] %v1018_v27  ;;  %v13349_v6 = vld [vmem:[#allocation3 + $0x54] ss:$36 sps:$4 sm:$0xff]  }
  0xa0   : > { %v1200_v32 = vshrl.u32 %v1085_v29, 16  ;;  %v1203_v34 = vshll.u32 %v1085_v29, 16  ;;  %v13351_v37 = vld [vmem:[#allocation3 + $0x50] ss:$36 sps:$4 sm:$0xff]   ;;  %1548 = vst [vmem:[#allocation3 + $0xb8] sm:$0xf] %v1198_v31  ;;  %v1188_v38 = vsel %vm14247_vm13, %v1183_v30, %v1187_v58  ;;  %5188 = vmatprep.mubr.bf16.mxu1 %v13349_v6  ;;  %v634_v45 = vor.u32 %v632_v47, %v631_v28 }
  0xa1   : > { %v637_v56 = vshrl.u32 %v12137_v20, 16  ;;  %v1584_v40 = vld [vmem:[#allocation2 + $0x24] sm:$0xe]  ;;  %1547 = vst [vmem:[#allocation3 + $0x94] sm:$0xf] %v1188_v38  ;;  %5189 = vmatmul.mubr.bf16.gmra.mxu1 %v13351_v37  ;;  %v635_v52 = vrot.slane %v631_v28, 4 }
  0xa2   : > { %v1202_v33 = vrot.slane %v1200_v32, 4  ;;  %v1205_v39 = vrot.slane %v1203_v34, 5  ;;  %v456_v41 = vld [vmem:[%s14188_s17 + $0x48] sm:$0xff]  ;;  %v1855_v42 = vld [vmem:[#allocation2 + $0x28] sm:$0xf]  ;;  %v640_v59 = vshll.u32 %v12137_v20, 16  ;;  %v922_v55 = vsel %vm14239_vm12, %v634_v45, %v921_v2 }
  0xa3   : > { %v1019_v43 = vld [vmem:[#allocation2 + $0x28] sm:$0xf]  ;;  %1887 = vst [vmem:[#allocation3 + $0xc0] sm:$0xf] %v1855_v42  ;;  %v1087_v57 = vld [vmem:[#allocation2 + $0x2c] sm:$0x1]  ;;  %v14366_v62 = vpack.c.bf16 %v456_v41, %v456_v41 }
  0xa4   : > { %v1086_v44 = vld [vmem:[#allocation2 + $0x28] sm:$0xf]  ;;  %1051 = vst [vmem:[#allocation3 + $0xfc] sm:$0xf] %v1019_v43  ;;  %v1206_v46 = vor.u32 %v1205_v39, %v1202_v33  ;;  %v14362_v58 = vrot.slane %v637_v56, 7  ;;  %v1219_v3 = vshll.u32 %v1087_v57, 16 }
  0xa5   : > { %v1209_v49 = vshll.u32 %v1086_v44, 16  ;;  %v1213_v51 = vshrl.u32 %v1086_v44, 16  ;;  %v1585_v53 = vld [vmem:[#allocation2 + $0x28] sm:$0xf]  ;;  %v1586_v47 = vld [vmem:[#allocation2 + $0x2c] sm:$0x1] }
  0xa6   : > { %v352_v61 = vld [vmem:[#allocation2 + $0x3c] sm:$0x1]  ;;  %v1207_v63 = vrot.slane %v1206_v46, 4  ;;  %923 = vst [vmem:[#allocation2 + $0x30] sm:$0xf] %v922_v55  ;;  %v457_v4 = vld [vmem:[%s14188_s17 + $0x50] sm:$0xff]  ;;  %v642_v5 = vor.u32 %v640_v59, %v14362_v58 }
  0xa7   : > { %v1211_v0 = vrot.slane %v1209_v49, 5  ;;  %v1215_v1 = vrot.slane %v1213_v51, 4  ;;  %v644_v7 = vrot.slane %v14362_v58, 4  ;;  %v11563_v8 = vrot.slane %v1584_v40, 9  ;;  %v3540_v10 = vld [vmem:[#allocation3 + $0xb4] sm:$0xff]  ;;  %v13381_v14 = vld [vmem:[#allocation7 + $0x160] sm:$0xff]  }
  0xa8   : > { %v1697_v9 = vrot.slane %v1585_v53, 5  ;;  %v1221_v50 = vrot.slane %v1219_v3, 5  ;;  %v1700_v11 = vrot.slane %v1586_v47, 5  ;;  %v643_v15 = vsel %vm14257_vm14, %v635_v52, %v642_v5  ;;  %v3535_v20 = vld [vmem:[#allocation3 + $0x90] sm:$0xff]  ;;  %v408_v29 = vld [vmem:[#allocation2 + $0x44] sm:$0x1]  ;;  %12425 = vmatprep.subr.bf16.mxu0 %v13381_v14 }
  0xa9   : > { %v1212_v12 = vsel %vm14247_vm13, %v1207_v63, %v1211_v0  ;;  %v1216_v13 = vor.u32 %v1215_v1, %v1211_v0  ;;  %v406_v19 = vsel %vm14204_vm4, 0, %v405_v54  ;;  %v13352_v21 = vld [vmem:[#allocation3 + $0x94] ss:$36 sps:$4 sm:$0xff]   ;;  %924 = vst [vmem:[#allocation2 + $0x34] sm:$0xf] %v643_v15  ;;  %v353_v26 = vsel %vm14199_vm3, 0, %v352_v61 }
  0xaa   : > { %1549 = vst [vmem:[#allocation3 + $0xdc] sm:$0xf] %v1212_v12  ;;  %v1698_v16 = vsel %vm14224_vm10, %v11563_v8, %v1697_v9  ;;  %v1699_v18 = vrot.slane %v1697_v9, 4  ;;  %407 = vst [vmem:[#allocation2 + $0x38] sm:$0x1] %v406_v19  ;;  %v646_v27 = vshrl.u32 %v14360_v48, 16  ;;  %v11626_v31 = vcombine.low %v3535_v20, %v3540_v10  ;;  %5035 = vmatprep.mubr.bf16.mxu0 %v13352_v21 }
  0xab   : > { %v1217_v23 = vrot.slane %v1216_v13, 4  ;;  %1824 = vst [vmem:[#allocation3 + $0xe0] sm:$0xf] %v1698_v16  ;;  %v13354_v30 = vld [vmem:[#allocation3 + $0x9c] ss:$36 sps:$4 sm:$0xff]   ;;  %v649_v2 = vshll.u32 %v14360_v48, 16  ;;  %v14385_v35 = vpack.c.bf16 %v457_v4, %v457_v4 }
  0xac   : > { %v13356_v32 = vld [vmem:[#allocation3 + $0x98] ss:$36 sps:$4 sm:$0xff]   ;;  %v1701_v34 = vsel %vm14224_vm10, %v1699_v18, %v1700_v11  ;;  %354 = vst [vmem:[#allocation2 + $0x3c] sm:$0x1] %v353_v26  ;;  %v648_v37 = vrot.slane %v646_v27, 7  ;;  %v654_v28 = vshrl.u32 %v14366_v62, 16  ;;  %5196 = vmatprep.mubr.bf16.mxu1 %v13354_v30  ;;  %5036 = vmatmul.mubr.bf16.gmra.mxu0 %v11626_v31 }
  0xad   : > { %v1222_v6 = vsel %vm14247_vm13, %v1217_v23, %v1221_v50  ;;  %1825 = vst [vmem:[#allocation3 + $0x104] sm:$0xf] %v1701_v34  ;;  %v657_v38 = vshll.u32 %v14366_v62, 16  ;;  %v355_v33 = vld [vmem:[#allocation2 + $0x48] sm:$0x1]  ;;  %v458_v39 = vld [vmem:[%s14188_s17 + $0x58] sm:$0xff]  ;;  %5197 = vmatmul.mubr.bf16.gmra.mxu1 %v13356_v32 }
  0xae   : > { %v13382_v56 = vld [vmem:[#allocation7 + $0x120] sm:$0xff]   ;;  %1550 = vst [vmem:[#allocation3 + $0x100] sm:$0xf] %v1222_v6  ;;  %v1856_v40 = vld [vmem:[#allocation2 + $0x30] sm:$0xf]  ;;  %v651_v45 = vor.u32 %v649_v2, %v648_v37  ;;  %v652_v48 = vrot.slane %v648_v37, 4  ;;  %v12141_v3 = vpack.c.bf16 %v458_v39, %v458_v39 }
  0xaf   : > { %v1020_v41 = vld [vmem:[#allocation2 + $0x30] sm:$0xf]  ;;  %1888 = vst [vmem:[#allocation3 + $0xe4] sm:$0xf] %v1856_v40  ;;  %v459_v49 = vld [vmem:[%s14188_s17 + $0x60] sm:$0xff]  ;;  %12426 = vmatpush3.bf16.msra.mxu0 %v13382_v56  ;;  %v656_v51 = vrot.slane %v654_v28, 7 }
  0xb0   : > { %v1088_v42 = vld [vmem:[#allocation2 + $0x30] sm:$0xf]  ;;  %1052 = vst [vmem:[#allocation3 + $0x120] sm:$0xf] %v1020_v41  ;;  %v409_v53 = vsel %vm14204_vm4, 0, %v408_v29  ;;  %v356_v54 = vsel %vm14199_vm3, 0, %v355_v33  ;;  %v14399_v5 = vpack.c.bf16 %v459_v49, %v459_v49 }
  0xb1   : > { %v1224_v43 = vshrl.u32 %v1088_v42, 16  ;;  %v1227_v44 = vshll.u32 %v1088_v42, 16  ;;  %v1587_v46 = vld [vmem:[#allocation2 + $0x30] sm:$0xe]  ;;  %410 = vst [vmem:[#allocation2 + $0x44] sm:$0x1] %v409_v53  ;;  %v659_v1 = vor.u32 %v657_v38, %v656_v51 }
  0xb2   : > { %v11564_v52 = vrot.slane %v1587_v46, 9  ;;  %v3545_v57 = vld [vmem:[#allocation3 + $0xd8] sm:$0xff]  ;;  %357 = vst [vmem:[#allocation2 + $0x48] sm:$0x1] %v356_v54  ;;  %v663_v47 = vshrl.u32 %v14385_v35, 16  ;;  %v666_v61 = vshll.u32 %v14385_v35, 16 }
  0xb3   : > { %v1226_v59 = vrot.slane %v1224_v43, 4  ;;  %v1229_v55 = vrot.slane %v1227_v44, 5  ;;  %v1857_v62 = vld [vmem:[#allocation2 + $0x34] sm:$0xf]  ;;  %v925_v63 = vld [vmem:[#allocation2 + $0x38] sm:$0x1]  ;;  %v660_v16 = vsel %vm14257_vm14, %v652_v48, %v659_v1 }
  0xb4   : > { %v1021_v0 = vld [vmem:[#allocation2 + $0x34] sm:$0xf]  ;;  %v411_v4 = vld [vmem:[#allocation2 + $0x50] sm:$0x1]  ;;  %1889 = vst [vmem:[#allocation3 + $0x108] sm:$0xf] %v1857_v62  ;;  %v926_v8 = vsel %vm14199_vm3, %v644_v7, %v925_v63 }
  0xb5   : > { %1053 = vst [vmem:[#allocation3 + $0x144] sm:$0xf] %v1021_v0  ;;  %v1089_v9 = vld [vmem:[#allocation2 + $0x34] sm:$0xf]  ;;  %v1230_v10 = vor.u32 %v1229_v55, %v1226_v59  ;;  %v661_v12 = vrot.slane %v656_v51, 4  ;;  %v665_v50 = vrot.slane %v663_v47, 7 }
  0xb6   : > { %v928_v13 = vld [vmem:[#allocation2 + $0x3c] sm:$0xf]  ;;  %v358_v11 = vld [vmem:[#allocation2 + $0x54] sm:$0x1]  ;;  %927 = vst [vmem:[#allocation2 + $0x38] sm:$0x1] %v926_v8 }
  0xb7   : > { %v1233_v14 = vshll.u32 %v1089_v9, 16  ;;  %v1237_v15 = vshrl.u32 %v1089_v9, 16  ;;  %v929_v18 = vsel %vm14239_vm12, %v651_v45, %v928_v13  ;;  %v1588_v58 = vld [vmem:[#allocation2 + $0x34] sm:$0xf]  ;;  %v1231_v7 = vrot.slane %v1230_v10, 4  ;;  %v460_v46 = vld [vmem:[%s14188_s17 + $0x68] sm:$0xff] }
  0xb8   : > { %v3550_v19 = vld [vmem:[#allocation3 + $0xfc] sm:$0xff]  ;;  %930 = vst [vmem:[#allocation2 + $0x3c] sm:$0xf] %v929_v18  ;;  %931 = vst [vmem:[#allocation2 + $0x40] sm:$0xf] %v660_v16  ;;  %v1704_v21 = vrot.slane %v1588_v58, 5  ;;  %v668_v23 = vor.u32 %v666_v61, %v665_v50  ;;  %v14430_v13 = vpack.c.bf16 %v460_v46, %v460_v46 }
  0xb9   : > { %v13359_v20 = vld [vmem:[#allocation3 + $0xdc] ss:$36 sps:$4 sm:$0xff]   ;;  %v669_v26 = vrot.slane %v665_v50, 4  ;;  %v11635_v27 = vcombine.low %v3545_v57, %v3550_v19  ;;  %v1235_v29 = vrot.slane %v1233_v14, 5  ;;  %v1239_v30 = vrot.slane %v1237_v15, 4  ;;  %s13940_s19 = scalar_lea.vmem %s13939_s13, 8192 }
  0xba   : > { %v671_v31 = vshrl.u32 %v12141_v3, 16  ;;  %5043 = vmatprep.mubr.bf16.mxu0 %v13359_v20  ;;  %v1705_v32 = vsel %vm14224_vm10, %v11564_v52, %v1704_v21  ;;  %v1706_v34 = vrot.slane %v1704_v21, 4  ;;  %v674_v2 = vshll.u32 %v12141_v3, 16  ;;  %v932_v28 = vld [vmem:[#allocation2 + $0x44] sm:$0x1]  ;;  %v461_v21 = vld [vmem:[%s14188_s17 + $0x70] sm:$0xff]  ;;  %p13942_p12 = scmp.lt.s32.totalorder %s13940_s19, %s13934_s28 }
  0xbb   : > { %v412_v35 = vsel %vm14204_vm4, 0, %v411_v4  ;;  %5044 = vmatmul.mubr.bf16.gmra.mxu0 %v11635_v27  ;;  %v1236_v6 = vsel %vm14247_vm13, %v1231_v7, %v1235_v29  ;;  %v1240_v37 = vor.u32 %v1239_v30, %v1235_v29  ;;  %1826 = vst [vmem:[#allocation3 + $0x128] sm:$0xf] %v1705_v32  ;;  %v935_v33 = vld [vmem:[#allocation2 + $0x48] sm:$0xf]  ;;  %v359_v39 = vsel %vm14199_vm3, 0, %v358_v11 }
  0xbc   : > { %v673_v38 = vrot.slane %v671_v31, 7  ;;  %413 = vst [vmem:[#allocation2 + $0x50] sm:$0x1] %v412_v35  ;;  %1551 = vst [vmem:[#allocation3 + $0x124] sm:$0xf] %v1236_v6  ;;  %v933_v56 = vsel %vm14199_vm3, %v661_v12, %v932_v28  ;;  %v936_v40 = vsel %vm14239_vm12, %v668_v23, %v935_v33  ;;  %v680_v41 = vshrl.u32 %v14399_v5, 16  ;;  %p13943_p7 = por %p13942_p12, %p13941_p6 }
  0xbd   : > { %360 = vst [vmem:[#allocation2 + $0x54] sm:$0x1] %v359_v39  ;;  %v683_v42 = vshll.u32 %v14399_v5, 16  ;;  %v13361_v43 = vld [vmem:[#allocation3 + $0xe4] ss:$36 sps:$4 sm:$0xff]   ;;  %v1241_v45 = vrot.slane %v1240_v37, 4 }
  0xbe   : > { %v13363_v44 = vld [vmem:[#allocation3 + $0xe0] ss:$36 sps:$4 sm:$0xff]   ;;  %934 = vst [vmem:[#allocation2 + $0x44] sm:$0x1] %v933_v56  ;;  %v676_v48 = vor.u32 %v674_v2, %v673_v38  ;;  %937 = vst [vmem:[#allocation2 + $0x48] sm:$0xf] %v936_v40  ;;  %5204 = vmatprep.mubr.bf16.mxu1 %v13361_v43  ;;  %p13944_p9 = pnand %p13943_p7, %p13937_p2 }
  0xbf   : > { %v1090_v49 = vld [vmem:[#allocation2 + $0x38] sm:$0x1]  ;;  %v678_v52 = vrot.slane %v673_v38, 4  ;;  %v14424_v53 = vrot.slane %v680_v41, 7  ;;  %v1858_v59 = vld [vmem:[#allocation2 + $0x3c] sm:$0xf]  ;;  %5205 = vmatmul.mubr.bf16.gmra.mxu1 %v13363_v44 }
  0xc0   : > { %v1589_v51 = vld [vmem:[#allocation2 + $0x38] sm:$0x1]  ;;  %v1243_v54 = vshll.u32 %v1090_v49, 16  ;;  %v1859_v55 = vld [vmem:[#allocation2 + $0x40] sm:$0xf]  ;;  %v677_v47 = vsel %vm14257_vm14, %v669_v26, %v676_v48  ;;  %v13393_v31 = vld [vmem:[#allocation7 + $0x158] sm:$0xff]  }
  0xc1   : > { %v1707_v57 = vrot.slane %v1589_v51, 5  ;;  %1890 = vst [vmem:[#allocation3 + $0x12c] sm:$0xf] %v1858_v59  ;;  %1891 = vst [vmem:[#allocation3 + $0x150] sm:$0xf] %v1859_v55  ;;  %v685_v35 = vor.u32 %v683_v42, %v14424_v53  ;;  %v686_v6 = vrot.slane %v14424_v53, 4  ;;  %12427 = vmatprep.subr.bf16.mxu0 %v13393_v31 }
  0xc2   : > { %v1022_v61 = vld [vmem:[#allocation2 + $0x3c] sm:$0xf]  ;;  %v1023_v62 = vld [vmem:[#allocation2 + $0x40] sm:$0xf]  ;;  %938 = vst [vmem:[#allocation2 + $0x4c] sm:$0xf] %v677_v47 }
  0xc3   : > { %v1091_v63 = vld [vmem:[#allocation2 + $0x3c] sm:$0xf]  ;;  %v1245_v0 = vrot.slane %v1243_v54, 5  ;;  %v1708_v1 = vsel %vm14224_vm10, %v1706_v34, %v1707_v57  ;;  %1054 = vst [vmem:[#allocation3 + $0x168] sm:$0xf] %v1022_v61  ;;  %v688_v37 = vshrl.u32 %v14430_v13, 16  ;;  %v14447_v54 = vpack.c.bf16 %v461_v21, %v461_v21 }
  0xc4   : > { %1055 = vst [vmem:[#allocation3 + $0x18c] sm:$0xf] %v1023_v62  ;;  %v1092_v3 = vld [vmem:[#allocation2 + $0x40] sm:$0xf]  ;;  %v1248_v4 = vshrl.u32 %v1091_v63, 16  ;;  %v1251_v5 = vshll.u32 %v1091_v63, 16 }
  0xc5   : > { %1827 = vst [vmem:[#allocation3 + $0x14c] sm:$0xf] %v1708_v1  ;;  %v1257_v8 = vshll.u32 %v1092_v3, 16  ;;  %v1261_v9 = vshrl.u32 %v1092_v3, 16  ;;  %v1590_v10 = vld [vmem:[#allocation2 + $0x3c] sm:$0xe]  ;;  %v1246_v50 = vsel %vm14247_vm13, %v1241_v45, %v1245_v0 }
  0xc6   : > { %v1591_v12 = vld [vmem:[#allocation2 + $0x40] sm:$0xf]  ;;  %v1250_v11 = vrot.slane %v1248_v4, 4  ;;  %v1253_v14 = vrot.slane %v1251_v5, 5  ;;  %v11565_v15 = vrot.slane %v1590_v10, 9  ;;  %v3555_v28 = vld [vmem:[#allocation3 + $0x120] sm:$0xff] }
  0xc7   : > { %v939_v16 = vld [vmem:[#allocation2 + $0x50] sm:$0x1]  ;;  %1552 = vst [vmem:[#allocation3 + $0x148] sm:$0xf] %v1246_v50  ;;  %v1093_v18 = vld [vmem:[#allocation2 + $0x44] sm:$0x1] }
  0xc8   : > { %v1259_v58 = vrot.slane %v1257_v8, 5  ;;  %v1263_v19 = vrot.slane %v1261_v9, 4  ;;  %v1592_v20 = vld [vmem:[#allocation2 + $0x44] sm:$0x1]  ;;  %v940_v7 = vsel %vm14199_vm3, %v678_v52, %v939_v16  ;;  %v1254_v23 = vor.u32 %v1253_v14, %v1250_v11  ;;  %v1860_v30 = vld [vmem:[#allocation2 + $0x48] sm:$0xf] }
  0xc9   : > { %v1267_v26 = vshll.u32 %v1093_v18, 16  ;;  %v1711_v27 = vrot.slane %v1591_v12, 5  ;;  %v1714_v29 = vrot.slane %v1592_v20, 5  ;;  %941 = vst [vmem:[#allocation2 + $0x50] sm:$0x1] %v940_v7  ;;  %v462_v41 = vld [vmem:[%s14188_s17 + $0x78] sm:$0xff] }
  0xca   : > { %v1264_v32 = vor.u32 %v1263_v19, %v1259_v58  ;;  %1892 = vst [vmem:[#allocation3 + $0x174] sm:$0xf] %v1860_v30  ;;  %v1024_v34 = vld [vmem:[#allocation2 + $0x48] sm:$0xf]  ;;  %v1255_v38 = vrot.slane %v1254_v23, 4  ;;  %v13394_v63 = vld [vmem:[#allocation7 + $0x118] sm:$0xff]   ;;  %v14456_v14 = vpack.c.bf16 %v462_v41, %v462_v41 }
  0xcb   : > { %v1094_v2 = vld [vmem:[#allocation2 + $0x48] sm:$0xf]  ;;  %v1269_v33 = vrot.slane %v1267_v26, 5  ;;  %v1712_v39 = vsel %vm14224_vm10, %v11565_v15, %v1711_v27  ;;  %v1713_v56 = vrot.slane %v1711_v27, 4  ;;  %v1861_v40 = vld [vmem:[#allocation2 + $0x4c] sm:$0xf]  ;;  %12428 = vmatpush3.bf16.msra.mxu0 %v13394_v63 }
  0xcc   : > { %1056 = vst [vmem:[#allocation3 + $0x1b0] sm:$0xf] %v1024_v34  ;;  %v1265_v43 = vrot.slane %v1264_v32, 4  ;;  %1828 = vst [vmem:[#allocation3 + $0x170] sm:$0xf] %v1712_v39  ;;  %v1272_v45 = vshrl.u32 %v1094_v2, 16  ;;  %v1260_v49 = vsel %vm14247_vm13, %v1255_v38, %v1259_v58 }
  0xcd   : > { %1893 = vst [vmem:[#allocation3 + $0x198] sm:$0xf] %v1861_v40  ;;  %v1025_v44 = vld [vmem:[#allocation2 + $0x4c] sm:$0xf]  ;;  %v13366_v48 = vld [vmem:[#allocation3 + $0x12c] ss:$36 sps:$4 sm:$0xff]   ;;  %v1715_v51 = vsel %vm14224_vm10, %v1713_v56, %v1714_v29 }
  0xce   : > { %v1095_v42 = vld [vmem:[#allocation2 + $0x4c] sm:$0xf]  ;;  %v13368_v46 = vld [vmem:[#allocation3 + $0x128] ss:$36 sps:$4 sm:$0xff]   ;;  %1057 = vst [vmem:[#allocation3 + $0x1d4] sm:$0xf] %v1025_v44  ;;  %v1270_v57 = vsel %vm14247_vm13, %v1265_v43, %v1269_v33  ;;  %5212 = vmatprep.mubr.bf16.mxu1 %v13366_v48 }
  0xcf   : > { %v1275_v52 = vshll.u32 %v1094_v2, 16  ;;  %1553 = vst [vmem:[#allocation3 + $0x16c] sm:$0xf] %v1260_v49  ;;  %1829 = vst [vmem:[#allocation3 + $0x194] sm:$0xf] %v1715_v51  ;;  %v1274_v59 = vrot.slane %v1272_v45, 4  ;;  %5213 = vmatmul.mubr.bf16.gmra.mxu1 %v13368_v46 }
  0xd0   : > { %v1281_v55 = vshll.u32 %v1095_v42, 16  ;;  %v1285_v47 = vshrl.u32 %v1095_v42, 16  ;;  %v942_v61 = vld [vmem:[#allocation2 + $0x54] sm:$0xf]  ;;  %v414_v62 = vld [vmem:[#allocation2 + $0x5c] sm:$0x1] }
  0xd1   : > { %v3560_v0 = vld [vmem:[#allocation3 + $0x144] sm:$0xff]  ;;  %1554 = vst [vmem:[#allocation3 + $0x190] sm:$0xf] %v1270_v57  ;;  %v1277_v3 = vrot.slane %v1275_v52, 5  ;;  %v14451_v4 = vrot.slane %v688_v37, 7  ;;  %v691_v5 = vshll.u32 %v14430_v13, 16  ;;  %v943_v8 = vsel %vm14239_vm12, %v685_v35, %v942_v61 }
  0xd2   : > { %v13364_v1 = vld [vmem:[#allocation3 + $0x124] ss:$36 sps:$4 sm:$0xff]   ;;  %v11644_v9 = vcombine.low %v3555_v28, %v3560_v0  ;;  %v1096_v10 = vld [vmem:[#allocation2 + $0x50] sm:$0x1]  ;;  %v1283_v12 = vrot.slane %v1281_v55, 5  ;;  %v1287_v50 = vrot.slane %v1285_v47, 4 }
  0xd3   : > { %944 = vst [vmem:[#allocation2 + $0x54] sm:$0xf] %v943_v8  ;;  %v1593_v11 = vld [vmem:[#allocation2 + $0x48] sm:$0xe]  ;;  %5051 = vmatprep.mubr.bf16.mxu0 %v13364_v1  ;;  %v1278_v15 = vor.u32 %v1277_v3, %v1274_v59  ;;  %v1291_v16 = vshll.u32 %v1096_v10, 16  ;;  %v693_v18 = vor.u32 %v691_v5, %v14451_v4  ;;  %v695_v13 = vrot.slane %v14451_v4, 4 }
  0xd4   : > { %v1594_v58 = vld [vmem:[#allocation2 + $0x4c] sm:$0xf]  ;;  %v1595_v19 = vld [vmem:[#allocation2 + $0x50] sm:$0x1]  ;;  %5052 = vmatmul.mubr.bf16.gmra.mxu0 %v11644_v9  ;;  %v1288_v20 = vor.u32 %v1287_v50, %v1283_v12  ;;  %v11566_v7 = vrot.slane %v1593_v11, 9  ;;  %v415_v31 = vsel %vm14204_vm4, 0, %v414_v62 }
  0xd5   : > { %v1718_v21 = vrot.slane %v1594_v58, 5  ;;  %v1721_v23 = vrot.slane %v1595_v19, 5  ;;  %v361_v26 = vld [vmem:[#allocation2 + $0x60] sm:$0x1]  ;;  %v1279_v27 = vrot.slane %v1278_v15, 4  ;;  %v1293_v29 = vrot.slane %v1291_v16, 5 }
  0xd6   : > { %v694_v30 = vsel %vm14257_vm14, %v686_v6, %v693_v18  ;;  %v1289_v32 = vrot.slane %v1288_v20, 4  ;;  %416 = vst [vmem:[#allocation2 + $0x5c] sm:$0x1] %v415_v31  ;;  %v362_v35 = vsel %vm14199_vm3, 0, %v361_v26  ;;  %v417_v37 = vld [vmem:[#allocation2 + $0x68] sm:$0x1] }
  0xd7   : > { %945 = vst [vmem:[#allocation2 + $0x58] sm:$0xf] %v694_v30  ;;  %v1719_v34 = vsel %vm14224_vm10, %v11566_v7, %v1718_v21  ;;  %v1720_v2 = vrot.slane %v1718_v21, 4  ;;  %v364_v28 = vld [vmem:[#allocation2 + $0x6c] sm:$0x1]  ;;  %v463_v53 = vld [vmem:[%s14188_s17 + $0x80] sm:$0xff]  ;;  %v1284_v6 = vsel %vm14247_vm13, %v1279_v27, %v1283_v12 }
  0xd8   : > { %v3565_v38 = vld [vmem:[#allocation3 + $0x168] sm:$0xff]  ;;  %v13373_v33 = vld [vmem:[#allocation3 + $0x174] ss:$36 sps:$4 sm:$0xff]   ;;  %1830 = vst [vmem:[#allocation3 + $0x1b8] sm:$0xf] %v1719_v34  ;;  %v697_v39 = vshrl.u32 %v14447_v54, 16  ;;  %v1294_v44 = vsel %vm14247_vm13, %v1289_v32, %v1293_v29 }
  0xd9   : > { %363 = vst [vmem:[#allocation2 + $0x60] sm:$0x1] %v362_v35  ;;  %v700_v56 = vshll.u32 %v14447_v54, 16  ;;  %v3570_v40 = vld [vmem:[#allocation3 + $0x18c] sm:$0xff]  ;;  %1555 = vst [vmem:[#allocation3 + $0x1b4] sm:$0xf] %v1284_v6  ;;  %v1722_v42 = vsel %vm14224_vm10, %v1720_v2, %v1721_v23  ;;  %5220 = vmatprep.mubr.bf16.mxu1 %v13373_v33  ;;  %v14481_v54 = vpack.c.bf16 %v463_v53, %v463_v53 }
  0xda   : > { %v13371_v41 = vld [vmem:[#allocation3 + $0x16c] ss:$36 sps:$4 sm:$0xff]   ;;  %v705_v45 = vshrl.u32 %v14456_v14, 16  ;;  %v11653_v46 = vcombine.low %v3565_v38, %v3570_v40  ;;  %1556 = vst [vmem:[#allocation3 + $0x1d8] sm:$0xf] %v1294_v44  ;;  %v699_v55 = vrot.slane %v697_v39, 7 }
  0xdb   : > { %v13375_v43 = vld [vmem:[#allocation3 + $0x170] ss:$36 sps:$4 sm:$0xff]   ;;  %v464_v48 = vld [vmem:[%s14188_s17 + $0x88] sm:$0xff]  ;;  %1831 = vst [vmem:[#allocation3 + $0x1dc] sm:$0xf] %v1722_v42  ;;  %5059 = vmatprep.mubr.bf16.mxu0 %v13371_v41  ;;  %v708_v62 = vshll.u32 %v14456_v14, 16 }
  0xdc   : > { %v1862_v49 = vld [vmem:[#allocation2 + $0x54] sm:$0xf]  ;;  %5221 = vmatmul.mubr.bf16.gmra.mxu1 %v13375_v43  ;;  %v14483_v47 = vrot.slane %v705_v45, 7  ;;  %v418_v0 = vsel %vm14204_vm4, 0, %v417_v37  ;;  %v365_v1 = vsel %vm14199_vm3, 0, %v364_v28  ;;  %5060 = vmatmul.mubr.bf16.gmra.mxu0 %v11653_v46  ;;  %v702_v8 = vor.u32 %v700_v56, %v699_v55  ;;  %v465_v10 = vld [vmem:[%s14188_s17 + $0x90] sm:$0xff] }
  0xdd   : > { %v1026_v51 = vld [vmem:[#allocation2 + $0x54] sm:$0xf]  ;;  %1894 = vst [vmem:[#allocation3 + $0x1bc] sm:$0xf] %v1862_v49  ;;  %v703_v9 = vrot.slane %v699_v55, 4  ;;  %v12147_v15 = vpack.c.bf16 %v464_v48, %v464_v48  ;;  %v714_v7 = vshrl.u32 %v14481_v54, 16  ;;  %v14502_v2 = vpack.c.bf16 %v465_v10, %v465_v10 }
  0xde   : > { %v1097_v52 = vld [vmem:[#allocation2 + $0x54] sm:$0xf]  ;;  %1058 = vst [vmem:[#allocation3 + $0x1f8] sm:$0xf] %v1026_v51  ;;  %419 = vst [vmem:[#allocation2 + $0x68] sm:$0x1] %v418_v0  ;;  %v710_v14 = vor.u32 %v708_v62, %v14483_v47 }
  0xdf   : > { %v1296_v57 = vshrl.u32 %v1097_v52, 16  ;;  %v1299_v59 = vshll.u32 %v1097_v52, 16  ;;  %v1596_v61 = vld [vmem:[#allocation2 + $0x54] sm:$0xe]  ;;  %366 = vst [vmem:[#allocation2 + $0x6c] sm:$0x1] %v365_v1 }
  0xe0   : > { %v11567_v63 = vrot.slane %v1596_v61, 9  ;;  %v1863_v12 = vld [vmem:[#allocation2 + $0x58] sm:$0xf]  ;;  %v946_v50 = vld [vmem:[#allocation2 + $0x5c] sm:$0x1]  ;;  %v712_v19 = vrot.slane %v14483_v47, 4  ;;  %v711_v27 = vsel %vm14257_vm14, %v703_v9, %v710_v14 }
  0xe1   : > { %v1298_v3 = vrot.slane %v1296_v57, 4  ;;  %v1301_v5 = vrot.slane %v1299_v59, 5  ;;  %v1027_v11 = vld [vmem:[#allocation2 + $0x58] sm:$0xf]  ;;  %1895 = vst [vmem:[#allocation3 + $0x1e0] sm:$0xf] %v1863_v12  ;;  %v947_v16 = vsel %vm14199_vm3, %v695_v13, %v946_v50 }
  0xe2   : > { %1059 = vst [vmem:[#allocation3 + $0x21c] sm:$0xf] %v1027_v11  ;;  %v1098_v18 = vld [vmem:[#allocation2 + $0x58] sm:$0xf]  ;;  %v949_v20 = vld [vmem:[#allocation2 + $0x60] sm:$0xf] }
  0xe3   : > { %v1302_v58 = vor.u32 %v1301_v5, %v1298_v3  ;;  %v3575_v21 = vld [vmem:[#allocation3 + $0x1b0] sm:$0xff]  ;;  %948 = vst [vmem:[#allocation2 + $0x5c] sm:$0x1] %v947_v16  ;;  %v1305_v23 = vshll.u32 %v1098_v18, 16  ;;  %v1309_v26 = vshrl.u32 %v1098_v18, 16  ;;  %v950_v4 = vsel %vm14239_vm12, %v702_v8, %v949_v20 }
  0xe4   : > { %v1597_v29 = vld [vmem:[#allocation2 + $0x58] sm:$0xf]  ;;  %v3580_v13 = vld [vmem:[#allocation3 + $0x1d4] sm:$0xff]  ;;  %951 = vst [vmem:[#allocation2 + $0x60] sm:$0xf] %v950_v4  ;;  %v716_v34 = vrot.slane %v714_v7, 7 }
  0xe5   : > { %v13376_v30 = vld [vmem:[#allocation3 + $0x1b4] ss:$36 sps:$4 sm:$0xff]   ;;  %v1303_v31 = vrot.slane %v1302_v58, 4  ;;  %952 = vst [vmem:[#allocation2 + $0x64] sm:$0xf] %v711_v27  ;;  %v1725_v32 = vrot.slane %v1597_v29, 5  ;;  %v11662_v35 = vcombine.low %v3575_v21, %v3580_v13 }
  0xe6   : > { %v1307_v37 = vrot.slane %v1305_v23, 5  ;;  %v1311_v28 = vrot.slane %v1309_v26, 4  ;;  %v717_v53 = vshll.u32 %v14481_v54, 16  ;;  %5067 = vmatprep.mubr.bf16.mxu0 %v13376_v30  ;;  %v722_v6 = vshrl.u32 %v12147_v15, 16  ;;  %v13405_v39 = vld [vmem:[#allocation7 + $0x150] sm:$0xff]   ;;  %v466_v4 = vld [vmem:[%s14188_s17 + $0x98] sm:$0xff] }
  0xe7   : > { %v1726_v38 = vsel %vm14224_vm10, %v11567_v63, %v1725_v32  ;;  %v1727_v33 = vrot.slane %v1725_v32, 4  ;;  %v953_v41 = vld [vmem:[#allocation2 + $0x68] sm:$0x1]  ;;  %v725_v44 = vshll.u32 %v12147_v15, 16  ;;  %v956_v42 = vld [vmem:[#allocation2 + $0x6c] sm:$0xf]  ;;  %5068 = vmatmul.mubr.bf16.gmra.mxu0 %v11662_v35  ;;  %12429 = vmatprep.subr.bf16.mxu0 %v13405_v39 }
  0xe8   : > { %v1308_v56 = vsel %vm14247_vm13, %v1303_v31, %v1307_v37  ;;  %v1312_v40 = vor.u32 %v1311_v28, %v1307_v37  ;;  %1832 = vst [vmem:[#allocation3 + $0x200] sm:$0xf] %v1726_v38  ;;  %v719_v43 = vor.u32 %v717_v53, %v716_v34  ;;  %v13406_v45 = vld [vmem:[#allocation7 + $0x110] sm:$0xff]   ;;  %v954_v48 = vsel %vm14199_vm3, %v712_v19, %v953_v41  ;;  %v420_v51 = vld [vmem:[#allocation2 + $0x74] sm:$0x1]  ;;  %v467_v38 = vld [vmem:[%s14188_s17 + $0xa0] sm:$0xff] }
  0xe9   : > { %1557 = vst [vmem:[#allocation3 + $0x1fc] sm:$0xf] %v1308_v56  ;;  %v720_v46 = vrot.slane %v716_v34, 4  ;;  %v14511_v49 = vrot.slane %v722_v6, 7  ;;  %v731_v52 = vshrl.u32 %v14502_v2, 16  ;;  %12430 = vmatpush3.bf16.msra.mxu0 %v13406_v45  ;;  %v421_v0 = vsel %vm14204_vm4, 0, %v420_v51 }
  0xea   : > { %v13378_v54 = vld [vmem:[#allocation3 + $0x1bc] ss:$36 sps:$4 sm:$0xff]   ;;  %v1313_v59 = vrot.slane %v1312_v40, 4  ;;  %955 = vst [vmem:[#allocation2 + $0x68] sm:$0x1] %v954_v48  ;;  %v957_v55 = vsel %vm14239_vm12, %v719_v43, %v956_v42  ;;  %v468_v45 = vld [vmem:[%s14188_s17 + $0xa8] sm:$0xff] }
  0xeb   : > { %v13380_v57 = vld [vmem:[#allocation3 + $0x1b8] ss:$36 sps:$4 sm:$0xff]   ;;  %v1099_v47 = vld [vmem:[#allocation2 + $0x5c] sm:$0x1]  ;;  %v727_v62 = vor.u32 %v725_v44, %v14511_v49  ;;  %v729_v63 = vrot.slane %v14511_v49, 4  ;;  %5228 = vmatprep.mubr.bf16.mxu1 %v13378_v54 }
  0xec   : > { %v1598_v61 = vld [vmem:[#allocation2 + $0x5c] sm:$0x1]  ;;  %958 = vst [vmem:[#allocation2 + $0x6c] sm:$0xf] %v957_v55  ;;  %v1315_v1 = vshll.u32 %v1099_v47, 16  ;;  %5229 = vmatmul.mubr.bf16.gmra.mxu1 %v13380_v57  ;;  %v12149_v57 = vpack.c.bf16 %v466_v4, %v466_v4 }
  0xed   : > { %v1728_v3 = vrot.slane %v1598_v61, 5  ;;  %v1864_v5 = vld [vmem:[#allocation2 + $0x60] sm:$0xf]  ;;  %v1865_v8 = vld [vmem:[#allocation2 + $0x64] sm:$0xf]  ;;  %v728_v50 = vsel %vm14257_vm14, %v720_v46, %v727_v62 }
  0xee   : > { %422 = vst [vmem:[#allocation2 + $0x74] sm:$0x1] %v421_v0  ;;  %1896 = vst [vmem:[#allocation3 + $0x204] sm:$0xf] %v1864_v5  ;;  %v1028_v9 = vld [vmem:[#allocation2 + $0x60] sm:$0xf] }
  0xef   : > { %1897 = vst [vmem:[#allocation3 + $0x228] sm:$0xf] %v1865_v8  ;;  %v1029_v10 = vld [vmem:[#allocation2 + $0x64] sm:$0xf]  ;;  %v1100_v12 = vld [vmem:[#allocation2 + $0x60] sm:$0xf]  ;;  %v1729_v14 = vsel %vm14224_vm10, %v1727_v33, %v1728_v3 }
  0xf0   : > { %v1317_v11 = vrot.slane %v1315_v1, 5  ;;  %1060 = vst [vmem:[#allocation3 + $0x240] sm:$0xf] %v1028_v9  ;;  %1061 = vst [vmem:[#allocation3 + $0x264] sm:$0xf] %v1029_v10  ;;  %v1320_v16 = vshrl.u32 %v1100_v12, 16  ;;  %v14537_v1 = vpack.c.bf16 %v467_v38, %v467_v38 }
  0xf1   : > { %v1101_v15 = vld [vmem:[#allocation2 + $0x64] sm:$0xf]  ;;  %v1323_v18 = vshll.u32 %v1100_v12, 16  ;;  %959 = vst [vmem:[#allocation2 + $0x70] sm:$0xf] %v728_v50  ;;  %v3585_v40 = vld [vmem:[#allocation3 + $0x1f8] sm:$0xff] }
  0xf2   : > { %1833 = vst [vmem:[#allocation3 + $0x224] sm:$0xf] %v1729_v14  ;;  %v1329_v58 = vshll.u32 %v1101_v15, 16  ;;  %v1333_v19 = vshrl.u32 %v1101_v15, 16  ;;  %v1599_v20 = vld [vmem:[#allocation2 + $0x60] sm:$0xe]  ;;  %v1318_v21 = vsel %vm14247_vm13, %v1313_v59, %v1317_v11 }
  0xf3   : > { %v1600_v7 = vld [vmem:[#allocation2 + $0x64] sm:$0xf]  ;;  %v1322_v23 = vrot.slane %v1320_v16, 4  ;;  %v1325_v26 = vrot.slane %v1323_v18, 5  ;;  %v11568_v27 = vrot.slane %v1599_v20, 9  ;;  %v733_v9 = vrot.slane %v731_v52, 7 }
  0xf4   : > { %1558 = vst [vmem:[#allocation3 + $0x220] sm:$0xf] %v1318_v21  ;;  %v1102_v29 = vld [vmem:[#allocation2 + $0x68] sm:$0x1]  ;;  %v1331_v13 = vrot.slane %v1329_v58, 5  ;;  %v1335_v30 = vrot.slane %v1333_v19, 4  ;;  %v14545_v16 = vpack.c.bf16 %v468_v45, %v468_v45 }
  0xf5   : > { %v1601_v31 = vld [vmem:[#allocation2 + $0x68] sm:$0x1]  ;;  %v1326_v32 = vor.u32 %v1325_v26, %v1322_v23  ;;  %v1339_v34 = vshll.u32 %v1102_v29, 16  ;;  %v1732_v35 = vrot.slane %v1600_v7, 5  ;;  %v1866_v28 = vld [vmem:[#allocation2 + $0x6c] sm:$0xf] }
  0xf6   : > { %v1735_v37 = vrot.slane %v1601_v31, 5  ;;  %v367_v53 = vld [vmem:[#allocation2 + $0x78] sm:$0x1]  ;;  %v1336_v33 = vor.u32 %v1335_v30, %v1331_v13  ;;  %1898 = vst [vmem:[#allocation3 + $0x24c] sm:$0xf] %v1866_v28  ;;  %v734_v58 = vshll.u32 %v14502_v2, 16 }
  0xf7   : > { %v960_v6 = vld [vmem:[#allocation2 + $0x74] sm:$0x1]  ;;  %v1030_v39 = vld [vmem:[#allocation2 + $0x6c] sm:$0xf]  ;;  %v1327_v41 = vrot.slane %v1326_v32, 4  ;;  %v1341_v43 = vrot.slane %v1339_v34, 5  ;;  %v1733_v44 = vsel %vm14224_vm10, %v11568_v27, %v1732_v35 }
  0xf8   : > { %v1103_v56 = vld [vmem:[#allocation2 + $0x6c] sm:$0xf]  ;;  %v1734_v42 = vrot.slane %v1732_v35, 4  ;;  %1062 = vst [vmem:[#allocation3 + $0x288] sm:$0xf] %v1030_v39  ;;  %v1337_v48 = vrot.slane %v1336_v33, 4  ;;  %v961_v49 = vsel %vm14199_vm3, %v729_v63, %v960_v6  ;;  %v736_v30 = vor.u32 %v734_v58, %v733_v9 }
  0xf9   : > { %1834 = vst [vmem:[#allocation3 + $0x248] sm:$0xf] %v1733_v44  ;;  %v1867_v46 = vld [vmem:[#allocation2 + $0x70] sm:$0xf]  ;;  %v1344_v54 = vshrl.u32 %v1103_v56, 16  ;;  %v1332_v47 = vsel %vm14247_vm13, %v1327_v41, %v1331_v13  ;;  %v1347_v62 = vshll.u32 %v1103_v56, 16 }
  0xfa   : > { %v1031_v51 = vld [vmem:[#allocation2 + $0x70] sm:$0xf]  ;;  %v13385_v59 = vld [vmem:[#allocation3 + $0x204] ss:$36 sps:$4 sm:$0xff]   ;;  %v1736_v61 = vsel %vm14224_vm10, %v1734_v42, %v1735_v37  ;;  %1899 = vst [vmem:[#allocation3 + $0x270] sm:$0xf] %v1867_v46  ;;  %v1342_v63 = vsel %vm14247_vm13, %v1337_v48, %v1341_v43 }
  0xfb   : > { %v13387_v55 = vld [vmem:[#allocation3 + $0x200] ss:$36 sps:$4 sm:$0xff]   ;;  %962 = vst [vmem:[#allocation2 + $0x74] sm:$0x1] %v961_v49  ;;  %1063 = vst [vmem:[#allocation3 + $0x2ac] sm:$0xf] %v1031_v51  ;;  %5236 = vmatprep.mubr.bf16.mxu1 %v13385_v59 }
  0xfc   : > { %v1602_v0 = vld [vmem:[#allocation2 + $0x6c] sm:$0xe]  ;;  %1559 = vst [vmem:[#allocation3 + $0x244] sm:$0xf] %v1332_v47  ;;  %1835 = vst [vmem:[#allocation3 + $0x26c] sm:$0xf] %v1736_v61  ;;  %5237 = vmatmul.mubr.bf16.gmra.mxu1 %v13387_v55 }
  0xfd   : > { %v1104_v3 = vld [vmem:[#allocation2 + $0x70] sm:$0xf]  ;;  %v1346_v5 = vrot.slane %v1344_v54, 4  ;;  %v368_v8 = vsel %vm14199_vm3, 0, %v367_v53  ;;  %v423_v10 = vld [vmem:[#allocation2 + $0x80] sm:$0x1] }
  0xfe   : > { %v3590_v12 = vld [vmem:[#allocation3 + $0x21c] sm:$0xff]  ;;  %1560 = vst [vmem:[#allocation3 + $0x268] sm:$0xf] %v1342_v63  ;;  %v1349_v11 = vrot.slane %v1347_v62, 5  ;;  %v1353_v14 = vshll.u32 %v1104_v3, 16  ;;  %v1357_v15 = vshrl.u32 %v1104_v3, 16 }
  0xff   : > { %v13383_v50 = vld [vmem:[#allocation3 + $0x1fc] ss:$36 sps:$4 sm:$0xff]   ;;  %369 = vst [vmem:[#allocation2 + $0x78] sm:$0x1] %v368_v8  ;;  %v11671_v18 = vcombine.low %v3585_v40, %v3590_v12  ;;  %v737_v19 = vrot.slane %v733_v9, 4  ;;  %v739_v20 = vshrl.u32 %v12149_v57, 16 }
 0x100   : > { %v1603_v52 = vld [vmem:[#allocation2 + $0x70] sm:$0xf]  ;;  %v469_v7 = vld [vmem:[%s14188_s17 + $0xb0] sm:$0xff]  ;;  %5075 = vmatprep.mubr.bf16.mxu0 %v13383_v50  ;;  %v1350_v21 = vor.u32 %v1349_v11, %v1346_v5  ;;  %v1355_v23 = vrot.slane %v1353_v14, 5  ;;  %v1359_v26 = vrot.slane %v1357_v15, 4  ;;  %v742_v27 = vshll.u32 %v12149_v57, 16 }
 0x101   : > { %v370_v4 = vld [vmem:[#allocation2 + $0x84] sm:$0x1]  ;;  %v470_v29 = vld [vmem:[%s14188_s17 + $0xb8] sm:$0xff]  ;;  %5076 = vmatmul.mubr.bf16.gmra.mxu0 %v11671_v18  ;;  %v14550_v31 = vrot.slane %v739_v20, 7  ;;  %v11569_v32 = vrot.slane %v1602_v0, 9  ;;  %v1739_v34 = vrot.slane %v1603_v52, 5  ;;  %v14562_v48 = vpack.c.bf16 %v469_v7, %v469_v7 }
 0x102   : > { %v13417_v13 = vld [vmem:[#allocation7 + $0x148] sm:$0xff]   ;;  %v1351_v2 = vrot.slane %v1350_v21, 4  ;;  %v1360_v37 = vor.u32 %v1359_v26, %v1355_v23  ;;  %v424_v28 = vsel %vm14204_vm4, 0, %v423_v10  ;;  %v371_v53 = vsel %vm14199_vm3, 0, %v370_v4  ;;  %v1105_v38 = vld [vmem:[#allocation2 + $0x74] sm:$0x1] }
 0x103   : > { %v13418_v35 = vld [vmem:[#allocation7 + $0x108] sm:$0xff]   ;;  %12431 = vmatprep.subr.bf16.mxu0 %v13417_v13  ;;  %v744_v33 = vor.u32 %v742_v27, %v14550_v31  ;;  %v746_v6 = vrot.slane %v14550_v31, 4  ;;  %v1604_v39 = vld [vmem:[#allocation2 + $0x74] sm:$0x1]  ;;  %v1740_v56 = vsel %vm14224_vm10, %v11569_v32, %v1739_v34  ;;  %v1741_v40 = vrot.slane %v1739_v34, 4  ;;  %v3595_v41 = vld [vmem:[#allocation3 + $0x240] sm:$0xff] }
 0x104   : > { %425 = vst [vmem:[#allocation2 + $0x80] sm:$0x1] %v424_v28  ;;  %372 = vst [vmem:[#allocation2 + $0x84] sm:$0x1] %v371_v53  ;;  %12432 = vmatpush3.bf16.msra.mxu0 %v13418_v35  ;;  %v13390_v43 = vld [vmem:[#allocation3 + $0x24c] ss:$36 sps:$4 sm:$0xff]   ;;  %v1356_v44 = vsel %vm14247_vm13, %v1351_v2, %v1355_v23  ;;  %v14566_v59 = vpack.c.bf16 %v470_v29, %v470_v29 }
 0x105   : > { %v1361_v42 = vrot.slane %v1360_v37, 4  ;;  %v1363_v45 = vshll.u32 %v1105_v38, 16  ;;  %1836 = vst [vmem:[#allocation3 + $0x290] sm:$0xf] %v1740_v56  ;;  %v3600_v46 = vld [vmem:[#allocation3 + $0x264] sm:$0xff]  ;;  %v745_v54 = vsel %vm14257_vm14, %v737_v19, %v744_v33  ;;  %v1742_v57 = vrot.slane %v1604_v39, 5  ;;  %5244 = vmatprep.mubr.bf16.mxu1 %v13390_v43 }
 0x106   : > { %v13388_v49 = vld [vmem:[#allocation3 + $0x244] ss:$36 sps:$4 sm:$0xff]   ;;  %1561 = vst [vmem:[#allocation3 + $0x28c] sm:$0xf] %v1356_v44  ;;  %v11680_v55 = vcombine.low %v3595_v41, %v3600_v46  ;;  %v963_v61 = vld [vmem:[#allocation2 + $0x78] sm:$0xf] }
 0x107   : > { %v13392_v51 = vld [vmem:[#allocation3 + $0x248] ss:$36 sps:$4 sm:$0xff]   ;;  %v1365_v47 = vrot.slane %v1363_v45, 5  ;;  %966 = vst [vmem:[#allocation2 + $0x7c] sm:$0xf] %v745_v54  ;;  %v748_v62 = vshrl.u32 %v14537_v1, 16  ;;  %5083 = vmatprep.mubr.bf16.mxu0 %v13388_v49  ;;  %v964_v3 = vsel %vm14239_vm12, %v736_v30, %v963_v61  ;;  %v1743_v5 = vsel %vm14224_vm10, %v1741_v40, %v1742_v57 }
 0x108   : > { %v751_v0 = vshll.u32 %v14537_v1, 16  ;;  %v13419_v63 = vld [vmem:[#allocation7 + $0x1f8] sm:$0xff]   ;;  %5245 = vmatmul.mubr.bf16.gmra.mxu1 %v13392_v51  ;;  %v756_v8 = vshrl.u32 %v14545_v16, 16  ;;  %v759_v9 = vshll.u32 %v14545_v16, 16  ;;  %965 = vst [vmem:[#allocation2 + $0x78] sm:$0xf] %v964_v3 }
 0x109   : > { %v1366_v10 = vsel %vm14247_vm13, %v1361_v42, %v1365_v47  ;;  %1837 = vst [vmem:[#allocation3 + $0x2b4] sm:$0xf] %v1743_v5  ;;  %v750_v12 = vrot.slane %v748_v62, 7  ;;  %v426_v1 = vld [vmem:[#allocation2 + $0x8c] sm:$0x1]  ;;  %v765_v11 = vshrl.u32 %v14562_v48, 16  ;;  %12531 = vmatprep.subr.bf16.mxu1 %v13419_v63  ;;  %5084 = vmatmul.mubr.bf16.gmra.mxu0 %v11680_v55 }
 0x10a   : > { %v373_v50 = vld [vmem:[#allocation2 + $0x90] sm:$0x1]  ;;  %1562 = vst [vmem:[#allocation3 + $0x2b0] sm:$0xf] %v1366_v10  ;;  %v758_v14 = vrot.slane %v756_v8, 7  ;;  %v427_v15 = vsel %vm14204_vm4, 0, %v426_v1 }
 0x10b   : > { %v374_v16 = vsel %vm14199_vm3, 0, %v373_v50  ;;  %v768_v18 = vshll.u32 %v14562_v48, 16  ;;  %v967_v58 = vld [vmem:[#allocation2 + $0x80] sm:$0x1]  ;;  %v753_v19 = vor.u32 %v751_v0, %v750_v12  ;;  %v754_v20 = vrot.slane %v750_v12, 4  ;;  %v13420_v32 = vld [vmem:[#allocation7 + $0x1b8] sm:$0xff]  }
 0x10c   : > { %v970_v52 = vld [vmem:[#allocation2 + $0x84] sm:$0xf]  ;;  %428 = vst [vmem:[#allocation2 + $0x8c] sm:$0x1] %v427_v15  ;;  %375 = vst [vmem:[#allocation2 + $0x90] sm:$0x1] %v374_v16  ;;  %v968_v21 = vsel %vm14199_vm3, %v746_v6, %v967_v58  ;;  %v761_v23 = vor.u32 %v759_v9, %v758_v14  ;;  %12532 = vmatpush3.bf16.msra.mxu1 %v13420_v32 }
 0x10d   : > { %v767_v7 = vrot.slane %v765_v11, 7  ;;  %v763_v26 = vrot.slane %v758_v14, 4  ;;  %v773_v27 = vshrl.u32 %v14566_v59, 16  ;;  %v429_v4 = vld [vmem:[#allocation2 + $0x98] sm:$0x1]  ;;  %v3605_v29 = vld [vmem:[#allocation3 + $0x288] sm:$0xff]  ;;  %v971_v13 = vsel %vm14239_vm12, %v753_v19, %v970_v52 }
 0x10e   : > { %969 = vst [vmem:[#allocation2 + $0x80] sm:$0x1] %v968_v21  ;;  %v776_v31 = vshll.u32 %v14566_v59, 16  ;;  %v1869_v34 = vld [vmem:[#allocation2 + $0x7c] sm:$0xf]  ;;  %v762_v37 = vsel %vm14257_vm14, %v754_v20, %v761_v23  ;;  %v430_v6 = vsel %vm14204_vm4, 0, %v429_v4 }
 0x10f   : > { %v771_v30 = vrot.slane %v767_v7, 4  ;;  %v1033_v35 = vld [vmem:[#allocation2 + $0x7c] sm:$0xf]  ;;  %972 = vst [vmem:[#allocation2 + $0x84] sm:$0xf] %v971_v13  ;;  %v14592_v33 = vrot.slane %v773_v27, 7  ;;  %v770_v59 = vor.u32 %v768_v18, %v767_v7 }
 0x110   : > { %v1107_v2 = vld [vmem:[#allocation2 + $0x7c] sm:$0xf]  ;;  %1901 = vst [vmem:[#allocation3 + $0x2b8] sm:$0xf] %v1869_v34  ;;  %1065 = vst [vmem:[#allocation3 + $0x2f4] sm:$0xf] %v1033_v35 }
 0x111   : > { %v1377_v28 = vshll.u32 %v1107_v2, 16  ;;  %v1381_v53 = vshrl.u32 %v1107_v2, 16  ;;  %973 = vst [vmem:[#allocation2 + $0x88] sm:$0xf] %v762_v37  ;;  %v1606_v38 = vld [vmem:[#allocation2 + $0x7c] sm:$0xf]  ;;  %v778_v48 = vor.u32 %v776_v31, %v14592_v33 }
 0x112   : > { %v1868_v39 = vld [vmem:[#allocation2 + $0x78] sm:$0xf]  ;;  %431 = vst [vmem:[#allocation2 + $0x98] sm:$0x1] %v430_v6  ;;  %v3610_v41 = vld [vmem:[#allocation3 + $0x2ac] sm:$0xff]  ;;  %v1746_v54 = vrot.slane %v1606_v38, 5 }
 0x113   : > { %v1032_v56 = vld [vmem:[#allocation2 + $0x78] sm:$0xf]  ;;  %v13395_v43 = vld [vmem:[#allocation3 + $0x28c] ss:$36 sps:$4 sm:$0xff]   ;;  %1900 = vst [vmem:[#allocation3 + $0x294] sm:$0xf] %v1868_v39  ;;  %v11689_v46 = vcombine.low %v3605_v29, %v3610_v41  ;;  %v779_v10 = vsel %vm14257_vm14, %v771_v30, %v778_v48 }
 0x114   : > { %v1106_v40 = vld [vmem:[#allocation2 + $0x78] sm:$0xf]  ;;  %1064 = vst [vmem:[#allocation3 + $0x2d0] sm:$0xf] %v1032_v56  ;;  %v1379_v45 = vrot.slane %v1377_v28, 5  ;;  %v1383_v49 = vrot.slane %v1381_v53, 4  ;;  %5091 = vmatprep.mubr.bf16.mxu0 %v13395_v43 }
 0x115   : > { %v1368_v44 = vshrl.u32 %v1106_v40, 16  ;;  %v1371_v42 = vshll.u32 %v1106_v40, 16  ;;  %v1605_v51 = vld [vmem:[#allocation2 + $0x78] sm:$0xe]  ;;  %v974_v57 = vld [vmem:[#allocation2 + $0x8c] sm:$0x1]  ;;  %5092 = vmatmul.mubr.bf16.gmra.mxu0 %v11689_v46 }
 0x116   : > { %v11570_v61 = vrot.slane %v1605_v51, 9  ;;  %v975_v62 = vsel %vm14199_vm3, %v763_v26, %v974_v57  ;;  %v977_v0 = vld [vmem:[#allocation2 + $0x90] sm:$0xf]  ;;  %v13421_v63 = vld [vmem:[#allocation7 + $0x1f0] sm:$0xff]   ;;  %v1108_v3 = vld [vmem:[#allocation2 + $0x80] sm:$0x1]  ;;  %v1384_v5 = vor.u32 %v1383_v49, %v1379_v45 }
 0x117   : > { %v1370_v55 = vrot.slane %v1368_v44, 4  ;;  %v1373_v47 = vrot.slane %v1371_v42, 5  ;;  %v1607_v8 = vld [vmem:[#allocation2 + $0x80] sm:$0x1]  ;;  %v1748_v9 = vrot.slane %v1746_v54, 4  ;;  %v780_v12 = vrot.slane %v14592_v33, 4  ;;  %12533 = vmatprep.subr.bf16.mxu1 %v13421_v63 }
 0x118   : > { %976 = vst [vmem:[#allocation2 + $0x8c] sm:$0x1] %v975_v62  ;;  %v1387_v50 = vshll.u32 %v1108_v3, 16  ;;  %v1747_v11 = vsel %vm14224_vm10, %v11570_v61, %v1746_v54  ;;  %v1749_v14 = vrot.slane %v1607_v8, 5  ;;  %v1870_v15 = vld [vmem:[#allocation2 + $0x84] sm:$0xf]  ;;  %v978_v20 = vsel %vm14239_vm12, %v770_v59, %v977_v0 }
 0x119   : > { %v1374_v1 = vor.u32 %v1373_v47, %v1370_v55  ;;  %v1034_v16 = vld [vmem:[#allocation2 + $0x84] sm:$0xf]  ;;  %980 = vst [vmem:[#allocation2 + $0x94] sm:$0xf] %v779_v10  ;;  %v1385_v18 = vrot.slane %v1384_v5, 4  ;;  %v471_v2 = vld [vmem:[%s14188_s17 + $0xc0] sm:$0xff] }
 0x11a   : > { %1838 = vst [vmem:[#allocation3 + $0x2d8] sm:$0xf] %v1747_v11  ;;  %v1871_v58 = vld [vmem:[#allocation2 + $0x88] sm:$0xf]  ;;  %1902 = vst [vmem:[#allocation3 + $0x2dc] sm:$0xf] %v1870_v15  ;;  %v1750_v21 = vsel %vm14224_vm10, %v1748_v9, %v1749_v14  ;;  %v12154_v3 = vpack.c.bf16 %v471_v2, %v471_v2 }
 0x11b   : > { %v1035_v19 = vld [vmem:[#allocation2 + $0x88] sm:$0xf]  ;;  %1066 = vst [vmem:[#allocation3 + $0x318] sm:$0xf] %v1034_v16  ;;  %v1375_v52 = vrot.slane %v1374_v1, 4  ;;  %v1389_v7 = vrot.slane %v1387_v50, 5 }
 0x11c   : > { %1903 = vst [vmem:[#allocation3 + $0x300] sm:$0xf] %v1871_v58  ;;  %1067 = vst [vmem:[#allocation3 + $0x33c] sm:$0xf] %v1035_v19  ;;  %v1109_v23 = vld [vmem:[#allocation2 + $0x84] sm:$0xf] }
 0x11d   : > { %v1110_v26 = vld [vmem:[#allocation2 + $0x88] sm:$0xf]  ;;  %979 = vst [vmem:[#allocation2 + $0x90] sm:$0xf] %v978_v20  ;;  %v13397_v27 = vld [vmem:[#allocation3 + $0x294] ss:$36 sps:$4 sm:$0xff]   ;;  %v1380_v13 = vsel %vm14247_vm13, %v1375_v52, %v1379_v45  ;;  %v1390_v30 = vsel %vm14247_vm13, %v1385_v18, %v1389_v7 }
 0x11e   : > { %v13399_v4 = vld [vmem:[#allocation3 + $0x290] ss:$36 sps:$4 sm:$0xff]   ;;  %1839 = vst [vmem:[#allocation3 + $0x2fc] sm:$0xf] %v1750_v21  ;;  %v1392_v29 = vshrl.u32 %v1109_v23, 16  ;;  %v1395_v31 = vshll.u32 %v1109_v23, 16  ;;  %5252 = vmatprep.mubr.bf16.mxu1 %v13397_v27 }
 0x11f   : > { %v1401_v32 = vshll.u32 %v1110_v26, 16  ;;  %v1608_v34 = vld [vmem:[#allocation2 + $0x84] sm:$0xe]  ;;  %v1609_v35 = vld [vmem:[#allocation2 + $0x88] sm:$0xf]  ;;  %v1405_v28 = vshrl.u32 %v1110_v26, 16  ;;  %5253 = vmatmul.mubr.bf16.gmra.mxu1 %v13399_v4 }
 0x120   : > { %1563 = vst [vmem:[#allocation3 + $0x2d4] sm:$0xf] %v1380_v13  ;;  %1564 = vst [vmem:[#allocation3 + $0x2f8] sm:$0xf] %v1390_v30  ;;  %v1394_v37 = vrot.slane %v1392_v29, 4  ;;  %v11571_v53 = vrot.slane %v1608_v34, 9 }
 0x121   : > { %v1753_v38 = vrot.slane %v1609_v35, 5  ;;  %v981_v33 = vld [vmem:[#allocation2 + $0x98] sm:$0x1]  ;;  %v472_v6 = vld [vmem:[%s14188_s17 + $0xc8] sm:$0xff]  ;;  %v1111_v39 = vld [vmem:[#allocation2 + $0x8c] sm:$0x1] }
 0x122   : > { %v1397_v56 = vrot.slane %v1395_v31, 5  ;;  %v1403_v40 = vrot.slane %v1401_v32, 5  ;;  %v1610_v41 = vld [vmem:[#allocation2 + $0x8c] sm:$0x1]  ;;  %v982_v43 = vsel %vm14199_vm3, %v780_v12, %v981_v33  ;;  %v376_v44 = vld [vmem:[#allocation2 + $0x9c] sm:$0x1]  ;;  %v12155_v12 = vpack.c.bf16 %v472_v6, %v472_v6 }
 0x123   : > { %v1407_v42 = vrot.slane %v1405_v28, 4  ;;  %v1411_v45 = vshll.u32 %v1111_v39, 16  ;;  %v1754_v48 = vsel %vm14224_vm10, %v11571_v53, %v1753_v38  ;;  %v1755_v46 = vrot.slane %v1753_v38, 4  ;;  %v1873_v49 = vld [vmem:[#allocation2 + $0x94] sm:$0xf]  ;;  %v473_v51 = vld [vmem:[%s14188_s17 + $0xd0] sm:$0xff] }
 0x124   : > { %983 = vst [vmem:[#allocation2 + $0x98] sm:$0x1] %v982_v43  ;;  %v1398_v54 = vor.u32 %v1397_v56, %v1394_v37  ;;  %v1756_v57 = vrot.slane %v1610_v41, 5  ;;  %1840 = vst [vmem:[#allocation3 + $0x320] sm:$0xf] %v1754_v48  ;;  %v377_v15 = vsel %vm14199_vm3, 0, %v376_v44  ;;  %v14627_v7 = vpack.c.bf16 %v473_v51, %v473_v51 }
 0x125   : > { %1905 = vst [vmem:[#allocation3 + $0x348] sm:$0xf] %v1873_v49  ;;  %v1037_v59 = vld [vmem:[#allocation2 + $0x94] sm:$0xf]  ;;  %v1408_v47 = vor.u32 %v1407_v42, %v1403_v40  ;;  %v1413_v61 = vrot.slane %v1411_v45, 5  ;;  %v782_v27 = vshrl.u32 %v12154_v3, 16 }
 0x126   : > { %v1113_v55 = vld [vmem:[#allocation2 + $0x94] sm:$0xf]  ;;  %v1872_v62 = vld [vmem:[#allocation2 + $0x90] sm:$0xf]  ;;  %1069 = vst [vmem:[#allocation3 + $0x384] sm:$0xf] %v1037_v59  ;;  %v1757_v10 = vsel %vm14224_vm10, %v1755_v46, %v1756_v57 }
 0x127   : > { %v1036_v0 = vld [vmem:[#allocation2 + $0x90] sm:$0xf]  ;;  %v1425_v63 = vshll.u32 %v1113_v55, 16  ;;  %v13402_v5 = vld [vmem:[#allocation3 + $0x2dc] ss:$36 sps:$4 sm:$0xff]   ;;  %v1399_v9 = vrot.slane %v1398_v54, 4 }
 0x128   : > { %v13404_v8 = vld [vmem:[#allocation3 + $0x2d8] ss:$36 sps:$4 sm:$0xff]   ;;  %1904 = vst [vmem:[#allocation3 + $0x324] sm:$0xf] %v1872_v62  ;;  %1068 = vst [vmem:[#allocation3 + $0x360] sm:$0xf] %v1036_v0  ;;  %5260 = vmatprep.mubr.bf16.mxu1 %v13402_v5 }
 0x129   : > { %v1409_v1 = vrot.slane %v1408_v47, 4  ;;  %1841 = vst [vmem:[#allocation3 + $0x344] sm:$0xf] %v1757_v10  ;;  %v1112_v50 = vld [vmem:[#allocation2 + $0x90] sm:$0xf]  ;;  %v14621_v11 = vrot.slane %v1425_v63, 5  ;;  %v1404_v19 = vsel %vm14247_vm13, %v1399_v9, %v1403_v40  ;;  %5261 = vmatmul.mubr.bf16.gmra.mxu1 %v13404_v8 }
 0x12a   : > { %v1429_v14 = vshrl.u32 %v1113_v55, 16  ;;  %v3615_v16 = vld [vmem:[#allocation3 + $0x2d0] sm:$0xff]  ;;  %v1416_v20 = vshrl.u32 %v1112_v50, 16  ;;  %v1419_v52 = vshll.u32 %v1112_v50, 16  ;;  %378 = vst [vmem:[#allocation2 + $0x9c] sm:$0x1] %v377_v15 }
 0x12b   : > { %v3620_v18 = vld [vmem:[#allocation3 + $0x2f4] sm:$0xff]  ;;  %v1414_v23 = vsel %vm14247_vm13, %v1409_v1, %v1413_v61  ;;  %1565 = vst [vmem:[#allocation3 + $0x31c] sm:$0xf] %v1404_v19  ;;  %v1612_v29 = vld [vmem:[#allocation2 + $0x94] sm:$0xf]  ;;  %v785_v32 = vshll.u32 %v12154_v3, 16 }
 0x12c   : > { %v13400_v58 = vld [vmem:[#allocation3 + $0x2d4] ss:$36 sps:$4 sm:$0xff]   ;;  %v11698_v21 = vcombine.low %v3615_v16, %v3620_v18  ;;  %v1431_v26 = vrot.slane %v1429_v14, 4  ;;  %1566 = vst [vmem:[#allocation3 + $0x340] sm:$0xf] %v1414_v23  ;;  %v1418_v30 = vrot.slane %v1416_v20, 4 }
 0x12d   : > { %v1611_v4 = vld [vmem:[#allocation2 + $0x90] sm:$0xe]  ;;  %5099 = vmatprep.mubr.bf16.mxu0 %v13400_v58  ;;  %v1114_v13 = vld [vmem:[#allocation2 + $0x98] sm:$0x1]  ;;  %v1421_v31 = vrot.slane %v1419_v52, 5  ;;  %v790_v34 = vshrl.u32 %v12155_v12, 16 }
 0x12e   : > { %5100 = vmatmul.mubr.bf16.gmra.mxu0 %v11698_v21  ;;  %v1432_v35 = vor.u32 %v1431_v26, %v14621_v11  ;;  %v1435_v2 = vshll.u32 %v1114_v13, 16  ;;  %v784_v37 = vrot.slane %v782_v27, 7  ;;  %v793_v28 = vshll.u32 %v12155_v12, 16  ;;  %v1613_v53 = vld [vmem:[#allocation2 + $0x98] sm:$0x1]  ;;  %v474_v38 = vld [vmem:[%s14188_s17 + $0xd8] sm:$0xff] }
 0x12f   : > { %v1422_v33 = vor.u32 %v1421_v31, %v1418_v30  ;;  %v14633_v6 = vrot.slane %v790_v34, 7  ;;  %v11572_v39 = vrot.slane %v1611_v4, 9  ;;  %v1760_v56 = vrot.slane %v1612_v29, 5  ;;  %v13426_v40 = vld [vmem:[#allocation7 + $0x1b0] sm:$0xff]   ;;  %v13409_v45 = vld [vmem:[#allocation3 + $0x324] ss:$36 sps:$4 sm:$0xff]  }
 0x130   : > { %v1433_v41 = vrot.slane %v1432_v35, 4  ;;  %v1437_v43 = vrot.slane %v1435_v2, 5  ;;  %v787_v44 = vor.u32 %v785_v32, %v784_v37  ;;  %v788_v42 = vrot.slane %v784_v37, 4  ;;  %v13411_v48 = vld [vmem:[#allocation3 + $0x320] ss:$36 sps:$4 sm:$0xff]   ;;  %12534 = vmatpush3.bf16.msra.mxu1 %v13426_v40  ;;  %v13428_v61 = vld [vmem:[#allocation7 + $0x1e8] sm:$0xff]   ;;  %5268 = vmatprep.mubr.bf16.mxu1 %v13409_v45 }
 0x131   : > { %v1423_v46 = vrot.slane %v1422_v33, 4  ;;  %v795_v49 = vor.u32 %v793_v28, %v14633_v6  ;;  %v1761_v51 = vsel %vm14224_vm10, %v11572_v39, %v1760_v56  ;;  %v984_v57 = vld [vmem:[#allocation2 + $0x9c] sm:$0xf]  ;;  %v1762_v59 = vrot.slane %v1760_v56, 4  ;;  %12535 = vmatprep.subr.bf16.mxu1 %v13428_v61  ;;  %5269 = vmatmul.mubr.bf16.gmra.mxu1 %v13411_v48  ;;  %v432_v50 = vld [vmem:[#allocation2 + $0xa4] sm:$0x1] }
 0x132   : > { %v1438_v54 = vsel %vm14247_vm13, %v1433_v41, %v1437_v43  ;;  %v1763_v55 = vrot.slane %v1613_v53, 5  ;;  %1842 = vst [vmem:[#allocation3 + $0x368] sm:$0xf] %v1761_v51  ;;  %v12157_v47 = vpack.c.bf16 %v474_v38, %v474_v38  ;;  %v3625_v62 = vld [vmem:[#allocation3 + $0x318] sm:$0xff]  ;;  %v985_v3 = vsel %vm14239_vm12, %v787_v44, %v984_v57  ;;  %v13429_v19 = vld [vmem:[#allocation7 + $0x1a8] sm:$0xff]   ;;  %v13430_v48 = vld [vmem:[#allocation7 + $0x1e0] sm:$0xff]  }
 0x133   : > { %v1428_v0 = vsel %vm14247_vm13, %v1423_v46, %v14621_v11  ;;  %1568 = vst [vmem:[#allocation3 + $0x388] sm:$0xf] %v1438_v54  ;;  %v796_v63 = vsel %vm14257_vm14, %v788_v42, %v795_v49  ;;  %v799_v5 = vshrl.u32 %v14627_v7, 16  ;;  %v3630_v8 = vld [vmem:[#allocation3 + $0x33c] sm:$0xff]  ;;  %986 = vst [vmem:[#allocation2 + $0x9c] sm:$0xf] %v985_v3 }
 0x134   : > { %v13407_v9 = vld [vmem:[#allocation3 + $0x31c] ss:$36 sps:$4 sm:$0xff]   ;;  %1567 = vst [vmem:[#allocation3 + $0x364] sm:$0xf] %v1428_v0  ;;  %987 = vst [vmem:[#allocation2 + $0xa0] sm:$0xf] %v796_v63  ;;  %v1764_v10 = vsel %vm14224_vm10, %v1762_v59, %v1763_v55  ;;  %v11707_v1 = vcombine.low %v3625_v62, %v3630_v8  ;;  %12536 = vmatpush3.bf16.msra.mxu1 %v13429_v19 }
 0x135   : > { %v802_v12 = vshll.u32 %v14627_v7, 16  ;;  %1843 = vst [vmem:[#allocation3 + $0x38c] sm:$0xf] %v1764_v10  ;;  %5107 = vmatprep.mubr.bf16.mxu0 %v13407_v9  ;;  %v379_v11 = vld [vmem:[#allocation2 + $0xa8] sm:$0x1]  ;;  %v801_v14 = vrot.slane %v799_v5, 7  ;;  %12537 = vmatprep.subr.bf16.mxu1 %v13430_v48 }
 0x136   : > { %v807_v15 = vshrl.u32 %v12157_v47, 16  ;;  %5108 = vmatmul.mubr.bf16.gmra.mxu0 %v11707_v1  ;;  %v433_v16 = vsel %vm14204_vm4, 0, %v432_v50  ;;  %v380_v18 = vsel %vm14199_vm3, 0, %v379_v11  ;;  %v810_v58 = vshll.u32 %v12157_v47, 16  ;;  %v435_v46 = vld [vmem:[#allocation2 + $0xb0] sm:$0x1] }
 0x137   : > { %434 = vst [vmem:[#allocation2 + $0xa4] sm:$0x1] %v433_v16  ;;  %381 = vst [vmem:[#allocation2 + $0xa8] sm:$0x1] %v380_v18  ;;  %v805_v20 = vrot.slane %v801_v14, 4  ;;  %v797_v27 = vrot.slane %v14633_v6, 4  ;;  %v804_v2 = vor.u32 %v802_v12, %v801_v14 }
 0x138   : > { %v14655_v52 = vrot.slane %v807_v15, 7  ;;  %v382_v57 = vld [vmem:[#allocation2 + $0xb4] sm:$0x1]  ;;  %v475_v59 = vld [vmem:[%s14188_s17 + $0xe0] sm:$0xff]  ;;  %v476_v55 = vld [vmem:[%s14188_s17 + $0xe8] sm:$0xff]  ;;  %v436_v61 = vsel %vm14204_vm4, 0, %v435_v46 }
 0x139   : > { %v383_v62 = vsel %vm14199_vm3, 0, %v382_v57  ;;  %v12158_v0 = vpack.c.bf16 %v475_v59, %v475_v59  ;;  %437 = vst [vmem:[#allocation2 + $0xb0] sm:$0x1] %v436_v61  ;;  %v12159_v3 = vpack.c.bf16 %v476_v55, %v476_v55  ;;  %v13435_v5 = vld [vmem:[#allocation7 + $0x1a0] sm:$0xff]   ;;  %v13439_v48 = vld [vmem:[#allocation7 + $0x1d8] sm:$0xff]  }
 0x13a   : > { %v3640_v7 = vld [vmem:[#allocation3 + $0x384] sm:$0xff]  ;;  %v812_v21 = vor.u32 %v810_v58, %v14655_v52  ;;  %v814_v63 = vrot.slane %v14655_v52, 4  ;;  %384 = vst [vmem:[#allocation2 + $0xb4] sm:$0x1] %v383_v62  ;;  %12538 = vmatpush3.bf16.msra.mxu1 %v13435_v5  ;;  %v13440_v62 = vld [vmem:[#allocation7 + $0x198] sm:$0xff]   ;;  %v13441_v5 = vld [vmem:[#allocation7 + $0x1d0] sm:$0xff]  }
 0x13b   : > { %v3635_v23 = vld [vmem:[#allocation3 + $0x360] sm:$0xff]  ;;  %v1875_v29 = vld [vmem:[#allocation2 + $0xa0] sm:$0xf]  ;;  %v816_v14 = vshrl.u32 %v12158_v0, 16  ;;  %v819_v18 = vshll.u32 %v12158_v0, 16  ;;  %v824_v58 = vshrl.u32 %v12159_v3, 16  ;;  %12539 = vmatprep.subr.bf16.mxu1 %v13439_v48 }
 0x13c   : > { %v13412_v26 = vld [vmem:[#allocation3 + $0x364] ss:$36 sps:$4 sm:$0xff]   ;;  %v11716_v13 = vcombine.low %v3635_v23, %v3640_v7  ;;  %v813_v32 = vsel %vm14257_vm14, %v805_v20, %v812_v21  ;;  %1907 = vst [vmem:[#allocation3 + $0x390] sm:$0xf] %v1875_v29  ;;  %v827_v19 = vshll.u32 %v12159_v3, 16 }
 0x13d   : > { %v1874_v4 = vld [vmem:[#allocation2 + $0x9c] sm:$0xf]  ;;  %v1039_v31 = vld [vmem:[#allocation2 + $0xa0] sm:$0xf]  ;;  %5115 = vmatprep.mubr.bf16.mxu0 %v13412_v26  ;;  %994 = vst [vmem:[#allocation2 + $0xac] sm:$0xf] %v813_v32 }
 0x13e   : > { %1906 = vst [vmem:[#allocation3 + $0x36c] sm:$0xf] %v1874_v4  ;;  %v1038_v30 = vld [vmem:[#allocation2 + $0x9c] sm:$0xf]  ;;  %1071 = vst [vmem:[#allocation3 + $0x3cc] sm:$0xf] %v1039_v31  ;;  %5116 = vmatmul.mubr.bf16.gmra.mxu0 %v11716_v13  ;;  %12540 = vmatpush3.bf16.msra.mxu1 %v13440_v62 }
 0x13f   : > { %1070 = vst [vmem:[#allocation3 + $0x3a8] sm:$0xf] %v1038_v30  ;;  %v1115_v34 = vld [vmem:[#allocation2 + $0x9c] sm:$0xf]  ;;  %v1116_v35 = vld [vmem:[#allocation2 + $0xa0] sm:$0xf]  ;;  %12541 = vmatprep.subr.bf16.mxu1 %v13441_v5 }
 0x140   : > { %v1614_v37 = vld [vmem:[#allocation2 + $0x9c] sm:$0xe]  ;;  %v1440_v28 = vshrl.u32 %v1115_v34, 16  ;;  %v1443_v53 = vshll.u32 %v1115_v34, 16  ;;  %v1449_v38 = vshll.u32 %v1116_v35, 16  ;;  %v1453_v33 = vshrl.u32 %v1116_v35, 16 }
 0x141   : > { %v1615_v6 = vld [vmem:[#allocation2 + $0xa0] sm:$0xf]  ;;  %v988_v39 = vld [vmem:[#allocation2 + $0xa4] sm:$0x1]  ;;  %v991_v56 = vld [vmem:[#allocation2 + $0xa8] sm:$0xf] }
 0x142   : > { %v11573_v40 = vrot.slane %v1614_v37, 9  ;;  %v1767_v41 = vrot.slane %v1615_v6, 5  ;;  %v989_v43 = vsel %vm14199_vm3, %v797_v27, %v988_v39  ;;  %v1442_v44 = vrot.slane %v1440_v28, 4  ;;  %v13416_v9 = vld [vmem:[#allocation3 + $0x368] ss:$36 sps:$4 sm:$0xff]   ;;  %v13437_v20 = vld [vmem:[#allocation7 + $0x140] sm:$0xff]  }
 0x143   : > { %v1445_v42 = vrot.slane %v1443_v53, 5  ;;  %v1451_v45 = vrot.slane %v1449_v38, 5  ;;  %990 = vst [vmem:[#allocation2 + $0xa4] sm:$0x1] %v989_v43  ;;  %v1455_v49 = vrot.slane %v1453_v33, 4  ;;  %v992_v51 = vsel %vm14239_vm12, %v804_v2, %v991_v56  ;;  %v13438_v26 = vld [vmem:[#allocation7 + $0x100] sm:$0xff]   ;;  %12433 = vmatprep.subr.bf16.mxu0 %v13437_v20 }
 0x144   : > { %v1768_v54 = vsel %vm14224_vm10, %v11573_v40, %v1767_v41  ;;  %993 = vst [vmem:[#allocation2 + $0xa8] sm:$0xf] %v992_v51  ;;  %v1769_v1 = vrot.slane %v1767_v41, 4  ;;  %v1877_v50 = vld [vmem:[#allocation2 + $0xac] sm:$0xf]  ;;  %v818_v21 = vrot.slane %v816_v14, 7  ;;  %12434 = vmatpush3.bf16.msra.mxu0 %v13438_v26 }
 0x145   : > { %v1446_v47 = vor.u32 %v1445_v42, %v1442_v44  ;;  %1844 = vst [vmem:[#allocation3 + $0x3b0] sm:$0xf] %v1768_v54  ;;  %v13414_v8 = vld [vmem:[#allocation3 + $0x36c] ss:$36 sps:$4 sm:$0xff]   ;;  %v1456_v12 = vor.u32 %v1455_v49, %v1451_v45  ;;  %v1041_v11 = vld [vmem:[#allocation2 + $0xac] sm:$0xf] }
 0x146   : > { %5276 = vmatprep.mubr.bf16.mxu1 %v13414_v8  ;;  %1909 = vst [vmem:[#allocation3 + $0x3d8] sm:$0xf] %v1877_v50  ;;  %1073 = vst [vmem:[#allocation3 + $0x414] sm:$0xf] %v1041_v11  ;;  %v1119_v16 = vld [vmem:[#allocation2 + $0xac] sm:$0xf]  ;;  %v821_v35 = vor.u32 %v819_v18, %v818_v21 }
 0x147   : > { %v1447_v10 = vrot.slane %v1446_v47, 4  ;;  %5277 = vmatmul.mubr.bf16.gmra.mxu1 %v13416_v9  ;;  %v1473_v52 = vshll.u32 %v1119_v16, 16  ;;  %v1477_v7 = vshrl.u32 %v1119_v16, 16  ;;  %v1618_v23 = vld [vmem:[#allocation2 + $0xac] sm:$0xf]  ;;  %v1457_v4 = vrot.slane %v1456_v12, 4 }
 0x148   : > { %v14676_v13 = vrot.slane %v824_v58, 7  ;;  %v995_v2 = vld [vmem:[#allocation2 + $0xb0] sm:$0x1]  ;;  %v998_v40 = vld [vmem:[#allocation2 + $0xb4] sm:$0xf]  ;;  %v822_v42 = vrot.slane %v818_v21, 4 }
 0x149   : > { %v1452_v15 = vsel %vm14247_vm13, %v1447_v10, %v1451_v45  ;;  %v1475_v28 = vrot.slane %v1473_v52, 5  ;;  %v1479_v53 = vrot.slane %v1477_v7, 4  ;;  %v996_v39 = vsel %vm14199_vm3, %v814_v63, %v995_v2  ;;  %v438_v8 = vld [vmem:[#allocation2 + $0xbc] sm:$0x1]  ;;  %v385_v12 = vld [vmem:[#allocation2 + $0xc0] sm:$0x1] }
 0x14a   : > { %1569 = vst [vmem:[#allocation3 + $0x3ac] sm:$0xf] %v1452_v15  ;;  %v1117_v27 = vld [vmem:[#allocation2 + $0xa4] sm:$0x1]  ;;  %v829_v38 = vor.u32 %v827_v19, %v14676_v13  ;;  %997 = vst [vmem:[#allocation2 + $0xb0] sm:$0x1] %v996_v39  ;;  %v999_v51 = vsel %vm14239_vm12, %v821_v35, %v998_v40 }
 0x14b   : > { %v1616_v29 = vld [vmem:[#allocation2 + $0xa4] sm:$0x1]  ;;  %v1459_v30 = vshll.u32 %v1117_v27, 16  ;;  %v1876_v32 = vld [vmem:[#allocation2 + $0xa8] sm:$0xf]  ;;  %v1480_v44 = vor.u32 %v1479_v53, %v1475_v28  ;;  %v1774_v45 = vrot.slane %v1618_v23, 5 }
 0x14c   : > { %v1770_v31 = vrot.slane %v1616_v29, 5  ;;  %v1040_v34 = vld [vmem:[#allocation2 + $0xa8] sm:$0xf]  ;;  %1908 = vst [vmem:[#allocation3 + $0x3b4] sm:$0xf] %v1876_v32  ;;  %v830_v59 = vsel %vm14257_vm14, %v822_v42, %v829_v38  ;;  %v831_v61 = vrot.slane %v14676_v13, 4 }
 0x14d   : > { %1072 = vst [vmem:[#allocation3 + $0x3f0] sm:$0xf] %v1040_v34  ;;  %v1118_v37 = vld [vmem:[#allocation2 + $0xa8] sm:$0xf]  ;;  %v1461_v33 = vrot.slane %v1459_v30, 5  ;;  %v1481_v63 = vrot.slane %v1480_v44, 4 }
 0x14e   : > { %v1771_v6 = vsel %vm14224_vm10, %v1769_v1, %v1770_v31  ;;  %v1464_v56 = vshrl.u32 %v1118_v37, 16  ;;  %v1617_v41 = vld [vmem:[#allocation2 + $0xa8] sm:$0xe]  ;;  %v1467_v43 = vshll.u32 %v1118_v37, 16  ;;  %1000 = vst [vmem:[#allocation2 + $0xb4] sm:$0xf] %v999_v51 }
 0x14f   : > { %1845 = vst [vmem:[#allocation3 + $0x3d4] sm:$0xf] %v1771_v6  ;;  %v1462_v46 = vsel %vm14247_vm13, %v1457_v4, %v1461_v33  ;;  %v11574_v54 = vrot.slane %v1617_v41, 9  ;;  %1001 = vst [vmem:[#allocation2 + $0xb8] sm:$0xf] %v830_v59  ;;  %v1776_v3 = vrot.slane %v1774_v45, 4 }
 0x150   : > { %v1466_v49 = vrot.slane %v1464_v56, 4  ;;  %1570 = vst [vmem:[#allocation3 + $0x3d0] sm:$0xf] %v1462_v46  ;;  %v1469_v57 = vrot.slane %v1467_v43, 5  ;;  %v439_v10 = vsel %vm14204_vm4, 0, %v438_v8  ;;  %v477_v1 = vld [vmem:[%s14188_s17 + $0xf0] sm:$0xff] }
 0x151   : > { %v1775_v55 = vsel %vm14224_vm10, %v11574_v54, %v1774_v45  ;;  %v3645_v0 = vld [vmem:[#allocation3 + $0x3a8] sm:$0xff]  ;;  %v478_v50 = vld [vmem:[%s14188_s17 + $0xf8] sm:$0xff]  ;;  %440 = vst [vmem:[#allocation2 + $0xbc] sm:$0x1] %v439_v10  ;;  %v386_v15 = vsel %vm14199_vm3, 0, %v385_v12  ;;  %v12160_v16 = vpack.c.bf16 %v477_v1, %v477_v1  ;;  %v13446_v43 = vld [vmem:[#allocation7 + $0x190] sm:$0xff]  }
 0x152   : > { %v1470_v47 = vor.u32 %v1469_v57, %v1466_v49  ;;  %1846 = vst [vmem:[#allocation3 + $0x3f8] sm:$0xf] %v1775_v55  ;;  %v1120_v18 = vld [vmem:[#allocation2 + $0xb0] sm:$0x1]  ;;  %387 = vst [vmem:[#allocation2 + $0xc0] sm:$0x1] %v386_v15  ;;  %v12161_v20 = vpack.c.bf16 %v478_v50, %v478_v50  ;;  %12542 = vmatpush3.bf16.msra.mxu1 %v13446_v43 }
 0x153   : > { %v13424_v11 = vld [vmem:[#allocation3 + $0x3b4] ss:$36 sps:$4 sm:$0xff]   ;;  %v1483_v21 = vshll.u32 %v1120_v18, 16  ;;  %v833_v26 = vshrl.u32 %v12160_v16, 16  ;;  %v836_v38 = vshll.u32 %v12160_v16, 16  ;;  %v13448_v49 = vld [vmem:[#allocation7 + $0x1c8] sm:$0xff]  }
 0x154   : > { %v1471_v9 = vrot.slane %v1470_v47, 4  ;;  %v1619_v19 = vld [vmem:[#allocation2 + $0xb0] sm:$0x1]  ;;  %5284 = vmatprep.mubr.bf16.mxu1 %v13424_v11  ;;  %v841_v33 = vshrl.u32 %v12161_v20, 16  ;;  %v844_v59 = vshll.u32 %v12161_v20, 16  ;;  %v13449_v47 = vld [vmem:[#allocation7 + $0x188] sm:$0xff]   ;;  %12543 = vmatprep.subr.bf16.mxu1 %v13448_v49 }
 0x155   : > { %v1777_v23 = vrot.slane %v1619_v19, 5  ;;  %v1878_v4 = vld [vmem:[#allocation2 + $0xb4] sm:$0xf]  ;;  %v1485_v31 = vrot.slane %v1483_v21, 5  ;;  %v835_v2 = vrot.slane %v833_v26, 7  ;;  %v13450_v5 = vld [vmem:[#allocation7 + $0x1c0] sm:$0xff]  }
 0x156   : > { %v13427_v14 = vld [vmem:[#allocation3 + $0x3b0] ss:$36 sps:$4 sm:$0xff]   ;;  %v1476_v58 = vsel %vm14247_vm13, %v1471_v9, %v1475_v28  ;;  %v1879_v29 = vld [vmem:[#allocation2 + $0xb8] sm:$0xf]  ;;  %v1042_v30 = vld [vmem:[#allocation2 + $0xb4] sm:$0xf]  ;;  %12544 = vmatpush3.bf16.msra.mxu1 %v13449_v47 }
 0x157   : > { %v3650_v52 = vld [vmem:[#allocation3 + $0x3cc] sm:$0xff]  ;;  %1571 = vst [vmem:[#allocation3 + $0x3f4] sm:$0xf] %v1476_v58  ;;  %5285 = vmatmul.mubr.bf16.gmra.mxu1 %v13427_v14  ;;  %v1778_v32 = vsel %vm14224_vm10, %v1776_v3, %v1777_v23  ;;  %1910 = vst [vmem:[#allocation3 + $0x3fc] sm:$0xf] %v1878_v4  ;;  %v1486_v6 = vsel %vm14247_vm13, %v1481_v63, %v1485_v31  ;;  %v839_v40 = vrot.slane %v835_v2, 4  ;;  %12545 = vmatprep.subr.bf16.mxu1 %v13450_v5 }
 0x158   : > { %v13422_v7 = vld [vmem:[#allocation3 + $0x3ac] ss:$36 sps:$4 sm:$0xff]   ;;  %v11725_v27 = vcombine.low %v3645_v0, %v3650_v52  ;;  %1911 = vst [vmem:[#allocation3 + $0x420] sm:$0xf] %v1879_v29  ;;  %v1043_v34 = vld [vmem:[#allocation2 + $0xb8] sm:$0xf]  ;;  %v838_v48 = vor.u32 %v836_v38, %v835_v2 }
 0x159   : > { %5123 = vmatprep.mubr.bf16.mxu0 %v13422_v7  ;;  %1074 = vst [vmem:[#allocation3 + $0x438] sm:$0xf] %v1042_v30  ;;  %v1121_v35 = vld [vmem:[#allocation2 + $0xb4] sm:$0xf]  ;;  %1847 = vst [vmem:[#allocation3 + $0x41c] sm:$0xf] %v1778_v32 }
 0x15a   : > { %5124 = vmatmul.mubr.bf16.gmra.mxu0 %v11725_v27  ;;  %1075 = vst [vmem:[#allocation3 + $0x45c] sm:$0xf] %v1043_v34  ;;  %v1122_v37 = vld [vmem:[#allocation2 + $0xb8] sm:$0xf]  ;;  %v1488_v28 = vshrl.u32 %v1121_v35, 16  ;;  %v1491_v53 = vshll.u32 %v1121_v35, 16 }
 0x15b   : > { %v1497_v39 = vshll.u32 %v1122_v37, 16  ;;  %v1501_v56 = vshrl.u32 %v1122_v37, 16  ;;  %v1620_v41 = vld [vmem:[#allocation2 + $0xb4] sm:$0xe]  ;;  %1572 = vst [vmem:[#allocation3 + $0x418] sm:$0xf] %v1486_v6 }
 0x15c   : > { %v1002_v44 = vld [vmem:[#allocation2 + $0xbc] sm:$0x1]  ;;  %v1490_v42 = vrot.slane %v1488_v28, 4  ;;  %v1493_v45 = vrot.slane %v1491_v53, 5  ;;  %v14704_v46 = vrot.slane %v841_v33, 7  ;;  %v11575_v3 = vrot.slane %v1620_v41, 9 }
 0x15d   : > { %v1003_v51 = vsel %vm14199_vm3, %v831_v61, %v1002_v44  ;;  %v1499_v54 = vrot.slane %v1497_v39, 5  ;;  %v1503_v57 = vrot.slane %v1501_v56, 4  ;;  %v1005_v55 = vld [vmem:[#allocation2 + $0xc0] sm:$0xf]  ;;  %v1621_v63 = vld [vmem:[#allocation2 + $0xb8] sm:$0xf] }
 0x15e   : > { %1004 = vst [vmem:[#allocation2 + $0xbc] sm:$0x1] %v1003_v51  ;;  %v1494_v62 = vor.u32 %v1493_v45, %v1490_v42  ;;  %v1006_v0 = vsel %vm14239_vm12, %v838_v48, %v1005_v55  ;;  %v3655_v8 = vld [vmem:[#allocation3 + $0x3f0] sm:$0xff]  ;;  %v846_v9 = vor.u32 %v844_v59, %v14704_v46  ;;  %v1781_v61 = vrot.slane %v1621_v63, 5  ;;  %v13453_v10 = vld [vmem:[#allocation7 + $0x180] sm:$0xff]   ;;  %v14719_v18 = vld [vmem:[#allocation7 + $0x238] sm:$0xff]  }
 0x15f   : > { %v1504_v13 = vor.u32 %v1503_v57, %v1499_v54  ;;  %1007 = vst [vmem:[#allocation2 + $0xc0] sm:$0xf] %v1006_v0  ;;  %v13433_v1 = vld [vmem:[#allocation3 + $0x3fc] ss:$36 sps:$4 sm:$0xff]   ;;  %v1914_v7 = vld [vmem:[#allocation2 + $0xc] sm:$0xf]  ;;  %13139 = vmatprep.subr.bf16.mxu0 %v14719_v18  ;;  %12546 = vmatpush3.bf16.msra.mxu1 %v13453_v10 }
 0x160   : > { %v1495_v12 = vrot.slane %v1494_v62, 4  ;;  %v13436_v50 = vld [vmem:[#allocation3 + $0x3f8] ss:$36 sps:$4 sm:$0xff]   ;;  %v847_v11 = vsel %vm14257_vm14, %v839_v40, %v846_v9  ;;  %v1782_v14 = vsel %vm14224_vm10, %v11575_v3, %v1781_v61  ;;  %5292 = vmatprep.mubr.bf16.mxu1 %v13433_v1  ;;  %v1783_v20 = vrot.slane %v1781_v61, 4  ;;  %v2410_v53 = vld [vmem:[#allocation2 + $0xc] sm:$0xe] }
 0x161   : > { %v1505_v16 = vrot.slane %v1504_v13, 4  ;;  %1008 = vst [vmem:[#allocation2 + $0xc4] sm:$0xf] %v847_v11  ;;  %1848 = vst [vmem:[#allocation3 + $0x440] sm:$0xf] %v1782_v14  ;;  %5293 = vmatmul.mubr.bf16.gmra.mxu1 %v13436_v50  ;;  %v1963_v4 = vshrl.u32 %v1914_v7, 16 }
 0x162   : > { %v1500_v15 = vsel %vm14247_vm13, %v1495_v12, %v1499_v54  ;;  %v3660_v58 = vld [vmem:[#allocation3 + $0x414] sm:$0xff]  ;;  %v1916_v23 = vld [vmem:[#allocation2 + $0x14] sm:$0x1]  ;;  %v1966_v29 = vshll.u32 %v1914_v7, 16  ;;  %v11576_v42 = vrot.slane %v2410_v53, 9 }
 0x163   : > { %v13431_v19 = vld [vmem:[#allocation3 + $0x3f4] ss:$36 sps:$4 sm:$0xff]   ;;  %1573 = vst [vmem:[#allocation3 + $0x43c] sm:$0xf] %v1500_v15  ;;  %v11734_v52 = vcombine.low %v3655_v8, %v3660_v58  ;;  %v1965_v2 = vrot.slane %v1963_v4, 4  ;;  %v1982_v28 = vshll.u32 %v1916_v23, 16 }
 0x164   : > { %v1915_v21 = vld [vmem:[#allocation2 + $0x10] sm:$0xf]  ;;  %5131 = vmatprep.mubr.bf16.mxu0 %v13431_v19  ;;  %v1968_v37 = vrot.slane %v1966_v29, 5  ;;  %v2412_v44 = vld [vmem:[#allocation2 + $0x14] sm:$0x1] }
 0x165   : > { %v1123_v26 = vld [vmem:[#allocation2 + $0xbc] sm:$0x1]  ;;  %5132 = vmatmul.mubr.bf16.gmra.mxu0 %v11734_v52  ;;  %v1972_v34 = vshll.u32 %v1915_v21, 16  ;;  %v1976_v35 = vshrl.u32 %v1915_v21, 16  ;;  %v2411_v56 = vld [vmem:[#allocation2 + $0x10] sm:$0xf] }
 0x166   : > { %v1622_v27 = vld [vmem:[#allocation2 + $0xbc] sm:$0x1]  ;;  %v1507_v30 = vshll.u32 %v1123_v26, 16  ;;  %v1880_v32 = vld [vmem:[#allocation2 + $0xc0] sm:$0xf]  ;;  %v1969_v41 = vor.u32 %v1968_v37, %v1965_v2  ;;  %v1984_v43 = vrot.slane %v1982_v28, 5 }
 0x167   : > { %v1784_v31 = vrot.slane %v1622_v27, 5  ;;  %1912 = vst [vmem:[#allocation3 + $0x444] sm:$0xf] %v1880_v32  ;;  %v1974_v6 = vrot.slane %v1972_v34, 5  ;;  %v1978_v39 = vrot.slane %v1976_v35, 4  ;;  %v2508_v49 = vrot.slane %v2411_v56, 5 }
 0x168   : > { %v1509_v38 = vrot.slane %v1507_v30, 5  ;;  %v1881_v40 = vld [vmem:[#allocation2 + $0xc4] sm:$0xf]  ;;  %v2511_v51 = vrot.slane %v2412_v44, 5  ;;  %v1970_v54 = vrot.slane %v1969_v41, 4 }
 0x169   : > { %v1785_v33 = vsel %vm14224_vm10, %v1783_v20, %v1784_v31  ;;  %1913 = vst [vmem:[#allocation3 + $0x468] sm:$0xf] %v1881_v40  ;;  %v1979_v48 = vor.u32 %v1978_v39, %v1974_v6  ;;  %v2509_v59 = vsel %vm14224_vm10, %v11576_v42, %v2508_v49  ;;  %v2510_v55 = vrot.slane %v2508_v49, 4  ;;  %v2683_v47 = vld [vmem:[#allocation2 + $0x18] sm:$0xf] }
 0x16a   : > { %1849 = vst [vmem:[#allocation3 + $0x464] sm:$0xf] %v1785_v33  ;;  %v1510_v45 = vsel %vm14247_vm13, %v1505_v16, %v1509_v38  ;;  %v1975_v62 = vsel %vm14247_vm13, %v1970_v54, %v1974_v6  ;;  %2650 = vst [vmem:[#allocation3 + $0x14] sm:$0xf] %v2509_v59  ;;  %v2684_v0 = vld [vmem:[#allocation2 + $0x1c] sm:$0xf]  ;;  %v12211_v38 = vpop.f32.mrf.mxu0 }
 0x16b   : > { %1574 = vst [vmem:[#allocation3 + $0x460] sm:$0xf] %v1510_v45  ;;  %v1980_v57 = vrot.slane %v1979_v48, 4  ;;  %2715 = vst [vmem:[#allocation3 + $0x18] sm:$0xf] %v2683_v47  ;;  %v3665_v5 = vld [vmem:[#allocation3 + $0x438] sm:$0xff]  ;;  %v2512_v13 = vsel %vm14224_vm10, %v2510_v55, %v2511_v51 }
 0x16c   : > { %v2747_v63 = vld [vmem:[#allocation2 + $0x18] sm:$0xf]  ;;  %v2748_v3 = vld [vmem:[#allocation2 + $0x1c] sm:$0xf]  ;;  %2378 = vst [vmem:[#allocation3 + $0x10] sm:$0xf] %v1975_v62  ;;  %v12212_v44 = vpop.f32.mrf.mxu0 }
 0x16d   : > { %v1985_v8 = vsel %vm14247_vm13, %v1980_v57, %v1984_v43  ;;  %2716 = vst [vmem:[#allocation3 + $0x3c] sm:$0xf] %v2684_v0  ;;  %v2749_v9 = vld [vmem:[#allocation2 + $0x20] sm:$0x1]  ;;  %v2796_v61 = vshrl.u32 %v2747_v63, 16  ;;  %v2799_v10 = vshll.u32 %v2747_v63, 16  ;;  %v14738_v63 = vadd.f32 %v12212_v44, %v12211_v38 }
 0x16e   : > { %2379 = vst [vmem:[#allocation3 + $0x34] sm:$0xf] %v1985_v8  ;;  %2651 = vst [vmem:[#allocation3 + $0x38] sm:$0xf] %v2512_v13  ;;  %v2805_v12 = vshll.u32 %v2748_v3, 16  ;;  %v2809_v1 = vshrl.u32 %v2748_v3, 16 }
 0x16f   : > { %v2815_v50 = vshll.u32 %v2749_v9, 16  ;;  %v1917_v11 = vld [vmem:[#allocation2 + $0x18] sm:$0xf]  ;;  %v2798_v14 = vrot.slane %v2796_v61, 4  ;;  %v2801_v15 = vrot.slane %v2799_v10, 5  ;;  %v12323_v61 = vpop.f32.mrf.mxu1  ;;  %v12214_v10 = vpop.f32.mrf.mxu0 }
 0x170   : > { %v1918_v16 = vld [vmem:[#allocation2 + $0x1c] sm:$0xf]  ;;  %v1919_v58 = vld [vmem:[#allocation2 + $0x20] sm:$0x1]  ;;  %v2807_v52 = vrot.slane %v2805_v12, 5  ;;  %v2811_v26 = vrot.slane %v2809_v1, 4 }
 0x171   : > { %v13444_v19 = vld [vmem:[#allocation3 + $0x444] ss:$36 sps:$4 sm:$0xff]   ;;  %v2802_v23 = vor.u32 %v2801_v15, %v2798_v14  ;;  %v2817_v27 = vrot.slane %v2815_v50, 5  ;;  %v1987_v4 = vshrl.u32 %v1917_v11, 16  ;;  %v1990_v30 = vshll.u32 %v1917_v11, 16  ;;  %v13468_v15 = vld [vmem:[#allocation7 + $0x230] sm:$0xff]  }
 0x172   : > { %v13447_v20 = vld [vmem:[#allocation3 + $0x440] ss:$36 sps:$4 sm:$0xff]   ;;  %5300 = vmatprep.mubr.bf16.mxu1 %v13444_v19  ;;  %v1996_v31 = vshll.u32 %v1918_v16, 16  ;;  %v2000_v32 = vshrl.u32 %v1918_v16, 16  ;;  %v2812_v2 = vor.u32 %v2811_v26, %v2807_v52  ;;  %v2006_v28 = vshll.u32 %v1919_v58, 16 }
 0x173   : > { %v3670_v7 = vld [vmem:[#allocation3 + $0x45c] sm:$0xff]  ;;  %5301 = vmatmul.mubr.bf16.gmra.mxu1 %v13447_v20  ;;  %v2803_v35 = vrot.slane %v2802_v23, 4  ;;  %v1989_v37 = vrot.slane %v1987_v4, 4  ;;  %v2414_v53 = vld [vmem:[#allocation2 + $0x1c] sm:$0xf]  ;;  %v1992_v33 = vrot.slane %v1990_v30, 5 }
 0x174   : > { %v13442_v21 = vld [vmem:[#allocation3 + $0x43c] ss:$36 sps:$4 sm:$0xff]   ;;  %v11743_v29 = vcombine.low %v3665_v5, %v3670_v7  ;;  %v1998_v6 = vrot.slane %v1996_v31, 5  ;;  %v2002_v39 = vrot.slane %v2000_v32, 4  ;;  %v2415_v56 = vld [vmem:[#allocation2 + $0x20] sm:$0x1] }
 0x175   : > { %v2413_v34 = vld [vmem:[#allocation2 + $0x18] sm:$0xe]  ;;  %5139 = vmatprep.mubr.bf16.mxu0 %v13442_v21  ;;  %v13451_v40 = vld [vmem:[#allocation3 + $0x14] ss:$36 sps:$4 sm:$0xff]   ;;  %v2808_v41 = vsel %vm14247_vm13, %v2803_v35, %v2807_v52  ;;  %v2813_v43 = vrot.slane %v2812_v2, 4  ;;  %v1993_v45 = vor.u32 %v1992_v33, %v1989_v37  ;;  %v2008_v49 = vrot.slane %v2006_v28, 5  ;;  %v12324_v21 = vpop.f32.mrf.mxu1  ;;  %v12215_v28 = vpop.f32.mrf.mxu0 }
 0x176   : > { %5140 = vmatmul.mubr.bf16.gmra.mxu0 %v11743_v29  ;;  %v13454_v42 = vld [vmem:[#allocation3 + $0x10] ss:$36 sps:$4 sm:$0xff]   ;;  %3211 = vst [vmem:[#allocation3 + $0x1c] sm:$0xf] %v2808_v41  ;;  %v2003_v48 = vor.u32 %v2002_v39, %v1998_v6  ;;  %v11577_v51 = vrot.slane %v2413_v34, 9  ;;  %v2515_v55 = vrot.slane %v2414_v53, 5 }
 0x177   : > { %v2685_v54 = vld [vmem:[#allocation2 + $0x24] sm:$0xf]  ;;  %v2686_v57 = vld [vmem:[#allocation2 + $0x28] sm:$0xf]  ;;  %5341 = vmatprep.mubr.bf16.mxu0 %v13451_v40  ;;  %v2818_v59 = vsel %vm14247_vm13, %v2813_v43, %v2817_v27  ;;  %v2518_v47 = vrot.slane %v2415_v56, 5  ;;  %v1994_v3 = vrot.slane %v1993_v45, 4  ;;  %v12326_v37 = vpop.f32.mrf.mxu1 }
 0x178   : > { %2717 = vst [vmem:[#allocation3 + $0x60] sm:$0xf] %v2685_v54  ;;  %2718 = vst [vmem:[#allocation3 + $0x84] sm:$0xf] %v2686_v57  ;;  %v2750_v62 = vld [vmem:[#allocation2 + $0x24] sm:$0xf]  ;;  %v2516_v12 = vsel %vm14224_vm10, %v11577_v51, %v2515_v55  ;;  %v12216_v51 = vadd.f32 %v12215_v28, %v12214_v10 }
 0x179   : > { %v2751_v0 = vld [vmem:[#allocation2 + $0x28] sm:$0xf]  ;;  %3212 = vst [vmem:[#allocation3 + $0x40] sm:$0xf] %v2818_v59  ;;  %v2004_v5 = vrot.slane %v2003_v48, 4  ;;  %v2820_v13 = vshrl.u32 %v2750_v62, 16  ;;  %v1999_v16 = vsel %vm14247_vm13, %v1994_v3, %v1998_v6  ;;  %v12327_v44 = vpop.f32.mrf.mxu1 }
 0x17a   : > { %v2752_v8 = vld [vmem:[#allocation2 + $0x2c] sm:$0x1]  ;;  %v2823_v9 = vshll.u32 %v2750_v62, 16  ;;  %v2517_v1 = vrot.slane %v2515_v55, 4  ;;  %v2829_v50 = vshll.u32 %v2751_v0, 16  ;;  %v2833_v11 = vshrl.u32 %v2751_v0, 16 }
 0x17b   : > { %v1920_v14 = vld [vmem:[#allocation2 + $0x24] sm:$0xf]  ;;  %v2009_v58 = vsel %vm14247_vm13, %v2004_v5, %v2008_v49  ;;  %2652 = vst [vmem:[#allocation3 + $0x5c] sm:$0xf] %v2516_v12  ;;  %v2822_v19 = vrot.slane %v2820_v13, 4  ;;  %v2839_v4 = vshll.u32 %v2752_v8, 16  ;;  %v12325_v49 = vadd.f32 %v12324_v21, %v12323_v61 }
 0x17c   : > { %v2825_v20 = vrot.slane %v2823_v9, 5  ;;  %v1921_v52 = vld [vmem:[#allocation2 + $0x28] sm:$0xf]  ;;  %v1922_v7 = vld [vmem:[#allocation2 + $0x2c] sm:$0x1]  ;;  %v2519_v23 = vsel %vm14224_vm10, %v2517_v1, %v2518_v47  ;;  %v2831_v26 = vrot.slane %v2829_v50, 5  ;;  %v12328_v54 = vadd.f32 %v12327_v44, %v12326_v37 }
 0x17d   : > { %2380 = vst [vmem:[#allocation3 + $0x58] sm:$0xf] %v1999_v16  ;;  %2381 = vst [vmem:[#allocation3 + $0x7c] sm:$0xf] %v2009_v58  ;;  %v2835_v27 = vrot.slane %v2833_v11, 4  ;;  %v2011_v30 = vshrl.u32 %v1920_v14, 16  ;;  %v14757_v1 = vadd.f32 %v12325_v49, %v14738_v63  ;;  %v12217_v11 = vpop.f32.mrf.mxu0 }
 0x17e   : > { %5342 = vmatmul.mubr.bf16.vlgmr.msra.gmra.mxu0 %v13454_v42  ;;  %2653 = vst [vmem:[#allocation3 + $0x80] sm:$0xf] %v2519_v23  ;;  %v2826_v29 = vor.u32 %v2825_v20, %v2822_v19  ;;  %v2014_v31 = vshll.u32 %v1920_v14, 16  ;;  %v2020_v32 = vshll.u32 %v1921_v52, 16  ;;  %v2416_v34 = vld [vmem:[#allocation2 + $0x24] sm:$0xe]  ;;  %v14759_v50 = vadd.f32 %v12328_v54, %v12216_v51 }
 0x17f   : > { %v2417_v35 = vld [vmem:[#allocation2 + $0x28] sm:$0xf]  ;;  %v14748_v2 = vld [vmem:[#allocation7 + $0x228] sm:$0xff]   ;;  %13140 = vmatpush3.bf16.msra.mxu0 %v14719_v18  ;;  %v2836_v53 = vor.u32 %v2835_v27, %v2831_v26  ;;  %v2841_v38 = vrot.slane %v2839_v4, 5  ;;  %v2024_v33 = vshrl.u32 %v1921_v52, 16  ;;  %v2030_v6 = vshll.u32 %v1922_v7, 16  ;;  %v12218_v23 = vpop.f32.mrf.mxu0 }
 0x180   : > { %v2418_v39 = vld [vmem:[#allocation2 + $0x2c] sm:$0x1]  ;;  %v2827_v56 = vrot.slane %v2826_v29, 4  ;;  %v2013_v40 = vrot.slane %v2011_v30, 4  ;;  %v2016_v41 = vrot.slane %v2014_v31, 5  ;;  %v2022_v43 = vrot.slane %v2020_v32, 5  ;;  %13141 = vmatprep.subr.bf16.mxu0 %v13468_v15  ;;  %v12329_v31 = vpop.f32.mrf.mxu1 }
 0x181   : > { %v13456_v42 = vld [vmem:[#allocation3 + $0x1c] ss:$36 sps:$4 sm:$0xff]   ;;  %v2837_v48 = vrot.slane %v2836_v53, 4  ;;  %v2026_v59 = vrot.slane %v2024_v33, 4  ;;  %v2032_v55 = vrot.slane %v2030_v6, 5  ;;  %v11578_v0 = vrot.slane %v2416_v34, 9 }
 0x182   : > { %v13458_v45 = vld [vmem:[#allocation3 + $0x18] ss:$36 sps:$4 sm:$0xff]   ;;  %v2832_v18 = vsel %vm14247_vm13, %v2827_v56, %v2831_v26  ;;  %v2017_v57 = vor.u32 %v2016_v41, %v2013_v40  ;;  %5502 = vmatprep.mubr.bf16.mxu1 %v13456_v42  ;;  %v2522_v3 = vrot.slane %v2417_v35, 5  ;;  %v2525_v5 = vrot.slane %v2418_v39, 5  ;;  %v13494_v13 = vld [vmem:[#allocation7 + $0x220] sm:$0xff]   ;;  %v12330_v40 = vpop.f32.mrf.mxu1 }
 0x183   : > { %v2687_v47 = vld [vmem:[#allocation2 + $0x30] sm:$0xf]  ;;  %v2842_v62 = vsel %vm14247_vm13, %v2837_v48, %v2841_v38  ;;  %3213 = vst [vmem:[#allocation3 + $0x64] sm:$0xf] %v2832_v18  ;;  %v2688_v8 = vld [vmem:[#allocation2 + $0x34] sm:$0xf]  ;;  %13142 = vmatpush3.bf16.msra.mxu0 %v13468_v15  ;;  %5503 = vmatmul.mubr.bf16.vlgmr.msra.gmra.mxu1 %v13458_v45  ;;  %v2027_v61 = vor.u32 %v2026_v59, %v2022_v43  ;;  %v12220_v38 = vpop.f32.mrf.mxu0 }
 0x184   : > { %2719 = vst [vmem:[#allocation3 + $0xa8] sm:$0xf] %v2687_v47  ;;  %3214 = vst [vmem:[#allocation3 + $0x88] sm:$0xf] %v2842_v62  ;;  %v2018_v9 = vrot.slane %v2017_v57, 4  ;;  %13143 = vmatprep.subr.bf16.mxu0 %v14748_v2  ;;  %v2523_v15 = vsel %vm14224_vm10, %v11578_v0, %v2522_v3  ;;  %v2524_v58 = vrot.slane %v2522_v3, 4  ;;  %v12219_v53 = vadd.f32 %v12218_v23, %v12217_v11  ;;  %v12332_v59 = vpop.f32.mrf.mxu1 }
 0x185   : > { %2720 = vst [vmem:[#allocation3 + $0xcc] sm:$0xf] %v2688_v8  ;;  %v2753_v10 = vld [vmem:[#allocation2 + $0x30] sm:$0xf]  ;;  %v2754_v12 = vld [vmem:[#allocation2 + $0x34] sm:$0xf]  ;;  %v12331_v57 = vadd.f32 %v12330_v40, %v12329_v31 }
 0x186   : > { %v13459_v14 = vld [vmem:[#allocation3 + $0x5c] ss:$36 sps:$4 sm:$0xff]   ;;  %v2023_v19 = vsel %vm14247_vm13, %v2018_v9, %v2022_v43  ;;  %v2028_v20 = vrot.slane %v2027_v61, 4  ;;  %2654 = vst [vmem:[#allocation3 + $0xa4] sm:$0xf] %v2523_v15  ;;  %v2844_v7 = vshrl.u32 %v2753_v10, 16  ;;  %v2526_v63 = vsel %vm14224_vm10, %v2524_v58, %v2525_v5  ;;  %v12221_v5 = vpop.f32.mrf.mxu0  ;;  %v12333_v11 = vpop.f32.mrf.mxu1 }
 0x187   : > { %v13461_v16 = vld [vmem:[#allocation3 + $0x58] ss:$36 sps:$4 sm:$0xff]   ;;  %v2755_v52 = vld [vmem:[#allocation2 + $0x38] sm:$0x1]  ;;  %v2847_v21 = vshll.u32 %v2753_v10, 16  ;;  %5349 = vmatprep.mubr.bf16.mxu0 %v13459_v14  ;;  %v2853_v26 = vshll.u32 %v2754_v12, 16  ;;  %13144 = vmatpush3.bf16.msra.mxu0 %v14748_v2  ;;  %v12222_v31 = vadd.f32 %v12221_v5, %v12220_v38 }
 0x188   : > { %2382 = vst [vmem:[#allocation3 + $0xa0] sm:$0xf] %v2023_v19  ;;  %v2857_v27 = vshrl.u32 %v2754_v12, 16  ;;  %v2863_v4 = vshll.u32 %v2755_v52, 16  ;;  %v1923_v29 = vld [vmem:[#allocation2 + $0x30] sm:$0xf]  ;;  %5350 = vmatmul.mubr.bf16.gmra.mxu0 %v13461_v16  ;;  %v2033_v32 = vsel %vm14247_vm13, %v2028_v20, %v2032_v55  ;;  %13145 = vmatprep.subr.bf16.mxu0 %v13494_v13 }
 0x189   : > { %v13507_v30 = vld [vmem:[#allocation7 + $0x218] sm:$0xff]   ;;  %2655 = vst [vmem:[#allocation3 + $0xc8] sm:$0xf] %v2526_v63  ;;  %v2846_v34 = vrot.slane %v2844_v7, 4  ;;  %v2849_v35 = vrot.slane %v2847_v21, 5  ;;  %v2855_v33 = vrot.slane %v2853_v26, 5 }
 0x18a   : > { %v1924_v37 = vld [vmem:[#allocation2 + $0x34] sm:$0xf]  ;;  %v1925_v28 = vld [vmem:[#allocation2 + $0x38] sm:$0x1]  ;;  %2383 = vst [vmem:[#allocation3 + $0xc4] sm:$0xf] %v2033_v32  ;;  %v12334_v32 = vadd.f32 %v12333_v11, %v12332_v59 }
 0x18b   : > { %v2859_v6 = vrot.slane %v2857_v27, 4  ;;  %v2865_v39 = vrot.slane %v2863_v4, 5  ;;  %v2035_v56 = vshrl.u32 %v1923_v29, 16  ;;  %v2419_v2 = vld [vmem:[#allocation2 + $0x30] sm:$0xe]  ;;  %v2850_v41 = vor.u32 %v2849_v35, %v2846_v34  ;;  %v14770_v48 = vld [vmem:[#allocation7 + $0x210] sm:$0xff]   ;;  %13146 = vmatpush3.bf16.msra.mxu0 %v13494_v13  ;;  %v12223_v34 = vpop.f32.mrf.mxu0 }
 0x18c   : > { %v2038_v43 = vshll.u32 %v1923_v29, 16  ;;  %v2044_v44 = vshll.u32 %v1924_v37, 16  ;;  %v2048_v42 = vshrl.u32 %v1924_v37, 16  ;;  %v2420_v45 = vld [vmem:[#allocation2 + $0x34] sm:$0xf]  ;;  %13147 = vmatprep.subr.bf16.mxu0 %v13507_v30  ;;  %v2054_v9 = vshll.u32 %v1925_v28, 16 }
 0x18d   : > { %v13462_v49 = vld [vmem:[#allocation3 + $0x64] ss:$36 sps:$4 sm:$0xff]   ;;  %v2860_v54 = vor.u32 %v2859_v6, %v2855_v33  ;;  %v2037_v18 = vrot.slane %v2035_v56, 4  ;;  %v2851_v55 = vrot.slane %v2850_v41, 4  ;;  %v2421_v3 = vld [vmem:[#allocation2 + $0x38] sm:$0x1]  ;;  %v14778_v29 = vadd.f32 %v12331_v57, %v12219_v53  ;;  %v12224_v41 = vpop.f32.mrf.mxu0 }
 0x18e   : > { %v13464_v51 = vld [vmem:[#allocation3 + $0x60] ss:$36 sps:$4 sm:$0xff]   ;;  %v2040_v47 = vrot.slane %v2038_v43, 5  ;;  %v2046_v62 = vrot.slane %v2044_v44, 5  ;;  %v2050_v0 = vrot.slane %v2048_v42, 4  ;;  %5510 = vmatprep.mubr.bf16.mxu1 %v13462_v49  ;;  %v11579_v61 = vrot.slane %v2419_v2, 9 }
 0x18f   : > { %v2861_v8 = vrot.slane %v2860_v54, 4  ;;  %v2529_v10 = vrot.slane %v2420_v45, 5  ;;  %v2689_v12 = vld [vmem:[#allocation2 + $0x3c] sm:$0xf]  ;;  %5511 = vmatmul.mubr.bf16.gmra.mxu1 %v13464_v51  ;;  %v2856_v13 = vsel %vm14247_vm13, %v2851_v55, %v2855_v33  ;;  %v2532_v15 = vrot.slane %v2421_v3, 5  ;;  %13148 = vmatpush3.bf16.msra.mxu0 %v13507_v30  ;;  %v12335_v30 = vpop.f32.mrf.mxu1 }
 0x190   : > { %v2041_v14 = vor.u32 %v2040_v47, %v2037_v18  ;;  %v2051_v16 = vor.u32 %v2050_v0, %v2046_v62  ;;  %v2690_v58 = vld [vmem:[#allocation2 + $0x40] sm:$0xf]  ;;  %2721 = vst [vmem:[#allocation3 + $0xf0] sm:$0xf] %v2689_v12  ;;  %v2756_v19 = vld [vmem:[#allocation2 + $0x3c] sm:$0xf]  ;;  %13149 = vmatprep.subr.bf16.mxu0 %v14770_v48  ;;  %v12226_v47 = vpop.f32.mrf.mxu0 }
 0x191   : > { %v2866_v20 = vsel %vm14247_vm13, %v2861_v8, %v2865_v39  ;;  %3215 = vst [vmem:[#allocation3 + $0xac] sm:$0xf] %v2856_v13  ;;  %v2056_v52 = vrot.slane %v2054_v9, 5  ;;  %v2530_v7 = vsel %vm14224_vm10, %v11579_v61, %v2529_v10  ;;  %v2531_v21 = vrot.slane %v2529_v10, 4  ;;  %2722 = vst [vmem:[#allocation3 + $0x114] sm:$0xf] %v2690_v58  ;;  %v12336_v51 = vpop.f32.mrf.mxu1 }
 0x192   : > { %v2757_v23 = vld [vmem:[#allocation2 + $0x40] sm:$0xf]  ;;  %v2758_v63 = vld [vmem:[#allocation2 + $0x44] sm:$0x1]  ;;  %v13467_v27 = vld [vmem:[#allocation3 + $0xa0] ss:$36 sps:$4 sm:$0xff]  }
 0x193   : > { %v13465_v26 = vld [vmem:[#allocation3 + $0xa4] ss:$36 sps:$4 sm:$0xff]   ;;  %3216 = vst [vmem:[#allocation3 + $0xd0] sm:$0xf] %v2866_v20  ;;  %v2042_v4 = vrot.slane %v2041_v14, 4  ;;  %v2052_v35 = vrot.slane %v2051_v16, 4  ;;  %v2533_v37 = vsel %vm14224_vm10, %v2531_v21, %v2532_v15  ;;  %13150 = vmatpush3.bf16.msra.mxu0 %v14770_v48  ;;  %v12338_v9 = vpop.f32.mrf.mxu1  ;;  %v12227_v14 = vpop.f32.mrf.mxu0  ;;  %v12225_v48 = vadd.f32 %v12224_v41, %v12223_v34 }
 0x194   : > { %2656 = vst [vmem:[#allocation3 + $0xec] sm:$0xf] %v2530_v7  ;;  %v2868_v28 = vshrl.u32 %v2756_v19, 16  ;;  %v2871_v33 = vshll.u32 %v2756_v19, 16  ;;  %v1926_v6 = vld [vmem:[#allocation2 + $0x3c] sm:$0xf]  ;;  %5357 = vmatprep.mubr.bf16.mxu0 %v13465_v26  ;;  %v14788_v19 = vadd.f32 %v12334_v32, %v12222_v31  ;;  %v12337_v20 = vadd.f32 %v12336_v51, %v12335_v30 }
 0x195   : > { %v13533_v39 = vld [vmem:[#allocation7 + $0x208] sm:$0xff]   ;;  %v2047_v56 = vsel %vm14247_vm13, %v2042_v4, %v2046_v62  ;;  %2657 = vst [vmem:[#allocation3 + $0x110] sm:$0xf] %v2533_v37  ;;  %v2877_v53 = vshll.u32 %v2757_v23, 16  ;;  %v2881_v38 = vshrl.u32 %v2757_v23, 16  ;;  %v2887_v2 = vshll.u32 %v2758_v63, 16  ;;  %5358 = vmatmul.mubr.bf16.gmra.mxu0 %v13467_v27  ;;  %v12339_v63 = vpop.f32.mrf.mxu1 }
 0x196   : > { %v1927_v40 = vld [vmem:[#allocation2 + $0x40] sm:$0xf]  ;;  %v2057_v43 = vsel %vm14247_vm13, %v2052_v35, %v2056_v52  ;;  %2384 = vst [vmem:[#allocation3 + $0xe8] sm:$0xf] %v2047_v56  ;;  %v2870_v44 = vrot.slane %v2868_v28, 4  ;;  %v2873_v42 = vrot.slane %v2871_v33, 5  ;;  %13151 = vmatprep.subr.bf16.mxu0 %v13533_v39  ;;  %v14794_v33 = vadd.f32 %v12337_v20, %v12225_v48 }
 0x197   : > { %v1928_v45 = vld [vmem:[#allocation2 + $0x44] sm:$0x1]  ;;  %v2059_v49 = vshrl.u32 %v1926_v6, 16  ;;  %2385 = vst [vmem:[#allocation3 + $0x10c] sm:$0xf] %v2057_v43  ;;  %v2879_v54 = vrot.slane %v2877_v53, 5  ;;  %13152 = vmatpush3.bf16.msra.mxu0 %v13533_v39 }
 0x198   : > { %v2883_v18 = vrot.slane %v2881_v38, 4  ;;  %v2889_v57 = vrot.slane %v2887_v2, 5  ;;  %v2062_v59 = vshll.u32 %v1926_v6, 16  ;;  %v2422_v55 = vld [vmem:[#allocation2 + $0x3c] sm:$0xe]  ;;  %v2874_v62 = vor.u32 %v2873_v42, %v2870_v44  ;;  %v12229_v6 = vpop.f32.mrf.mxu0 }
 0x199   : > { %v2061_v0 = vrot.slane %v2059_v49, 4  ;;  %v2068_v3 = vshll.u32 %v1927_v40, 16  ;;  %v2072_v5 = vshrl.u32 %v1927_v40, 16  ;;  %v2423_v8 = vld [vmem:[#allocation2 + $0x40] sm:$0xf]  ;;  %v2078_v12 = vshll.u32 %v1928_v45, 16 }
 0x19a   : > { %v2884_v61 = vor.u32 %v2883_v18, %v2879_v54  ;;  %v2064_v10 = vrot.slane %v2062_v59, 5  ;;  %v2424_v11 = vld [vmem:[#allocation2 + $0x44] sm:$0x1]  ;;  %v11580_v13 = vrot.slane %v2422_v55, 9  ;;  %v2875_v58 = vrot.slane %v2874_v62, 4  ;;  %v12230_v42 = vpop.f32.mrf.mxu0  ;;  %v13546_v45 = vld [vmem:[#allocation7 + $0x200] sm:$0xff]  }
 0x19b   : > { %v13469_v16 = vld [vmem:[#allocation3 + $0xac] ss:$36 sps:$4 sm:$0xff]   ;;  %v2070_v21 = vrot.slane %v2068_v3, 5  ;;  %v2074_v23 = vrot.slane %v2072_v5, 4  ;;  %v2080_v27 = vrot.slane %v2078_v12, 5  ;;  %v2536_v4 = vrot.slane %v2423_v8, 5  ;;  %13153 = vmatprep.subr.bf16.mxu0 %v13546_v45  ;;  %v12341_v12 = vpop.f32.mrf.mxu1 }
 0x19c   : > { %v13471_v15 = vld [vmem:[#allocation3 + $0xa8] ss:$36 sps:$4 sm:$0xff]   ;;  %v2885_v52 = vrot.slane %v2884_v61, 4  ;;  %v2065_v7 = vor.u32 %v2064_v10, %v2061_v0  ;;  %5518 = vmatprep.mubr.bf16.mxu1 %v13469_v16  ;;  %v2880_v26 = vsel %vm14247_vm13, %v2875_v58, %v2879_v54  ;;  %v2539_v35 = vrot.slane %v2424_v11, 5  ;;  %v2691_v37 = vld [vmem:[#allocation2 + $0x48] sm:$0xf]  ;;  %13154 = vmatpush3.bf16.msra.mxu0 %v13546_v45  ;;  %v12232_v58 = vpop.f32.mrf.mxu0 }
 0x19d   : > { %5519 = vmatmul.mubr.bf16.gmra.mxu1 %v13471_v15  ;;  %3217 = vst [vmem:[#allocation3 + $0xf4] sm:$0xf] %v2880_v26  ;;  %v2075_v34 = vor.u32 %v2074_v23, %v2070_v21  ;;  %v2692_v28 = vld [vmem:[#allocation2 + $0x4c] sm:$0xf]  ;;  %v13472_v30 = vld [vmem:[#allocation3 + $0xec] ss:$36 sps:$4 sm:$0xff]   ;;  %v2537_v56 = vsel %vm14224_vm10, %v11580_v13, %v2536_v4  ;;  %v12228_v38 = vadd.f32 %v12227_v14, %v12226_v47  ;;  %v12342_v23 = vpop.f32.mrf.mxu1 }
 0x19e   : > { %v2890_v31 = vsel %vm14247_vm13, %v2885_v52, %v2889_v57  ;;  %v2066_v32 = vrot.slane %v2065_v7, 4  ;;  %v13474_v39 = vld [vmem:[#allocation3 + $0xe8] ss:$36 sps:$4 sm:$0xff]   ;;  %v2538_v53 = vrot.slane %v2536_v4, 4  ;;  %2723 = vst [vmem:[#allocation3 + $0x138] sm:$0xf] %v2691_v37  ;;  %v12340_v2 = vadd.f32 %v12339_v63, %v12338_v9  ;;  %5365 = vmatprep.mubr.bf16.mxu0 %v13472_v30 }
 0x19f   : > { %3218 = vst [vmem:[#allocation3 + $0x118] sm:$0xf] %v2890_v31  ;;  %2724 = vst [vmem:[#allocation3 + $0x15c] sm:$0xf] %v2692_v28  ;;  %v2076_v41 = vrot.slane %v2075_v34, 4  ;;  %5366 = vmatmul.mubr.bf16.gmra.mxu0 %v13474_v39  ;;  %v12343_v31 = vadd.f32 %v12342_v23, %v12341_v12  ;;  %v12344_v39 = vpop.f32.mrf.mxu1 }
 0x1a0   : > { %v2071_v40 = vsel %vm14247_vm13, %v2066_v32, %v2070_v21  ;;  %2658 = vst [vmem:[#allocation3 + $0x134] sm:$0xf] %v2537_v56  ;;  %v2759_v43 = vld [vmem:[#allocation2 + $0x48] sm:$0xf]  ;;  %v2760_v44 = vld [vmem:[#allocation2 + $0x4c] sm:$0xf]  ;;  %v2540_v49 = vsel %vm14224_vm10, %v2538_v53, %v2539_v35  ;;  %v14804_v3 = vadd.f32 %v12340_v2, %v12228_v38  ;;  %v12231_v35 = vadd.f32 %v12230_v42, %v12229_v6 }
 0x1a1   : > { %2386 = vst [vmem:[#allocation3 + $0x130] sm:$0xf] %v2071_v40  ;;  %v2761_v51 = vld [vmem:[#allocation2 + $0x50] sm:$0x1]  ;;  %v2892_v54 = vshrl.u32 %v2759_v43, 16  ;;  %v2895_v18 = vshll.u32 %v2759_v43, 16  ;;  %v2081_v59 = vsel %vm14247_vm13, %v2076_v41, %v2080_v27  ;;  %v12233_v41 = vpop.f32.mrf.mxu0 }
 0x1a2   : > { %v2901_v57 = vshll.u32 %v2760_v44, 16  ;;  %2659 = vst [vmem:[#allocation3 + $0x158] sm:$0xf] %v2540_v49  ;;  %v2905_v55 = vshrl.u32 %v2760_v44, 16  ;;  %v2911_v47 = vshll.u32 %v2761_v51, 16  ;;  %v14808_v49 = vadd.f32 %v12343_v31, %v12231_v35  ;;  %v12345_v51 = vpop.f32.mrf.mxu1 }
 0x1a3   : > { %v1929_v62 = vld [vmem:[#allocation2 + $0x48] sm:$0xf]  ;;  %v1930_v0 = vld [vmem:[#allocation2 + $0x4c] sm:$0xf]  ;;  %2387 = vst [vmem:[#allocation3 + $0x154] sm:$0xf] %v2081_v59 }
 0x1a4   : > { %v2894_v5 = vrot.slane %v2892_v54, 4  ;;  %v2897_v8 = vrot.slane %v2895_v18, 5  ;;  %v2903_v9 = vrot.slane %v2901_v57, 5  ;;  %v1931_v61 = vld [vmem:[#allocation2 + $0x50] sm:$0x1]  ;;  %v2083_v10 = vshrl.u32 %v1929_v62, 16 }
 0x1a5   : > { %v2907_v11 = vrot.slane %v2905_v55, 4  ;;  %v2913_v13 = vrot.slane %v2911_v47, 5  ;;  %v2086_v14 = vshll.u32 %v1929_v62, 16  ;;  %v2092_v16 = vshll.u32 %v1930_v0, 16  ;;  %v2425_v15 = vld [vmem:[#allocation2 + $0x48] sm:$0xe] }
 0x1a6   : > { %v2898_v48 = vor.u32 %v2897_v8, %v2894_v5  ;;  %v2085_v20 = vrot.slane %v2083_v10, 4  ;;  %v2096_v52 = vshrl.u32 %v1930_v0, 16  ;;  %v2102_v7 = vshll.u32 %v1931_v61, 16  ;;  %v2426_v21 = vld [vmem:[#allocation2 + $0x4c] sm:$0xf] }
 0x1a7   : > { %v13475_v63 = vld [vmem:[#allocation3 + $0xf4] ss:$36 sps:$4 sm:$0xff]   ;;  %v2908_v27 = vor.u32 %v2907_v11, %v2903_v9  ;;  %v2088_v4 = vrot.slane %v2086_v14, 5  ;;  %v2094_v34 = vrot.slane %v2092_v16, 5  ;;  %v11581_v38 = vrot.slane %v2425_v15, 9 }
 0x1a8   : > { %v13477_v26 = vld [vmem:[#allocation3 + $0xf0] ss:$36 sps:$4 sm:$0xff]   ;;  %v2899_v32 = vrot.slane %v2898_v48, 4  ;;  %v2098_v37 = vrot.slane %v2096_v52, 4  ;;  %v2104_v28 = vrot.slane %v2102_v7, 5  ;;  %5526 = vmatprep.mubr.bf16.mxu1 %v13475_v63  ;;  %v2543_v2 = vrot.slane %v2426_v21, 5 }
 0x1a9   : > { %v2427_v30 = vld [vmem:[#allocation2 + $0x50] sm:$0x1]  ;;  %v2909_v56 = vrot.slane %v2908_v27, 4  ;;  %v2089_v53 = vor.u32 %v2088_v4, %v2085_v20  ;;  %v2693_v40 = vld [vmem:[#allocation2 + $0x54] sm:$0xf]  ;;  %5527 = vmatmul.mubr.bf16.gmra.mxu1 %v13477_v26  ;;  %v12234_v8 = vadd.f32 %v12233_v41, %v12232_v58 }
 0x1aa   : > { %v2904_v43 = vsel %vm14247_vm13, %v2899_v32, %v2903_v9  ;;  %v2099_v44 = vor.u32 %v2098_v37, %v2094_v34  ;;  %v2546_v6 = vrot.slane %v2427_v30, 5  ;;  %v2694_v42 = vld [vmem:[#allocation2 + $0x58] sm:$0xf]  ;;  %2725 = vst [vmem:[#allocation3 + $0x180] sm:$0xf] %v2693_v40  ;;  %v2544_v55 = vsel %vm14224_vm10, %v11581_v38, %v2543_v2  ;;  %v12347_v32 = vpop.f32.mrf.mxu1  ;;  %v12235_v40 = vpop.f32.mrf.mxu0 }
 0x1ab   : > { %v2762_v45 = vld [vmem:[#allocation2 + $0x54] sm:$0xf]  ;;  %v13478_v54 = vld [vmem:[#allocation3 + $0x134] ss:$36 sps:$4 sm:$0xff]   ;;  %v2914_v57 = vsel %vm14247_vm13, %v2909_v56, %v2913_v13  ;;  %3219 = vst [vmem:[#allocation3 + $0x13c] sm:$0xf] %v2904_v43  ;;  %v12346_v9 = vadd.f32 %v12345_v51, %v12344_v39 }
 0x1ac   : > { %v13480_v18 = vld [vmem:[#allocation3 + $0x130] ss:$36 sps:$4 sm:$0xff]   ;;  %v2090_v59 = vrot.slane %v2089_v53, 4  ;;  %2726 = vst [vmem:[#allocation3 + $0x1a4] sm:$0xf] %v2694_v42  ;;  %v2100_v47 = vrot.slane %v2099_v44, 4  ;;  %5373 = vmatprep.mubr.bf16.mxu0 %v13478_v54  ;;  %v12348_v41 = vpop.f32.mrf.mxu1 }
 0x1ad   : > { %3220 = vst [vmem:[#allocation3 + $0x160] sm:$0xf] %v2914_v57  ;;  %v2545_v62 = vrot.slane %v2543_v2, 4  ;;  %2660 = vst [vmem:[#allocation3 + $0x17c] sm:$0xf] %v2544_v55  ;;  %v2916_v10 = vshrl.u32 %v2762_v45, 16  ;;  %5374 = vmatmul.mubr.bf16.gmra.mxu0 %v13480_v18  ;;  %v14820_v42 = vadd.f32 %v12346_v9, %v12234_v8 }
 0x1ae   : > { %v2763_v0 = vld [vmem:[#allocation2 + $0x58] sm:$0xf]  ;;  %v2764_v5 = vld [vmem:[#allocation2 + $0x5c] sm:$0x1]  ;;  %v2095_v61 = vsel %vm14247_vm13, %v2090_v59, %v2094_v34  ;;  %v2919_v12 = vshll.u32 %v2762_v45, 16  ;;  %v2105_v14 = vsel %vm14247_vm13, %v2100_v47, %v2104_v28  ;;  %v12349_v45 = vadd.f32 %v12348_v41, %v12347_v32  ;;  %v12236_v59 = vpop.f32.mrf.mxu0  ;;  %v12350_v55 = vpop.f32.mrf.mxu1 }
 0x1af   : > { %v2925_v11 = vshll.u32 %v2763_v0, 16  ;;  %v1932_v13 = vld [vmem:[#allocation2 + $0x54] sm:$0xf]  ;;  %2388 = vst [vmem:[#allocation3 + $0x178] sm:$0xf] %v2095_v61  ;;  %v2547_v16 = vsel %vm14224_vm10, %v2545_v62, %v2546_v6  ;;  %v2929_v15 = vshrl.u32 %v2763_v0, 16  ;;  %v12237_v61 = vadd.f32 %v12236_v59, %v12235_v40 }
 0x1b0   : > { %v2935_v48 = vshll.u32 %v2764_v5, 16  ;;  %v1933_v58 = vld [vmem:[#allocation2 + $0x58] sm:$0xf]  ;;  %v1934_v20 = vld [vmem:[#allocation2 + $0x5c] sm:$0x1]  ;;  %v2918_v52 = vrot.slane %v2916_v10, 4 }
 0x1b1   : > { %2389 = vst [vmem:[#allocation3 + $0x19c] sm:$0xf] %v2105_v14  ;;  %2661 = vst [vmem:[#allocation3 + $0x1a0] sm:$0xf] %v2547_v16  ;;  %v2921_v7 = vrot.slane %v2919_v12, 5  ;;  %v2927_v21 = vrot.slane %v2925_v11, 5  ;;  %v12351_v14 = vpop.f32.mrf.mxu1 }
 0x1b2   : > { %v2107_v23 = vshrl.u32 %v1932_v13, 16  ;;  %v2428_v63 = vld [vmem:[#allocation2 + $0x54] sm:$0xe]  ;;  %v2931_v26 = vrot.slane %v2929_v15, 4  ;;  %v2937_v27 = vrot.slane %v2935_v48, 5  ;;  %v2110_v4 = vshll.u32 %v1932_v13, 16  ;;  %v12238_v13 = vpop.f32.mrf.mxu0 }
 0x1b3   : > { %v2116_v35 = vshll.u32 %v1933_v58, 16  ;;  %v2429_v31 = vld [vmem:[#allocation2 + $0x58] sm:$0xf]  ;;  %v2922_v34 = vor.u32 %v2921_v7, %v2918_v52  ;;  %v2120_v28 = vshrl.u32 %v1933_v58, 16  ;;  %v2126_v30 = vshll.u32 %v1934_v20, 16 }
 0x1b4   : > { %v2109_v37 = vrot.slane %v2107_v23, 4  ;;  %v2430_v39 = vld [vmem:[#allocation2 + $0x5c] sm:$0x1]  ;;  %v2932_v56 = vor.u32 %v2931_v26, %v2927_v21  ;;  %v2112_v53 = vrot.slane %v2110_v4, 5  ;;  %v11582_v2 = vrot.slane %v2428_v63, 9  ;;  %v12239_v26 = vpop.f32.mrf.mxu0  ;;  %v12353_v4 = vpop.f32.mrf.mxu1 }
 0x1b5   : > { %v2118_v38 = vrot.slane %v2116_v35, 5  ;;  %v13482_v43 = vld [vmem:[#allocation3 + $0x13c] ss:$36 sps:$4 sm:$0xff]   ;;  %v2923_v6 = vrot.slane %v2922_v34, 4  ;;  %v2122_v18 = vrot.slane %v2120_v28, 4  ;;  %v2128_v57 = vrot.slane %v2126_v30, 5 }
 0x1b6   : > { %v13484_v44 = vld [vmem:[#allocation3 + $0x138] ss:$36 sps:$4 sm:$0xff]   ;;  %v2933_v51 = vrot.slane %v2932_v56, 4  ;;  %v2113_v54 = vor.u32 %v2112_v53, %v2109_v37  ;;  %5534 = vmatprep.mubr.bf16.mxu1 %v13482_v43  ;;  %v2550_v62 = vrot.slane %v2429_v31, 5  ;;  %v2553_v0 = vrot.slane %v2430_v39, 5  ;;  %v12354_v40 = vpop.f32.mrf.mxu1 }
 0x1b7   : > { %v2928_v47 = vsel %vm14247_vm13, %v2923_v6, %v2927_v21  ;;  %v2695_v5 = vld [vmem:[#allocation2 + $0x60] sm:$0xf]  ;;  %5535 = vmatmul.mubr.bf16.gmra.mxu1 %v13484_v44  ;;  %v2123_v11 = vor.u32 %v2122_v18, %v2118_v38  ;;  %v2696_v48 = vld [vmem:[#allocation2 + $0x64] sm:$0xf]  ;;  %v14828_v20 = vadd.f32 %v12349_v45, %v12237_v61  ;;  %v2767_v23 = vld [vmem:[#allocation2 + $0x68] sm:$0x1] }
 0x1b8   : > { %v13485_v10 = vld [vmem:[#allocation3 + $0x17c] ss:$36 sps:$4 sm:$0xff]   ;;  %v2938_v8 = vsel %vm14247_vm13, %v2933_v51, %v2937_v27  ;;  %3221 = vst [vmem:[#allocation3 + $0x184] sm:$0xf] %v2928_v47  ;;  %v2114_v9 = vrot.slane %v2113_v54, 4  ;;  %v2551_v16 = vsel %vm14224_vm10, %v11582_v2, %v2550_v62  ;;  %v2552_v15 = vrot.slane %v2550_v62, 4  ;;  %v12241_v2 = vpop.f32.mrf.mxu0 }
 0x1b9   : > { %v13487_v12 = vld [vmem:[#allocation3 + $0x178] ss:$36 sps:$4 sm:$0xff]   ;;  %2727 = vst [vmem:[#allocation3 + $0x1c8] sm:$0xf] %v2695_v5  ;;  %3222 = vst [vmem:[#allocation3 + $0x1a8] sm:$0xf] %v2938_v8  ;;  %5381 = vmatprep.mubr.bf16.mxu0 %v13485_v10  ;;  %v12352_v27 = vadd.f32 %v12351_v14, %v12350_v55 }
 0x1ba   : > { %v2765_v58 = vld [vmem:[#allocation2 + $0x60] sm:$0xf]  ;;  %v2119_v52 = vsel %vm14247_vm13, %v2114_v9, %v2118_v38  ;;  %v2124_v7 = vrot.slane %v2123_v11, 4  ;;  %2662 = vst [vmem:[#allocation3 + $0x1c4] sm:$0xf] %v2551_v16  ;;  %5382 = vmatmul.mubr.bf16.gmra.mxu0 %v13487_v12  ;;  %v2554_v35 = vsel %vm14224_vm10, %v2552_v15, %v2553_v0  ;;  %v2959_v39 = vshll.u32 %v2767_v23, 16  ;;  %v14838_v16 = vpop.f32.mrf.mxu1 }
 0x1bb   : > { %2728 = vst [vmem:[#allocation3 + $0x1ec] sm:$0xf] %v2696_v48  ;;  %v2766_v21 = vld [vmem:[#allocation2 + $0x64] sm:$0xf]  ;;  %v2940_v63 = vshrl.u32 %v2765_v58, 16  ;;  %v2943_v31 = vshll.u32 %v2765_v58, 16  ;;  %v12240_v38 = vadd.f32 %v12239_v26, %v12238_v13  ;;  %v12355_v13 = vadd.f32 %v12354_v40, %v12353_v4 }
 0x1bc   : > { %2390 = vst [vmem:[#allocation3 + $0x1c0] sm:$0xf] %v2119_v52  ;;  %v2949_v32 = vshll.u32 %v2766_v21, 16  ;;  %v2953_v34 = vshrl.u32 %v2766_v21, 16  ;;  %v1935_v37 = vld [vmem:[#allocation2 + $0x60] sm:$0xf]  ;;  %v2129_v28 = vsel %vm14247_vm13, %v2124_v7, %v2128_v57  ;;  %v12242_v57 = vpop.f32.mrf.mxu0  ;;  %v12357_v40 = vpop.f32.mrf.mxu1 }
 0x1bd   : > { %2663 = vst [vmem:[#allocation3 + $0x1e8] sm:$0xf] %v2554_v35  ;;  %v2942_v30 = vrot.slane %v2940_v63, 4  ;;  %v1936_v56 = vld [vmem:[#allocation2 + $0x64] sm:$0xf]  ;;  %v2945_v41 = vrot.slane %v2943_v31, 5  ;;  %v14836_v9 = vadd.f32 %v12352_v27, %v12240_v38  ;;  %v12243_v11 = vadd.f32 %v12242_v57, %v12241_v2 }
 0x1be   : > { %v1937_v53 = vld [vmem:[#allocation2 + $0x68] sm:$0x1]  ;;  %2391 = vst [vmem:[#allocation3 + $0x1e4] sm:$0xf] %v2129_v28  ;;  %v2951_v43 = vrot.slane %v2949_v32, 5  ;;  %v2955_v44 = vrot.slane %v2953_v34, 4  ;;  %v12244_v14 = vpop.f32.mrf.mxu0 }
 0x1bf   : > { %v2131_v6 = vshrl.u32 %v1935_v37, 16  ;;  %v2431_v45 = vld [vmem:[#allocation2 + $0x60] sm:$0xe]  ;;  %v2961_v51 = vrot.slane %v2959_v39, 5  ;;  %v2134_v54 = vshll.u32 %v1935_v37, 16  ;;  %v2140_v18 = vshll.u32 %v1936_v56, 16 }
 0x1c0   : > { %v2144_v59 = vshrl.u32 %v1936_v56, 16  ;;  %v2432_v55 = vld [vmem:[#allocation2 + $0x64] sm:$0xf]  ;;  %v2946_v47 = vor.u32 %v2945_v41, %v2942_v30  ;;  %v2956_v62 = vor.u32 %v2955_v44, %v2951_v43  ;;  %v2150_v5 = vshll.u32 %v1937_v53, 16  ;;  %v2433_v61 = vld [vmem:[#allocation2 + $0x68] sm:$0x1]  ;;  %v12245_v31 = vpop.f32.mrf.mxu0 }
 0x1c1   : > { %v2133_v0 = vrot.slane %v2131_v6, 4  ;;  %v13488_v10 = vld [vmem:[#allocation3 + $0x184] ss:$36 sps:$4 sm:$0xff]   ;;  %v2136_v8 = vrot.slane %v2134_v54, 5  ;;  %v2142_v58 = vrot.slane %v2140_v18, 5  ;;  %v11583_v63 = vrot.slane %v2431_v45, 9 }
 0x1c2   : > { %v13490_v12 = vld [vmem:[#allocation3 + $0x180] ss:$36 sps:$4 sm:$0xff]   ;;  %v2947_v15 = vrot.slane %v2946_v47, 4  ;;  %v2957_v48 = vrot.slane %v2956_v62, 4  ;;  %v2146_v52 = vrot.slane %v2144_v59, 4  ;;  %5542 = vmatprep.mubr.bf16.mxu1 %v13488_v10  ;;  %v2152_v23 = vrot.slane %v2150_v5, 5  ;;  %v12247_v41 = vpop.f32.mrf.mxu0 }
 0x1c3   : > { %v2697_v7 = vld [vmem:[#allocation2 + $0x6c] sm:$0xf]  ;;  %v2137_v21 = vor.u32 %v2136_v8, %v2133_v0  ;;  %v2557_v26 = vrot.slane %v2432_v55, 5  ;;  %v2698_v35 = vld [vmem:[#allocation2 + $0x70] sm:$0xf]  ;;  %5543 = vmatmul.mubr.bf16.gmra.mxu1 %v13490_v12  ;;  %v2560_v34 = vrot.slane %v2433_v61, 5  ;;  %v14846_v38 = vadd.f32 %v12355_v13, %v12243_v11 }
 0x1c4   : > { %2729 = vst [vmem:[#allocation3 + $0x210] sm:$0xf] %v2697_v7  ;;  %v2952_v27 = vsel %vm14247_vm13, %v2947_v15, %v2951_v43  ;;  %v2962_v4 = vsel %vm14247_vm13, %v2957_v48, %v2961_v51  ;;  %v2147_v32 = vor.u32 %v2146_v52, %v2142_v58  ;;  %2730 = vst [vmem:[#allocation3 + $0x234] sm:$0xf] %v2698_v35  ;;  %v2768_v37 = vld [vmem:[#allocation2 + $0x6c] sm:$0xf]  ;;  %v12248_v47 = vpop.f32.mrf.mxu0  ;;  %v12359_v48 = vpop.f32.mrf.mxu1 }
 0x1c5   : > { %v2769_v28 = vld [vmem:[#allocation2 + $0x70] sm:$0xf]  ;;  %v13491_v30 = vld [vmem:[#allocation3 + $0x1c4] ss:$36 sps:$4 sm:$0xff]   ;;  %3223 = vst [vmem:[#allocation3 + $0x1cc] sm:$0xf] %v2952_v27  ;;  %v2558_v53 = vsel %vm14224_vm10, %v11583_v63, %v2557_v26  ;;  %v14848_v2 = vadd.f32 %v12245_v31, %v12244_v14 }
 0x1c6   : > { %v13493_v39 = vld [vmem:[#allocation3 + $0x1c0] ss:$36 sps:$4 sm:$0xff]   ;;  %3224 = vst [vmem:[#allocation3 + $0x1f0] sm:$0xf] %v2962_v4  ;;  %v2138_v56 = vrot.slane %v2137_v21, 4  ;;  %v2148_v43 = vrot.slane %v2147_v32, 4  ;;  %5389 = vmatprep.mubr.bf16.mxu0 %v13491_v30  ;;  %v12360_v32 = vpop.f32.mrf.mxu1  ;;  %v12358_v30 = vadd.f32 %v12357_v40, %v14838_v16 }
 0x1c7   : > { %v2559_v44 = vrot.slane %v2557_v26, 4  ;;  %2664 = vst [vmem:[#allocation3 + $0x20c] sm:$0xf] %v2558_v53  ;;  %v2770_v6 = vld [vmem:[#allocation2 + $0x74] sm:$0x1]  ;;  %v2964_v45 = vshrl.u32 %v2768_v37, 16  ;;  %5390 = vmatmul.mubr.bf16.gmra.mxu0 %v13493_v39  ;;  %v12249_v39 = vadd.f32 %v12248_v47, %v12247_v41 }
 0x1c8   : > { %v2967_v51 = vshll.u32 %v2768_v37, 16  ;;  %v2143_v54 = vsel %vm14247_vm13, %v2138_v56, %v2142_v58  ;;  %v2973_v18 = vshll.u32 %v2769_v28, 16  ;;  %v2977_v59 = vshrl.u32 %v2769_v28, 16  ;;  %v1938_v57 = vld [vmem:[#allocation2 + $0x6c] sm:$0xf]  ;;  %v12250_v58 = vpop.f32.mrf.mxu0 }
 0x1c9   : > { %v2983_v55 = vshll.u32 %v2770_v6, 16  ;;  %v2153_v62 = vsel %vm14247_vm13, %v2148_v43, %v2152_v23  ;;  %2392 = vst [vmem:[#allocation3 + $0x208] sm:$0xf] %v2143_v54  ;;  %v2561_v0 = vsel %vm14224_vm10, %v2559_v44, %v2560_v34  ;;  %v2966_v5 = vrot.slane %v2964_v45, 4  ;;  %v1939_v10 = vld [vmem:[#allocation2 + $0x70] sm:$0xf]  ;;  %v12362_v45 = vpop.f32.mrf.mxu1 }
 0x1ca   : > { %v2969_v61 = vrot.slane %v2967_v51, 5  ;;  %v1940_v12 = vld [vmem:[#allocation2 + $0x74] sm:$0x1]  ;;  %2393 = vst [vmem:[#allocation3 + $0x22c] sm:$0xf] %v2153_v62  ;;  %v2975_v8 = vrot.slane %v2973_v18, 5  ;;  %v12251_v51 = vpop.f32.mrf.mxu0  ;;  %v14862_v47 = vadd.f32 %v12358_v30, %v14848_v2  ;;  %v12361_v62 = vadd.f32 %v12360_v32, %v12359_v48 }
 0x1cb   : > { %2665 = vst [vmem:[#allocation3 + $0x230] sm:$0xf] %v2561_v0  ;;  %v2979_v11 = vrot.slane %v2977_v59, 4  ;;  %v2985_v13 = vrot.slane %v2983_v55, 5  ;;  %v2155_v14 = vshrl.u32 %v1938_v57, 16  ;;  %v2158_v7 = vshll.u32 %v1938_v57, 16  ;;  %v12363_v0 = vpop.f32.mrf.mxu1 }
 0x1cc   : > { %v2434_v15 = vld [vmem:[#allocation2 + $0x6c] sm:$0xe]  ;;  %v2970_v52 = vor.u32 %v2969_v61, %v2966_v5  ;;  %v2164_v21 = vshll.u32 %v1939_v10, 16  ;;  %v2168_v23 = vshrl.u32 %v1939_v10, 16  ;;  %v2435_v63 = vld [vmem:[#allocation2 + $0x70] sm:$0xf]  ;;  %v12364_v2 = vadd.f32 %v12363_v0, %v12362_v45 }
 0x1cd   : > { %v2980_v26 = vor.u32 %v2979_v11, %v2975_v8  ;;  %v2157_v35 = vrot.slane %v2155_v14, 4  ;;  %v2174_v31 = vshll.u32 %v1940_v12, 16  ;;  %v2436_v27 = vld [vmem:[#allocation2 + $0x74] sm:$0x1]  ;;  %v11584_v4 = vrot.slane %v2434_v15, 9 }
 0x1ce   : > { %v13495_v34 = vld [vmem:[#allocation3 + $0x1cc] ss:$36 sps:$4 sm:$0xff]   ;;  %v2971_v37 = vrot.slane %v2970_v52, 4  ;;  %v2160_v28 = vrot.slane %v2158_v7, 5  ;;  %v2166_v43 = vrot.slane %v2164_v21, 5  ;;  %v2170_v44 = vrot.slane %v2168_v23, 4 }
 0x1cf   : > { %v13497_v56 = vld [vmem:[#allocation3 + $0x1c8] ss:$36 sps:$4 sm:$0xff]   ;;  %v2981_v53 = vrot.slane %v2980_v26, 4  ;;  %v2176_v6 = vrot.slane %v2174_v31, 5  ;;  %5550 = vmatprep.mubr.bf16.mxu1 %v13495_v34  ;;  %v2564_v59 = vrot.slane %v2435_v63, 5  ;;  %v2567_v55 = vrot.slane %v2436_v27, 5 }
 0x1d0   : > { %v2976_v54 = vsel %vm14247_vm13, %v2971_v37, %v2975_v8  ;;  %v2161_v18 = vor.u32 %v2160_v28, %v2157_v35  ;;  %5551 = vmatmul.mubr.bf16.gmra.mxu1 %v13497_v56  ;;  %v2171_v16 = vor.u32 %v2170_v44, %v2166_v43  ;;  %v2699_v40 = vld [vmem:[#allocation2 + $0x78] sm:$0xf]  ;;  %v2700_v41 = vld [vmem:[#allocation2 + $0x7c] sm:$0xf]  ;;  %v12252_v8 = vadd.f32 %v12251_v51, %v12250_v58  ;;  %v2773_v7 = vld [vmem:[#allocation2 + $0x80] sm:$0x1] }
 0x1d1   : > { %v2986_v57 = vsel %vm14247_vm13, %v2981_v53, %v2985_v13  ;;  %3225 = vst [vmem:[#allocation3 + $0x214] sm:$0xf] %v2976_v54  ;;  %v13500_v61 = vld [vmem:[#allocation3 + $0x208] ss:$36 sps:$4 sm:$0xff]   ;;  %v2565_v12 = vsel %vm14224_vm10, %v11584_v4, %v2564_v59  ;;  %2731 = vst [vmem:[#allocation3 + $0x258] sm:$0xf] %v2699_v40  ;;  %v14866_v52 = vadd.f32 %v12361_v62, %v12249_v39  ;;  %v12253_v62 = vpop.f32.mrf.mxu0 }
 0x1d2   : > { %v13498_v5 = vld [vmem:[#allocation3 + $0x20c] ss:$36 sps:$4 sm:$0xff]   ;;  %3226 = vst [vmem:[#allocation3 + $0x238] sm:$0xf] %v2986_v57  ;;  %v2162_v10 = vrot.slane %v2161_v18, 4  ;;  %v2172_v11 = vrot.slane %v2171_v16, 4 }
 0x1d3   : > { %2732 = vst [vmem:[#allocation3 + $0x27c] sm:$0xf] %v2700_v41  ;;  %v2566_v13 = vrot.slane %v2564_v59, 4  ;;  %2666 = vst [vmem:[#allocation3 + $0x254] sm:$0xf] %v2565_v12  ;;  %5397 = vmatprep.mubr.bf16.mxu0 %v13498_v5  ;;  %v3007_v31 = vshll.u32 %v2773_v7, 16  ;;  %v14874_v41 = vadd.f32 %v12364_v2, %v12252_v8 }
 0x1d4   : > { %v2771_v14 = vld [vmem:[#allocation2 + $0x78] sm:$0xf]  ;;  %v2772_v15 = vld [vmem:[#allocation2 + $0x7c] sm:$0xf]  ;;  %v2167_v48 = vsel %vm14247_vm13, %v2162_v10, %v2166_v43  ;;  %5398 = vmatmul.mubr.bf16.gmra.mxu0 %v13500_v61  ;;  %v2177_v58 = vsel %vm14247_vm13, %v2172_v11, %v2176_v6  ;;  %v1943_v28 = vld [vmem:[#allocation2 + $0x80] sm:$0x1]  ;;  %v12365_v6 = vpop.f32.mrf.mxu1 }
 0x1d5   : > { %v2988_v21 = vshrl.u32 %v2771_v14, 16  ;;  %v2991_v23 = vshll.u32 %v2771_v14, 16  ;;  %v2997_v63 = vshll.u32 %v2772_v15, 16  ;;  %2394 = vst [vmem:[#allocation3 + $0x250] sm:$0xf] %v2167_v48  ;;  %v2568_v26 = vsel %vm14224_vm10, %v2566_v13, %v2567_v55 }
 0x1d6   : > { %v3001_v35 = vshrl.u32 %v2772_v15, 16  ;;  %v1941_v27 = vld [vmem:[#allocation2 + $0x78] sm:$0xf]  ;;  %v1942_v4 = vld [vmem:[#allocation2 + $0x7c] sm:$0xf]  ;;  %v3009_v56 = vrot.slane %v3007_v31, 5  ;;  %v12366_v0 = vpop.f32.mrf.mxu1 }
 0x1d7   : > { %2395 = vst [vmem:[#allocation3 + $0x274] sm:$0xf] %v2177_v58  ;;  %2667 = vst [vmem:[#allocation3 + $0x278] sm:$0xf] %v2568_v26  ;;  %v2990_v32 = vrot.slane %v2988_v21, 4  ;;  %v2993_v34 = vrot.slane %v2991_v23, 5  ;;  %v12254_v21 = vpop.f32.mrf.mxu0 }
 0x1d8   : > { %v2999_v37 = vrot.slane %v2997_v63, 5  ;;  %v2179_v30 = vshrl.u32 %v1941_v27, 16  ;;  %v3003_v39 = vrot.slane %v3001_v35, 4  ;;  %v2182_v53 = vshll.u32 %v1941_v27, 16  ;;  %v2437_v44 = vld [vmem:[#allocation2 + $0x78] sm:$0xe]  ;;  %v12368_v23 = vpop.f32.mrf.mxu1 }
 0x1d9   : > { %v2188_v43 = vshll.u32 %v1942_v4, 16  ;;  %v2994_v45 = vor.u32 %v2993_v34, %v2990_v32  ;;  %v2192_v54 = vshrl.u32 %v1942_v4, 16  ;;  %v2198_v18 = vshll.u32 %v1943_v28, 16  ;;  %v2438_v59 = vld [vmem:[#allocation2 + $0x7c] sm:$0xf] }
 0x1da   : > { %v2181_v51 = vrot.slane %v2179_v30, 4  ;;  %v13501_v55 = vld [vmem:[#allocation3 + $0x214] ss:$36 sps:$4 sm:$0xff]   ;;  %v3004_v16 = vor.u32 %v3003_v39, %v2999_v37  ;;  %v2184_v40 = vrot.slane %v2182_v53, 5  ;;  %v2439_v11 = vld [vmem:[#allocation2 + $0x80] sm:$0x1]  ;;  %v12255_v35 = vadd.f32 %v12254_v21, %v12253_v62  ;;  %v12256_v30 = vpop.f32.mrf.mxu0 }
 0x1db   : > { %v13503_v57 = vld [vmem:[#allocation3 + $0x210] ss:$36 sps:$4 sm:$0xff]   ;;  %v2995_v5 = vrot.slane %v2994_v45, 4  ;;  %v2190_v61 = vrot.slane %v2188_v43, 5  ;;  %v2194_v10 = vrot.slane %v2192_v54, 4  ;;  %v2200_v12 = vrot.slane %v2198_v18, 5  ;;  %5558 = vmatprep.mubr.bf16.mxu1 %v13501_v55 }
 0x1dc   : > { %v3005_v13 = vrot.slane %v3004_v16, 4  ;;  %v2185_v14 = vor.u32 %v2184_v40, %v2181_v51  ;;  %v11585_v15 = vrot.slane %v2437_v44, 9  ;;  %v2571_v48 = vrot.slane %v2438_v59, 5  ;;  %v2701_v7 = vld [vmem:[#allocation2 + $0x84] sm:$0xf]  ;;  %5559 = vmatmul.mubr.bf16.gmra.mxu1 %v13503_v57  ;;  %v12257_v55 = vpop.f32.mrf.mxu0 }
 0x1dd   : > { %v3000_v8 = vsel %vm14247_vm13, %v2995_v5, %v2999_v37  ;;  %v2195_v2 = vor.u32 %v2194_v10, %v2190_v61  ;;  %v2574_v63 = vrot.slane %v2439_v11, 5  ;;  %v2702_v58 = vld [vmem:[#allocation2 + $0x88] sm:$0xf]  ;;  %2733 = vst [vmem:[#allocation3 + $0x2a0] sm:$0xf] %v2701_v7  ;;  %v12367_v28 = vadd.f32 %v12366_v0, %v12365_v6  ;;  %v12369_v37 = vpop.f32.mrf.mxu1 }
 0x1de   : > { %v2774_v26 = vld [vmem:[#allocation2 + $0x84] sm:$0xf]  ;;  %v13504_v31 = vld [vmem:[#allocation3 + $0x254] ss:$36 sps:$4 sm:$0xff]   ;;  %v3010_v4 = vsel %vm14247_vm13, %v3005_v13, %v3009_v56  ;;  %3227 = vst [vmem:[#allocation3 + $0x25c] sm:$0xf] %v3000_v8  ;;  %v2572_v34 = vsel %vm14224_vm10, %v11585_v15, %v2571_v48  ;;  %v12370_v45 = vadd.f32 %v12369_v37, %v12368_v23  ;;  %v12259_v15 = vpop.f32.mrf.mxu0 }
 0x1df   : > { %v13506_v27 = vld [vmem:[#allocation3 + $0x250] ss:$36 sps:$4 sm:$0xff]   ;;  %v2186_v32 = vrot.slane %v2185_v14, 4  ;;  %2734 = vst [vmem:[#allocation3 + $0x2c4] sm:$0xf] %v2702_v58  ;;  %v2196_v39 = vrot.slane %v2195_v2, 4  ;;  %5405 = vmatprep.mubr.bf16.mxu0 %v13504_v31  ;;  %v12371_v57 = vpop.f32.mrf.mxu1 }
 0x1e0   : > { %3228 = vst [vmem:[#allocation3 + $0x280] sm:$0xf] %v3010_v4  ;;  %v2573_v53 = vrot.slane %v2571_v48, 4  ;;  %2668 = vst [vmem:[#allocation3 + $0x29c] sm:$0xf] %v2572_v34  ;;  %v3012_v51 = vshrl.u32 %v2774_v26, 16  ;;  %5406 = vmatmul.mubr.bf16.gmra.mxu0 %v13506_v27  ;;  %v12260_v27 = vpop.f32.mrf.mxu0 }
 0x1e1   : > { %v2775_v43 = vld [vmem:[#allocation2 + $0x88] sm:$0xf]  ;;  %v2776_v44 = vld [vmem:[#allocation2 + $0x8c] sm:$0x1]  ;;  %v2191_v56 = vsel %vm14247_vm13, %v2186_v32, %v2190_v61  ;;  %v3015_v54 = vshll.u32 %v2774_v26, 16  ;;  %v2201_v6 = vsel %vm14247_vm13, %v2196_v39, %v2200_v12  ;;  %v12372_v48 = vpop.f32.mrf.mxu1 }
 0x1e2   : > { %v3021_v18 = vshll.u32 %v2775_v43, 16  ;;  %v1944_v59 = vld [vmem:[#allocation2 + $0x84] sm:$0xf]  ;;  %2396 = vst [vmem:[#allocation3 + $0x298] sm:$0xf] %v2191_v56  ;;  %v2575_v16 = vsel %vm14224_vm10, %v2573_v53, %v2574_v63  ;;  %v3025_v40 = vshrl.u32 %v2775_v43, 16  ;;  %v14888_v56 = vadd.f32 %v12367_v28, %v12255_v35 }
 0x1e3   : > { %v3031_v62 = vshll.u32 %v2776_v44, 16  ;;  %v1945_v0 = vld [vmem:[#allocation2 + $0x88] sm:$0xf]  ;;  %v1946_v5 = vld [vmem:[#allocation2 + $0x8c] sm:$0x1]  ;;  %v3014_v61 = vrot.slane %v3012_v51, 4  ;;  %v12374_v4 = vpop.f32.mrf.mxu1  ;;  %v12258_v51 = vadd.f32 %v12257_v55, %v12256_v30 }
 0x1e4   : > { %2397 = vst [vmem:[#allocation3 + $0x2bc] sm:$0xf] %v2201_v6  ;;  %2669 = vst [vmem:[#allocation3 + $0x2c0] sm:$0xf] %v2575_v16  ;;  %v3017_v10 = vrot.slane %v3015_v54, 5  ;;  %v3023_v11 = vrot.slane %v3021_v18, 5  ;;  %v12261_v54 = vadd.f32 %v12260_v27, %v12259_v15  ;;  %v12262_v18 = vpop.f32.mrf.mxu0 }
 0x1e5   : > { %v2203_v13 = vshrl.u32 %v1944_v59, 16  ;;  %v2440_v14 = vld [vmem:[#allocation2 + $0x84] sm:$0xe]  ;;  %v3027_v7 = vrot.slane %v3025_v40, 4  ;;  %v3033_v21 = vrot.slane %v3031_v62, 5  ;;  %v2206_v12 = vshll.u32 %v1944_v59, 16  ;;  %v12375_v62 = vpop.f32.mrf.mxu1 }
 0x1e6   : > { %v2212_v23 = vshll.u32 %v1945_v0, 16  ;;  %v2441_v8 = vld [vmem:[#allocation2 + $0x88] sm:$0xf]  ;;  %v3018_v2 = vor.u32 %v3017_v10, %v3014_v61  ;;  %v2216_v58 = vshrl.u32 %v1945_v0, 16  ;;  %v2222_v26 = vshll.u32 %v1946_v5, 16 }
 0x1e7   : > { %v2205_v63 = vrot.slane %v2203_v13, 4  ;;  %v2442_v31 = vld [vmem:[#allocation2 + $0x8c] sm:$0x1]  ;;  %v3028_v32 = vor.u32 %v3027_v7, %v3023_v11  ;;  %v2208_v34 = vrot.slane %v2206_v12, 5  ;;  %v11586_v39 = vrot.slane %v2440_v14, 9  ;;  %v12263_v14 = vpop.f32.mrf.mxu0 }
 0x1e8   : > { %v2214_v37 = vrot.slane %v2212_v23, 5  ;;  %v13508_v53 = vld [vmem:[#allocation3 + $0x25c] ss:$36 sps:$4 sm:$0xff]   ;;  %v3019_v44 = vrot.slane %v3018_v2, 4  ;;  %v2218_v16 = vrot.slane %v2216_v58, 4  ;;  %v2224_v40 = vrot.slane %v2222_v26, 5 }
 0x1e9   : > { %v13510_v43 = vld [vmem:[#allocation3 + $0x258] ss:$36 sps:$4 sm:$0xff]   ;;  %v3029_v59 = vrot.slane %v3028_v32, 4  ;;  %v2209_v6 = vor.u32 %v2208_v34, %v2205_v63  ;;  %5566 = vmatprep.mubr.bf16.mxu1 %v13508_v53  ;;  %v2578_v5 = vrot.slane %v2441_v8, 5  ;;  %v2581_v61 = vrot.slane %v2442_v31, 5 }
 0x1ea   : > { %v3024_v0 = vsel %vm14247_vm13, %v3019_v44, %v3023_v11  ;;  %v2703_v10 = vld [vmem:[#allocation2 + $0x90] sm:$0xf]  ;;  %v14892_v13 = vadd.f32 %v12370_v45, %v12258_v51  ;;  %5567 = vmatmul.mubr.bf16.gmra.mxu1 %v13510_v43  ;;  %v2219_v15 = vor.u32 %v2218_v16, %v2214_v37  ;;  %v12373_v7 = vadd.f32 %v12372_v48, %v12371_v57  ;;  %v2704_v23 = vld [vmem:[#allocation2 + $0x94] sm:$0xf]  ;;  %v2779_v26 = vld [vmem:[#allocation2 + $0x98] sm:$0x1] }
 0x1eb   : > { %v13511_v35 = vld [vmem:[#allocation3 + $0x29c] ss:$36 sps:$4 sm:$0xff]   ;;  %v3034_v30 = vsel %vm14247_vm13, %v3029_v59, %v3033_v21  ;;  %3229 = vst [vmem:[#allocation3 + $0x2a4] sm:$0xf] %v3024_v0  ;;  %v2210_v55 = vrot.slane %v2209_v6, 4  ;;  %v2579_v11 = vsel %vm14224_vm10, %v11586_v39, %v2578_v5  ;;  %v2580_v12 = vrot.slane %v2578_v5, 4  ;;  %v12265_v39 = vpop.f32.mrf.mxu0 }
 0x1ec   : > { %v13513_v28 = vld [vmem:[#allocation3 + $0x298] ss:$36 sps:$4 sm:$0xff]   ;;  %2735 = vst [vmem:[#allocation3 + $0x2e8] sm:$0xf] %v2703_v10  ;;  %3230 = vst [vmem:[#allocation3 + $0x2c8] sm:$0xf] %v3034_v30  ;;  %v12264_v8 = vadd.f32 %v12263_v14, %v12262_v18  ;;  %v12376_v2 = vadd.f32 %v12375_v62, %v12374_v4  ;;  %5413 = vmatprep.mubr.bf16.mxu0 %v13511_v35  ;;  %v14900_v57 = vadd.f32 %v12373_v7, %v12261_v54 }
 0x1ed   : > { %v2777_v45 = vld [vmem:[#allocation2 + $0x90] sm:$0xf]  ;;  %v2215_v63 = vsel %vm14247_vm13, %v2210_v55, %v2214_v37  ;;  %v2220_v58 = vrot.slane %v2219_v15, 4  ;;  %2670 = vst [vmem:[#allocation3 + $0x2e4] sm:$0xf] %v2579_v11  ;;  %5414 = vmatmul.mubr.bf16.gmra.mxu0 %v13513_v28  ;;  %v2582_v48 = vsel %vm14224_vm10, %v2580_v12, %v2581_v61  ;;  %v3055_v43 = vshll.u32 %v2779_v26, 16  ;;  %v12266_v0 = vpop.f32.mrf.mxu0 }
 0x1ee   : > { %2736 = vst [vmem:[#allocation3 + $0x30c] sm:$0xf] %v2704_v23  ;;  %v2778_v21 = vld [vmem:[#allocation2 + $0x94] sm:$0xf]  ;;  %v3036_v31 = vshrl.u32 %v2777_v45, 16  ;;  %v3039_v27 = vshll.u32 %v2777_v45, 16  ;;  %v14906_v54 = vadd.f32 %v12376_v2, %v12264_v8  ;;  %v14908_v45 = vadd.f32 %v12266_v0, %v12265_v39 }
 0x1ef   : > { %2398 = vst [vmem:[#allocation3 + $0x2e0] sm:$0xf] %v2215_v63  ;;  %v3045_v32 = vshll.u32 %v2778_v21, 16  ;;  %v3049_v4 = vshrl.u32 %v2778_v21, 16  ;;  %v1947_v34 = vld [vmem:[#allocation2 + $0x90] sm:$0xf]  ;;  %v2225_v37 = vsel %vm14247_vm13, %v2220_v58, %v2224_v40  ;;  %v12268_v7 = vpop.f32.mrf.mxu0 }
 0x1f0   : > { %2671 = vst [vmem:[#allocation3 + $0x308] sm:$0xf] %v2582_v48  ;;  %v3038_v53 = vrot.slane %v3036_v31, 4  ;;  %v1948_v44 = vld [vmem:[#allocation2 + $0x94] sm:$0xf]  ;;  %v3041_v18 = vrot.slane %v3039_v27, 5 }
 0x1f1   : > { %v1949_v51 = vld [vmem:[#allocation2 + $0x98] sm:$0x1]  ;;  %2399 = vst [vmem:[#allocation3 + $0x304] sm:$0xf] %v2225_v37  ;;  %v3047_v59 = vrot.slane %v3045_v32, 5  ;;  %v3051_v6 = vrot.slane %v3049_v4, 4  ;;  %v12269_v26 = vpop.f32.mrf.mxu0 }
 0x1f2   : > { %v2227_v16 = vshrl.u32 %v1947_v34, 16  ;;  %v2443_v62 = vld [vmem:[#allocation2 + $0x90] sm:$0xe]  ;;  %v3057_v5 = vrot.slane %v3055_v43, 5  ;;  %v2230_v61 = vshll.u32 %v1947_v34, 16  ;;  %v2236_v10 = vshll.u32 %v1948_v44, 16  ;;  %v12377_v34 = vpop.f32.mrf.mxu1 }
 0x1f3   : > { %v2240_v14 = vshrl.u32 %v1948_v44, 16  ;;  %v2444_v35 = vld [vmem:[#allocation2 + $0x94] sm:$0xf]  ;;  %v3042_v40 = vor.u32 %v3041_v18, %v3038_v53  ;;  %v3052_v28 = vor.u32 %v3051_v6, %v3047_v59  ;;  %v2246_v55 = vshll.u32 %v1949_v51, 16  ;;  %v2445_v15 = vld [vmem:[#allocation2 + $0x98] sm:$0x1] }
 0x1f4   : > { %v2229_v30 = vrot.slane %v2227_v16, 4  ;;  %v13514_v11 = vld [vmem:[#allocation3 + $0x2a4] ss:$36 sps:$4 sm:$0xff]   ;;  %v2232_v23 = vrot.slane %v2230_v61, 5  ;;  %v2238_v63 = vrot.slane %v2236_v10, 5  ;;  %v11587_v27 = vrot.slane %v2443_v62, 9  ;;  %v12378_v0 = vpop.f32.mrf.mxu1 }
 0x1f5   : > { %v13516_v12 = vld [vmem:[#allocation3 + $0x2a0] ss:$36 sps:$4 sm:$0xff]   ;;  %v3043_v8 = vrot.slane %v3042_v40, 4  ;;  %v3053_v2 = vrot.slane %v3052_v28, 4  ;;  %v2242_v58 = vrot.slane %v2240_v14, 4  ;;  %5574 = vmatprep.mubr.bf16.mxu1 %v13514_v11  ;;  %v2248_v48 = vrot.slane %v2246_v55, 5 }
 0x1f6   : > { %v2705_v21 = vld [vmem:[#allocation2 + $0x9c] sm:$0xf]  ;;  %v2233_v31 = vor.u32 %v2232_v23, %v2229_v30  ;;  %v2585_v32 = vrot.slane %v2444_v35, 5  ;;  %v2706_v4 = vld [vmem:[#allocation2 + $0xa0] sm:$0xf]  ;;  %5575 = vmatmul.mubr.bf16.gmra.mxu1 %v13516_v12  ;;  %v2588_v43 = vrot.slane %v2445_v15, 5  ;;  %v14916_v61 = vadd.f32 %v12269_v26, %v12268_v7  ;;  %v12380_v11 = vpop.f32.mrf.mxu1 }
 0x1f7   : > { %2737 = vst [vmem:[#allocation3 + $0x330] sm:$0xf] %v2705_v21  ;;  %v3048_v37 = vsel %vm14247_vm13, %v3043_v8, %v3047_v59  ;;  %v3058_v39 = vsel %vm14247_vm13, %v3053_v2, %v3057_v5  ;;  %v2243_v53 = vor.u32 %v2242_v58, %v2238_v63  ;;  %2738 = vst [vmem:[#allocation3 + $0x354] sm:$0xf] %v2706_v4  ;;  %v2780_v44 = vld [vmem:[#allocation2 + $0x9c] sm:$0xf] }
 0x1f8   : > { %v2781_v51 = vld [vmem:[#allocation2 + $0xa0] sm:$0xf]  ;;  %v13519_v6 = vld [vmem:[#allocation3 + $0x2e0] ss:$36 sps:$4 sm:$0xff]   ;;  %3231 = vst [vmem:[#allocation3 + $0x2ec] sm:$0xf] %v3048_v37  ;;  %v2586_v62 = vsel %vm14224_vm10, %v11587_v27, %v2585_v32 }
 0x1f9   : > { %v13517_v18 = vld [vmem:[#allocation3 + $0x2e4] ss:$36 sps:$4 sm:$0xff]   ;;  %3232 = vst [vmem:[#allocation3 + $0x310] sm:$0xf] %v3058_v39  ;;  %v2234_v16 = vrot.slane %v2233_v31, 4  ;;  %v2244_v59 = vrot.slane %v2243_v53, 4 }
 0x1fa   : > { %v2587_v10 = vrot.slane %v2585_v32, 4  ;;  %2672 = vst [vmem:[#allocation3 + $0x32c] sm:$0xf] %v2586_v62  ;;  %v2782_v5 = vld [vmem:[#allocation2 + $0xa4] sm:$0x1]  ;;  %v3060_v14 = vshrl.u32 %v2780_v44, 16  ;;  %5421 = vmatprep.mubr.bf16.mxu0 %v13517_v18  ;;  %v12381_v32 = vpop.f32.mrf.mxu1 }
 0x1fb   : > { %v3063_v35 = vshll.u32 %v2780_v44, 16  ;;  %v2239_v40 = vsel %vm14247_vm13, %v2234_v16, %v2238_v63  ;;  %v3069_v28 = vshll.u32 %v2781_v51, 16  ;;  %v3073_v30 = vshrl.u32 %v2781_v51, 16  ;;  %v1950_v15 = vld [vmem:[#allocation2 + $0x9c] sm:$0xf]  ;;  %5422 = vmatmul.mubr.bf16.gmra.mxu0 %v13519_v6 }
 0x1fc   : > { %v3079_v55 = vshll.u32 %v2782_v5, 16  ;;  %v2249_v7 = vsel %vm14247_vm13, %v2244_v59, %v2248_v48  ;;  %2400 = vst [vmem:[#allocation3 + $0x328] sm:$0xf] %v2239_v40  ;;  %v2589_v12 = vsel %vm14224_vm10, %v2587_v10, %v2588_v43  ;;  %v3062_v23 = vrot.slane %v3060_v14, 4  ;;  %v1951_v2 = vld [vmem:[#allocation2 + $0xa0] sm:$0xf]  ;;  %v12383_v16 = vpop.f32.mrf.mxu1 }
 0x1fd   : > { %v3065_v8 = vrot.slane %v3063_v35, 5  ;;  %v1952_v58 = vld [vmem:[#allocation2 + $0xa4] sm:$0x1]  ;;  %2401 = vst [vmem:[#allocation3 + $0x34c] sm:$0xf] %v2249_v7  ;;  %v3071_v63 = vrot.slane %v3069_v28, 5  ;;  %v12379_v5 = vadd.f32 %v12378_v0, %v12377_v34  ;;  %v12382_v14 = vadd.f32 %v12381_v32, %v12380_v11  ;;  %v12271_v35 = vpop.f32.mrf.mxu0 }
 0x1fe   : > { %2673 = vst [vmem:[#allocation3 + $0x350] sm:$0xf] %v2589_v12  ;;  %v3075_v21 = vrot.slane %v3073_v30, 4  ;;  %v3081_v26 = vrot.slane %v3079_v55, 5  ;;  %v2251_v31 = vshrl.u32 %v1950_v15, 16  ;;  %v2254_v37 = vshll.u32 %v1950_v15, 16  ;;  %v12384_v7 = vpop.f32.mrf.mxu1 }
 0x1ff   : > { %v2446_v27 = vld [vmem:[#allocation2 + $0x9c] sm:$0xe]  ;;  %v3066_v4 = vor.u32 %v3065_v8, %v3062_v23  ;;  %v2260_v39 = vshll.u32 %v1951_v2, 16  ;;  %v2264_v48 = vshrl.u32 %v1951_v2, 16  ;;  %v2447_v53 = vld [vmem:[#allocation2 + $0xa0] sm:$0xf] }
 0x200   : > { %v3076_v44 = vor.u32 %v3075_v21, %v3071_v63  ;;  %v2253_v51 = vrot.slane %v2251_v31, 4  ;;  %v2270_v43 = vshll.u32 %v1952_v58, 16  ;;  %v2448_v18 = vld [vmem:[#allocation2 + $0xa4] sm:$0x1]  ;;  %v11588_v6 = vrot.slane %v2446_v27, 9  ;;  %v12272_v58 = vpop.f32.mrf.mxu0  ;;  %v14934_v32 = vpop.f32.mrf.mxu1 }
 0x201   : > { %v13521_v62 = vld [vmem:[#allocation3 + $0x2ec] ss:$36 sps:$4 sm:$0xff]   ;;  %v3067_v59 = vrot.slane %v3066_v4, 4  ;;  %v2256_v10 = vrot.slane %v2254_v37, 5  ;;  %v2262_v30 = vrot.slane %v2260_v39, 5  ;;  %v2266_v55 = vrot.slane %v2264_v48, 4 }
 0x202   : > { %v13523_v40 = vld [vmem:[#allocation3 + $0x2e8] ss:$36 sps:$4 sm:$0xff]   ;;  %v3077_v28 = vrot.slane %v3076_v44, 4  ;;  %v2272_v15 = vrot.slane %v2270_v43, 5  ;;  %5582 = vmatprep.mubr.bf16.mxu1 %v13521_v62  ;;  %v2592_v8 = vrot.slane %v2447_v53, 5  ;;  %v2595_v2 = vrot.slane %v2448_v18, 5  ;;  %v12274_v53 = vpop.f32.mrf.mxu0  ;;  %v12387_v43 = vpop.f32.mrf.mxu1 }
 0x203   : > { %v3072_v12 = vsel %vm14247_vm13, %v3067_v59, %v3071_v63  ;;  %v2257_v23 = vor.u32 %v2256_v10, %v2253_v51  ;;  %5583 = vmatmul.mubr.bf16.gmra.mxu1 %v13523_v40  ;;  %v2267_v0 = vor.u32 %v2266_v55, %v2262_v30  ;;  %v2707_v11 = vld [vmem:[#allocation2 + $0xa8] sm:$0xf]  ;;  %v2708_v21 = vld [vmem:[#allocation2 + $0xac] sm:$0xf]  ;;  %v14929_v31 = vadd.f32 %v12379_v5, %v14908_v45  ;;  %v2785_v62 = vld [vmem:[#allocation2 + $0xb0] sm:$0x1] }
 0x204   : > { %v3082_v34 = vsel %vm14247_vm13, %v3077_v28, %v3081_v26  ;;  %3233 = vst [vmem:[#allocation3 + $0x334] sm:$0xf] %v3072_v12  ;;  %v14932_v27 = vadd.f32 %v12382_v14, %v14916_v61  ;;  %v13526_v4 = vld [vmem:[#allocation3 + $0x328] ss:$36 sps:$4 sm:$0xff]   ;;  %v2593_v39 = vsel %vm14224_vm10, %v11588_v6, %v2592_v8  ;;  %2739 = vst [vmem:[#allocation3 + $0x378] sm:$0xf] %v2707_v11  ;;  %v12275_v6 = vpop.f32.mrf.mxu0 }
 0x205   : > { %v13524_v63 = vld [vmem:[#allocation3 + $0x32c] ss:$36 sps:$4 sm:$0xff]   ;;  %3234 = vst [vmem:[#allocation3 + $0x358] sm:$0xf] %v3082_v34  ;;  %v2258_v37 = vrot.slane %v2257_v23, 4  ;;  %v12273_v26 = vadd.f32 %v12272_v58, %v12271_v35  ;;  %v12385_v48 = vadd.f32 %v12384_v7, %v12383_v16  ;;  %v2268_v44 = vrot.slane %v2267_v0, 4  ;;  %v12389_v58 = vpop.f32.mrf.mxu1 }
 0x206   : > { %2740 = vst [vmem:[#allocation3 + $0x39c] sm:$0xf] %v2708_v21  ;;  %v2594_v45 = vrot.slane %v2592_v8, 4  ;;  %2674 = vst [vmem:[#allocation3 + $0x374] sm:$0xf] %v2593_v39  ;;  %5429 = vmatprep.mubr.bf16.mxu0 %v13524_v63  ;;  %v3103_v40 = vshll.u32 %v2785_v62, 16  ;;  %v12277_v63 = vpop.f32.mrf.mxu0 }
 0x207   : > { %v2783_v51 = vld [vmem:[#allocation2 + $0xa8] sm:$0xf]  ;;  %v2784_v61 = vld [vmem:[#allocation2 + $0xac] sm:$0xf]  ;;  %v2263_v18 = vsel %vm14247_vm13, %v2258_v37, %v2262_v30  ;;  %5430 = vmatmul.mubr.bf16.gmra.mxu0 %v13526_v4  ;;  %v2273_v16 = vsel %vm14247_vm13, %v2268_v44, %v2272_v15  ;;  %v1955_v23 = vld [vmem:[#allocation2 + $0xb0] sm:$0x1]  ;;  %v14944_v62 = vadd.f32 %v12385_v48, %v12273_v26 }
 0x208   : > { %v3084_v59 = vshrl.u32 %v2783_v51, 16  ;;  %v3087_v10 = vshll.u32 %v2783_v51, 16  ;;  %v3093_v5 = vshll.u32 %v2784_v61, 16  ;;  %2402 = vst [vmem:[#allocation3 + $0x370] sm:$0xf] %v2263_v18  ;;  %v2596_v14 = vsel %vm14224_vm10, %v2594_v45, %v2595_v2 }
 0x209   : > { %v3097_v35 = vshrl.u32 %v2784_v61, 16  ;;  %v1953_v28 = vld [vmem:[#allocation2 + $0xa8] sm:$0xf]  ;;  %v1954_v55 = vld [vmem:[#allocation2 + $0xac] sm:$0xf]  ;;  %v3105_v0 = vrot.slane %v3103_v40, 5 }
 0x20a   : > { %2403 = vst [vmem:[#allocation3 + $0x394] sm:$0xf] %v2273_v16  ;;  %2675 = vst [vmem:[#allocation3 + $0x398] sm:$0xf] %v2596_v14  ;;  %v3086_v30 = vrot.slane %v3084_v59, 4  ;;  %v3089_v7 = vrot.slane %v3087_v10, 5  ;;  %v12276_v59 = vadd.f32 %v12275_v6, %v12274_v53  ;;  %v12278_v10 = vpop.f32.mrf.mxu0 }
 0x20b   : > { %v3095_v12 = vrot.slane %v3093_v5, 5  ;;  %v2275_v8 = vshrl.u32 %v1953_v28, 16  ;;  %v3099_v34 = vrot.slane %v3097_v35, 4  ;;  %v2278_v11 = vshll.u32 %v1953_v28, 16  ;;  %v2449_v21 = vld [vmem:[#allocation2 + $0xa8] sm:$0xe]  ;;  %v12390_v28 = vpop.f32.mrf.mxu1 }
 0x20c   : > { %v2284_v15 = vshll.u32 %v1954_v55, 16  ;;  %v3090_v4 = vor.u32 %v3089_v7, %v3086_v30  ;;  %v2288_v37 = vshrl.u32 %v1954_v55, 16  ;;  %v2294_v39 = vshll.u32 %v1955_v23, 16  ;;  %v2450_v44 = vld [vmem:[#allocation2 + $0xac] sm:$0xf]  ;;  %v14946_v36 = vpop.f32.mrf.mxu0 }
 0x20d   : > { %v2277_v2 = vrot.slane %v2275_v8, 4  ;;  %v13527_v45 = vld [vmem:[#allocation3 + $0x334] ss:$36 sps:$4 sm:$0xff]   ;;  %v3100_v61 = vor.u32 %v3099_v34, %v3095_v12  ;;  %v2280_v18 = vrot.slane %v2278_v11, 5  ;;  %v11589_v55 = vrot.slane %v2449_v21, 9 }
 0x20e   : > { %v13529_v51 = vld [vmem:[#allocation3 + $0x330] ss:$36 sps:$4 sm:$0xff]   ;;  %v3091_v5 = vrot.slane %v3090_v4, 4  ;;  %v2286_v16 = vrot.slane %v2284_v15, 5  ;;  %v2290_v14 = vrot.slane %v2288_v37, 4  ;;  %v2296_v35 = vrot.slane %v2294_v39, 5  ;;  %5590 = vmatprep.mubr.bf16.mxu1 %v13527_v45 }
 0x20f   : > { %v2451_v40 = vld [vmem:[#allocation2 + $0xb0] sm:$0x1]  ;;  %v3101_v30 = vrot.slane %v3100_v61, 4  ;;  %v2281_v7 = vor.u32 %v2280_v18, %v2277_v2  ;;  %v2599_v23 = vrot.slane %v2450_v44, 5  ;;  %v2709_v8 = vld [vmem:[#allocation2 + $0xb4] sm:$0xf]  ;;  %5591 = vmatmul.mubr.bf16.gmra.mxu1 %v13529_v51  ;;  %v12388_v11 = vadd.f32 %v12387_v43, %v14934_v32  ;;  %v12392_v18 = vpop.f32.mrf.mxu1 }
 0x210   : > { %v3096_v26 = vsel %vm14247_vm13, %v3091_v5, %v3095_v12  ;;  %v2291_v48 = vor.u32 %v2290_v14, %v2286_v16  ;;  %v2602_v53 = vrot.slane %v2451_v40, 5  ;;  %v2710_v6 = vld [vmem:[#allocation2 + $0xb8] sm:$0xf]  ;;  %2741 = vst [vmem:[#allocation3 + $0x3c0] sm:$0xf] %v2709_v8  ;;  %v12279_v39 = vadd.f32 %v12278_v10, %v12277_v63  ;;  %v12281_v12 = vpop.f32.mrf.mxu0  ;;  %v13571_v63 = vld [vmem:[#allocation9 + $0x78] sm:$0xff]  }
 0x211   : > { %v2786_v34 = vld [vmem:[#allocation2 + $0xb4] sm:$0xf]  ;;  %v13530_v15 = vld [vmem:[#allocation3 + $0x374] ss:$36 sps:$4 sm:$0xff]   ;;  %v3106_v21 = vsel %vm14247_vm13, %v3101_v30, %v3105_v0  ;;  %3235 = vst [vmem:[#allocation3 + $0x37c] sm:$0xf] %v3096_v26  ;;  %v2600_v37 = vsel %vm14224_vm10, %v11589_v55, %v2599_v23  ;;  %v14955_v32 = vadd.f32 %v12388_v11, %v12276_v59  ;;  %v12391_v43 = vadd.f32 %v12390_v28, %v12389_v58 }
 0x212   : > { %v13532_v4 = vld [vmem:[#allocation3 + $0x370] ss:$36 sps:$4 sm:$0xff]   ;;  %v2282_v2 = vrot.slane %v2281_v7, 4  ;;  %2742 = vst [vmem:[#allocation3 + $0x3e4] sm:$0xf] %v2710_v6  ;;  %v2292_v44 = vrot.slane %v2291_v48, 4  ;;  %5437 = vmatprep.mubr.bf16.mxu0 %v13530_v15  ;;  %v12283_v6 = vpop.f32.mrf.mxu0  ;;  %12667 = vmatprep.subr.bf16.mxu1 %v13571_v63 }
 0x213   : > { %3236 = vst [vmem:[#allocation3 + $0x3a0] sm:$0xf] %v3106_v21  ;;  %v2601_v45 = vrot.slane %v2599_v23, 4  ;;  %2676 = vst [vmem:[#allocation3 + $0x3bc] sm:$0xf] %v2600_v37  ;;  %v3108_v5 = vshrl.u32 %v2786_v34, 16  ;;  %5438 = vmatmul.mubr.bf16.gmra.mxu0 %v13532_v4  ;;  %v12393_v21 = vpop.f32.mrf.mxu1  ;;  %v14963_v63 = vadd.f32 %v12391_v43, %v12279_v39 }
 0x214   : > { %v2787_v51 = vld [vmem:[#allocation2 + $0xb8] sm:$0xf]  ;;  %v2788_v61 = vld [vmem:[#allocation2 + $0xbc] sm:$0x1]  ;;  %v2287_v0 = vsel %vm14247_vm13, %v2282_v2, %v2286_v16  ;;  %v3111_v14 = vshll.u32 %v2786_v34, 16  ;;  %v2297_v10 = vsel %vm14247_vm13, %v2292_v44, %v2296_v35 }
 0x215   : > { %v3117_v40 = vshll.u32 %v2787_v51, 16  ;;  %v1956_v30 = vld [vmem:[#allocation2 + $0xb4] sm:$0xf]  ;;  %2404 = vst [vmem:[#allocation3 + $0x3b8] sm:$0xf] %v2287_v0  ;;  %v2603_v59 = vsel %vm14224_vm10, %v2601_v45, %v2602_v53  ;;  %v3121_v7 = vshrl.u32 %v2787_v51, 16  ;;  %v12395_v39 = vpop.f32.mrf.mxu1 }
 0x216   : > { %v3127_v58 = vshll.u32 %v2788_v61, 16  ;;  %v1957_v28 = vld [vmem:[#allocation2 + $0xb8] sm:$0xf]  ;;  %v1958_v55 = vld [vmem:[#allocation2 + $0xbc] sm:$0x1]  ;;  %v3110_v16 = vrot.slane %v3108_v5, 4 }
 0x217   : > { %2405 = vst [vmem:[#allocation3 + $0x3dc] sm:$0xf] %v2297_v10  ;;  %2677 = vst [vmem:[#allocation3 + $0x3e0] sm:$0xf] %v2603_v59  ;;  %v3113_v23 = vrot.slane %v3111_v14, 5  ;;  %v3119_v8 = vrot.slane %v3117_v40, 5 }
 0x218   : > { %v2299_v26 = vshrl.u32 %v1956_v30, 16  ;;  %v2452_v48 = vld [vmem:[#allocation2 + $0xb4] sm:$0xe]  ;;  %v3123_v34 = vrot.slane %v3121_v7, 4  ;;  %v3129_v11 = vrot.slane %v3127_v58, 5  ;;  %v2302_v35 = vshll.u32 %v1956_v30, 16  ;;  %v12284_v58 = vpop.f32.mrf.mxu0 }
 0x219   : > { %v2308_v15 = vshll.u32 %v1957_v28, 16  ;;  %v2453_v4 = vld [vmem:[#allocation2 + $0xb8] sm:$0xf]  ;;  %v3114_v53 = vor.u32 %v3113_v23, %v3110_v16  ;;  %v2312_v37 = vshrl.u32 %v1957_v28, 16  ;;  %v2318_v44 = vshll.u32 %v1958_v55, 16  ;;  %v13572_v51 = vld [vmem:[#allocation9 + $0x38] sm:$0xff]  }
 0x21a   : > { %v2301_v2 = vrot.slane %v2299_v26, 4  ;;  %v2454_v45 = vld [vmem:[#allocation2 + $0xbc] sm:$0x1]  ;;  %v3124_v61 = vor.u32 %v3123_v34, %v3119_v8  ;;  %v2304_v0 = vrot.slane %v2302_v35, 5  ;;  %v11590_v14 = vrot.slane %v2452_v48, 9  ;;  %12668 = vmatpush3.bf16.msra.mxu1 %v13572_v51 }
 0x21b   : > { %v2310_v5 = vrot.slane %v2308_v15, 5  ;;  %v13534_v40 = vld [vmem:[#allocation3 + $0x37c] ss:$36 sps:$4 sm:$0xff]   ;;  %v3115_v59 = vrot.slane %v3114_v53, 4  ;;  %v12282_v30 = vadd.f32 %v12281_v12, %v14946_v36  ;;  %v12394_v7 = vadd.f32 %v12393_v21, %v12392_v18  ;;  %v441_v35 = vld [vmem:[#allocation2 + $0xc8] sm:$0x1] }
 0x21c   : > { %v13536_v10 = vld [vmem:[#allocation3 + $0x378] ss:$36 sps:$4 sm:$0xff]   ;;  %v3125_v16 = vrot.slane %v3124_v61, 4  ;;  %v2305_v23 = vor.u32 %v2304_v0, %v2301_v2  ;;  %v2314_v28 = vrot.slane %v2312_v37, 4  ;;  %v2320_v55 = vrot.slane %v2318_v44, 5  ;;  %5598 = vmatprep.mubr.bf16.mxu1 %v13534_v40  ;;  %v12286_v40 = vpop.f32.mrf.mxu0 }
 0x21d   : > { %v3120_v26 = vsel %vm14247_vm13, %v3115_v59, %v3119_v8  ;;  %v2606_v34 = vrot.slane %v2453_v4, 5  ;;  %v2609_v48 = vrot.slane %v2454_v45, 5  ;;  %v14968_v15 = vadd.f32 %v12394_v7, %v12282_v30  ;;  %5599 = vmatmul.mubr.bf16.gmra.mxu1 %v13536_v10  ;;  %v2711_v37 = vld [vmem:[#allocation2 + $0xc0] sm:$0xf]  ;;  %v2712_v44 = vld [vmem:[#allocation2 + $0xc4] sm:$0xf]  ;;  %v12396_v45 = vpop.f32.mrf.mxu1 }
 0x21e   : > { %v13537_v43 = vld [vmem:[#allocation3 + $0x3bc] ss:$36 sps:$4 sm:$0xff]   ;;  %v3130_v12 = vsel %vm14247_vm13, %v3125_v16, %v3129_v11  ;;  %3237 = vst [vmem:[#allocation3 + $0x3c4] sm:$0xf] %v3120_v26  ;;  %v2306_v18 = vrot.slane %v2305_v23, 4  ;;  %v2315_v21 = vor.u32 %v2314_v28, %v2310_v5  ;;  %v12285_v53 = vadd.f32 %v12284_v58, %v12283_v6 }
 0x21f   : > { %16891 = vst [vmem:[#allocation19_spill] sm:$0xff] %v14968_v15  ;;  %v13539_v36 = vld [vmem:[#allocation3 + $0x3b8] ss:$36 sps:$4 sm:$0xff]   ;;  %3238 = vst [vmem:[#allocation3 + $0x3e8] sm:$0xf] %v3130_v12  ;;  %v2607_v8 = vsel %vm14224_vm10, %v11590_v14, %v2606_v34  ;;  %v2608_v4 = vrot.slane %v2606_v34, 4  ;;  %5445 = vmatprep.mubr.bf16.mxu0 %v13537_v43  ;;  %v12397_v14 = vadd.f32 %v12396_v45, %v12395_v39  ;;  %v12398_v26 = vpop.f32.mrf.mxu1 }
 0x220   : > { %v442_v2 = vsel %vm14204_vm4, 0, %v441_v35  ;;  %v848_v51 = vrot.slane %v14704_v46, 4  ;;  %v2311_v11 = vsel %vm14247_vm13, %v2306_v18, %v2310_v5  ;;  %v2316_v61 = vrot.slane %v2315_v21, 4  ;;  %2678 = vst [vmem:[#allocation3 + $0x404] sm:$0xf] %v2607_v8  ;;  %5446 = vmatmul.mubr.bf16.gmra.mxu0 %v13539_v36 }
 0x221   : > { %443 = vst [vmem:[#allocation2 + $0xc8] sm:$0x1] %v442_v2  ;;  %2743 = vst [vmem:[#allocation3 + $0x408] sm:$0xf] %v2711_v37  ;;  %v2789_v6 = vld [vmem:[#allocation2 + $0xc0] sm:$0xf]  ;;  %v2610_v10 = vsel %vm14224_vm10, %v2608_v4, %v2609_v48 }
 0x222   : > { %2744 = vst [vmem:[#allocation3 + $0x42c] sm:$0xf] %v2712_v44  ;;  %v2790_v0 = vld [vmem:[#allocation2 + $0xc4] sm:$0xf]  ;;  %2406 = vst [vmem:[#allocation3 + $0x400] sm:$0xf] %v2311_v11  ;;  %v2321_v5 = vsel %vm14247_vm13, %v2316_v61, %v2320_v55  ;;  %v12287_v55 = vpop.f32.mrf.mxu0 }
 0x223   : > { %v3132_v59 = vshrl.u32 %v2789_v6, 16  ;;  %v3135_v46 = vshll.u32 %v2789_v6, 16  ;;  %v3141_v30 = vshll.u32 %v2790_v0, 16  ;;  %v1959_v7 = vld [vmem:[#allocation2 + $0xc0] sm:$0xf]  ;;  %v3145_v58 = vshrl.u32 %v2790_v0, 16 }
 0x224   : > { %2679 = vst [vmem:[#allocation3 + $0x428] sm:$0xf] %v2610_v10  ;;  %v1960_v16 = vld [vmem:[#allocation2 + $0xc4] sm:$0xf]  ;;  %v2323_v23 = vshrl.u32 %v1959_v7, 16  ;;  %v2326_v28 = vshll.u32 %v1959_v7, 16  ;;  %v14987_v10 = vadd.f32 %v12397_v14, %v12285_v53 }
 0x225   : > { %2407 = vst [vmem:[#allocation3 + $0x424] sm:$0xf] %v2321_v5  ;;  %v3134_v34 = vrot.slane %v3132_v59, 4  ;;  %v3137_v35 = vrot.slane %v3135_v46, 5  ;;  %v14983_v39 = vrot.slane %v3141_v30, 5  ;;  %v2332_v43 = vshll.u32 %v1960_v16, 16  ;;  %v12399_v59 = vpop.f32.mrf.mxu1 }
 0x226   : > { %v2455_v48 = vld [vmem:[#allocation2 + $0xc0] sm:$0xe]  ;;  %v14985_v36 = vrot.slane %v3145_v58, 4  ;;  %v2325_v12 = vrot.slane %v2323_v23, 4  ;;  %v2328_v18 = vrot.slane %v2326_v28, 5  ;;  %v2336_v21 = vshrl.u32 %v1960_v16, 16 }
 0x227   : > { %v2456_v8 = vld [vmem:[#allocation2 + $0xc4] sm:$0xf]  ;;  %v3138_v4 = vor.u32 %v3137_v35, %v3134_v34  ;;  %v2334_v2 = vrot.slane %v2332_v43, 5  ;;  %v11591_v37 = vrot.slane %v2455_v48, 9  ;;  %v388_v45 = vld [vmem:[#allocation2 + $0xcc] sm:$0x1]  ;;  %v12288_v58 = vadd.f32 %v12287_v55, %v12286_v40 }
 0x228   : > { %v2613_v44 = vrot.slane %v2456_v8, 5  ;;  %v13540_v11 = vld [vmem:[#allocation3 + $0x3c4] ss:$36 sps:$4 sm:$0xff]   ;;  %v2329_v6 = vor.u32 %v2328_v18, %v2325_v12  ;;  %v2338_v0 = vrot.slane %v2336_v21, 4  ;;  %16892 = vst [vmem:[#allocation20_spill] sm:$0xff] %v14987_v10  ;;  %v389_v5 = vsel %vm14199_vm3, 0, %v388_v45 }
 0x229   : > { %v13542_v61 = vld [vmem:[#allocation3 + $0x3c0] ss:$36 sps:$4 sm:$0xff]   ;;  %v1009_v46 = vld [vmem:[#allocation2 + $0xc8] sm:$0x1]  ;;  %v3139_v30 = vrot.slane %v3138_v4, 4  ;;  %5606 = vmatprep.mubr.bf16.mxu1 %v13540_v11  ;;  %v12400_v43 = vadd.f32 %v12399_v59, %v12398_v26  ;;  %v3148_v18 = vor.u32 %v14985_v36, %v14983_v39 }
 0x22a   : > { %v2614_v7 = vsel %vm14224_vm10, %v11591_v37, %v2613_v44  ;;  %v1010_v16 = vsel %vm14199_vm3, %v848_v51, %v1009_v46  ;;  %v2330_v23 = vrot.slane %v2329_v6, 4  ;;  %390 = vst [vmem:[#allocation2 + $0xcc] sm:$0x1] %v389_v5  ;;  %v444_v28 = vld [vmem:[#allocation2 + $0xd4] sm:$0x1]  ;;  %v13573_v53 = vld [vmem:[#allocation9 + $0x70] sm:$0xff]   ;;  %5607 = vmatmul.mubr.bf16.gmra.mxu1 %v13542_v61  ;;  %v2339_v8 = vor.u32 %v2338_v0, %v2334_v2  ;;  %v12401_v61 = vpop.f32.mrf.mxu1 }
 0x22b   : > { %2680 = vst [vmem:[#allocation3 + $0x44c] sm:$0xf] %v2614_v7  ;;  %1011 = vst [vmem:[#allocation2 + $0xc8] sm:$0x1] %v1010_v16  ;;  %v3144_v14 = vsel %vm14247_vm13, %v3139_v30, %v14983_v39  ;;  %v445_v34 = vsel %vm14204_vm4, 0, %v444_v28  ;;  %v13574_v48 = vld [vmem:[#allocation9 + $0x30] sm:$0xff]   ;;  %12669 = vmatprep.subr.bf16.mxu1 %v13573_v53  ;;  %v15004_v26 = vadd.f32 %v12400_v43, %v12288_v58  ;;  %v12289_v58 = vpop.f32.mrf.mxu0 }
 0x22c   : > { %v2714_v35 = vld [vmem:[#allocation2 + $0xd0] sm:$0xf]  ;;  %v13543_v12 = vld [vmem:[#allocation3 + $0x404] ss:$36 sps:$4 sm:$0xff]   ;;  %3239 = vst [vmem:[#allocation3 + $0x40c] sm:$0xf] %v3144_v14  ;;  %v2335_v21 = vsel %vm14247_vm13, %v2330_v23, %v2334_v2  ;;  %12670 = vmatpush3.bf16.msra.mxu1 %v13574_v48  ;;  %v12402_v16 = vpop.f32.mrf.mxu1 }
 0x22d   : > { %v2793_v40 = vld [vmem:[#allocation2 + $0xd0] sm:$0xf]  ;;  %v13545_v51 = vld [vmem:[#allocation3 + $0x400] ss:$36 sps:$4 sm:$0xff]   ;;  %446 = vst [vmem:[#allocation2 + $0xd4] sm:$0x1] %v445_v34  ;;  %5453 = vmatprep.mubr.bf16.mxu0 %v13543_v12 }
 0x22e   : > { %2746 = vst [vmem:[#allocation3 + $0x474] sm:$0xf] %v2714_v35  ;;  %2408 = vst [vmem:[#allocation3 + $0x448] sm:$0xf] %v2335_v21  ;;  %v2615_v25 = vrot.slane %v2613_v44, 4  ;;  %v3165_v55 = vshll.u32 %v2793_v40, 16  ;;  %5454 = vmatmul.mubr.bf16.gmra.mxu0 %v13545_v51  ;;  %v12403_v35 = vadd.f32 %v12402_v16, %v12401_v61  ;;  %v12290_v51 = vpop.f32.mrf.mxu0 }
 0x22f   : > { %v3169_v4 = vshrl.u32 %v2793_v40, 16  ;;  %v8204_v37 = vld [vmem:[#allocation2 + $0xd0] sm:$0xf]  ;;  %16893 = vst [vmem:[#allocation21_spill] sm:$0xff] %v15004_v26  ;;  %v3243_v39 = vld [vmem:[#allocation2 + $0x18] sm:$0xe] }
 0x230   : > { %v8576_v45 = vshll.u32 %v8204_v37, 16  ;;  %v8580_v11 = vshrl.u32 %v8204_v37, 16  ;;  %v15006_v36 = vld [vmem:[#allocation2 + $0x1c] sm:$0xf]  ;;  %v15008_v2 = vrot.slane %v3165_v55, 5  ;;  %v11592_v44 = vrot.slane %v3243_v39, 9 }
 0x231   : > { %v3171_v6 = vrot.slane %v3169_v4, 4  ;;  %v15010_v0 = vld [vmem:[#allocation2 + $0x20] sm:$0x1]  ;;  %v3341_v59 = vrot.slane %v15006_v36, 5  ;;  %v3149_v46 = vrot.slane %v3148_v18, 4  ;;  %v2340_v30 = vrot.slane %v2339_v8, 4  ;;  %v15020_v18 = vpop.f32.mrf.mxu1 }
 0x232   : > { %v15013_v7 = vrot.slane %v8576_v45, 5  ;;  %v8582_v5 = vrot.slane %v8580_v11, 4  ;;  %v2713_v23 = vld [vmem:[#allocation2 + $0xcc] sm:$0xf]  ;;  %v3344_v34 = vrot.slane %v15010_v0, 5  ;;  %v12291_v37 = vadd.f32 %v12290_v51, %v12289_v58 }
 0x233   : > { %v2792_v28 = vld [vmem:[#allocation2 + $0xcc] sm:$0xf]  ;;  %v3172_v53 = vor.u32 %v3171_v6, %v15008_v2  ;;  %v3342_v14 = vsel %vm14224_vm10, %v11592_v44, %v3341_v59  ;;  %v2791_v40 = vld [vmem:[#allocation2 + $0xc8] sm:$0x1]  ;;  %2745 = vst [vmem:[#allocation3 + $0x450] sm:$0xf] %v2713_v23  ;;  %v15022_v6 = vpop.f32.mrf.mxu0 }
 0x234   : > { %v1961_v43 = vld [vmem:[#allocation2 + $0xc8] sm:$0x1]  ;;  %v8583_v12 = vor.u32 %v8582_v5, %v15013_v7  ;;  %3483 = vst [vmem:[#allocation3 + $0x20] sm:$0xf] %v3342_v14  ;;  %v3151_v21 = vshll.u32 %v2791_v40, 16  ;;  %v3156_v45 = vshrl.u32 %v2792_v28, 16  ;;  %v15026_v14 = vadd.f32 %v12403_v35, %v12291_v37 }
 0x235   : > { %v2457_v48 = vld [vmem:[#allocation2 + $0xc8] sm:$0x1]  ;;  %v2342_v8 = vshll.u32 %v1961_v43, 16  ;;  %v2794_v4 = vld [vmem:[#allocation2 + $0xd4] sm:$0x1]  ;;  %v3159_v11 = vshll.u32 %v2792_v28, 16  ;;  %v12293_v24 = vpop.f32.mrf.mxu0 }
 0x236   : > { %v2616_v55 = vrot.slane %v2457_v48, 5  ;;  %v3173_v39 = vrot.slane %v3172_v53, 4  ;;  %v3175_v36 = vshll.u32 %v2794_v4, 16  ;;  %v3246_v61 = vld [vmem:[#allocation2 + $0x24] sm:$0xe]  ;;  %v3153_v0 = vrot.slane %v3151_v21, 5  ;;  %v15028_v53 = vpop.f32.mrf.mxu1 }
 0x237   : > { %v2344_v44 = vrot.slane %v2342_v8, 5  ;;  %v8203_v16 = vld [vmem:[#allocation2 + $0xcc] sm:$0xf]  ;;  %v8205_v23 = vld [vmem:[#allocation2 + $0xd4] sm:$0x1]  ;;  %16894 = vst [vmem:[#allocation22_spill] sm:$0xff] %v15026_v14  ;;  %v12406_v14 = vadd.f32 %v15028_v53, %v15020_v18 }
 0x238   : > { %v2617_v5 = vsel %vm14224_vm10, %v2615_v25, %v2616_v55  ;;  %v3158_v40 = vrot.slane %v3156_v45, 4  ;;  %v3161_v43 = vrot.slane %v3159_v11, 5  ;;  %v3177_v58 = vrot.slane %v3175_v36, 5  ;;  %v3247_v28 = vld [vmem:[#allocation2 + $0x28] sm:$0xf] }
 0x239   : > { %2681 = vst [vmem:[#allocation3 + $0x470] sm:$0xf] %v2617_v5  ;;  %v8567_v48 = vshrl.u32 %v8203_v16, 16  ;;  %v3154_v51 = vsel %vm14247_vm13, %v3149_v46, %v3153_v0  ;;  %v2345_v21 = vsel %vm14247_vm13, %v2340_v30, %v2344_v44  ;;  %v8570_v8 = vshll.u32 %v8203_v16, 16  ;;  %v3248_v55 = vld [vmem:[#allocation2 + $0x2c] sm:$0x1] }
 0x23a   : > { %v15034_v25 = vrot.slane %v8583_v12, 4  ;;  %v3249_v35 = vld [vmem:[#allocation2 + $0x30] sm:$0xe]  ;;  %3240 = vst [vmem:[#allocation3 + $0x430] sm:$0xf] %v3154_v51  ;;  %v3162_v4 = vor.u32 %v3161_v43, %v3158_v40  ;;  %v3178_v37 = vsel %vm14247_vm13, %v3173_v39, %v3177_v58  ;;  %v8586_v11 = vshll.u32 %v8205_v23, 16  ;;  %v12407_v40 = vpop.f32.mrf.mxu1 }
 0x23b   : > { %2409 = vst [vmem:[#allocation3 + $0x46c] sm:$0xf] %v2345_v21  ;;  %v8569_v45 = vrot.slane %v8567_v48, 4  ;;  %v3250_v36 = vld [vmem:[#allocation2 + $0x34] sm:$0xf]  ;;  %v8572_v46 = vrot.slane %v8570_v8, 5 }
 0x23c   : > { %v3251_v5 = vld [vmem:[#allocation2 + $0x38] sm:$0x1]  ;;  %3242 = vst [vmem:[#allocation3 + $0x478] sm:$0xf] %v3178_v37  ;;  %v3343_v0 = vrot.slane %v3341_v59, 4  ;;  %v11593_v30 = vrot.slane %v3246_v61, 9  ;;  %v12408_v37 = vpop.f32.mrf.mxu1 }
 0x23d   : > { %v3348_v44 = vrot.slane %v3247_v28, 5  ;;  %v3163_v12 = vrot.slane %v3162_v4, 4  ;;  %v15038_v16 = vrot.slane %v8586_v11, 5  ;;  %v3351_v17 = vrot.slane %v3248_v55, 5  ;;  %v3252_v21 = vld [vmem:[#allocation2 + $0x3c] sm:$0xe]  ;;  %v12295_v4 = vpop.f32.mrf.mxu0 }
 0x23e   : > { %v11594_v51 = vrot.slane %v3249_v35, 9  ;;  %v8573_v43 = vor.u32 %v8572_v46, %v8569_v45  ;;  %v3345_v39 = vsel %vm14224_vm10, %v3343_v0, %v3344_v34  ;;  %v3253_v48 = vld [vmem:[#allocation2 + $0x40] sm:$0xf]  ;;  %v3254_v8 = vld [vmem:[#allocation2 + $0x44] sm:$0x1]  ;;  %v3355_v28 = vrot.slane %v3250_v36, 5 }
 0x23f   : > { %v3349_v23 = vsel %vm14224_vm10, %v11593_v30, %v3348_v44  ;;  %v3350_v58 = vrot.slane %v3348_v44, 4  ;;  %v3168_v59 = vsel %vm14247_vm13, %v3163_v12, %v15008_v2  ;;  %3484 = vst [vmem:[#allocation3 + $0x44] sm:$0xf] %v3345_v39  ;;  %v3358_v55 = vrot.slane %v3251_v5, 5  ;;  %v3255_v34 = vld [vmem:[#allocation2 + $0x48] sm:$0xe]  ;;  %v12296_v39 = vpop.f32.mrf.mxu0 }
 0x240   : > { %3485 = vst [vmem:[#allocation3 + $0x68] sm:$0xf] %v3349_v23  ;;  %v3256_v35 = vld [vmem:[#allocation2 + $0x4c] sm:$0xf]  ;;  %3241 = vst [vmem:[#allocation3 + $0x454] sm:$0xf] %v3168_v59  ;;  %v3356_v30 = vsel %vm14224_vm10, %v11594_v51, %v3355_v28  ;;  %v12410_v23 = vpop.f32.mrf.mxu1  ;;  %v12294_v51 = vadd.f32 %v12293_v24, %v15022_v6  ;;  %v12409_v10 = vadd.f32 %v12408_v37, %v12407_v40 }
 0x241   : > { %v15051_v45 = vrot.slane %v8573_v43, 4  ;;  %v3352_v11 = vsel %vm14224_vm10, %v3350_v58, %v3351_v17  ;;  %v11595_v2 = vrot.slane %v3252_v21, 9  ;;  %v3362_v46 = vrot.slane %v3253_v48, 5  ;;  %v3257_v0 = vld [vmem:[#allocation2 + $0x50] sm:$0x1] }
 0x242   : > { %3486 = vst [vmem:[#allocation3 + $0x8c] sm:$0xf] %v3352_v11  ;;  %v3357_v44 = vrot.slane %v3355_v28, 4  ;;  %v3365_v36 = vrot.slane %v3254_v8, 5  ;;  %v11596_v5 = vrot.slane %v3255_v34, 9  ;;  %v3369_v11 = vrot.slane %v3256_v35, 5 }
 0x243   : > { %v3258_v12 = vld [vmem:[#allocation2 + $0x54] sm:$0xe]  ;;  %v13547_v61 = vld [vmem:[#allocation3 + $0x40c] ss:$36 sps:$4 sm:$0xff]   ;;  %v8579_v17 = vsel %vm14247_vm13, %v15051_v45, %v15013_v7  ;;  %3487 = vst [vmem:[#allocation3 + $0xb0] sm:$0xf] %v3356_v30  ;;  %v3363_v21 = vsel %vm14224_vm10, %v11595_v2, %v3362_v46  ;;  %v12297_v7 = vadd.f32 %v12296_v39, %v12295_v4  ;;  %v12298_v45 = vpop.f32.mrf.mxu0  ;;  %v12411_v30 = vpop.f32.mrf.mxu1 }
 0x244   : > { %v13549_v59 = vld [vmem:[#allocation3 + $0x408] ss:$36 sps:$4 sm:$0xff]   ;;  %v3364_v43 = vrot.slane %v3362_v46, 4  ;;  %v8124_v8 = vld [vmem:[#allocation2 + $0xcc] sm:$0xf]  ;;  %v3359_v34 = vsel %vm14224_vm10, %v3357_v44, %v3358_v55  ;;  %5614 = vmatprep.mubr.bf16.mxu1 %v13547_v61  ;;  %v3372_v6 = vrot.slane %v3257_v0, 5  ;;  %v12412_v15 = vadd.f32 %v12411_v30, %v12410_v23 }
 0x245   : > { %v13550_v58 = vld [vmem:[#allocation3 + $0x44c] ss:$36 sps:$4 sm:$0xff]   ;;  %v8125_v28 = vld [vmem:[#allocation2 + $0xd0] sm:$0xf]  ;;  %3489 = vst [vmem:[#allocation3 + $0xf8] sm:$0xf] %v3363_v21  ;;  %5615 = vmatmul.mubr.bf16.gmra.mxu1 %v13549_v59  ;;  %v3370_v18 = vsel %vm14224_vm10, %v11596_v5, %v3369_v11  ;;  %v12299_v4 = vpop.f32.mrf.mxu0  ;;  %v15072_v0 = vadd.f32 %v12406_v14, %v12294_v51 }
 0x246   : > { %v13552_v48 = vld [vmem:[#allocation3 + $0x448] ss:$36 sps:$4 sm:$0xff]   ;;  %v3673_v2 = vld [vmem:[#allocation3 + $0x474] sm:$0xff]  ;;  %3488 = vst [vmem:[#allocation3 + $0xd4] sm:$0xf] %v3359_v34  ;;  %v3366_v24 = vsel %vm14224_vm10, %v3364_v43, %v3365_v36  ;;  %5461 = vmatprep.mubr.bf16.mxu0 %v13550_v58  ;;  %v3371_v53 = vrot.slane %v3369_v11, 4  ;;  %v15074_v36 = vadd.f32 %v12409_v10, %v12297_v7  ;;  %v12300_v40 = vadd.f32 %v12299_v4, %v12298_v45 }
 0x247   : > { %v3259_v46 = vld [vmem:[#allocation2 + $0x58] sm:$0xf]  ;;  %v3260_v26 = vld [vmem:[#allocation2 + $0x5c] sm:$0x1]  ;;  %3490 = vst [vmem:[#allocation3 + $0x11c] sm:$0xf] %v3366_v24  ;;  %5462 = vmatmul.mubr.bf16.gmra.mxu0 %v13552_v48  ;;  %v16895_v10 = vsel %vm14247_vm13, %v15034_v25, %v15038_v16 }
 0x248   : > { %v11597_v55 = vrot.slane %v3258_v12, 9  ;;  %v3376_v35 = vrot.slane %v3259_v46, 5  ;;  %v3261_v61 = vld [vmem:[#allocation2 + $0x60] sm:$0xe]  ;;  %v13555_v39 = vld [vmem:[#allocation3 + $0x20] ss:$36 sps:$4 sm:$0xff]   ;;  %v3373_v59 = vsel %vm14224_vm10, %v3371_v53, %v3372_v6  ;;  %v15085_v58 = vadd.f32 %v12412_v15, %v12300_v40  ;;  %v12413_v6 = vpop.f32.mrf.mxu1 }
 0x249   : > { %v13575_v44 = vld [vmem:[#allocation9 + $0x68] sm:$0xff]   ;;  %3491 = vst [vmem:[#allocation3 + $0x140] sm:$0xf] %v3370_v18  ;;  %v3668_v37 = vld [vmem:[#allocation3 + $0x450] sm:$0xff]  ;;  %v3379_v21 = vrot.slane %v3260_v26, 5  ;;  %13155 = vmatprep.mubr.bf16.mxu0 %v13555_v39 }
 0x24a   : > { %v13553_v23 = vld [vmem:[#allocation3 + $0x454] ss:$36 sps:$4 sm:$0xff]   ;;  %v3377_v5 = vsel %vm14224_vm10, %v11597_v55, %v3376_v35  ;;  %v3378_v12 = vrot.slane %v3376_v35, 4  ;;  %12671 = vmatprep.subr.bf16.mxu1 %v13575_v44  ;;  %v13576_v43 = vld [vmem:[#allocation9 + $0x28] sm:$0xff]   ;;  %8156 = vst [vmem:[#allocation3 + $0x450] sm:$0xf] %v8124_v8  ;;  %v11749_v26 = vcombine.low %v3668_v37, %v3673_v2  ;;  %v12301_v55 = vpop.f32.mrf.mxu0 }
 0x24b   : > { %8157 = vst [vmem:[#allocation3 + $0x474] sm:$0xf] %v8125_v28  ;;  %8652 = vst [vmem:[#allocation3 + $0x454] sm:$0xf] %v8579_v17  ;;  %v13556_v14 = vld [vmem:[#allocation3 + $0x68] ss:$36 sps:$4 sm:$0xff]   ;;  %5622 = vmatprep.mubr.bf16.mxu1 %v13553_v23  ;;  %12672 = vmatpush3.bf16.msra.mxu1 %v13576_v43 }
 0x24c   : > { %8653 = vst [vmem:[#allocation3 + $0x478] sm:$0xf] %v16895_v10  ;;  %3492 = vst [vmem:[#allocation3 + $0x164] sm:$0xf] %v3373_v59  ;;  %v3262_v51 = vld [vmem:[#allocation2 + $0x64] sm:$0xf]  ;;  %v3380_v48 = vsel %vm14224_vm10, %v3378_v12, %v3379_v21  ;;  %v12302_v23 = vpop.f32.mrf.mxu0 }
 0x24d   : > { %3493 = vst [vmem:[#allocation3 + $0x188] sm:$0xf] %v3377_v5  ;;  %v3263_v8 = vld [vmem:[#allocation2 + $0x68] sm:$0x1]  ;;  %v11598_v17 = vrot.slane %v3261_v61, 9  ;;  %v3383_v28 = vrot.slane %v3262_v51, 5  ;;  %5623 = vmatmul.mubr.bf16.gmra.mxu1 %v11749_v26  ;;  %v12414_v61 = vpop.f32.mrf.mxu1  ;;  %v12303_v21 = vadd.f32 %v12302_v23, %v12301_v55 }
 0x24e   : > { %3494 = vst [vmem:[#allocation3 + $0x1ac] sm:$0xf] %v3380_v48  ;;  %v3386_v34 = vrot.slane %v3263_v8, 5  ;;  %v3264_v25 = vld [vmem:[#allocation2 + $0x6c] sm:$0xe]  ;;  %v12415_v59 = vadd.f32 %v12414_v61, %v12413_v6  ;;  %v12304_v8 = vpop.f32.mrf.mxu0 }
 0x24f   : > { %v13557_v16 = vld [vmem:[#allocation3 + $0xb0] ss:$36 sps:$4 sm:$0xff]   ;;  %v3384_v11 = vsel %vm14224_vm10, %v11598_v17, %v3383_v28  ;;  %v3385_v7 = vrot.slane %v3383_v28, 4  ;;  %v11599_v45 = vrot.slane %v3264_v25, 9  ;;  %v3265_v15 = vld [vmem:[#allocation2 + $0x70] sm:$0xf]  ;;  %13156 = vmatmul.mubr.bf16.vlgmr.msra.gmra.mxu0 %v13556_v14  ;;  %v12416_v43 = vpop.f32.mrf.mxu1 }
 0x250   : > { %3495 = vst [vmem:[#allocation3 + $0x1d0] sm:$0xf] %v3384_v11  ;;  %v3266_v2 = vld [vmem:[#allocation2 + $0x74] sm:$0x1]  ;;  %v3390_v24 = vrot.slane %v3265_v15, 5  ;;  %13159 = vmatprep.mubr.bf16.mxu0 %v13557_v16  ;;  %v15099_v25 = vadd.f32 %v12415_v59, %v12303_v21 }
 0x251   : > { %v3387_v30 = vsel %vm14224_vm10, %v3385_v7, %v3386_v34  ;;  %v3393_v46 = vrot.slane %v3266_v2, 5  ;;  %v3267_v18 = vld [vmem:[#allocation2 + $0x78] sm:$0xe]  ;;  %v3268_v53 = vld [vmem:[#allocation2 + $0x7c] sm:$0xf]  ;;  %v12417_v16 = vpop.f32.mrf.mxu1 }
 0x252   : > { %3496 = vst [vmem:[#allocation3 + $0x1f4] sm:$0xf] %v3387_v30  ;;  %v3391_v35 = vsel %vm14224_vm10, %v11599_v45, %v3390_v24  ;;  %v13558_v4 = vld [vmem:[#allocation3 + $0xf8] ss:$36 sps:$4 sm:$0xff]   ;;  %v3392_v44 = vrot.slane %v3390_v24, 4  ;;  %v11600_v40 = vrot.slane %v3267_v18, 9  ;;  %v12305_v30 = vpop.f32.mrf.mxu0  ;;  %v12418_v2 = vadd.f32 %v12417_v16, %v12416_v43 }
 0x253   : > { %3497 = vst [vmem:[#allocation3 + $0x218] sm:$0xf] %v3391_v35  ;;  %v3269_v39 = vld [vmem:[#allocation2 + $0x80] sm:$0x1]  ;;  %v3397_v37 = vrot.slane %v3268_v53, 5  ;;  %16896 = vst [vmem:[#allocation23_spill] sm:$0xff] %v15099_v25  ;;  %v12306_v18 = vadd.f32 %v12305_v30, %v12304_v8 }
 0x254   : > { %v13559_v5 = vld [vmem:[#allocation3 + $0x140] ss:$36 sps:$4 sm:$0xff]   ;;  %v3400_v12 = vrot.slane %v3269_v39, 5  ;;  %v3394_v10 = vsel %vm14224_vm10, %v3392_v44, %v3393_v46  ;;  %v3270_v26 = vld [vmem:[#allocation2 + $0x84] sm:$0xe]  ;;  %v12435_v61 = vpop.f32.mrf.mxu0 }
 0x255   : > { %v3398_v14 = vsel %vm14224_vm10, %v11600_v40, %v3397_v37  ;;  %v3399_v51 = vrot.slane %v3397_v37, 4  ;;  %v3271_v48 = vld [vmem:[#allocation2 + $0x88] sm:$0xf]  ;;  %3498 = vst [vmem:[#allocation3 + $0x23c] sm:$0xf] %v3394_v10  ;;  %v11601_v28 = vrot.slane %v3270_v26, 9  ;;  %v15107_v23 = vadd.f32 %v12418_v2, %v12306_v18 }
 0x256   : > { %3499 = vst [vmem:[#allocation3 + $0x260] sm:$0xf] %v3398_v14  ;;  %v3272_v17 = vld [vmem:[#allocation2 + $0x8c] sm:$0x1]  ;;  %v3404_v34 = vrot.slane %v3271_v48, 5  ;;  %v12436_v14 = vpop.f32.mrf.mxu0  ;;  %v13577_v2 = vld [vmem:[#allocation9 + $0x60] sm:$0xff]  }
 0x257   : > { %v3401_v11 = vsel %vm14224_vm10, %v3399_v51, %v3400_v12  ;;  %v3407_v7 = vrot.slane %v3272_v17, 5  ;;  %v3273_v45 = vld [vmem:[#allocation2 + $0x90] sm:$0xe]  ;;  %v3274_v15 = vld [vmem:[#allocation2 + $0x94] sm:$0xf]  ;;  %13160 = vmatmul.mubr.bf16.gmra.mxu0 %v13558_v4  ;;  %16897 = vst [vmem:[#allocation24_spill] sm:$0xff] %v15107_v23  ;;  %v12437_v8 = vadd.f32 %v12436_v14, %v12435_v61  ;;  %12673 = vmatprep.subr.bf16.mxu1 %v13577_v2 }
 0x258   : > { %3500 = vst [vmem:[#allocation3 + $0x284] sm:$0xf] %v3401_v11  ;;  %v3405_v24 = vsel %vm14224_vm10, %v11601_v28, %v3404_v34  ;;  %v3406_v6 = vrot.slane %v3404_v34, 4  ;;  %v11602_v46 = vrot.slane %v3273_v45, 9  ;;  %v3275_v53 = vld [vmem:[#allocation2 + $0x98] sm:$0x1]  ;;  %13163 = vmatprep.mubr.bf16.mxu0 %v13559_v5  ;;  %v12438_v16 = vpop.f32.mrf.mxu0 }
 0x259   : > { %3501 = vst [vmem:[#allocation3 + $0x2a8] sm:$0xf] %v3405_v24  ;;  %v3411_v55 = vrot.slane %v3274_v15, 5  ;;  %v3276_v35 = vld [vmem:[#allocation2 + $0x9c] sm:$0xe]  ;;  %v3414_v39 = vrot.slane %v3275_v53, 5  ;;  %v15116_v30 = vadd.f32 %v12437_v8, %v14757_v1 }
 0x25a   : > { %v3408_v44 = vsel %vm14224_vm10, %v3406_v6, %v3407_v7  ;;  %v3277_v40 = vld [vmem:[#allocation2 + $0xa0] sm:$0xf]  ;;  %v11603_v37 = vrot.slane %v3276_v35, 9  ;;  %v3278_v21 = vld [vmem:[#allocation2 + $0xa4] sm:$0x1]  ;;  %v15118_v6 = vpop.f32.mrf.mxu1  ;;  %v13587_v23 = vld [vmem:[#allocation9 + $0xf0] sm:$0xff]  }
 0x25b   : > { %v13560_v59 = vld [vmem:[#allocation3 + $0x188] ss:$36 sps:$4 sm:$0xff]   ;;  %3502 = vst [vmem:[#allocation3 + $0x2cc] sm:$0xf] %v3408_v44  ;;  %v3412_v12 = vsel %vm14224_vm10, %v11602_v46, %v3411_v55  ;;  %v3413_v4 = vrot.slane %v3411_v55, 4  ;;  %v3418_v43 = vrot.slane %v3277_v40, 5  ;;  %v12439_v46 = vpop.f32.mrf.mxu0 }
 0x25c   : > { %v3279_v10 = vld [vmem:[#allocation2 + $0xa8] sm:$0xe]  ;;  %3503 = vst [vmem:[#allocation3 + $0x2f0] sm:$0xf] %v3412_v12  ;;  %v3421_v5 = vrot.slane %v3278_v21, 5  ;;  %v12440_v12 = vadd.f32 %v12439_v46, %v12438_v16  ;;  %v13596_v25 = vld [vmem:[#allocation9] sm:$0xff]  }
 0x25d   : > { %v3280_v51 = vld [vmem:[#allocation2 + $0xac] sm:$0xf]  ;;  %v3281_v26 = vld [vmem:[#allocation2 + $0xb0] sm:$0x1]  ;;  %v11604_v48 = vrot.slane %v3279_v10, 9  ;;  %v3415_v28 = vsel %vm14224_vm10, %v3413_v4, %v3414_v39  ;;  %v3419_v34 = vsel %vm14224_vm10, %v11603_v37, %v3418_v43  ;;  %v3420_v11 = vrot.slane %v3418_v43, 4  ;;  %v15124_v37 = vpop.f32.mrf.mxu1 }
 0x25e   : > { %v13561_v17 = vld [vmem:[#allocation3 + $0x1d0] ss:$36 sps:$4 sm:$0xff]   ;;  %3504 = vst [vmem:[#allocation3 + $0x314] sm:$0xf] %v3415_v28  ;;  %3505 = vst [vmem:[#allocation3 + $0x338] sm:$0xf] %v3419_v34  ;;  %v15133_v34 = vadd.f32 %v12440_v12, %v14759_v50 }
 0x25f   : > { %v3425_v7 = vrot.slane %v3280_v51, 5  ;;  %v3428_v45 = vrot.slane %v3281_v26, 5  ;;  %v3282_v15 = vld [vmem:[#allocation2 + $0xb4] sm:$0xe]  ;;  %v3283_v24 = vld [vmem:[#allocation2 + $0xb8] sm:$0xf]  ;;  %v3422_v18 = vsel %vm14224_vm10, %v3420_v11, %v3421_v5  ;;  %13164 = vmatmul.mubr.bf16.gmra.mxu0 %v13560_v59  ;;  %v15130_v51 = vpop.f32.mrf.mxu1  ;;  %v12441_v26 = vpop.f32.mrf.mxu0 }
 0x260   : > { %v3284_v35 = vld [vmem:[#allocation2 + $0xbc] sm:$0x1]  ;;  %v11605_v61 = vrot.slane %v3282_v15, 9  ;;  %3506 = vst [vmem:[#allocation3 + $0x35c] sm:$0xf] %v3422_v18  ;;  %v3432_v1 = vrot.slane %v3283_v24, 5  ;;  %13167 = vmatprep.mubr.bf16.mxu0 %v13561_v17 }
 0x261   : > { %v3426_v53 = vsel %vm14224_vm10, %v11604_v48, %v3425_v7  ;;  %v3427_v55 = vrot.slane %v3425_v7, 4  ;;  %v3435_v44 = vrot.slane %v3284_v35, 5  ;;  %v3285_v39 = vld [vmem:[#allocation2 + $0xc0] sm:$0xe]  ;;  %v3286_v40 = vld [vmem:[#allocation2 + $0xc4] sm:$0xf]  ;;  %v12442_v15 = vpop.f32.mrf.mxu0 }
 0x262   : > { %3507 = vst [vmem:[#allocation3 + $0x380] sm:$0xf] %v3426_v53  ;;  %v3287_v21 = vld [vmem:[#allocation2 + $0xc8] sm:$0x1]  ;;  %v13562_v43 = vld [vmem:[#allocation3 + $0x218] ss:$36 sps:$4 sm:$0xff]   ;;  %v3433_v10 = vsel %vm14224_vm10, %v11605_v61, %v3432_v1 }
 0x263   : > { %v3429_v4 = vsel %vm14224_vm10, %v3427_v55, %v3428_v45  ;;  %v3434_v59 = vrot.slane %v3432_v1, 4  ;;  %v11606_v14 = vrot.slane %v3285_v39, 9  ;;  %v3439_v5 = vrot.slane %v3286_v40, 5  ;;  %v13578_v48 = vld [vmem:[#allocation9 + $0x20] sm:$0xff]   ;;  %3509 = vst [vmem:[#allocation3 + $0x3c8] sm:$0xf] %v3433_v10  ;;  %v15139_v45 = vpop.f32.mrf.mxu1  ;;  %v12444_v35 = vpop.f32.mrf.mxu0 }
 0x264   : > { %3508 = vst [vmem:[#allocation3 + $0x3a4] sm:$0xf] %v3429_v4  ;;  %v3442_v8 = vrot.slane %v3287_v21, 5  ;;  %v3288_v28 = vld [vmem:[#allocation2 + $0xcc] sm:$0xe]  ;;  %12674 = vmatpush3.bf16.msra.mxu1 %v13578_v48  ;;  %v12443_v55 = vadd.f32 %v12442_v15, %v12441_v26 }
 0x265   : > { %v3289_v17 = vld [vmem:[#allocation2 + $0xd0] sm:$0xf]  ;;  %v13563_v16 = vld [vmem:[#allocation3 + $0x260] ss:$36 sps:$4 sm:$0xff]   ;;  %v3436_v11 = vsel %vm14224_vm10, %v3434_v59, %v3435_v44  ;;  %v3440_v7 = vsel %vm14224_vm10, %v11606_v14, %v3439_v5  ;;  %v3441_v2 = vrot.slane %v3439_v5, 4  ;;  %v11607_v46 = vrot.slane %v3288_v28, 9  ;;  %v15148_v4 = vpop.f32.mrf.mxu1  ;;  %v12445_v21 = vpop.f32.mrf.mxu0 }
 0x266   : > { %3510 = vst [vmem:[#allocation3 + $0x3ec] sm:$0xf] %v3436_v11  ;;  %3511 = vst [vmem:[#allocation3 + $0x410] sm:$0xf] %v3440_v7  ;;  %v3290_v24 = vld [vmem:[#allocation2 + $0xd4] sm:$0x1]  ;;  %v15146_v12 = vadd.f32 %v12443_v55, %v14778_v29  ;;  %v12446_v59 = vadd.f32 %v12445_v21, %v12444_v35 }
 0x267   : > { %v3446_v18 = vrot.slane %v3289_v17, 5  ;;  %v3449_v53 = vrot.slane %v3290_v24, 5  ;;  %v8700_v50 = vld [vmem:[#allocation2 + $0xd0] sm:$0xf]  ;;  %v3443_v61 = vsel %vm14224_vm10, %v3441_v2, %v3442_v8  ;;  %v8699_v44 = vld [vmem:[#allocation2 + $0xcc] sm:$0xe]  ;;  %13168 = vmatmul.mubr.bf16.gmra.mxu0 %v13562_v43  ;;  %v15152_v48 = vpop.f32.mrf.mxu1  ;;  %v12447_v11 = vpop.f32.mrf.mxu0 }
 0x268   : > { %3512 = vst [vmem:[#allocation3 + $0x434] sm:$0xf] %v3443_v61  ;;  %v8857_v40 = vrot.slane %v8700_v50, 5  ;;  %13171 = vmatprep.mubr.bf16.mxu0 %v13563_v16  ;;  %v8701_v10 = vld [vmem:[#allocation2 + $0xd4] sm:$0x1]  ;;  %v11905_v26 = vrot.slane %v8699_v44, 9  ;;  %v15155_v8 = vadd.f32 %v12446_v59, %v14788_v19 }
 0x269   : > { %v3447_v1 = vsel %vm14224_vm10, %v11607_v46, %v3446_v18  ;;  %v3448_v39 = vrot.slane %v3446_v18, 4  ;;  %v13564_v14 = vld [vmem:[#allocation3 + $0x2a8] ss:$36 sps:$4 sm:$0xff]   ;;  %v13565_v43 = vld [vmem:[#allocation3 + $0x2f0] ss:$36 sps:$4 sm:$0xff]   ;;  %v8860_v28 = vrot.slane %v8701_v10, 5  ;;  %v15157_v17 = vpop.f32.mrf.mxu1  ;;  %v12448_v16 = vpop.f32.mrf.mxu0 }
 0x26a   : > { %3513 = vst [vmem:[#allocation3 + $0x458] sm:$0xf] %v3447_v1  ;;  %v8859_v29 = vrot.slane %v8857_v40, 4  ;;  %v8858_v7 = vsel %vm14224_vm10, %v11905_v26, %v8857_v40  ;;  %v12449_v24 = vadd.f32 %v12448_v16, %v12447_v11  ;;  %v13566_v19 = vld [vmem:[#allocation3 + $0x338] ss:$36 sps:$4 sm:$0xff]  }
 0x26b   : > { %v3450_v5 = vsel %vm14224_vm10, %v3448_v39, %v3449_v53  ;;  %v15163_v2 = vpop.f32.mrf.mxu1  ;;  %v12450_v46 = vpop.f32.mrf.mxu0  ;;  %v13567_v50 = vld [vmem:[#allocation3 + $0x380] ss:$36 sps:$4 sm:$0xff]   ;;  %v13579_v35 = vld [vmem:[#allocation9 + $0x58] sm:$0xff]  }
 0x26c   : > { %3514 = vst [vmem:[#allocation3 + $0x47c] sm:$0xf] %v3450_v5  ;;  %v8861_v15 = vsel %vm14224_vm10, %v8859_v29, %v8860_v28  ;;  %v15166_v53 = vadd.f32 %v12449_v24, %v14794_v33  ;;  %v13580_v44 = vld [vmem:[#allocation9 + $0x18] sm:$0xff]   ;;  %12675 = vmatprep.subr.bf16.mxu1 %v13579_v35 }
 0x26d   : > { %v12451_v55 = vpop.f32.mrf.mxu0  ;;  %v15168_v61 = vpop.f32.mrf.mxu1  ;;  %12676 = vmatpush3.bf16.msra.mxu1 %v13580_v44  ;;  %v13568_v10 = vld [vmem:[#allocation3 + $0x3c8] ss:$36 sps:$4 sm:$0xff]  }
 0x26e   : > { %v12452_v1 = vadd.f32 %v12451_v55, %v12450_v46 }
 0x26f   : > { %13172 = vmatmul.mubr.bf16.gmra.mxu0 %v13564_v14  ;;  %v15170_v39 = vpop.f32.mrf.mxu1  ;;  %v12453_v33 = vpop.f32.mrf.mxu0  ;;  %v13569_v14 = vld [vmem:[#allocation3 + $0x410] ss:$36 sps:$4 sm:$0xff]  }
 0x270   : > { %13175 = vmatprep.mubr.bf16.mxu0 %v13565_v43  ;;  %v15173_v40 = vadd.f32 %v12452_v1, %v14804_v3 }
 0x271   : > { %v15175_v21 = vpop.f32.mrf.mxu1  ;;  %v12454_v59 = vpop.f32.mrf.mxu0 }
 0x272   : > { %v12455_v26 = vadd.f32 %v12454_v59, %v12453_v33 }
 0x273   : > { %v13570_v18 = vld [vmem:[#allocation3 + $0x458] ss:$36 sps:$4 sm:$0xff]   ;;  %v15177_v5 = vpop.f32.mrf.mxu1  ;;  %v12456_v43 = vpop.f32.mrf.mxu0 }
 0x274   : > { %8924 = vst [vmem:[#allocation3 + $0x458] sm:$0xf] %v8858_v7  ;;  %8925 = vst [vmem:[#allocation3 + $0x47c] sm:$0xf] %v8861_v15  ;;  %v15180_v29 = vadd.f32 %v12455_v26, %v14808_v49 }
 0x275   : > { %v12457_v28 = vpop.f32.mrf.mxu0  ;;  %v15182_v11 = vpop.f32.mrf.mxu1 }
 0x276   : > { %v12458_v3 = vadd.f32 %v12457_v28, %v12456_v43  ;;  %v13581_v28 = vld [vmem:[#allocation9 + $0x50] sm:$0xff]  }
 0x277   : > { %13176 = vmatmul.mubr.bf16.gmra.mxu0 %v13566_v19  ;;  %v15184_v16 = vpop.f32.mrf.mxu1  ;;  %v12459_v24 = vpop.f32.mrf.mxu0  ;;  %12677 = vmatprep.subr.bf16.mxu1 %v13581_v28 }
 0x278   : > { %13179 = vmatprep.mubr.bf16.mxu0 %v13567_v50  ;;  %v15187_v7 = vadd.f32 %v12458_v3, %v14820_v42 }
 0x279   : > { %v15189_v15 = vpop.f32.mrf.mxu1  ;;  %v12460_v46 = vpop.f32.mrf.mxu0 }
 0x27a   : > { %16898 = vst [vmem:[#allocation25_spill] sm:$0xff] %v15187_v7  ;;  %v12461_v19 = vadd.f32 %v12460_v46, %v12459_v24 }
 0x27b   : > { %v15191_v50 = vpop.f32.mrf.mxu1  ;;  %v12462_v49 = vpop.f32.mrf.mxu0 }
 0x27c   : > { %v15194_v55 = vadd.f32 %v12461_v19, %v14828_v20  ;;  %v13582_v20 = vld [vmem:[#allocation9 + $0x10] sm:$0xff]  }
 0x27d   : > { %v12463_v35 = vpop.f32.mrf.mxu0  ;;  %v15196_v44 = vpop.f32.mrf.mxu1  ;;  %12678 = vmatpush3.bf16.msra.mxu1 %v13582_v20 }
 0x27e   : > { %16899 = vst [vmem:[#allocation26_spill] sm:$0xff] %v15194_v55  ;;  %v12464_v1 = vadd.f32 %v12463_v35, %v12462_v49  ;;  %v13584_v55 = vld [vmem:[#allocation9 + $0x48] sm:$0xff]  }
 0x27f   : > { %13180 = vmatmul.mubr.bf16.gmra.mxu0 %v13568_v10  ;;  %v15201_v42 = vpop.f32.mrf.mxu1  ;;  %v12465_v10 = vpop.f32.mrf.mxu0  ;;  %12679 = vmatprep.subr.bf16.mxu1 %v13584_v55 }
 0x280   : > { %13183 = vmatprep.mubr.bf16.mxu0 %v13569_v14  ;;  %v15199_v33 = vadd.f32 %v12464_v1, %v14836_v9 }
 0x281   : > { %v15203_v59 = vpop.f32.mrf.mxu1  ;;  %v12466_v14 = vpop.f32.mrf.mxu0 }
 0x282   : > { %16900 = vst [vmem:[#allocation27_spill] sm:$0xff] %v15199_v33  ;;  %v12467_v26 = vadd.f32 %v12466_v14, %v12465_v10  ;;  %v13590_v33 = vld [vmem:[#allocation9 + $0xa8] sm:$0xff]  }
 0x283   : > { %v15205_v43 = vpop.f32.mrf.mxu1 }
 0x284   : > { %v15208_v3 = vadd.f32 %v12467_v26, %v14846_v38  ;;  %v13583_v38 = vld [vmem:[#allocation9 + $0xf8] sm:$0xff]  }
 0x285   : > { %v15210_v9 = vpop.f32.mrf.mxu1  ;;  %12779 = vmatprep.subr.bf16.mxu0 %v13583_v38 }
 0x286   : > { %16901 = vst [vmem:[#allocation28_spill] sm:$0xff] %v15208_v3  ;;  %12780 = vmatpush3.bf16.msra.mxu0 %v13585_v60  ;;  %v13589_v60 = vld [vmem:[#allocation9 + $0xe8] sm:$0xff]  }
 0x287   : > { %13184 = vmatmul.mubr.bf16.gmra.mxu0 %v13570_v18  ;;  %v12468_v18 = vpop.f32.mrf.mxu0  ;;  %v15215_v49 = vpop.f32.mrf.mxu1  ;;  %12781 = vmatprep.subr.bf16.mxu0 %v13587_v23 }
 0x289   : > { %v12469_v24 = vpop.f32.mrf.mxu0  ;;  %v15217_v35 = vpop.f32.mrf.mxu1 }
 0x28a   : > { %v12470_v46 = vadd.f32 %v12469_v24, %v12468_v18 }
 0x28b   : > { %v12471_v1 = vpop.f32.mrf.mxu0  ;;  %v15219_v14 = vpop.f32.mrf.mxu1 }
 0x28c   : > { %v15213_v19 = vadd.f32 %v12470_v46, %v14862_v47 }
 0x28d   : > { %v12472_v10 = vpop.f32.mrf.mxu0 }
 0x28e   : > { %16902 = vst [vmem:[#allocation29_spill] sm:$0xff] %v15213_v19  ;;  %v12473_v22 = vadd.f32 %v12472_v10, %v12471_v1  ;;  %v13588_v19 = vld [vmem:[#allocation9 + $0xb0] sm:$0xff]  }
 0x28f   : > { %v12474_v26 = vpop.f32.mrf.mxu0  ;;  %12782 = vmatpush3.bf16.msra.mxu0 %v13588_v19  ;;  %v13592_v19 = vld [vmem:[#allocation9 + $0xa0] sm:$0xff]  }
 0x290   : > { %v15222_v18 = vadd.f32 %v12473_v22, %v14866_v52  ;;  %v15224_v47 = vpop.f32.mrf.mxu1  ;;  %12783 = vmatprep.subr.bf16.mxu0 %v13589_v60 }
 0x291   : > { %v12475_v28 = vpop.f32.mrf.mxu0 }
 0x292   : > { %16903 = vst [vmem:[#allocation30_spill] sm:$0xff] %v15222_v18  ;;  %v12476_v20 = vadd.f32 %v12475_v28, %v12474_v26  ;;  %v15226_v24 = vpop.f32.mrf.mxu1 }
 0x293   : > { %12784 = vmatpush3.bf16.msra.mxu0 %v13590_v33 }
 0x294   : > { %v15229_v46 = vadd.f32 %v12476_v20, %v14874_v41  ;;  %v15231_v1 = vpop.f32.mrf.mxu1  ;;  %v12477_v10 = vpop.f32.mrf.mxu0 }
 0x296   : > { %16904 = vst [vmem:[#allocation31_spill] sm:$0xff] %v15229_v46  ;;  %v12478_v22 = vpop.f32.mrf.mxu0  ;;  %v15233_v52 = vpop.f32.mrf.mxu1  ;;  %v13591_v46 = vld [vmem:[#allocation9 + $0xe0] sm:$0xff]  }
 0x297   : > { %v12479_v38 = vadd.f32 %v12478_v22, %v12477_v10  ;;  %12785 = vmatprep.subr.bf16.mxu0 %v13591_v46 }
 0x298   : > { %v12480_v18 = vpop.f32.mrf.mxu0  ;;  %12786 = vmatpush3.bf16.msra.mxu0 %v13592_v19 }
 0x299   : > { %v15236_v26 = vadd.f32 %v12479_v38, %v14888_v56  ;;  %v13586_v56 = vld [vmem:[#allocation9 + $0x8] sm:$0xff]  }
 0x29a   : > { %v12481_v41 = vpop.f32.mrf.mxu0  ;;  %12680 = vmatpush3.bf16.msra.mxu1 %v13586_v56  ;;  %v13594_v56 = vld [vmem:[#allocation9 + $0x40] sm:$0xff]  }
 0x29b   : > { %16905 = vst [vmem:[#allocation32_spill] sm:$0xff] %v15236_v26  ;;  %v12482_v20 = vadd.f32 %v12481_v41, %v12480_v18  ;;  %v13593_v41 = vld [vmem:[#allocation9 + $0xd8] sm:$0xff]   ;;  %12681 = vmatprep.subr.bf16.mxu1 %v13594_v56 }
 0x29c   : > { %v15238_v28 = vpop.f32.mrf.mxu1  ;;  %12787 = vmatprep.subr.bf16.mxu0 %v13593_v41 }
 0x29d   : > { %v15243_v23 = vadd.f32 %v12482_v20, %v14892_v13  ;;  %v13595_v13 = vld [vmem:[#allocation9 + $0x98] sm:$0xff]  }
 0x29e   : > { %v15240_v3 = vpop.f32.mrf.mxu1  ;;  %12788 = vmatpush3.bf16.msra.mxu0 %v13595_v13  ;;  %12682 = vmatpush3.bf16.msra.mxu1 %v13596_v25 }
 0x29f   : > { %16906 = vst [vmem:[#allocation33_spill] sm:$0xff] %v15243_v23 }
 0x2a0   : > { %v15245_v10 = vpop.f32.mrf.mxu1  ;;  %v12483_v22 = vpop.f32.mrf.mxu0 }
 0x2a2   : > { %v12484_v38 = vpop.f32.mrf.mxu0  ;;  %v15247_v60 = vpop.f32.mrf.mxu1 }
 0x2a3   : > { %v12485_v33 = vadd.f32 %v12484_v38, %v12483_v22  ;;  %v13597_v38 = vld [vmem:[#allocation9 + $0xd0] sm:$0xff]  }
 0x2a4   : > { %v12486_v18 = vpop.f32.mrf.mxu0  ;;  %12789 = vmatprep.subr.bf16.mxu0 %v13597_v38 }
 0x2a5   : > { %v15250_v26 = vadd.f32 %v12485_v33, %v14900_v57  ;;  %v13598_v57 = vld [vmem:[#allocation9 + $0x90] sm:$0xff]  }
 0x2a6   : > { %v12487_v46 = vpop.f32.mrf.mxu0  ;;  %12790 = vmatpush3.bf16.msra.mxu0 %v13598_v57  ;;  %v13605_v57 = vld [vmem:[#allocation9 + $0x80] sm:$0xff]  }
 0x2a7   : > { %16907 = vst [vmem:[#allocation34_spill] sm:$0xff] %v15250_v26  ;;  %v12488_v20 = vadd.f32 %v12487_v46, %v12486_v18  ;;  %v13603_v26 = vld [vmem:[#allocation3 + $0x4] ss:$36 sps:$4 sm:$0xff]  }
 0x2a8   : > { %10430 = vmatprep.mubr.bf16.mxu1 %v13603_v26 }
 0x2a9   : > { %v15255_v19 = vadd.f32 %v12488_v20, %v14906_v54  ;;  %v13599_v54 = vld [vmem:[#allocation9 + $0xc8] sm:$0xff]  }
 0x2aa   : > { %v15252_v23 = vpop.f32.mrf.mxu1  ;;  %v13600_v20 = vld [vmem:[#allocation9 + $0x88] sm:$0xff]   ;;  %12791 = vmatprep.subr.bf16.mxu0 %v13599_v54 }
 0x2ab   : > { %16908 = vst [vmem:[#allocation35_spill] sm:$0xff] %v15252_v23  ;;  %16909 = vst [vmem:[#allocation36_spill] sm:$0xff] %v15255_v19  ;;  %12792 = vmatpush3.bf16.msra.mxu0 %v13600_v20 }
 0x2ac   : > { %v15257_v55 = vpop.f32.mrf.mxu1 }
 0x2ad   : > { %16910 = vst [vmem:[#allocation37_spill] sm:$0xff] %v15257_v55  ;;  %v12489_v22 = vpop.f32.mrf.mxu0  ;;  %v13601_v55 = vld [vmem:[#allocation3] ss:$36 sps:$4 sm:$0xff]  }
 0x2ae   : > { %v15259_v7 = vpop.f32.mrf.mxu1  ;;  %10431 = vmatmul.mubr.bf16.vlgmr.msra.gmra.mxu1 %v13601_v55 }
 0x2af   : > { %16911 = vst [vmem:[#allocation38_spill] sm:$0xff] %v15259_v7  ;;  %v12490_v33 = vpop.f32.mrf.mxu0 }
 0x2b0   : > { %v12491_v41 = vadd.f32 %v12490_v33, %v12489_v22  ;;  %v15261_v18 = vpop.f32.mrf.mxu1  ;;  %v13604_v22 = vld [vmem:[#allocation9 + $0xc0] sm:$0xff]  }
 0x2b1   : > { %v12492_v13 = vpop.f32.mrf.mxu0  ;;  %12793 = vmatprep.subr.bf16.mxu0 %v13604_v22 }
 0x2b2   : > { %v15264_v46 = vadd.f32 %v12491_v41, %v14929_v31  ;;  %12794 = vmatpush3.bf16.msra.mxu0 %v13605_v57 }
 0x2b3   : > { %v12493_v19 = vpop.f32.mrf.mxu0 }
 0x2b4   : > { %16912 = vst [vmem:[#allocation39_spill] sm:$0xff] %v15264_v46  ;;  %v12494_v7 = vadd.f32 %v12493_v19, %v12492_v13 }
 0x2b6   : > { %v15266_v23 = vpop.f32.mrf.mxu1  ;;  %v15269_v25 = vadd.f32 %v12494_v7, %v14932_v27 }
 0x2b8   : > { %16913 = vst [vmem:[#allocation40_spill] sm:$0xff] %v15269_v25  ;;  %v15271_v56 = vpop.f32.mrf.mxu1 }
 0x2ba   : > { %v15273_v31 = vpop.f32.mrf.mxu1 }
 0x2bb   : > { %v12495_v38 = vpop.f32.mrf.mxu0 }
 0x2bc   : > { %v15275_v41 = vpop.f32.mrf.mxu1 }
 0x2bd   : > { %v12496_v33 = vpop.f32.mrf.mxu0  ;;  %16914 = vst [vmem:[#allocation41_spill] sm:$0xff] %v15275_v41 }
 0x2be   : > { %v12497_v19 = vadd.f32 %v12496_v33, %v12495_v38 }
 0x2bf   : > { %v12498_v13 = vpop.f32.mrf.mxu0 }
 0x2c0   : > { %v15278_v26 = vadd.f32 %v12497_v19, %v14944_v62 }
 0x2c1   : > { %v12499_v54 = vpop.f32.mrf.mxu0 }
 0x2c2   : > { %16915 = vst [vmem:[#allocation42_spill] sm:$0xff] %v15278_v26  ;;  %v12500_v7 = vadd.f32 %v12499_v54, %v12498_v13  ;;  %v16924_v26 = vld [vmem:[#allocation19_spill] sm:$0xff] }
 0x2c3   : > { %v15280_v27 = vpop.f32.mrf.mxu1 }
 0x2c4   : > { %16916 = vst [vmem:[#allocation43_spill] sm:$0xff] %v15280_v27  ;;  %v15285_v20 = vadd.f32 %v12500_v7, %v14955_v32  ;;  %v16927_v27 = vld [vmem:[#allocation20_spill] sm:$0xff] }
 0x2c5   : > { %v15282_v55 = vpop.f32.mrf.mxu1 }
 0x2c6   : > { %16917 = vst [vmem:[#allocation44_spill] sm:$0xff] %v15282_v55  ;;  %16918 = vst [vmem:[#allocation45_spill] sm:$0xff] %v15285_v20 }
 0x2c7   : > { %v15287_v22 = vpop.f32.mrf.mxu1  ;;  %v12501_v25 = vpop.f32.mrf.mxu0 }
 0x2c8   : > { %16919 = vst [vmem:[#allocation46_spill] sm:$0xff] %v15287_v22 }
 0x2c9   : > { %v12502_v46 = vpop.f32.mrf.mxu0  ;;  %v15289_v41 = vpop.f32.mrf.mxu1 }
 0x2ca   : > { %16920 = vst [vmem:[#allocation47_spill] sm:$0xff] %v15289_v41  ;;  %v12503_v38 = vadd.f32 %v12502_v46, %v12501_v25  ;;  %v13609_v46 = vld [vmem:[#allocation9 + $0x178] sm:$0xff]  }
 0x2cb   : > { %v12504_v57 = vpop.f32.mrf.mxu0  ;;  %v13610_v25 = vld [vmem:[#allocation9 + $0x138] sm:$0xff]   ;;  %12891 = vmatprep.subr.bf16.mxu1 %v13609_v46 }
 0x2cc   : > { %v15292_v62 = vadd.f32 %v12503_v38, %v14963_v63  ;;  %12892 = vmatpush3.bf16.msra.mxu1 %v13610_v25 }
 0x2cd   : > { %v12505_v33 = vpop.f32.mrf.mxu0 }
 0x2ce   : > { %16921 = vst [vmem:[#allocation48_spill] sm:$0xff] %v15292_v62  ;;  %v12506_v13 = vadd.f32 %v12505_v33, %v12504_v57  ;;  %v16929_v33 = vld [vmem:[#allocation21_spill] sm:$0xff] }
 0x2cf   : > { %v15294_v19 = vpop.f32.mrf.mxu1 }
 0x2d0   : > { %16922 = vst [vmem:[#allocation49_spill] sm:$0xff] %v15294_v19  ;;  %v15299_v32 = vadd.f32 %v12506_v13, %v16924_v26  ;;  %v16932_v19 = vld [vmem:[#allocation22_spill] sm:$0xff] }
 0x2d1   : > { %v15296_v54 = vpop.f32.mrf.mxu1 }
 0x2d2   : > { %16923 = vst [vmem:[#allocation50_spill] sm:$0xff] %v15296_v54  ;;  %16925 = vst [vmem:[#allocation19_spill] sm:$0xff] %v15299_v32 }
 0x2d3   : > { %v12507_v7 = vpop.f32.mrf.mxu0  ;;  %v15301_v20 = vpop.f32.mrf.mxu1 }
 0x2d4   : > { %16926 = vst [vmem:[#allocation51_spill] sm:$0xff] %v15301_v20 }
 0x2d5   : > { %v12508_v22 = vpop.f32.mrf.mxu0  ;;  %v15306_v38 = vpop.f32.mrf.mxu1 }
 0x2d6   : > { %v12509_v55 = vadd.f32 %v12508_v22, %v12507_v7 }
 0x2d7   : > { %v12510_v41 = vpop.f32.mrf.mxu0 }
 0x2d8   : > { %v15304_v63 = vadd.f32 %v12509_v55, %v16927_v27 }
 0x2d9   : > { %v12511_v62 = vpop.f32.mrf.mxu0 }
 0x2da   : > { %16928 = vst [vmem:[#allocation20_spill] sm:$0xff] %v15304_v63  ;;  %v12512_v57 = vadd.f32 %v12511_v62, %v12510_v41 }
 0x2dc   : > { %v15309_v26 = vadd.f32 %v12512_v57, %v16929_v33 }
 0x2dd   : > { %v15311_v13 = vpop.f32.mrf.mxu1 }
 0x2de   : > { %16930 = vst [vmem:[#allocation21_spill] sm:$0xff] %v15309_v26 }
 0x2df   : > { %v15313_v22 = vpop.f32.mrf.mxu1 }
 0x2e0   : > { %v12513_v32 = vpop.f32.mrf.mxu0  ;;  %16931 = vst [vmem:[#allocation52_spill] sm:$0xff] %v15313_v22 }
 0x2e1   : > { %v15318_v63 = vpop.f32.mrf.mxu1 }
 0x2e2   : > { %v12514_v20 = vpop.f32.mrf.mxu0 }
 0x2e3   : > { %v12515_v7 = vadd.f32 %v12514_v20, %v12513_v32  ;;  %v15323_v62 = vpop.f32.mrf.mxu1 }
 0x2e4   : > { %v12516_v54 = vpop.f32.mrf.mxu0 }
 0x2e5   : > { %v15316_v27 = vadd.f32 %v12515_v7, %v16932_v19 }
 0x2e6   : > { %v12517_v55 = vpop.f32.mrf.mxu0 }
 0x2e7   : > { %v12518_v46 = vadd.f32 %v12517_v55, %v12516_v54 }
 0x2e9   : > { %v15321_v41 = vadd.f32 %v12518_v46, %v15072_v0  ;;  %v12549_v46 = vadd.f32 %v15124_v37, %v15118_v6  ;;  %v12567_v6 = vadd.f32 %v15184_v16, %v15182_v11  ;;  %v12582_v11 = vadd.f32 %v15219_v14, %v15217_v35  ;;  %v16937_v35 = vld [vmem:[#allocation25_spill] sm:$0xff] }
 0x2ea   : > { %v15325_v33 = vpop.f32.mrf.mxu1 }
 0x2eb   : > { %16933 = vst [vmem:[#allocation22_spill] sm:$0xff] %v15321_v41  ;;  %v13626_v41 = vld [vmem:[#allocation9 + $0x170] sm:$0xff]  }
 0x2ec   : > { %v15330_v32 = vpop.f32.mrf.mxu1  ;;  %12893 = vmatprep.subr.bf16.mxu1 %v13626_v41  ;;  %v16941_v41 = vld [vmem:[#allocation27_spill] sm:$0xff] }
 0x2ee   : > { %v12519_v25 = vpop.f32.mrf.mxu0  ;;  %v15335_v0 = vpop.f32.mrf.mxu1 }
 0x2f0   : > { %v12520_v57 = vpop.f32.mrf.mxu0  ;;  %v15337_v55 = vpop.f32.mrf.mxu1 }
 0x2f1   : > { %v12521_v26 = vadd.f32 %v12520_v57, %v12519_v25  ;;  %v12552_v25 = vadd.f32 %v15139_v45, %v15130_v51  ;;  %v5505_v51 = vadd.f32 %v12549_v46, %v15116_v30  ;;  %v12570_v45 = vadd.f32 %v15191_v50, %v15189_v15 }
 0x2f2   : > { %v12522_v22 = vpop.f32.mrf.mxu0  ;;  %v12585_v50 = vadd.f32 %v15226_v24, %v15224_v47  ;;  %v16938_v47 = vld [vmem:[#allocation26_spill] sm:$0xff] }
 0x2f3   : > { %v15328_v20 = vadd.f32 %v12521_v26, %v15074_v36  ;;  %v12555_v36 = vadd.f32 %v15152_v48, %v15148_v4  ;;  %v12558_v26 = vadd.f32 %v15163_v2, %v15157_v17  ;;  %v12573_v4 = vadd.f32 %v15201_v42, %v15196_v44 }
 0x2f4   : > { %v12523_v19 = vpop.f32.mrf.mxu0  ;;  %v15364_v2 = vadd.f32 %v12552_v25, %v15133_v34  ;;  %v15379_v34 = vadd.f32 %v12567_v6, %v15180_v29  ;;  %v12594_v44 = vadd.f32 %v15247_v60, %v15245_v10  ;;  %v15400_v14 = vadd.f32 %v12570_v45, %v16937_v35  ;;  %v16940_v10 = vld [vmem:[#allocation28_spill] sm:$0xff]  ;;  %v16943_v25 = vld [vmem:[#allocation43_spill] sm:$0xff]  ;;  %v16945_v6 = vld [vmem:[#allocation29_spill] sm:$0xff] }
 0x2f5   : > { %v12524_v7 = vadd.f32 %v12523_v19, %v12522_v22  ;;  %v12564_v22 = vadd.f32 %v15177_v5, %v15175_v21  ;;  %v5513_v17 = vadd.f32 %v12555_v36, %v15146_v12  ;;  %v5516_v21 = vadd.f32 %v12558_v26, %v15155_v8  ;;  %v16944_v36 = vld [vmem:[#allocation44_spill] sm:$0xff] }
 0x2f6   : > { %v12588_v8 = vadd.f32 %v15233_v52, %v15231_v1  ;;  %v15403_v24 = vadd.f32 %v12573_v4, %v16938_v47  ;;  %v16939_v1 = vld [vmem:[#allocation38_spill] sm:$0xff]  ;;  %v12603_v52 = vadd.f32 %v15271_v56, %v15266_v23  ;;  %v12609_v26 = vadd.f32 %v16944_v36, %v16943_v25  ;;  %v15425_v23 = vld [vmem:[%s16842_s3] ss:$0 sm:$0xff]  ;;  %v16946_v56 = vld [vmem:[#allocation32_spill] sm:$0xff] }
 0x2f7   : > { %v15333_v54 = vadd.f32 %v12524_v7, %v15085_v58  ;;  %v12561_v58 = vadd.f32 %v15170_v39, %v15168_v61  ;;  %v12576_v61 = vadd.f32 %v15205_v43, %v15203_v59  ;;  %v12579_v39 = vadd.f32 %v15215_v49, %v15210_v9  ;;  %v16934_v59 = vld [vmem:[#allocation35_spill] sm:$0xff]  ;;  %v16935_v43 = vld [vmem:[#allocation37_spill] sm:$0xff]  ;;  %v16947_v4 = vld [vmem:[#allocation30_spill] sm:$0xff] }
 0x2f8   : > { %v15382_v15 = vadd.f32 %v12564_v22, %v15173_v40  ;;  %v12597_v29 = vadd.f32 %v16935_v43, %v16934_v59  ;;  %v16936_v40 = vld [vmem:[#allocation23_spill] sm:$0xff]  ;;  %v16942_v7 = vld [vmem:[#allocation41_spill] sm:$0xff] }
 0x2f9   : > { %v15372_v5 = vadd.f32 %v12561_v58, %v15166_v53  ;;  %v12591_v53 = vadd.f32 %v15240_v3, %v15238_v28  ;;  %v12600_v3 = vadd.f32 %v15261_v18, %v16939_v1  ;;  %v15410_v60 = vadd.f32 %v12579_v39, %v16940_v10  ;;  %v16953_v1 = vld [vmem:[#allocation34_spill] sm:$0xff]  ;;  %v16957_v36 = vld [vmem:[#allocation39_spill] sm:$0xff] }
 0x2fa   : > { %v15413_v19 = vadd.f32 %v12576_v61, %v16941_v41  ;;  %v12606_v46 = vadd.f32 %v16942_v7, %v15273_v31  ;;  %v15420_v18 = vadd.f32 %v12582_v11, %v16945_v6  ;;  %v15431_v61 = vadd.f32 %v12585_v50, %v16947_v4  ;;  %v16948_v31 = vld [vmem:[#allocation33_spill] sm:$0xff]  ;;  %v16950_v11 = vld [vmem:[#allocation46_spill] sm:$0xff] }
 0x2fb   : > { %v15428_v45 = vadd.f32 %v12591_v53, %v16946_v56  ;;  %v15434_v39 = vadd.f32 %v12594_v44, %v16948_v31  ;;  %v15445_v53 = vadd.f32 %v12597_v29, %v16953_v1  ;;  %v16954_v50 = vld [vmem:[#allocation49_spill] sm:$0xff]  ;;  %v16955_v10 = vld [vmem:[#allocation50_spill] sm:$0xff]  ;;  %v16956_v44 = vld [vmem:[#allocation51_spill] sm:$0xff] }
 0x2fc   : > { %v12615_v41 = vadd.f32 %v16955_v10, %v16954_v50  ;;  %v12618_v7 = vadd.f32 %v15306_v38, %v16956_v44  ;;  %v16959_v56 = vld [vmem:[#allocation40_spill] sm:$0xff]  ;;  %v16960_v31 = vld [vmem:[#allocation42_spill] sm:$0xff]  ;;  %v16962_v1 = vld [vmem:[#allocation45_spill] sm:$0xff] }
 0x2fd   : > { %v15464_v4 = vadd.f32 %v12606_v46, %v16959_v56  ;;  %v15467_v38 = vadd.f32 %v12609_v26, %v16960_v31  ;;  %v16963_v50 = vld [vmem:[#allocation48_spill] sm:$0xff] }
 0x305   : > { %v15353_v37 = vpop.f32.mrf.mxu1 }
 0x307   : > { %v12525_v57 = vpop.f32.mrf.mxu0  ;;  %v15360_v48 = vpop.f32.mrf.mxu1 }
 0x309   : > { %v12526_v30 = vpop.f32.mrf.mxu0  ;;  %v15376_v16 = vpop.f32.mrf.mxu1 }
 0x30a   : > { %v12527_v12 = vadd.f32 %v12526_v30, %v12525_v57  ;;  %v16949_v30 = vld [vmem:[#allocation31_spill] sm:$0xff] }
 0x30b   : > { %v12528_v42 = vpop.f32.mrf.mxu0  ;;  %v15394_v9 = vpop.f32.mrf.mxu1 }
 0x30c   : > { %v15397_v49 = vadd.f32 %v12527_v12, %v16936_v40  ;;  %v15437_v12 = vadd.f32 %v12588_v8, %v16949_v30  ;;  %v16952_v40 = vld [vmem:[#allocation24_spill] sm:$0xff]  ;;  %v15454_v8 = vld [vmem:[%s16843_s4] ss:$0 sm:$0xff]  ;;  %v15509_v56 = vadd.f32 %v15394_v9, %v15376_v16 }
 0x30d   : > { %v12529_v28 = vpop.f32.mrf.mxu0  ;;  %v12637_v58 = vpop.f32.mrf.mxu1  ;;  %v16961_v30 = vld [vmem:[#allocation52_spill] sm:$0xff] }
 0x30e   : > { %v12530_v22 = vadd.f32 %v12529_v28, %v12528_v42  ;;  %v16951_v42 = vld [vmem:[#allocation47_spill] sm:$0xff]  ;;  %v13630_v28 = vld [vmem:[#allocation9 + $0x130] sm:$0xff]  }
 0x30f   : > { %v13157_v57 = vpop.f32.mrf.mxu0  ;;  %v12612_v59 = vadd.f32 %v16951_v42, %v16950_v11  ;;  %v12638_v43 = vpop.f32.mrf.mxu1  ;;  %12894 = vmatpush3.bf16.msra.mxu1 %v13630_v28  ;;  %v12621_v11 = vadd.f32 %v16961_v30, %v15311_v13  ;;  %v12630_v42 = vadd.f32 %v15337_v55, %v15335_v0  ;;  %v12633_v13 = vadd.f32 %v15360_v48, %v15353_v37  ;;  %v16965_v37 = vld [vmem:[#allocation20_spill] sm:$0xff] }
 0x310   : > { %v15442_v35 = vadd.f32 %v12530_v22, %v16952_v40  ;;  %v5674_v47 = vadd.f32 %v13157_v57, %v5513_v17  ;;  %v15457_v22 = vadd.f32 %v12603_v52, %v16957_v36  ;;  %v16958_v17 = vld [vmem:[#allocation36_spill] sm:$0xff]  ;;  %v12624_v52 = vadd.f32 %v15323_v62, %v15318_v63 }
 0x311   : > { %v5665_v25 = vpop.f32.mrf.mxu0  ;;  %v15460_v6 = vadd.f32 %v12600_v3, %v16958_v17  ;;  %v12627_v3 = vadd.f32 %v15330_v32, %v15325_v33  ;;  %v15480_v28 = vadd.f32 %v12612_v59, %v16962_v1  ;;  %v12639_v63 = vadd.f32 %v12638_v43, %v12637_v58  ;;  %v16964_v32 = vld [vmem:[#allocation19_spill] sm:$0xff]  ;;  %v16966_v58 = vld [vmem:[#allocation22_spill] sm:$0xff] }
 0x312   : > { %v5801_v29 = vmul.f32 %v15425_v23, %v5674_v47  ;;  %v5666_v57 = vadd.f32 %v5665_v25, %v5505_v51  ;;  %v12640_v51 = vpop.f32.mrf.mxu1  ;;  %v15485_v33 = vadd.f32 %v12615_v41, %v16963_v50  ;;  %v15488_v0 = vadd.f32 %v12618_v7, %v16964_v32  ;;  %v16967_v41 = vld [vmem:[#allocation21_spill] sm:$0xff] }
 0x313   : > { %v13158_v40 = vpop.f32.mrf.mxu0  ;;  %v15494_v36 = vadd.f32 %v12627_v3, %v15316_v27  ;;  %v15497_v48 = vadd.f32 %v12621_v11, %v16965_v37  ;;  %v15500_v43 = vadd.f32 %v12630_v42, %v16966_v58  ;;  %v15503_v7 = vadd.f32 %v12624_v52, %v16967_v41  ;;  %v13640_v52 = vld [vmem:[#allocation9 + $0x168] sm:$0xff]  }
 0x314   : > { %v5840_v46 = vadd.f32 %v15454_v8, %v5801_v29  ;;  %v5799_v26 = vmul.f32 %v15425_v23, %v5666_v57  ;;  %v5677_v47 = vadd.f32 %v13158_v40, %v5516_v21  ;;  %v12641_v59 = vpop.f32.mrf.mxu1  ;;  %v15513_v30 = vadd.f32 %v12639_v63, %v15397_v49  ;;  %12895 = vmatprep.subr.bf16.mxu1 %v13640_v52  ;;  %v13644_v52 = vld [vmem:[#allocation9 + $0x128] sm:$0xff]  }
 0x315   : > { %v5668_v62 = vpop.f32.mrf.mxu0  ;;  %v15516_v11 = vadd.f32 %v12633_v13, %v15328_v20  ;;  %v15518_v3 = vadd.f32 %v12641_v59, %v12640_v51  ;;  %v6325_v13 = vld [vmem:[#allocation2 + $0x18] sm:$0xf]  ;;  %12896 = vmatpush3.bf16.msra.mxu1 %v13644_v52 }
 0x316   : > { %v5872_v55 = vmax.f32 %v5840_v46, 0.0  ;;  %v5838_v10 = vadd.f32 %v15454_v8, %v5799_v26  ;;  %v5802_v44 = vmul.f32 %v15425_v23, %v5677_v47  ;;  %v5669_v21 = vadd.f32 %v5668_v62, %v15364_v2 }
 0x317   : > { %v13161_v25 = vpop.f32.mrf.mxu0 }
 0x318   : > { %v12164_v17 = vpack.c.bf16 %v5872_v55, %v5872_v55  ;;  %v5870_v29 = vmax.f32 %v5838_v10, 0.0  ;;  %v5841_v57 = vadd.f32 %v15454_v8, %v5802_v44  ;;  %v5800_v2 = vmul.f32 %v15425_v23, %v5669_v21 }
 0x319   : > { %v5690_v27 = vadd.f32 %v13161_v25, %v15379_v34  ;;  %v5681_v31 = vpop.f32.mrf.mxu0 }
 0x31a   : > { %v6016_v42 = vshrl.u32 %v12164_v17, 16  ;;  %v12162_v40 = vpack.c.bf16 %v5870_v29, %v5870_v29  ;;  %v5873_v46 = vmax.f32 %v5841_v57, 0.0  ;;  %v6019_v26 = vshll.u32 %v12164_v17, 16 }
 0x31b   : > { %v5839_v47 = vadd.f32 %v15454_v8, %v5800_v2  ;;  %v5805_v16 = vmul.f32 %v15425_v23, %v5690_v27  ;;  %v5682_v34 = vadd.f32 %v5681_v31, %v15372_v5  ;;  %v13162_v9 = vpop.f32.mrf.mxu0  ;;  %v6318_v5 = vld [vmem:[#allocation2 + $0xc] sm:$0xf] }
 0x31c   : > { %v6018_v49 = vrot.slane %v6016_v42, 7  ;;  %v5999_v1 = vshrl.u32 %v12162_v40, 16  ;;  %v6002_v63 = vshll.u32 %v12162_v40, 16  ;;  %v12165_v20 = vpack.c.bf16 %v5873_v46, %v5873_v46 }
 0x31d   : > { %v5871_v62 = vmax.f32 %v5839_v47, 0.0  ;;  %v5844_v51 = vadd.f32 %v15454_v8, %v5805_v16  ;;  %v5803_v50 = vmul.f32 %v15425_v23, %v5682_v34  ;;  %v5693_v32 = vadd.f32 %v13162_v9, %v15400_v14  ;;  %v5684_v55 = vpop.f32.mrf.mxu0  ;;  %v6329_v14 = vld [vmem:[#allocation2 + $0x20] sm:$0x1] }
 0x31e   : > { %v6021_v10 = vor.u32 %v6019_v26, %v6018_v49  ;;  %v6022_v44 = vrot.slane %v6018_v49, 4  ;;  %v6001_v21 = vrot.slane %v5999_v1, 7  ;;  %v6024_v59 = vshrl.u32 %v12165_v20, 16 }
 0x31f   : > { %v6027_v25 = vshll.u32 %v12165_v20, 16  ;;  %v12163_v37 = vpack.c.bf16 %v5871_v62, %v5871_v62  ;;  %v5876_v58 = vmax.f32 %v5844_v51, 0.0  ;;  %v5842_v41 = vadd.f32 %v15454_v8, %v5803_v50  ;;  %v13165_v17 = vpop.f32.mrf.mxu0 }
 0x320   : > { %v6326_v57 = vsel %vm14239_vm12, %v6021_v10, %v6325_v13  ;;  %v6004_v2 = vor.u32 %v6002_v63, %v6001_v21  ;;  %v6005_v27 = vrot.slane %v6001_v21, 4  ;;  %v6026_v31 = vrot.slane %v6024_v59, 7  ;;  %v6322_v59 = vld [vmem:[#allocation2 + $0x14] sm:$0x1] }
 0x321   : > { %6327 = vst [vmem:[#allocation2 + $0x18] sm:$0xf] %v6326_v57  ;;  %v6007_v42 = vshrl.u32 %v12163_v37, 16  ;;  %v6010_v40 = vshll.u32 %v12163_v37, 16  ;;  %v12168_v46 = vpack.c.bf16 %v5876_v58, %v5876_v58  ;;  %v5874_v26 = vmax.f32 %v5842_v41, 0.0  ;;  %v5697_v47 = vpop.f32.mrf.mxu0 }
 0x322   : > { %v6319_v16 = vsel %vm14239_vm12, %v6004_v2, %v6318_v5  ;;  %v6029_v34 = vor.u32 %v6027_v25, %v6026_v31  ;;  %v6031_v9 = vrot.slane %v6026_v31, 4  ;;  %v5806_v49 = vmul.f32 %v15425_v23, %v5693_v32  ;;  %v6339_v2 = vld [vmem:[#allocation2 + $0x30] sm:$0xf] }
 0x323   : > { %6320 = vst [vmem:[#allocation2 + $0xc] sm:$0xf] %v6319_v16  ;;  %v6009_v1 = vrot.slane %v6007_v42, 7  ;;  %v6050_v63 = vshrl.u32 %v12168_v46, 16  ;;  %v6053_v20 = vshll.u32 %v12168_v46, 16  ;;  %v12166_v13 = vpack.c.bf16 %v5874_v26, %v5874_v26  ;;  %v13166_v62 = vpop.f32.mrf.mxu0 }
 0x324   : > { %v6030_v50 = vsel %vm14257_vm14, %v6022_v44, %v6029_v34  ;;  %v6330_v21 = vsel %vm14199_vm3, %v6031_v9, %v6329_v14  ;;  %v5845_v5 = vadd.f32 %v15454_v8, %v5806_v49  ;;  %v5685_v25 = vadd.f32 %v5684_v55, %v15382_v15  ;;  %v6332_v9 = vld [vmem:[#allocation2 + $0x24] sm:$0xf] }
 0x325   : > { %6328 = vst [vmem:[#allocation2 + $0x1c] sm:$0xf] %v6030_v50  ;;  %6331 = vst [vmem:[#allocation2 + $0x20] sm:$0x1] %v6330_v21  ;;  %v6012_v32 = vor.u32 %v6010_v40, %v6009_v1  ;;  %v6014_v37 = vrot.slane %v6009_v1, 4  ;;  %v15538_v58 = vrot.slane %v6050_v63, 7  ;;  %v5700_v57 = vpop.f32.mrf.mxu0  ;;  %v5706_v14 = vadd.f32 %v13165_v17, %v15410_v60 }
 0x326   : > { %v6033_v41 = vshrl.u32 %v12166_v13, 16  ;;  %v6036_v31 = vshll.u32 %v12166_v13, 16  ;;  %v5877_v52 = vmax.f32 %v5845_v5, 0.0  ;;  %v5804_v44 = vmul.f32 %v15425_v23, %v5685_v25  ;;  %v13654_v50 = vld [vmem:[#allocation9 + $0x160] sm:$0xff]  }
 0x327   : > { %v6013_v42 = vsel %vm14257_vm14, %v6005_v27, %v6012_v32  ;;  %v6323_v15 = vsel %vm14199_vm3, %v6014_v37, %v6322_v59  ;;  %v6055_v55 = vor.u32 %v6053_v20, %v15538_v58  ;;  %v6056_v40 = vrot.slane %v15538_v58, 4  ;;  %v13169_v46 = vpop.f32.mrf.mxu0  ;;  %12897 = vmatprep.subr.bf16.mxu1 %v13654_v50  ;;  %v13658_v58 = vld [vmem:[#allocation9 + $0x120] sm:$0xff]  }
 0x328   : > { %6321 = vst [vmem:[#allocation2 + $0x10] sm:$0xf] %v6013_v42  ;;  %6324 = vst [vmem:[#allocation2 + $0x14] sm:$0x1] %v6323_v15  ;;  %v15548_v26 = vrot.slane %v6033_v41, 7  ;;  %v12169_v16 = vpack.c.bf16 %v5877_v52, %v5877_v52  ;;  %v5843_v34 = vadd.f32 %v15454_v8, %v5804_v44  ;;  %v5809_v60 = vmul.f32 %v15425_v23, %v5706_v14 }
 0x329   : > { %v7264_v17 = vld [vmem:[#allocation2 + $0x18] sm:$0xf]  ;;  %v6340_v27 = vsel %vm14239_vm12, %v6055_v55, %v6339_v2  ;;  %v5698_v49 = vadd.f32 %v5697_v47, %v15403_v24  ;;  %v5709_v1 = vadd.f32 %v13166_v62, %v15420_v18  ;;  %v5701_v63 = vadd.f32 %v5700_v57, %v15413_v19  ;;  %v15557_v20 = vpop.f32.mrf.mxu0  ;;  %12898 = vmatpush3.bf16.msra.mxu1 %v13658_v58 }
 0x32a   : > { %7296 = vst [vmem:[#allocation3 + $0x54] sm:$0xf] %v7264_v17  ;;  %v6434_v13 = vld [vmem:[#allocation2 + $0x18] sm:$0xf]  ;;  %6341 = vst [vmem:[#allocation2 + $0x30] sm:$0xf] %v6340_v27  ;;  %v6038_v21 = vor.u32 %v6036_v31, %v15548_v26  ;;  %v5848_v24 = vadd.f32 %v15454_v8, %v5809_v60  ;;  %v5722_v31 = vadd.f32 %v13169_v46, %v15428_v45 }
 0x32b   : > { %v6039_v59 = vrot.slane %v15548_v26, 4  ;;  %v6058_v5 = vshrl.u32 %v12169_v16, 16  ;;  %v6061_v25 = vshll.u32 %v12169_v16, 16  ;;  %v7262_v32 = vld [vmem:[#allocation2 + $0xc] sm:$0xf]  ;;  %v5875_v37 = vmax.f32 %v5843_v34, 0.0  ;;  %v15564_v47 = vpop.f32.mrf.mxu0 }
 0x32c   : > { %6466 = vst [vmem:[#allocation3 + $0x90] sm:$0xf] %v6434_v13  ;;  %v5807_v18 = vmul.f32 %v15425_v23, %v5698_v49  ;;  %v5810_v19 = vmul.f32 %v15425_v23, %v5709_v1  ;;  %7294 = vst [vmem:[#allocation3 + $0xc] sm:$0xf] %v7262_v32  ;;  %v6432_v62 = vld [vmem:[#allocation2 + $0xc] sm:$0xf]  ;;  %v6333_v41 = vsel %vm14239_vm12, %v6038_v21, %v6332_v9 }
 0x32d   : > { %v6060_v57 = vrot.slane %v6058_v5, 7  ;;  %v5808_v2 = vmul.f32 %v15425_v23, %v5701_v63  ;;  %v7265_v52 = vld [vmem:[#allocation2 + $0x1c] sm:$0xf]  ;;  %6464 = vst [vmem:[#allocation3 + $0x48] sm:$0xf] %v6432_v62  ;;  %v12167_v14 = vpack.c.bf16 %v5875_v37, %v5875_v37  ;;  %v5880_v42 = vmax.f32 %v5848_v24, 0.0  ;;  %v15572_v16 = vpop.f32.mrf.mxu0 }
 0x32e   : > { %6334 = vst [vmem:[#allocation2 + $0x24] sm:$0xf] %v6333_v41  ;;  %v6343_v44 = vld [vmem:[#allocation2 + $0x38] sm:$0x1]  ;;  %v5846_v15 = vadd.f32 %v15454_v8, %v5807_v18  ;;  %v5849_v55 = vadd.f32 %v15454_v8, %v5810_v19  ;;  %7297 = vst [vmem:[#allocation3 + $0x78] sm:$0xf] %v7265_v52  ;;  %v5813_v45 = vmul.f32 %v15425_v23, %v5722_v31 }
 0x32f   : > { %v6063_v34 = vor.u32 %v6061_v25, %v6060_v57  ;;  %v6065_v60 = vrot.slane %v6060_v57, 4  ;;  %v5847_v17 = vadd.f32 %v15454_v8, %v5808_v2  ;;  %v6435_v46 = vld [vmem:[#allocation2 + $0x1c] sm:$0xf]  ;;  %v6041_v27 = vshrl.u32 %v12167_v14, 16  ;;  %v15576_v63 = vpop.f32.mrf.mxu0  ;;  %v7263_v13 = vld [vmem:[#allocation2 + $0x10] sm:$0xf] }
 0x330   : > { %v6044_v9 = vshll.u32 %v12167_v14, 16  ;;  %v12172_v49 = vpack.c.bf16 %v5880_v42, %v5880_v42  ;;  %v5878_v1 = vmax.f32 %v5846_v15, 0.0  ;;  %6467 = vst [vmem:[#allocation3 + $0xb4] sm:$0xf] %v6435_v46  ;;  %v5881_v5 = vmax.f32 %v5849_v55, 0.0  ;;  %v13665_v15 = vld [vmem:[#allocation9 + $0x1f8] sm:$0xff]  }
 0x331   : > { %v6064_v50 = vsel %vm14257_vm14, %v6056_v40, %v6063_v34  ;;  %v6344_v21 = vsel %vm14199_vm3, %v6065_v60, %v6343_v44  ;;  %v5879_v25 = vmax.f32 %v5847_v17, 0.0  ;;  %7295 = vst [vmem:[#allocation3 + $0x30] sm:$0xf] %v7263_v13  ;;  %v6043_v32 = vrot.slane %v6041_v27, 7  ;;  %v6433_v19 = vld [vmem:[#allocation2 + $0x10] sm:$0xf]  ;;  %v15585_v2 = vpop.f32.mrf.mxu0  ;;  %13003 = vmatprep.subr.bf16.mxu0 %v13665_v15 }
 0x332   : > { %6342 = vst [vmem:[#allocation2 + $0x34] sm:$0xf] %v6064_v50  ;;  %6345 = vst [vmem:[#allocation2 + $0x38] sm:$0x1] %v6344_v21  ;;  %v6084_v37 = vshrl.u32 %v12172_v49, 16  ;;  %v6087_v24 = vshll.u32 %v12172_v49, 16  ;;  %v12170_v18 = vpack.c.bf16 %v5878_v1, %v5878_v1  ;;  %v12173_v58 = vpack.c.bf16 %v5881_v5, %v5881_v5 }
 0x333   : > { %v6336_v62 = vld [vmem:[#allocation2 + $0x2c] sm:$0x1]  ;;  %v12171_v41 = vpack.c.bf16 %v5879_v25, %v5879_v25  ;;  %v5852_v57 = vadd.f32 %v15454_v8, %v5813_v45  ;;  %v5714_v40 = vadd.f32 %v15557_v20, %v15431_v61  ;;  %6465 = vst [vmem:[#allocation3 + $0x6c] sm:$0xf] %v6433_v19  ;;  %v6046_v31 = vor.u32 %v6044_v9, %v6043_v32  ;;  %v6353_v14 = vld [vmem:[#allocation2 + $0x48] sm:$0xf]  ;;  %v13174_v25 = vpop.f32.mrf.mxu0 }
 0x334   : > { %v6048_v52 = vrot.slane %v6043_v32, 4  ;;  %v6086_v44 = vrot.slane %v6084_v37, 7  ;;  %v6067_v42 = vshrl.u32 %v12170_v18, 16  ;;  %v6070_v55 = vshll.u32 %v12170_v18, 16  ;;  %v6346_v9 = vld [vmem:[#allocation2 + $0x3c] sm:$0xf] }
 0x335   : > { %v6092_v34 = vshrl.u32 %v12173_v58, 16  ;;  %v6095_v60 = vshll.u32 %v12173_v58, 16  ;;  %v6075_v17 = vshrl.u32 %v12171_v41, 16  ;;  %v7266_v46 = vld [vmem:[#allocation2 + $0x24] sm:$0xf]  ;;  %v6047_v45 = vsel %vm14257_vm14, %v6039_v59, %v6046_v31  ;;  %v13666_v13 = vld [vmem:[#allocation9 + $0x1b8] sm:$0xff]  }
 0x336   : > { %v6337_v61 = vsel %vm14199_vm3, %v6048_v52, %v6336_v62  ;;  %v6089_v20 = vor.u32 %v6087_v24, %v6086_v44  ;;  %v6090_v27 = vrot.slane %v6086_v44, 4  ;;  %v6357_v49 = vld [vmem:[#allocation2 + $0x50] sm:$0x1]  ;;  %7298 = vst [vmem:[#allocation3 + $0x9c] sm:$0xf] %v7266_v46  ;;  %v6069_v50 = vrot.slane %v6067_v42, 7 }
 0x337   : > { %v7268_v1 = vld [vmem:[#allocation2 + $0x30] sm:$0xf]  ;;  %6335 = vst [vmem:[#allocation2 + $0x28] sm:$0xf] %v6047_v45  ;;  %6338 = vst [vmem:[#allocation2 + $0x2c] sm:$0x1] %v6337_v61  ;;  %v5811_v24 = vmul.f32 %v15425_v23, %v5714_v40  ;;  %v5725_v18 = vadd.f32 %v15564_v47, %v15434_v39 }
 0x338   : > { %v6094_v21 = vrot.slane %v6092_v34, 7  ;;  %v6077_v5 = vrot.slane %v6075_v17, 7  ;;  %v6078_v26 = vshll.u32 %v12171_v41, 16  ;;  %7300 = vst [vmem:[#allocation3 + $0xe4] sm:$0xf] %v7268_v1  ;;  %v6354_v32 = vsel %vm14239_vm12, %v6089_v20, %v6353_v14  ;;  %v13670_v40 = vld [vmem:[#allocation9 + $0x158] sm:$0xff]  }
 0x339   : > { %v6436_v59 = vld [vmem:[#allocation2 + $0x24] sm:$0xf]  ;;  %v5884_v37 = vmax.f32 %v5852_v57, 0.0  ;;  %6355 = vst [vmem:[#allocation2 + $0x48] sm:$0xf] %v6354_v32  ;;  %v6072_v58 = vor.u32 %v6070_v55, %v6069_v50  ;;  %v6073_v31 = vrot.slane %v6069_v50, 4  ;;  %v5850_v57 = vadd.f32 %v15454_v8, %v5811_v24  ;;  %12899 = vmatprep.subr.bf16.mxu1 %v13670_v40 }
 0x33a   : > { %v13606_v19 = vld [vmem:[#allocation3 + $0x8] ss:$36 sps:$4 sm:$0xff]   ;;  %6468 = vst [vmem:[#allocation3 + $0xd8] sm:$0xf] %v6436_v59  ;;  %v6097_v52 = vor.u32 %v6095_v60, %v6094_v21  ;;  %v6099_v41 = vrot.slane %v6094_v21, 4  ;;  %v6080_v15 = vor.u32 %v6078_v26, %v6077_v5  ;;  %v6082_v34 = vrot.slane %v6077_v5, 4  ;;  %v5732_v60 = vpop.f32.mrf.mxu0 }
 0x33b   : > { %v13608_v62 = vld [vmem:[#allocation3 + $0xc] ss:$36 sps:$4 sm:$0xff]   ;;  %v7269_v42 = vld [vmem:[#allocation2 + $0x34] sm:$0xf]  ;;  %v12176_v17 = vpack.c.bf16 %v5884_v37, %v5884_v37  ;;  %v6347_v39 = vsel %vm14239_vm12, %v6072_v58, %v6346_v9  ;;  %v5814_v55 = vmul.f32 %v15425_v23, %v5725_v18  ;;  %v6438_v46 = vld [vmem:[#allocation2 + $0x30] sm:$0xf]  ;;  %v5717_v50 = vadd.f32 %v15572_v16, %v15437_v12 }
 0x33c   : > { %v6350_v44 = vld [vmem:[#allocation2 + $0x44] sm:$0x1]  ;;  %10591 = vmatprep.mubr.bf16.mxu0 %v13608_v62  ;;  %7301 = vst [vmem:[#allocation3 + $0x108] sm:$0xf] %v7269_v42  ;;  %v6098_v47 = vsel %vm14257_vm14, %v6090_v27, %v6097_v52  ;;  %v6358_v14 = vsel %vm14199_vm3, %v6099_v41, %v6357_v49  ;;  %v6439_v45 = vld [vmem:[#allocation2 + $0x34] sm:$0xf]  ;;  %v6081_v61 = vsel %vm14257_vm14, %v6073_v31, %v6080_v15 }
 0x33d   : > { %10592 = vmatmul.mubr.bf16.vlgmr.msra.gmra.mxu0 %v13606_v19  ;;  %6348 = vst [vmem:[#allocation2 + $0x3c] sm:$0xf] %v6347_v39  ;;  %6356 = vst [vmem:[#allocation2 + $0x4c] sm:$0xf] %v6098_v47  ;;  %v6351_v20 = vsel %vm14199_vm3, %v6082_v34, %v6350_v44  ;;  %v6118_v9 = vshrl.u32 %v12176_v17, 16  ;;  %v6121_v27 = vshll.u32 %v12176_v17, 16  ;;  %v5853_v1 = vadd.f32 %v15454_v8, %v5814_v55 }
 0x33e   : > { %6359 = vst [vmem:[#allocation2 + $0x50] sm:$0x1] %v6358_v14  ;;  %6470 = vst [vmem:[#allocation3 + $0x120] sm:$0xf] %v6438_v46  ;;  %13004 = vmatpush3.bf16.msra.mxu0 %v13666_v13  ;;  %v5882_v49 = vmax.f32 %v5850_v57, 0.0  ;;  %v5738_v21 = vadd.f32 %v15576_v63, %v15457_v22  ;;  %v13674_v5 = vld [vmem:[#allocation9 + $0x118] sm:$0xff]   ;;  %v5730_v32 = vadd.f32 %v15585_v2, %v15445_v53  ;;  %v15627_v2 = vpop.f32.mrf.mxu0 }
 0x33f   : > { %6471 = vst [vmem:[#allocation3 + $0x144] sm:$0xf] %v6439_v45  ;;  %6349 = vst [vmem:[#allocation2 + $0x40] sm:$0xf] %v6081_v61  ;;  %v8094_v26 = vld [vmem:[#allocation2 + $0x18] sm:$0xf]  ;;  %v5741_v13 = vadd.f32 %v13174_v25, %v15464_v4  ;;  %v5733_v37 = vadd.f32 %v5732_v60, %v15460_v6  ;;  %v5812_v12 = vmul.f32 %v15425_v23, %v5717_v50  ;;  %12900 = vmatpush3.bf16.msra.mxu1 %v13674_v5 }
 0x340   : > { %6352 = vst [vmem:[#allocation2 + $0x44] sm:$0x1] %v6351_v20  ;;  %v15615_v59 = vrot.slane %v6118_v9, 7  ;;  %v7267_v24 = vld [vmem:[#allocation2 + $0x28] sm:$0xf]  ;;  %v12174_v19 = vpack.c.bf16 %v5882_v49, %v5882_v49  ;;  %v5885_v62 = vmax.f32 %v5853_v1, 0.0  ;;  %v5817_v22 = vmul.f32 %v15425_v23, %v5738_v21  ;;  %v15638_v9 = vpop.f32.mrf.mxu0 }
 0x341   : > { %8126 = vst [vmem:[#allocation3 + $0x18] sm:$0xf] %v8094_v26  ;;  %v6367_v18 = vld [vmem:[#allocation2 + $0x60] sm:$0xf]  ;;  %7299 = vst [vmem:[#allocation3 + $0xc0] sm:$0xf] %v7267_v24  ;;  %v5815_v4 = vmul.f32 %v15425_v23, %v5730_v32  ;;  %v5818_v6 = vmul.f32 %v15425_v23, %v5741_v13  ;;  %v5851_v52 = vadd.f32 %v15454_v8, %v5812_v12 }
 0x342   : > { %v6437_v16 = vld [vmem:[#allocation2 + $0x28] sm:$0xf]  ;;  %v6123_v63 = vor.u32 %v6121_v27, %v15615_v59  ;;  %v6124_v53 = vrot.slane %v15615_v59, 4  ;;  %v6101_v25 = vshrl.u32 %v12174_v19, 16  ;;  %v6104_v58 = vshll.u32 %v12174_v19, 16 }
 0x343   : > { %6469 = vst [vmem:[#allocation3 + $0xfc] sm:$0xf] %v6437_v16  ;;  %v12177_v31 = vpack.c.bf16 %v5885_v62, %v5885_v62  ;;  %v7272_v41 = vld [vmem:[#allocation2 + $0x48] sm:$0xf]  ;;  %v6360_v42 = vld [vmem:[#allocation2 + $0x54] sm:$0xf]  ;;  %v5856_v15 = vadd.f32 %v15454_v8, %v5817_v22  ;;  %v5854_v34 = vadd.f32 %v15454_v8, %v5815_v4  ;;  %v5857_v17 = vadd.f32 %v15454_v8, %v5818_v6 }
 0x344   : > { %v6368_v44 = vsel %vm14239_vm12, %v6123_v63, %v6367_v18  ;;  %7304 = vst [vmem:[#allocation3 + $0x174] sm:$0xf] %v7272_v41  ;;  %v6442_v57 = vld [vmem:[#allocation2 + $0x48] sm:$0xf]  ;;  %v8095_v40 = vld [vmem:[#allocation2 + $0x1c] sm:$0xf]  ;;  %v5816_v20 = vmul.f32 %v15425_v23, %v5733_v37 }
 0x345   : > { %6369 = vst [vmem:[#allocation2 + $0x60] sm:$0xf] %v6368_v44  ;;  %v15635_v39 = vrot.slane %v6101_v25, 7  ;;  %v6126_v47 = vshrl.u32 %v12177_v31, 16  ;;  %v6129_v14 = vshll.u32 %v12177_v31, 16  ;;  %v5883_v55 = vmax.f32 %v5851_v52, 0.0 }
 0x346   : > { %v7270_v60 = vld [vmem:[#allocation2 + $0x3c] sm:$0xf]  ;;  %6474 = vst [vmem:[#allocation3 + $0x1b0] sm:$0xf] %v6442_v57  ;;  %8127 = vst [vmem:[#allocation3 + $0x3c] sm:$0xf] %v8095_v40  ;;  %v5855_v24 = vadd.f32 %v15454_v8, %v5816_v20 }
 0x347   : > { %v5888_v46 = vmax.f32 %v5856_v15, 0.0  ;;  %v5886_v45 = vmax.f32 %v5854_v34, 0.0  ;;  %v5889_v61 = vmax.f32 %v5857_v17, 0.0  ;;  %v7271_v27 = vld [vmem:[#allocation2 + $0x40] sm:$0xf]  ;;  %v13681_v49 = vld [vmem:[#allocation9 + $0x1f0] sm:$0xff]   ;;  %v6106_v1 = vor.u32 %v6104_v58, %v15635_v39  ;;  %v13178_v58 = vpop.f32.mrf.mxu0 }
 0x348   : > { %7302 = vst [vmem:[#allocation3 + $0x12c] sm:$0xf] %v7270_v60  ;;  %v6107_v50 = vrot.slane %v15635_v39, 4  ;;  %v6128_v21 = vrot.slane %v6126_v47, 7  ;;  %v12175_v5 = vpack.c.bf16 %v5883_v55, %v5883_v55  ;;  %7303 = vst [vmem:[#allocation3 + $0x150] sm:$0xf] %v7271_v27  ;;  %13005 = vmatprep.subr.bf16.mxu0 %v13681_v49  ;;  %v5754_v55 = vadd.f32 %v15627_v2, %v15485_v33 }
 0x349   : > { %v6371_v26 = vld [vmem:[#allocation2 + $0x68] sm:$0x1]  ;;  %v12180_v59 = vpack.c.bf16 %v5888_v46, %v5888_v46  ;;  %v12178_v32 = vpack.c.bf16 %v5886_v45, %v5886_v45  ;;  %v15642_v13 = vpack.c.bf16 %v5889_v61, %v5889_v61  ;;  %v7273_v37 = vld [vmem:[#allocation2 + $0x4c] sm:$0xf]  ;;  %v6440_v18 = vld [vmem:[#allocation2 + $0x3c] sm:$0xf]  ;;  %v6361_v19 = vsel %vm14239_vm12, %v6106_v1, %v6360_v42  ;;  %v5748_v27 = vpop.f32.mrf.mxu0 }
 0x34a   : > { %v6131_v62 = vor.u32 %v6129_v14, %v6128_v21  ;;  %v6133_v12 = vrot.slane %v6128_v21, 4  ;;  %v6109_v22 = vshrl.u32 %v12175_v5, 16  ;;  %7305 = vst [vmem:[#allocation3 + $0x198] sm:$0xf] %v7273_v37  ;;  %v6441_v16 = vld [vmem:[#allocation2 + $0x40] sm:$0xf] }
 0x34b   : > { %6472 = vst [vmem:[#allocation3 + $0x168] sm:$0xf] %v6440_v18  ;;  %6362 = vst [vmem:[#allocation2 + $0x54] sm:$0xf] %v6361_v19  ;;  %v6112_v63 = vshll.u32 %v12175_v5, 16  ;;  %v6152_v4 = vshrl.u32 %v12180_v59, 16 }
 0x34c   : > { %v6155_v6 = vshll.u32 %v12180_v59, 16  ;;  %v6135_v25 = vshrl.u32 %v12178_v32, 16  ;;  %6473 = vst [vmem:[#allocation3 + $0x18c] sm:$0xf] %v6441_v16  ;;  %v6132_v31 = vsel %vm14257_vm14, %v6124_v53, %v6131_v62  ;;  %v6372_v52 = vsel %vm14199_vm3, %v6133_v12, %v6371_v26  ;;  %v6364_v44 = vld [vmem:[#allocation2 + $0x5c] sm:$0x1] }
 0x34d   : > { %v6111_v41 = vrot.slane %v6109_v22, 7  ;;  %v6138_v42 = vshll.u32 %v12178_v32, 16  ;;  %6370 = vst [vmem:[#allocation2 + $0x64] sm:$0xf] %v6132_v31  ;;  %6373 = vst [vmem:[#allocation2 + $0x68] sm:$0x1] %v6372_v52  ;;  %v13181_v52 = vpop.f32.mrf.mxu0 }
 0x34e   : > { %v6154_v15 = vrot.slane %v6152_v4, 7  ;;  %v6381_v34 = vld [vmem:[#allocation2 + $0x78] sm:$0xf]  ;;  %v15651_v17 = vrot.slane %v6135_v25, 7  ;;  %v6160_v57 = vshrl.u32 %v15642_v13, 16  ;;  %v6163_v40 = vshll.u32 %v15642_v13, 16 }
 0x34f   : > { %v6114_v39 = vor.u32 %v6112_v63, %v6111_v41  ;;  %v6116_v47 = vrot.slane %v6111_v41, 4  ;;  %v6374_v14 = vld [vmem:[#allocation2 + $0x6c] sm:$0xf]  ;;  %v5887_v53 = vmax.f32 %v5855_v24, 0.0  ;;  %v7276_v49 = vld [vmem:[#allocation2 + $0x60] sm:$0xf]  ;;  %v5821_v24 = vmul.f32 %v15425_v23, %v5754_v55 }
 0x350   : > { %v6443_v60 = vld [vmem:[#allocation2 + $0x4c] sm:$0xf]  ;;  %v6157_v46 = vor.u32 %v6155_v6, %v6154_v15  ;;  %v6158_v45 = vrot.slane %v6154_v15, 4  ;;  %v6140_v61 = vor.u32 %v6138_v42, %v15651_v17  ;;  %v6141_v20 = vrot.slane %v15651_v17, 4  ;;  %v6385_v26 = vld [vmem:[#allocation2 + $0x80] sm:$0x1] }
 0x351   : > { %6475 = vst [vmem:[#allocation3 + $0x1d4] sm:$0xf] %v6443_v60  ;;  %v6115_v1 = vsel %vm14257_vm14, %v6107_v50, %v6114_v39  ;;  %v6365_v21 = vsel %vm14199_vm3, %v6116_v47, %v6364_v44  ;;  %v6162_v5 = vrot.slane %v6160_v57, 7  ;;  %v12179_v59 = vpack.c.bf16 %v5887_v53, %v5887_v53  ;;  %7308 = vst [vmem:[#allocation3 + $0x204] sm:$0xf] %v7276_v49  ;;  %v13682_v2 = vld [vmem:[#allocation9 + $0x1b0] sm:$0xff]  }
 0x352   : > { %v6446_v33 = vld [vmem:[#allocation2 + $0x60] sm:$0xf]  ;;  %6363 = vst [vmem:[#allocation2 + $0x58] sm:$0xf] %v6115_v1  ;;  %6366 = vst [vmem:[#allocation2 + $0x5c] sm:$0x1] %v6365_v21  ;;  %v6382_v32 = vsel %vm14239_vm12, %v6157_v46, %v6381_v34  ;;  %v6375_v13 = vsel %vm14239_vm12, %v6140_v61, %v6374_v14  ;;  %v5746_v50 = vadd.f32 %v15638_v9, %v15467_v38  ;;  %13006 = vmatpush3.bf16.msra.mxu0 %v13682_v2  ;;  %v5761_v1 = vpop.f32.mrf.mxu0 }
 0x353   : > { %v6993_v37 = vld [vmem:[#allocation2 + $0xc] sm:$0xe]  ;;  %6478 = vst [vmem:[#allocation3 + $0x240] sm:$0xf] %v6446_v33  ;;  %6383 = vst [vmem:[#allocation2 + $0x78] sm:$0xf] %v6382_v32  ;;  %v6165_v62 = vor.u32 %v6163_v40, %v6162_v5  ;;  %v5860_v4 = vadd.f32 %v15454_v8, %v5821_v24  ;;  %v5757_v25 = vadd.f32 %v13178_v58, %v15488_v0 }
 0x354   : > { %v13686_v18 = vld [vmem:[#allocation9 + $0x150] sm:$0xff]   ;;  %6376 = vst [vmem:[#allocation2 + $0x6c] sm:$0xf] %v6375_v13  ;;  %v6167_v12 = vrot.slane %v6162_v5, 4  ;;  %v6143_v22 = vshrl.u32 %v12179_v59, 16  ;;  %v6146_v16 = vshll.u32 %v12179_v59, 16  ;;  %v5819_v6 = vmul.f32 %v15425_v23, %v5746_v50 }
 0x355   : > { %v13690_v19 = vld [vmem:[#allocation9 + $0x110] sm:$0xff]   ;;  %v7274_v63 = vld [vmem:[#allocation2 + $0x54] sm:$0xf]  ;;  %v5749_v38 = vadd.f32 %v5748_v27, %v15480_v28  ;;  %v6994_v9 = vld [vmem:[#allocation2 + $0x10] sm:$0xf]  ;;  %12901 = vmatprep.subr.bf16.mxu1 %v13686_v18  ;;  %v6166_v44 = vsel %vm14257_vm14, %v6158_v45, %v6165_v62  ;;  %v11859_v34 = vrot.slane %v6993_v37, 9  ;;  %v5822_v40 = vmul.f32 %v15425_v23, %v5757_v25 }
 0x356   : > { %v6995_v31 = vld [vmem:[#allocation2 + $0x14] sm:$0x1]  ;;  %7306 = vst [vmem:[#allocation3 + $0x1bc] sm:$0xf] %v7274_v63  ;;  %v6386_v42 = vsel %vm14199_vm3, %v6167_v12, %v6385_v26  ;;  %v6145_v15 = vrot.slane %v6143_v22, 7  ;;  %12902 = vmatpush3.bf16.msra.mxu1 %v13690_v19  ;;  %v5892_v0 = vmax.f32 %v5860_v4, 0.0  ;;  %v5858_v58 = vadd.f32 %v15454_v8, %v5819_v6 }
 0x357   : > { %v6444_v41 = vld [vmem:[#allocation2 + $0x54] sm:$0xf]  ;;  %v7277_v57 = vld [vmem:[#allocation2 + $0x64] sm:$0xf]  ;;  %6384 = vst [vmem:[#allocation2 + $0x7c] sm:$0xf] %v6166_v44  ;;  %v5820_v39 = vmul.f32 %v15425_v23, %v5749_v38  ;;  %v5861_v27 = vadd.f32 %v15454_v8, %v5822_v40  ;;  %v5770_v19 = vadd.f32 %v13181_v52, %v15494_v36  ;;  %v5762_v62 = vadd.f32 %v5761_v1, %v15497_v48  ;;  %v13182_v40 = vpop.f32.mrf.mxu0 }
 0x358   : > { %6476 = vst [vmem:[#allocation3 + $0x1f8] sm:$0xf] %v6444_v41  ;;  %6387 = vst [vmem:[#allocation2 + $0x80] sm:$0x1] %v6386_v42  ;;  %v6378_v28 = vld [vmem:[#allocation2 + $0x74] sm:$0x1]  ;;  %v6148_v14 = vor.u32 %v6146_v16, %v6145_v15  ;;  %v12184_v45 = vpack.c.bf16 %v5892_v0, %v5892_v0 }
 0x359   : > { %7309 = vst [vmem:[#allocation3 + $0x228] sm:$0xf] %v7277_v57  ;;  %v6447_v47 = vld [vmem:[#allocation2 + $0x64] sm:$0xf]  ;;  %v6150_v53 = vrot.slane %v6145_v15, 4  ;;  %v7095_v55 = vrot.slane %v6994_v9, 5  ;;  %v5859_v49 = vadd.f32 %v15454_v8, %v5820_v39  ;;  %v5825_v9 = vmul.f32 %v15425_v23, %v5770_v19 }
 0x35a   : > { %v7098_v60 = vrot.slane %v6995_v31, 5  ;;  %6479 = vst [vmem:[#allocation3 + $0x264] sm:$0xf] %v6447_v47  ;;  %v13697_v46 = vld [vmem:[#allocation9 + $0x1e8] sm:$0xff]   ;;  %v5890_v61 = vmax.f32 %v5858_v58, 0.0  ;;  %v6149_v5 = vsel %vm14257_vm14, %v6141_v20, %v6148_v14  ;;  %v6186_v13 = vshrl.u32 %v12184_v45, 16 }
 0x35b   : > { %v13698_v21 = vld [vmem:[#allocation9 + $0x1a8] sm:$0xff]   ;;  %v6379_v26 = vsel %vm14199_vm3, %v6150_v53, %v6378_v28  ;;  %v7096_v33 = vsel %vm14224_vm10, %v11859_v34, %v7095_v55  ;;  %v7097_v2 = vrot.slane %v7095_v55, 4  ;;  %v7275_v32 = vld [vmem:[#allocation2 + $0x58] sm:$0xf]  ;;  %13007 = vmatprep.subr.bf16.mxu0 %v13697_v46  ;;  %6377 = vst [vmem:[#allocation2 + $0x70] sm:$0xf] %v6149_v5  ;;  %v5823_v31 = vmul.f32 %v15425_v23, %v5762_v62 }
 0x35c   : > { %6380 = vst [vmem:[#allocation2 + $0x74] sm:$0x1] %v6379_v26  ;;  %v6189_v24 = vshll.u32 %v12184_v45, 16  ;;  %v12182_v50 = vpack.c.bf16 %v5890_v61, %v5890_v61  ;;  %v5893_v37 = vmax.f32 %v5861_v27, 0.0  ;;  %7232 = vst [vmem:[#allocation3 + $0x50] sm:$0xf] %v7096_v33  ;;  %13008 = vmatpush3.bf16.msra.mxu0 %v13698_v21  ;;  %v5864_v58 = vadd.f32 %v15454_v8, %v5825_v9 }
 0x35d   : > { %v15691_v17 = vld [vmem:[#allocation2 + $0xc] sm:$0xf]  ;;  %7307 = vst [vmem:[#allocation3 + $0x1e0] sm:$0xf] %v7275_v32  ;;  %v5891_v20 = vmax.f32 %v5859_v49, 0.0  ;;  %v7099_v18 = vsel %vm14224_vm10, %v7097_v2, %v7098_v60  ;;  %v6188_v22 = vrot.slane %v6186_v13, 7  ;;  %v5862_v27 = vadd.f32 %v15454_v8, %v5823_v31 }
 0x35e   : > { %v6445_v12 = vld [vmem:[#allocation2 + $0x58] sm:$0xf]  ;;  %v6395_v16 = vld [vmem:[#allocation2 + $0x90] sm:$0xf]  ;;  %v6169_v63 = vshrl.u32 %v12182_v50, 16  ;;  %v6172_v4 = vshll.u32 %v12182_v50, 16  ;;  %v12185_v6 = vpack.c.bf16 %v5893_v37, %v5893_v37 }
 0x35f   : > { %7233 = vst [vmem:[#allocation3 + $0x74] sm:$0xf] %v7099_v18  ;;  %6477 = vst [vmem:[#allocation3 + $0x21c] sm:$0xf] %v6445_v12  ;;  %v6388_v25 = vld [vmem:[#allocation2 + $0x84] sm:$0xf]  ;;  %v12183_v38 = vpack.c.bf16 %v5891_v20, %v5891_v20  ;;  %v6191_v36 = vor.u32 %v6189_v24, %v6188_v22  ;;  %v5773_v20 = vadd.f32 %v13182_v40, %v15500_v43  ;;  %v15708_v18 = vpop.f32.mrf.mxu0 }
 0x360   : > { %v6567_v41 = vshrl.u32 %v15691_v17, 16  ;;  %v7278_v44 = vld [vmem:[#allocation2 + $0x6c] sm:$0xf]  ;;  %v6192_v52 = vrot.slane %v6188_v22, 4  ;;  %v6171_v48 = vrot.slane %v6169_v63, 7  ;;  %v6194_v42 = vshrl.u32 %v12185_v6, 16 }
 0x361   : > { %7310 = vst [vmem:[#allocation3 + $0x24c] sm:$0xf] %v7278_v44  ;;  %v7280_v15 = vld [vmem:[#allocation2 + $0x78] sm:$0xf]  ;;  %v13702_v34 = vld [vmem:[#allocation9 + $0x148] sm:$0xff]   ;;  %v6197_v57 = vshll.u32 %v12185_v6, 16  ;;  %v6396_v23 = vsel %vm14239_vm12, %v6191_v36, %v6395_v16 }
 0x362   : > { %v6177_v28 = vshrl.u32 %v12183_v38, 16  ;;  %v6180_v0 = vshll.u32 %v12183_v38, 16  ;;  %v7281_v39 = vld [vmem:[#allocation2 + $0x7c] sm:$0xf]  ;;  %7312 = vst [vmem:[#allocation3 + $0x294] sm:$0xf] %v7280_v15  ;;  %v6174_v14 = vor.u32 %v6172_v4, %v6171_v48  ;;  %12903 = vmatprep.subr.bf16.mxu1 %v13702_v34  ;;  %v15732_v34 = vpop.f32.mrf.mxu0 }
 0x363   : > { %v13706_v47 = vld [vmem:[#allocation9 + $0x108] sm:$0xff]   ;;  %v6175_v53 = vrot.slane %v6171_v48, 4  ;;  %v6196_v55 = vrot.slane %v6194_v42, 7  ;;  %v6399_v60 = vld [vmem:[#allocation2 + $0x98] sm:$0x1]  ;;  %v5896_v61 = vmax.f32 %v5864_v58, 0.0 }
 0x364   : > { %7313 = vst [vmem:[#allocation3 + $0x2b8] sm:$0xf] %v7281_v39  ;;  %v6448_v46 = vld [vmem:[#allocation2 + $0x6c] sm:$0xf]  ;;  %6397 = vst [vmem:[#allocation2 + $0x90] sm:$0xf] %v6396_v23  ;;  %12904 = vmatpush3.bf16.msra.mxu1 %v13706_v47  ;;  %v6389_v21 = vsel %vm14239_vm12, %v6174_v14, %v6388_v25  ;;  %v15720_v25 = vadd.f32 %v15518_v3, %v15442_v35 }
 0x365   : > { %v6179_v45 = vrot.slane %v6177_v28, 7  ;;  %v6569_v49 = vrot.slane %v6567_v41, 4  ;;  %v7279_v1 = vld [vmem:[#allocation2 + $0x70] sm:$0xf]  ;;  %6480 = vst [vmem:[#allocation3 + $0x288] sm:$0xf] %v6448_v46  ;;  %v6199_v5 = vor.u32 %v6197_v57, %v6196_v55  ;;  %v12188_v37 = vpack.c.bf16 %v5896_v61, %v5896_v61 }
 0x366   : > { %v6201_v26 = vrot.slane %v6196_v55, 4  ;;  %v6392_v33 = vld [vmem:[#allocation2 + $0x8c] sm:$0x1]  ;;  %v6498_v2 = vld [vmem:[#allocation2 + $0x10] sm:$0xf]  ;;  %v6570_v32 = vshll.u32 %v15691_v17, 16 }
 0x367   : > { %7311 = vst [vmem:[#allocation3 + $0x270] sm:$0xf] %v7279_v1  ;;  %6390 = vst [vmem:[#allocation2 + $0x84] sm:$0xf] %v6389_v21  ;;  %v6182_v13 = vor.u32 %v6180_v0, %v6179_v45  ;;  %v6184_v24 = vrot.slane %v6179_v45, 4  ;;  %v6200_v19 = vsel %vm14257_vm14, %v6192_v52, %v6199_v5  ;;  %v5894_v22 = vmax.f32 %v5862_v27, 0.0 }
 0x368   : > { %v13613_v50 = vld [vmem:[#allocation3 + $0x54] ss:$36 sps:$4 sm:$0xff]   ;;  %v6499_v8 = vld [vmem:[#allocation2 + $0x14] sm:$0x1]  ;;  %v6400_v62 = vsel %vm14199_vm3, %v6201_v26, %v6399_v60  ;;  %v6572_v17 = vrot.slane %v6570_v32, 5  ;;  %v6220_v4 = vshrl.u32 %v12188_v37, 16 }
 0x369   : > { %v13611_v12 = vld [vmem:[#allocation3 + $0x50] ss:$36 sps:$4 sm:$0xff]   ;;  %v6449_v16 = vld [vmem:[#allocation2 + $0x70] sm:$0xf]  ;;  %6398 = vst [vmem:[#allocation2 + $0x94] sm:$0xf] %v6200_v19  ;;  %v6183_v63 = vsel %vm14257_vm14, %v6175_v53, %v6182_v13  ;;  %v6393_v43 = vsel %vm14199_vm3, %v6184_v24, %v6392_v33  ;;  %10599 = vmatprep.mubr.bf16.mxu0 %v13613_v50  ;;  %v12186_v9 = vpack.c.bf16 %v5894_v22, %v5894_v22 }
 0x36a   : > { %6401 = vst [vmem:[#allocation2 + $0x98] sm:$0x1] %v6400_v62  ;;  %v6996_v6 = vld [vmem:[#allocation2 + $0x18] sm:$0xe]  ;;  %6481 = vst [vmem:[#allocation3 + $0x2ac] sm:$0xf] %v6449_v16  ;;  %v6573_v31 = vor.u32 %v6572_v17, %v6569_v49  ;;  %10600 = vmatmul.mubr.bf16.gmra.mxu0 %v13611_v12 }
 0x36b   : > { %6391 = vst [vmem:[#allocation2 + $0x88] sm:$0xf] %v6183_v63  ;;  %6394 = vst [vmem:[#allocation2 + $0x8c] sm:$0x1] %v6393_v43  ;;  %v6409_v38 = vld [vmem:[#allocation2 + $0xa8] sm:$0xf] }
 0x36c   : > { %v6576_v41 = vshll.u32 %v6498_v2, 16  ;;  %v6580_v44 = vshrl.u32 %v6498_v2, 16  ;;  %v6997_v36 = vld [vmem:[#allocation2 + $0x1c] sm:$0xf]  ;;  %v15722_v52 = vld [vmem:[#allocation2 + $0x18] sm:$0xf] }
 0x36d   : > { %v15724_v48 = vrot.slane %v6220_v4, 7  ;;  %v6223_v42 = vshll.u32 %v12188_v37, 16  ;;  %v6586_v15 = vshll.u32 %v6499_v8, 16  ;;  %v15729_v35 = vld [vmem:[%s16842_s3] ss:$0 sm:$0xff]  ;;  %v13713_v28 = vld [vmem:[#allocation9 + $0x1e0] sm:$0xff]   ;;  %v5777_v37 = vpop.f32.mrf.mxu0 }
 0x36e   : > { %v5826_v3 = vmul.f32 %v15729_v35, %v5773_v20  ;;  %v6450_v57 = vld [vmem:[#allocation2 + $0x78] sm:$0xf]  ;;  %v6203_v0 = vshrl.u32 %v12186_v9, 16  ;;  %v6574_v58 = vrot.slane %v6573_v31, 4  ;;  %v6578_v40 = vrot.slane %v6576_v41, 5  ;;  %13009 = vmatprep.subr.bf16.mxu0 %v13713_v28 }
 0x36f   : > { %v11860_v39 = vrot.slane %v6996_v6, 9  ;;  %v6451_v47 = vld [vmem:[#allocation2 + $0x7c] sm:$0xf]  ;;  %6482 = vst [vmem:[#allocation3 + $0x2d0] sm:$0xf] %v6450_v57  ;;  %v6225_v23 = vor.u32 %v6223_v42, %v15724_v48  ;;  %v6226_v14 = vrot.slane %v15724_v48, 4 }
 0x370   : > { %v6206_v53 = vshll.u32 %v12186_v9, 16  ;;  %v6582_v55 = vrot.slane %v6580_v44, 4  ;;  %v6998_v60 = vld [vmem:[#allocation2 + $0x20] sm:$0x1]  ;;  %6483 = vst [vmem:[#allocation3 + $0x2f4] sm:$0xf] %v6451_v47  ;;  %v6579_v49 = vsel %vm14247_vm13, %v6574_v58, %v6578_v40  ;;  %v5765_v47 = vadd.f32 %v15708_v18, %v15503_v7 }
 0x371   : > { %v13714_v46 = vld [vmem:[#allocation9 + $0x1a0] sm:$0xff]   ;;  %v15736_v45 = vrot.slane %v6203_v0, 7  ;;  %v15743_v1 = vld [vmem:[%s16843_s4] ss:$0 sm:$0xff]  ;;  %v7102_v5 = vrot.slane %v6997_v36, 5  ;;  %v6410_v33 = vsel %vm14239_vm12, %v6225_v23, %v6409_v38  ;;  %v6588_v32 = vrot.slane %v6586_v15, 5 }
 0x372   : > { %v6402_v61 = vld [vmem:[#allocation2 + $0x9c] sm:$0xf]  ;;  %v5865_v21 = vadd.f32 %v15743_v1, %v5826_v3  ;;  %v7282_v26 = vld [vmem:[#allocation2 + $0x84] sm:$0xf]  ;;  %v6583_v2 = vor.u32 %v6582_v55, %v6578_v40  ;;  %6960 = vst [vmem:[#allocation3 + $0x4c] sm:$0xf] %v6579_v49  ;;  %13010 = vmatpush3.bf16.msra.mxu0 %v13714_v46  ;;  %v5786_v23 = vadd.f32 %v15732_v34, %v15513_v30 }
 0x373   : > { %v6501_v13 = vld [vmem:[#allocation2 + $0x1c] sm:$0xf]  ;;  %v6502_v24 = vld [vmem:[#allocation2 + $0x20] sm:$0x1]  ;;  %v6591_v50 = vshrl.u32 %v15722_v52, 16  ;;  %v6208_v8 = vor.u32 %v6206_v53, %v15736_v45  ;;  %v7103_v19 = vsel %vm14224_vm10, %v11860_v39, %v7102_v5  ;;  %v7105_v62 = vrot.slane %v6998_v60, 5 }
 0x374   : > { %7314 = vst [vmem:[#allocation3 + $0x2dc] sm:$0xf] %v7282_v26  ;;  %6411 = vst [vmem:[#allocation2 + $0xa8] sm:$0xf] %v6410_v33  ;;  %v5897_v20 = vmax.f32 %v5865_v21, 0.0  ;;  %v6584_v17 = vrot.slane %v6583_v2, 4  ;;  %v5778_v46 = vadd.f32 %v5777_v37, %v15516_v11  ;;  %v5824_v26 = vmul.f32 %v15729_v35, %v5765_v47 }
 0x375   : > { %v7284_v12 = vld [vmem:[#allocation2 + $0x90] sm:$0xf]  ;;  %v7285_v22 = vld [vmem:[#allocation2 + $0x94] sm:$0xf]  ;;  %v7104_v16 = vrot.slane %v7102_v5, 4  ;;  %v6593_v63 = vrot.slane %v6591_v50, 4  ;;  %v6403_v6 = vsel %vm14239_vm12, %v6208_v8, %v6402_v61  ;;  %v5829_v33 = vmul.f32 %v15729_v35, %v5786_v23 }
 0x376   : > { %7234 = vst [vmem:[#allocation3 + $0x98] sm:$0xf] %v7103_v19  ;;  %v6594_v43 = vshll.u32 %v15722_v52, 16  ;;  %v7283_v4 = vld [vmem:[#allocation2 + $0x88] sm:$0xf]  ;;  %v12189_v38 = vpack.c.bf16 %v5897_v20, %v5897_v20  ;;  %v6600_v9 = vshll.u32 %v6501_v13, 16  ;;  %v6589_v41 = vsel %vm14247_vm13, %v6584_v17, %v6588_v32  ;;  %v13186_v52 = vpop.f32.mrf.mxu0 }
 0x377   : > { %7316 = vst [vmem:[#allocation3 + $0x324] sm:$0xf] %v7284_v12  ;;  %7317 = vst [vmem:[#allocation3 + $0x348] sm:$0xf] %v7285_v22  ;;  %v6604_v31 = vshrl.u32 %v6501_v13, 16  ;;  %v7106_v44 = vsel %vm14224_vm10, %v7104_v16, %v7105_v62  ;;  %v6610_v42 = vshll.u32 %v6502_v24, 16  ;;  %v5789_v61 = vadd.f32 %v13186_v52, %v15720_v25 }
 0x378   : > { %7315 = vst [vmem:[#allocation3 + $0x300] sm:$0xf] %v7283_v4  ;;  %6404 = vst [vmem:[#allocation2 + $0x9c] sm:$0xf] %v6403_v6  ;;  %v6596_v36 = vrot.slane %v6594_v43, 5  ;;  %v6209_v57 = vrot.slane %v15736_v45, 4  ;;  %v5827_v30 = vmul.f32 %v15729_v35, %v5778_v46  ;;  %v5863_v25 = vadd.f32 %v15743_v1, %v5824_v26  ;;  %v5780_v6 = vpop.f32.mrf.mxu0 }
 0x379   : > { %v6452_v15 = vld [vmem:[#allocation2 + $0x84] sm:$0xf]  ;;  %v6453_v3 = vld [vmem:[#allocation2 + $0x88] sm:$0xf]  ;;  %6961 = vst [vmem:[#allocation3 + $0x70] sm:$0xf] %v6589_v41  ;;  %v5868_v24 = vadd.f32 %v15743_v1, %v5829_v33  ;;  %v5830_v50 = vmul.f32 %v15729_v35, %v5789_v61  ;;  %v5620_v41 = vadd.f32 %v15509_v56, %v15333_v54 }
 0x37a   : > { %v6228_v28 = vshrl.u32 %v12189_v38, 16  ;;  %7235 = vst [vmem:[#allocation3 + $0xbc] sm:$0xf] %v7106_v44  ;;  %v6602_v0 = vrot.slane %v6600_v9, 5  ;;  %v6606_v58 = vrot.slane %v6604_v31, 4  ;;  %v6231_v40 = vshll.u32 %v12189_v38, 16 }
 0x37b   : > { %6484 = vst [vmem:[#allocation3 + $0x318] sm:$0xf] %v6452_v15  ;;  %6485 = vst [vmem:[#allocation3 + $0x33c] sm:$0xf] %v6453_v3  ;;  %v6597_v39 = vor.u32 %v6596_v36, %v6593_v63  ;;  %v13715_v53 = vld [vmem:[#allocation9 + $0x1d8] sm:$0xff]   ;;  %v6612_v5 = vrot.slane %v6610_v42, 5  ;;  %v5866_v12 = vadd.f32 %v15743_v1, %v5827_v30  ;;  %v5869_v4 = vadd.f32 %v15743_v1, %v5830_v50 }
 0x37c   : > { %v6230_v55 = vrot.slane %v6228_v28, 7  ;;  %v6607_v60 = vor.u32 %v6606_v58, %v6602_v0  ;;  %v6413_v49 = vld [vmem:[#allocation2 + $0xb0] sm:$0x1]  ;;  %13011 = vmatprep.subr.bf16.mxu0 %v13715_v53  ;;  %v6455_v34 = vld [vmem:[#allocation2 + $0x94] sm:$0xf]  ;;  %v13719_v13 = vld [vmem:[#allocation9 + $0x140] sm:$0xff]  }
 0x37d   : > { %v6598_v21 = vrot.slane %v6597_v39, 4  ;;  %v6454_v2 = vld [vmem:[#allocation2 + $0x90] sm:$0xf]  ;;  %v6999_v37 = vld [vmem:[#allocation2 + $0x24] sm:$0xe]  ;;  %12905 = vmatprep.subr.bf16.mxu1 %v13719_v13  ;;  %v5900_v31 = vmax.f32 %v5868_v24, 0.0 }
 0x37e   : > { %v6233_v7 = vor.u32 %v6231_v40, %v6230_v55  ;;  %v6235_v18 = vrot.slane %v6230_v55, 4  ;;  %v6608_v32 = vrot.slane %v6607_v60, 4  ;;  %6486 = vst [vmem:[#allocation3 + $0x360] sm:$0xf] %v6454_v2  ;;  %v7000_v8 = vld [vmem:[#allocation2 + $0x28] sm:$0xf]  ;;  %v5781_v40 = vadd.f32 %v5780_v6, %v5620_v41 }
 0x37f   : > { %v6603_v11 = vsel %vm14247_vm13, %v6598_v21, %v6602_v0  ;;  %6487 = vst [vmem:[#allocation3 + $0x384] sm:$0xf] %v6455_v34  ;;  %v15783_v22 = vld [vmem:[#allocation2 + $0x2c] sm:$0x1]  ;;  %v15785_v17 = vld [vmem:[#allocation2 + $0x24] sm:$0xf]  ;;  %v12192_v28 = vpack.c.bf16 %v5900_v31, %v5900_v31 }
 0x380   : > { %v6234_v20 = vsel %vm14257_vm14, %v6226_v14, %v6233_v7  ;;  %v6414_v19 = vsel %vm14199_vm3, %v6235_v18, %v6413_v49  ;;  %v6613_v62 = vsel %vm14247_vm13, %v6608_v32, %v6612_v5  ;;  %6962 = vst [vmem:[#allocation3 + $0x94] sm:$0xf] %v6603_v11  ;;  %v7286_v16 = vld [vmem:[#allocation2 + $0x9c] sm:$0xf]  ;;  %v7288_v63 = vld [vmem:[#allocation2 + $0xa8] sm:$0xf] }
 0x381   : > { %v13614_v48 = vld [vmem:[#allocation3 + $0x48] ss:$36 sps:$4 sm:$0xff]   ;;  %6412 = vst [vmem:[#allocation2 + $0xac] sm:$0xf] %v6234_v20  ;;  %6415 = vst [vmem:[#allocation2 + $0xb0] sm:$0x1] %v6414_v19 }
 0x382   : > { %v13616_v43 = vld [vmem:[#allocation3 + $0x4c] ss:$36 sps:$4 sm:$0xff]   ;;  %6963 = vst [vmem:[#allocation3 + $0xb8] sm:$0xf] %v6613_v62  ;;  %v5895_v14 = vmax.f32 %v5863_v25, 0.0  ;;  %v5898_v36 = vmax.f32 %v5866_v12, 0.0 }
 0x383   : > { %7318 = vst [vmem:[#allocation3 + $0x36c] sm:$0xf] %v7286_v16  ;;  %7320 = vst [vmem:[#allocation3 + $0x3b4] sm:$0xf] %v7288_v63  ;;  %v13617_v38 = vld [vmem:[#allocation3 + $0x98] ss:$36 sps:$4 sm:$0xff]   ;;  %10438 = vmatprep.mubr.bf16.mxu1 %v13616_v43 }
 0x384   : > { %v13619_v9 = vld [vmem:[#allocation3 + $0x9c] ss:$36 sps:$4 sm:$0xff]   ;;  %v12187_v44 = vpack.c.bf16 %v5895_v14, %v5895_v14  ;;  %v5901_v42 = vmax.f32 %v5869_v4, 0.0  ;;  %v7109_v52 = vrot.slane %v7000_v8, 5  ;;  %v6456_v15 = vld [vmem:[#allocation2 + $0x9c] sm:$0xf]  ;;  %10439 = vmatmul.mubr.bf16.gmra.mxu1 %v13614_v48  ;;  %v12190_v23 = vpack.c.bf16 %v5898_v36, %v5898_v36 }
 0x385   : > { %v13720_v3 = vld [vmem:[#allocation9 + $0x198] sm:$0xff]   ;;  %10607 = vmatprep.mubr.bf16.mxu0 %v13619_v9  ;;  %v11861_v0 = vrot.slane %v6999_v37, 9  ;;  %v7112_v58 = vrot.slane %v15783_v22, 5  ;;  %6488 = vst [vmem:[#allocation3 + $0x3a8] sm:$0xf] %v6456_v15  ;;  %v13724_v39 = vld [vmem:[#allocation9 + $0x100] sm:$0xff]   ;;  %v5828_v48 = vmul.f32 %v15729_v35, %v5781_v40 }
 0x386   : > { %v6211_v47 = vshrl.u32 %v12187_v44, 16  ;;  %10608 = vmatmul.mubr.bf16.gmra.mxu0 %v13617_v38  ;;  %v12193_v54 = vpack.c.bf16 %v5901_v42, %v5901_v42  ;;  %v6615_v56 = vshrl.u32 %v15785_v17, 16  ;;  %v6458_v53 = vld [vmem:[#allocation2 + $0xa8] sm:$0xf]  ;;  %v6406_v55 = vld [vmem:[#allocation2 + $0xa4] sm:$0x1]  ;;  %12906 = vmatpush3.bf16.msra.mxu1 %v13724_v39 }
 0x387   : > { %v6254_v60 = vshrl.u32 %v12192_v28, 16  ;;  %v7110_v46 = vsel %vm14224_vm10, %v11861_v0, %v7109_v52  ;;  %v7111_v61 = vrot.slane %v7109_v52, 4  ;;  %v6618_v49 = vshll.u32 %v15785_v17, 16  ;;  %6490 = vst [vmem:[#allocation3 + $0x3f0] sm:$0xf] %v6458_v53  ;;  %13012 = vmatpush3.bf16.msra.mxu0 %v13720_v3  ;;  %v13725_v21 = vld [vmem:[#allocation9 + $0x1d0] sm:$0xff]  }
 0x388   : > { %v6213_v5 = vrot.slane %v6211_v47, 7  ;;  %v6214_v26 = vshll.u32 %v12187_v44, 16  ;;  %v6423_v33 = vld [vmem:[#allocation2 + $0xc0] sm:$0xf]  ;;  %v6237_v2 = vshrl.u32 %v12190_v23, 16  ;;  %v6262_v7 = vshrl.u32 %v12193_v54, 16  ;;  %13013 = vmatprep.subr.bf16.mxu0 %v13725_v21 }
 0x389   : > { %7236 = vst [vmem:[#allocation3 + $0xe0] sm:$0xf] %v7110_v46  ;;  %v13726_v18 = vld [vmem:[#allocation9 + $0x190] sm:$0xff]   ;;  %v6256_v30 = vrot.slane %v6254_v60, 7  ;;  %v6257_v34 = vshll.u32 %v12192_v28, 16  ;;  %v6240_v13 = vshll.u32 %v12190_v23, 16  ;;  %v7113_v25 = vsel %vm14224_vm10, %v7111_v61, %v7112_v58 }
 0x38a   : > { %v13622_v32 = vld [vmem:[#allocation3 + $0x94] ss:$36 sps:$4 sm:$0xff]   ;;  %v6416_v11 = vld [vmem:[#allocation2 + $0xb4] sm:$0xf]  ;;  %v6504_v24 = vld [vmem:[#allocation2 + $0x28] sm:$0xf]  ;;  %v6216_v37 = vor.u32 %v6214_v26, %v6213_v5  ;;  %v5867_v47 = vadd.f32 %v15743_v1, %v5828_v48 }
 0x38b   : > { %v6505_v50 = vld [vmem:[#allocation2 + $0x2c] sm:$0x1]  ;;  %v6218_v8 = vrot.slane %v6213_v5, 4  ;;  %v15797_v20 = vrot.slane %v6237_v2, 7  ;;  %v6264_v19 = vrot.slane %v6262_v7, 7  ;;  %v13727_v12 = vld [vmem:[#allocation9 + $0x1c8] sm:$0xff]   ;;  %10446 = vmatprep.mubr.bf16.mxu1 %v13622_v32  ;;  %v6259_v17 = vor.u32 %v6257_v34, %v6256_v30  ;;  %13014 = vmatpush3.bf16.msra.mxu0 %v13726_v18 }
 0x38c   : > { %7237 = vst [vmem:[#allocation3 + $0x104] sm:$0xf] %v7113_v25  ;;  %v7289_v62 = vld [vmem:[#allocation2 + $0xac] sm:$0xf]  ;;  %v6265_v16 = vshll.u32 %v12193_v54, 16  ;;  %v6617_v63 = vrot.slane %v6615_v56, 4  ;;  %v6217_v14 = vsel %vm14257_vm14, %v6209_v57, %v6216_v37  ;;  %13015 = vmatprep.subr.bf16.mxu0 %v13727_v12 }
 0x38d   : > { %v13620_v22 = vld [vmem:[#allocation3 + $0x90] ss:$36 sps:$4 sm:$0xff]   ;;  %7321 = vst [vmem:[#allocation3 + $0x3d8] sm:$0xf] %v7289_v62  ;;  %v13728_v43 = vld [vmem:[#allocation9 + $0x188] sm:$0xff]   ;;  %v6407_v4 = vsel %vm14199_vm3, %v6218_v8, %v6406_v55  ;;  %v6260_v6 = vrot.slane %v6256_v30, 4  ;;  %v6242_v38 = vor.u32 %v6240_v13, %v15797_v20  ;;  %v6424_v35 = vsel %vm14239_vm12, %v6259_v17, %v6423_v33 }
 0x38e   : > { %v6427_v9 = vld [vmem:[#allocation2 + $0xc8] sm:$0x1]  ;;  %v6459_v31 = vld [vmem:[#allocation2 + $0xac] sm:$0xf]  ;;  %v13735_v41 = vld [vmem:[#allocation9 + $0x1c0] sm:$0xff]   ;;  %v6267_v44 = vor.u32 %v6265_v16, %v6264_v19  ;;  %v6269_v45 = vrot.slane %v6264_v19, 4  ;;  %10447 = vmatmul.mubr.bf16.gmra.mxu1 %v13620_v22 }
 0x38f   : > { %6405 = vst [vmem:[#allocation2 + $0xa0] sm:$0xf] %v6217_v14  ;;  %6408 = vst [vmem:[#allocation2 + $0xa4] sm:$0x1] %v6407_v4  ;;  %v6620_v36 = vrot.slane %v6618_v49, 5  ;;  %v6417_v52 = vsel %vm14239_vm12, %v6242_v38, %v6416_v11  ;;  %v6624_v15 = vshll.u32 %v6504_v24, 16  ;;  %13016 = vmatpush3.bf16.msra.mxu0 %v13728_v43 }
 0x390   : > { %v7002_v57 = vld [vmem:[#allocation2 + $0x30] sm:$0xe]  ;;  %v7003_v42 = vld [vmem:[#allocation2 + $0x34] sm:$0xf]  ;;  %6491 = vst [vmem:[#allocation3 + $0x414] sm:$0xf] %v6459_v31  ;;  %v6268_v58 = vsel %vm14257_vm14, %v6260_v6, %v6267_v44  ;;  %v6428_v40 = vsel %vm14199_vm3, %v6269_v45, %v6427_v9  ;;  %13017 = vmatprep.subr.bf16.mxu0 %v13735_v41 }
 0x391   : > { %6425 = vst [vmem:[#allocation2 + $0xc0] sm:$0xf] %v6424_v35  ;;  %v6628_v3 = vshrl.u32 %v6504_v24, 16  ;;  %v6634_v28 = vshll.u32 %v6505_v50, 16  ;;  %v7004_v0 = vld [vmem:[#allocation2 + $0x38] sm:$0x1]  ;;  %v6621_v39 = vor.u32 %v6620_v36, %v6617_v63 }
 0x392   : > { %6418 = vst [vmem:[#allocation2 + $0xb4] sm:$0xf] %v6417_v52  ;;  %v6506_v23 = vld [vmem:[#allocation2 + $0x30] sm:$0xf]  ;;  %v13736_v54 = vld [vmem:[#allocation9 + $0x180] sm:$0xff]   ;;  %v6243_v29 = vrot.slane %v15797_v20, 4 }
 0x393   : > { %6426 = vst [vmem:[#allocation2 + $0xc4] sm:$0xf] %v6268_v58  ;;  %6429 = vst [vmem:[#allocation2 + $0xc8] sm:$0x1] %v6428_v40  ;;  %v6626_v56 = vrot.slane %v6624_v15, 5  ;;  %v6630_v53 = vrot.slane %v6628_v3, 4  ;;  %13018 = vmatpush3.bf16.msra.mxu0 %v13736_v54 }
 0x394   : > { %v6507_v55 = vld [vmem:[#allocation2 + $0x34] sm:$0xf]  ;;  %v13625_v60 = vld [vmem:[#allocation3 + $0xe4] ss:$36 sps:$4 sm:$0xff]   ;;  %v6622_v46 = vrot.slane %v6621_v39, 4  ;;  %v6636_v61 = vrot.slane %v6634_v28, 5 }
 0x395   : > { %v11862_v49 = vrot.slane %v7002_v57, 9  ;;  %v13623_v21 = vld [vmem:[#allocation3 + $0xe0] ss:$36 sps:$4 sm:$0xff]   ;;  %v6631_v5 = vor.u32 %v6630_v53, %v6626_v56  ;;  %v5899_v26 = vmax.f32 %v5867_v47, 0.0  ;;  %v7116_v33 = vrot.slane %v7003_v42, 5  ;;  %v13740_v18 = vld [vmem:[#allocation9 + $0x238] sm:$0xff]   ;;  %10615 = vmatprep.mubr.bf16.mxu0 %v13625_v60 }
 0x396   : > { %v7119_v1 = vrot.slane %v7004_v0, 5  ;;  %v6508_v2 = vld [vmem:[#allocation2 + $0x38] sm:$0x1]  ;;  %v7005_v7 = vld [vmem:[#allocation2 + $0x3c] sm:$0xe]  ;;  %v6627_v32 = vsel %vm14247_vm13, %v6622_v46, %v6626_v56  ;;  %v6639_v30 = vshrl.u32 %v6506_v23, 16  ;;  %10616 = vmatmul.mubr.bf16.gmra.mxu0 %v13623_v21  ;;  %13187 = vmatprep.subr.bf16.mxu1 %v13740_v18 }
 0x397   : > { %v6642_v34 = vshll.u32 %v6506_v23, 16  ;;  %v6648_v13 = vshll.u32 %v6507_v55, 16  ;;  %v7006_v11 = vld [vmem:[#allocation2 + $0x40] sm:$0xf]  ;;  %v6632_v25 = vrot.slane %v6631_v5, 4  ;;  %v12191_v24 = vpack.c.bf16 %v5899_v26, %v5899_v26 }
 0x398   : > { %6964 = vst [vmem:[#allocation3 + $0xdc] sm:$0xf] %v6627_v32  ;;  %v7117_v50 = vsel %vm14224_vm10, %v11862_v49, %v7116_v33  ;;  %v7118_v37 = vrot.slane %v7116_v33, 4  ;;  %v7007_v8 = vld [vmem:[#allocation2 + $0x44] sm:$0x1]  ;;  %v6641_v62 = vrot.slane %v6639_v30, 4 }
 0x399   : > { %v7287_v19 = vld [vmem:[#allocation2 + $0xa0] sm:$0xf]  ;;  %7238 = vst [vmem:[#allocation3 + $0x128] sm:$0xf] %v7117_v50  ;;  %v6644_v12 = vrot.slane %v6642_v34, 5  ;;  %v6650_v22 = vrot.slane %v6648_v13, 5  ;;  %v6637_v63 = vsel %vm14247_vm13, %v6632_v25, %v6636_v61 }
 0x39a   : > { %v6652_v17 = vshrl.u32 %v6507_v55, 16  ;;  %v6509_v16 = vld [vmem:[#allocation2 + $0x3c] sm:$0xf]  ;;  %7319 = vst [vmem:[#allocation3 + $0x390] sm:$0xf] %v7287_v19  ;;  %v6245_v48 = vshrl.u32 %v12191_v24, 16  ;;  %v7120_v14 = vsel %vm14224_vm10, %v7118_v37, %v7119_v1 }
 0x39b   : > { %v6248_v43 = vshll.u32 %v12191_v24, 16  ;;  %v6457_v4 = vld [vmem:[#allocation2 + $0xa0] sm:$0xf]  ;;  %6965 = vst [vmem:[#allocation3 + $0x100] sm:$0xf] %v6637_v63  ;;  %v6645_v38 = vor.u32 %v6644_v12, %v6641_v62  ;;  %v6658_v31 = vshll.u32 %v6508_v2, 16 }
 0x39c   : > { %v6420_v6 = vld [vmem:[#allocation2 + $0xbc] sm:$0x1]  ;;  %7239 = vst [vmem:[#allocation3 + $0x14c] sm:$0xf] %v7120_v14  ;;  %v6654_v9 = vrot.slane %v6652_v17, 4  ;;  %v11863_v41 = vrot.slane %v7005_v7, 9 }
 0x39d   : > { %6489 = vst [vmem:[#allocation3 + $0x3cc] sm:$0xf] %v6457_v4  ;;  %v6247_v35 = vrot.slane %v6245_v48, 7  ;;  %v7123_v44 = vrot.slane %v7006_v11, 5  ;;  %v7126_v45 = vrot.slane %v7007_v8, 5  ;;  %v6663_v36 = vshrl.u32 %v6509_v16, 16 }
 0x39e   : > { %v7290_v57 = vld [vmem:[#allocation2 + $0xb4] sm:$0xf]  ;;  %v6646_v42 = vrot.slane %v6645_v38, 4  ;;  %v6655_v52 = vor.u32 %v6654_v9, %v6650_v22  ;;  %v6660_v15 = vrot.slane %v6658_v31, 5  ;;  %v6510_v3 = vld [vmem:[#allocation2 + $0x40] sm:$0xf] }
 0x39f   : > { %v6666_v28 = vshll.u32 %v6509_v16, 16  ;;  %7322 = vst [vmem:[#allocation3 + $0x3fc] sm:$0xf] %v7290_v57  ;;  %v6250_v0 = vor.u32 %v6248_v43, %v6247_v35  ;;  %v6252_v58 = vrot.slane %v6247_v35, 4  ;;  %v7124_v40 = vsel %vm14224_vm10, %v11863_v41, %v7123_v44  ;;  %v7292_v47 = vld [vmem:[#allocation2 + $0xc0] sm:$0xf] }
 0x3a0   : > { %v7125_v39 = vrot.slane %v7123_v44, 4  ;;  %v7293_v23 = vld [vmem:[#allocation2 + $0xc4] sm:$0xf]  ;;  %v6651_v54 = vsel %vm14247_vm13, %v6646_v42, %v6650_v22  ;;  %v6656_v56 = vrot.slane %v6655_v52, 4  ;;  %7240 = vst [vmem:[#allocation3 + $0x170] sm:$0xf] %v7124_v40 }
 0x3a1   : > { %v15829_v53 = vld [vmem:[#allocation2 + $0x44] sm:$0x1]  ;;  %v6665_v55 = vrot.slane %v6663_v36, 4  ;;  %v6668_v60 = vrot.slane %v6666_v28, 5  ;;  %v7008_v46 = vld [vmem:[#allocation2 + $0x48] sm:$0xe]  ;;  %v6251_v49 = vsel %vm14257_vm14, %v6243_v29, %v6250_v0  ;;  %v6421_v21 = vsel %vm14199_vm3, %v6252_v58, %v6420_v6 }
 0x3a2   : > { %7324 = vst [vmem:[#allocation3 + $0x444] sm:$0xf] %v7292_v47  ;;  %7325 = vst [vmem:[#allocation3 + $0x468] sm:$0xf] %v7293_v23  ;;  %v6460_v61 = vld [vmem:[#allocation2 + $0xb4] sm:$0xf]  ;;  %v7127_v5 = vsel %vm14224_vm10, %v7125_v39, %v7126_v45  ;;  %v6661_v20 = vsel %vm14247_vm13, %v6656_v56, %v6660_v15 }
 0x3a3   : > { %6966 = vst [vmem:[#allocation3 + $0x124] sm:$0xf] %v6651_v54  ;;  %v6672_v26 = vshll.u32 %v6510_v3, 16  ;;  %v7009_v33 = vld [vmem:[#allocation2 + $0x4c] sm:$0xf]  ;;  %v6669_v51 = vor.u32 %v6668_v60, %v6665_v55  ;;  %v6676_v29 = vshrl.u32 %v6510_v3, 16 }
 0x3a4   : > { %v7010_v1 = vld [vmem:[#allocation2 + $0x50] sm:$0x1]  ;;  %v6512_v2 = vld [vmem:[#allocation2 + $0x48] sm:$0xf]  ;;  %6492 = vst [vmem:[#allocation3 + $0x438] sm:$0xf] %v6460_v61 }
 0x3a5   : > { %6419 = vst [vmem:[#allocation2 + $0xb8] sm:$0xf] %v6251_v49  ;;  %6422 = vst [vmem:[#allocation2 + $0xbc] sm:$0x1] %v6421_v21  ;;  %v6513_v7 = vld [vmem:[#allocation2 + $0x4c] sm:$0xf] }
 0x3a6   : > { %7241 = vst [vmem:[#allocation3 + $0x194] sm:$0xf] %v7127_v5  ;;  %v8096_v10 = vld [vmem:[#allocation2 + $0x24] sm:$0xf]  ;;  %v13627_v18 = vld [vmem:[#allocation3 + $0xd8] ss:$36 sps:$4 sm:$0xff]  }
 0x3a7   : > { %v13629_v32 = vld [vmem:[#allocation3 + $0xdc] ss:$36 sps:$4 sm:$0xff]   ;;  %6967 = vst [vmem:[#allocation3 + $0x148] sm:$0xf] %v6661_v20  ;;  %v6674_v30 = vrot.slane %v6672_v26, 5  ;;  %v6670_v25 = vrot.slane %v6669_v51, 4 }
 0x3a8   : > { %v6514_v34 = vld [vmem:[#allocation2 + $0x50] sm:$0x1]  ;;  %8128 = vst [vmem:[#allocation3 + $0x60] sm:$0xf] %v8096_v10  ;;  %v13631_v13 = vld [vmem:[#allocation3 + $0x128] ss:$36 sps:$4 sm:$0xff]   ;;  %10454 = vmatprep.mubr.bf16.mxu1 %v13629_v32 }
 0x3a9   : > { %v13633_v11 = vld [vmem:[#allocation3 + $0x12c] ss:$36 sps:$4 sm:$0xff]   ;;  %v6678_v24 = vrot.slane %v6676_v29, 4  ;;  %v6682_v50 = vshll.u32 %v15829_v53, 16  ;;  %v11864_v37 = vrot.slane %v7008_v46, 9  ;;  %v7130_v8 = vrot.slane %v7009_v33, 5  ;;  %10455 = vmatmul.mubr.bf16.gmra.mxu1 %v13627_v18 }
 0x3aa   : > { %v8097_v19 = vld [vmem:[#allocation2 + $0x28] sm:$0xf]  ;;  %10623 = vmatprep.mubr.bf16.mxu0 %v13633_v11  ;;  %v6675_v62 = vsel %vm14247_vm13, %v6670_v25, %v6674_v30  ;;  %v7133_v12 = vrot.slane %v7010_v1, 5  ;;  %v6687_v22 = vshrl.u32 %v6512_v2, 16  ;;  %v6690_v17 = vshll.u32 %v6512_v2, 16 }
 0x3ab   : > { %v7011_v16 = vld [vmem:[#allocation2 + $0x54] sm:$0xe]  ;;  %8129 = vst [vmem:[#allocation3 + $0x84] sm:$0xf] %v8097_v19  ;;  %10624 = vmatmul.mubr.bf16.gmra.mxu0 %v13631_v13  ;;  %v6679_v63 = vor.u32 %v6678_v24, %v6674_v30  ;;  %6968 = vst [vmem:[#allocation3 + $0x16c] sm:$0xf] %v6675_v62  ;;  %v7131_v48 = vsel %vm14224_vm10, %v11864_v37, %v7130_v8 }
 0x3ac   : > { %v7132_v43 = vrot.slane %v7130_v8, 4  ;;  %v6696_v14 = vshll.u32 %v6513_v7, 16  ;;  %v7012_v4 = vld [vmem:[#allocation2 + $0x58] sm:$0xf]  ;;  %v7013_v6 = vld [vmem:[#allocation2 + $0x5c] sm:$0x1] }
 0x3ad   : > { %v6515_v38 = vld [vmem:[#allocation2 + $0x54] sm:$0xf]  ;;  %7242 = vst [vmem:[#allocation3 + $0x1b8] sm:$0xf] %v7131_v48  ;;  %v6689_v9 = vrot.slane %v6687_v22, 4  ;;  %v6692_v31 = vrot.slane %v6690_v17, 5 }
 0x3ae   : > { %v6700_v41 = vshrl.u32 %v6513_v7, 16  ;;  %v6706_v35 = vshll.u32 %v6514_v34, 16  ;;  %v13639_v44 = vld [vmem:[#allocation3 + $0x174] ss:$36 sps:$4 sm:$0xff]   ;;  %v6680_v45 = vrot.slane %v6679_v63, 4  ;;  %v6684_v36 = vrot.slane %v6682_v50, 5 }
 0x3af   : > { %v7134_v57 = vsel %vm14224_vm10, %v7132_v43, %v7133_v12  ;;  %v13636_v42 = vld [vmem:[#allocation3 + $0x124] ss:$36 sps:$4 sm:$0xff]   ;;  %v6693_v52 = vor.u32 %v6692_v31, %v6689_v9  ;;  %v6698_v15 = vrot.slane %v6696_v14, 5  ;;  %v6516_v3 = vld [vmem:[#allocation2 + $0x58] sm:$0xf]  ;;  %10631 = vmatprep.mubr.bf16.mxu0 %v13639_v44  ;;  %v11865_v40 = vrot.slane %v7011_v16, 9 }
 0x3b0   : > { %7243 = vst [vmem:[#allocation3 + $0x1dc] sm:$0xf] %v7134_v57  ;;  %v6685_v28 = vsel %vm14247_vm13, %v6680_v45, %v6684_v36  ;;  %v6702_v0 = vrot.slane %v6700_v41, 4  ;;  %v6708_v58 = vrot.slane %v6706_v35, 5  ;;  %v6517_v39 = vld [vmem:[#allocation2 + $0x5c] sm:$0x1]  ;;  %10462 = vmatprep.mubr.bf16.mxu1 %v13636_v42 }
 0x3b1   : > { %v7014_v47 = vld [vmem:[#allocation2 + $0x60] sm:$0xe]  ;;  %v7015_v23 = vld [vmem:[#allocation2 + $0x64] sm:$0xf]  ;;  %v7291_v54 = vld [vmem:[#allocation2 + $0xb8] sm:$0xf] }
 0x3b2   : > { %v13634_v56 = vld [vmem:[#allocation3 + $0x120] ss:$36 sps:$4 sm:$0xff]   ;;  %6969 = vst [vmem:[#allocation3 + $0x190] sm:$0xf] %v6685_v28  ;;  %v6694_v53 = vrot.slane %v6693_v52, 4  ;;  %v7137_v55 = vrot.slane %v7012_v4, 5  ;;  %v6703_v49 = vor.u32 %v6702_v0, %v6698_v15 }
 0x3b3   : > { %v7140_v60 = vrot.slane %v7013_v6, 5  ;;  %v6711_v46 = vshrl.u32 %v6515_v38, 16  ;;  %7323 = vst [vmem:[#allocation3 + $0x420] sm:$0xf] %v7291_v54  ;;  %v13637_v61 = vld [vmem:[#allocation3 + $0x170] ss:$36 sps:$4 sm:$0xff]   ;;  %10463 = vmatmul.mubr.bf16.gmra.mxu1 %v13634_v56 }
 0x3b4   : > { %v6714_v21 = vshll.u32 %v6515_v38, 16  ;;  %v6720_v5 = vshll.u32 %v6516_v3, 16  ;;  %v6724_v26 = vshrl.u32 %v6516_v3, 16  ;;  %v7016_v33 = vld [vmem:[#allocation2 + $0x68] sm:$0x1]  ;;  %v6699_v2 = vsel %vm14247_vm13, %v6694_v53, %v6698_v15  ;;  %10632 = vmatmul.mubr.bf16.gmra.mxu0 %v13637_v61 }
 0x3b5   : > { %v6518_v1 = vld [vmem:[#allocation2 + $0x60] sm:$0xf]  ;;  %v7138_v20 = vsel %vm14224_vm10, %v11865_v40, %v7137_v55  ;;  %v7139_v51 = vrot.slane %v7137_v55, 4  ;;  %v6713_v29 = vrot.slane %v6711_v46, 4  ;;  %v6461_v7 = vld [vmem:[#allocation2 + $0xb8] sm:$0xf] }
 0x3b6   : > { %v6704_v10 = vrot.slane %v6703_v49, 4  ;;  %6970 = vst [vmem:[#allocation3 + $0x1b4] sm:$0xf] %v6699_v2  ;;  %7244 = vst [vmem:[#allocation3 + $0x200] sm:$0xf] %v7138_v20  ;;  %v6716_v18 = vrot.slane %v6714_v21, 5 }
 0x3b7   : > { %v6722_v32 = vrot.slane %v6720_v5, 5  ;;  %v6726_v30 = vrot.slane %v6724_v26, 4  ;;  %6493 = vst [vmem:[#allocation3 + $0x45c] sm:$0xf] %v6461_v7  ;;  %v7141_v34 = vsel %vm14224_vm10, %v7139_v51, %v7140_v60  ;;  %v6730_v13 = vshll.u32 %v6517_v39, 16 }
 0x3b8   : > { %v11866_v11 = vrot.slane %v7014_v47, 9  ;;  %v7144_v25 = vrot.slane %v7015_v23, 5  ;;  %v6519_v24 = vld [vmem:[#allocation2 + $0x64] sm:$0xf]  ;;  %v6520_v50 = vld [vmem:[#allocation2 + $0x68] sm:$0x1]  ;;  %v6709_v8 = vsel %vm14247_vm13, %v6704_v10, %v6708_v58  ;;  %v6717_v19 = vor.u32 %v6716_v18, %v6713_v29 }
 0x3b9   : > { %v13647_v37 = vld [vmem:[#allocation3 + $0x1bc] ss:$36 sps:$4 sm:$0xff]   ;;  %7245 = vst [vmem:[#allocation3 + $0x224] sm:$0xf] %v7141_v34  ;;  %v6727_v62 = vor.u32 %v6726_v30, %v6722_v32  ;;  %v7017_v12 = vld [vmem:[#allocation2 + $0x6c] sm:$0xe] }
 0x3ba   : > { %6971 = vst [vmem:[#allocation3 + $0x1d8] sm:$0xf] %v6709_v8  ;;  %v7145_v22 = vsel %vm14224_vm10, %v11866_v11, %v7144_v25  ;;  %v7146_v17 = vrot.slane %v7144_v25, 4  ;;  %v7147_v16 = vrot.slane %v7016_v33, 5  ;;  %v6735_v63 = vshrl.u32 %v6518_v1, 16  ;;  %10639 = vmatprep.mubr.bf16.mxu0 %v13647_v37 }
 0x3bb   : > { %v7018_v48 = vld [vmem:[#allocation2 + $0x70] sm:$0xf]  ;;  %v13643_v43 = vld [vmem:[#allocation3 + $0x16c] ss:$36 sps:$4 sm:$0xff]   ;;  %v6718_v14 = vrot.slane %v6717_v19, 4  ;;  %v6732_v4 = vrot.slane %v6730_v13, 5 }
 0x3bc   : > { %7246 = vst [vmem:[#allocation3 + $0x248] sm:$0xf] %v7145_v22  ;;  %v7019_v6 = vld [vmem:[#allocation2 + $0x74] sm:$0x1]  ;;  %v13641_v38 = vld [vmem:[#allocation3 + $0x168] ss:$36 sps:$4 sm:$0xff]   ;;  %v7148_v31 = vsel %vm14224_vm10, %v7146_v17, %v7147_v16  ;;  %10470 = vmatprep.mubr.bf16.mxu1 %v13643_v43 }
 0x3bd   : > { %v6728_v9 = vrot.slane %v6727_v62, 4  ;;  %v6737_v41 = vrot.slane %v6735_v63, 4  ;;  %v6738_v35 = vshll.u32 %v6518_v1, 16  ;;  %v6521_v44 = vld [vmem:[#allocation2 + $0x6c] sm:$0xf]  ;;  %v6723_v36 = vsel %vm14247_vm13, %v6718_v14, %v6722_v32  ;;  %10471 = vmatmul.mubr.bf16.gmra.mxu1 %v13641_v38 }
 0x3be   : > { %v13645_v45 = vld [vmem:[#allocation3 + $0x1b8] ss:$36 sps:$4 sm:$0xff]   ;;  %7247 = vst [vmem:[#allocation3 + $0x26c] sm:$0xf] %v7148_v31  ;;  %v6744_v57 = vshll.u32 %v6519_v24, 16  ;;  %v6748_v42 = vshrl.u32 %v6519_v24, 16 }
 0x3bf   : > { %v6754_v52 = vshll.u32 %v6520_v50, 16  ;;  %v6733_v15 = vsel %vm14247_vm13, %v6728_v9, %v6732_v4  ;;  %6972 = vst [vmem:[#allocation3 + $0x1fc] sm:$0xf] %v6723_v36  ;;  %v6740_v3 = vrot.slane %v6738_v35, 5  ;;  %v11867_v28 = vrot.slane %v7017_v12, 9  ;;  %10640 = vmatmul.mubr.bf16.gmra.mxu0 %v13645_v45 }
 0x3c0   : > { %v7151_v0 = vrot.slane %v7018_v48, 5  ;;  %6973 = vst [vmem:[#allocation3 + $0x220] sm:$0xf] %v6733_v15  ;;  %v6746_v58 = vrot.slane %v6744_v57, 5  ;;  %v6750_v40 = vrot.slane %v6748_v42, 4  ;;  %v7154_v55 = vrot.slane %v7019_v6, 5 }
 0x3c1   : > { %v6522_v39 = vld [vmem:[#allocation2 + $0x70] sm:$0xf]  ;;  %v6523_v47 = vld [vmem:[#allocation2 + $0x74] sm:$0x1]  ;;  %v13653_v23 = vld [vmem:[#allocation3 + $0x204] ss:$36 sps:$4 sm:$0xff]   ;;  %v6741_v54 = vor.u32 %v6740_v3, %v6737_v41 }
 0x3c2   : > { %v7152_v56 = vsel %vm14224_vm10, %v11867_v28, %v7151_v0  ;;  %v7153_v53 = vrot.slane %v7151_v0, 4  ;;  %v13650_v60 = vld [vmem:[#allocation3 + $0x1b4] ss:$36 sps:$4 sm:$0xff]   ;;  %v6751_v46 = vor.u32 %v6750_v40, %v6746_v58  ;;  %v6756_v61 = vrot.slane %v6754_v52, 5  ;;  %v7020_v21 = vld [vmem:[#allocation2 + $0x78] sm:$0xe]  ;;  %10647 = vmatprep.mubr.bf16.mxu0 %v13653_v23 }
 0x3c3   : > { %7248 = vst [vmem:[#allocation3 + $0x290] sm:$0xf] %v7152_v56  ;;  %v6759_v49 = vshrl.u32 %v6521_v44, 16  ;;  %v6742_v5 = vrot.slane %v6741_v54, 4  ;;  %v6762_v33 = vshll.u32 %v6521_v44, 16  ;;  %v6768_v1 = vshll.u32 %v6522_v39, 16  ;;  %10478 = vmatprep.mubr.bf16.mxu1 %v13650_v60 }
 0x3c4   : > { %v7155_v26 = vsel %vm14224_vm10, %v7153_v53, %v7154_v55  ;;  %v7021_v2 = vld [vmem:[#allocation2 + $0x7c] sm:$0xf]  ;;  %v7022_v20 = vld [vmem:[#allocation2 + $0x80] sm:$0x1]  ;;  %v6524_v51 = vld [vmem:[#allocation2 + $0x78] sm:$0xf] }
 0x3c5   : > { %v6752_v29 = vrot.slane %v6751_v46, 4  ;;  %7249 = vst [vmem:[#allocation3 + $0x2b4] sm:$0xf] %v7155_v26  ;;  %v6761_v7 = vrot.slane %v6759_v49, 4  ;;  %v6772_v10 = vshrl.u32 %v6522_v39, 16  ;;  %v6778_v18 = vshll.u32 %v6523_v47, 16 }
 0x3c6   : > { %v6525_v32 = vld [vmem:[#allocation2 + $0x7c] sm:$0xf]  ;;  %v13648_v30 = vld [vmem:[#allocation3 + $0x1b0] ss:$36 sps:$4 sm:$0xff]   ;;  %v6747_v13 = vsel %vm14247_vm13, %v6742_v5, %v6746_v58  ;;  %v6764_v11 = vrot.slane %v6762_v33, 5  ;;  %v6770_v50 = vrot.slane %v6768_v1, 5 }
 0x3c7   : > { %v13651_v34 = vld [vmem:[#allocation3 + $0x200] ss:$36 sps:$4 sm:$0xff]   ;;  %v13661_v25 = vld [vmem:[#allocation3 + $0x24c] ss:$36 sps:$4 sm:$0xff]   ;;  %v6757_v24 = vsel %vm14247_vm13, %v6752_v29, %v6756_v61  ;;  %6974 = vst [vmem:[#allocation3 + $0x244] sm:$0xf] %v6747_v13  ;;  %10479 = vmatmul.mubr.bf16.gmra.mxu1 %v13648_v30 }
 0x3c8   : > { %v6774_v37 = vrot.slane %v6772_v10, 4  ;;  %v13657_v8 = vld [vmem:[#allocation3 + $0x1fc] ss:$36 sps:$4 sm:$0xff]   ;;  %6975 = vst [vmem:[#allocation3 + $0x268] sm:$0xf] %v6757_v24  ;;  %v6765_v19 = vor.u32 %v6764_v11, %v6761_v7  ;;  %v6780_v62 = vrot.slane %v6778_v18, 5  ;;  %10648 = vmatmul.mubr.bf16.gmra.mxu0 %v13651_v34 }
 0x3c9   : > { %v11868_v12 = vrot.slane %v7020_v21, 9  ;;  %v7158_v17 = vrot.slane %v7021_v2, 5  ;;  %v7161_v16 = vrot.slane %v7022_v20, 5  ;;  %v6526_v63 = vld [vmem:[#allocation2 + $0x80] sm:$0x1]  ;;  %v6783_v48 = vshrl.u32 %v6524_v51, 16  ;;  %10486 = vmatprep.mubr.bf16.mxu1 %v13657_v8  ;;  %10655 = vmatprep.mubr.bf16.mxu0 %v13661_v25 }
 0x3ca   : > { %v6775_v22 = vor.u32 %v6774_v37, %v6770_v50  ;;  %v7023_v43 = vld [vmem:[#allocation2 + $0x84] sm:$0xe]  ;;  %v7024_v14 = vld [vmem:[#allocation2 + $0x88] sm:$0xf]  ;;  %v6766_v4 = vrot.slane %v6765_v19, 4  ;;  %v6786_v6 = vshll.u32 %v6524_v51, 16 }
 0x3cb   : > { %v6792_v38 = vshll.u32 %v6525_v32, 16  ;;  %v6796_v9 = vshrl.u32 %v6525_v32, 16  ;;  %v7025_v31 = vld [vmem:[#allocation2 + $0x8c] sm:$0x1]  ;;  %v7159_v35 = vsel %vm14224_vm10, %v11868_v12, %v7158_v17  ;;  %v7160_v44 = vrot.slane %v7158_v17, 4 }
 0x3cc   : > { %v6776_v41 = vrot.slane %v6775_v22, 4  ;;  %v6785_v45 = vrot.slane %v6783_v48, 4  ;;  %v8098_v36 = vld [vmem:[#allocation2 + $0x30] sm:$0xf]  ;;  %v6771_v57 = vsel %vm14247_vm13, %v6766_v4, %v6770_v50  ;;  %7250 = vst [vmem:[#allocation3 + $0x2d8] sm:$0xf] %v7159_v35 }
 0x3cd   : > { %v6788_v42 = vrot.slane %v6786_v6, 5  ;;  %v6527_v52 = vld [vmem:[#allocation2 + $0x84] sm:$0xf]  ;;  %v6528_v15 = vld [vmem:[#allocation2 + $0x88] sm:$0xf]  ;;  %v7162_v28 = vsel %vm14224_vm10, %v7160_v44, %v7161_v16  ;;  %v6794_v0 = vrot.slane %v6792_v38, 5 }
 0x3ce   : > { %8130 = vst [vmem:[#allocation3 + $0xa8] sm:$0xf] %v8098_v36  ;;  %v6781_v3 = vsel %vm14247_vm13, %v6776_v41, %v6780_v62  ;;  %6976 = vst [vmem:[#allocation3 + $0x28c] sm:$0xf] %v6771_v57  ;;  %v6798_v58 = vrot.slane %v6796_v9, 4  ;;  %v6802_v54 = vshll.u32 %v6526_v63, 16 }
 0x3cf   : > { %v6529_v40 = vld [vmem:[#allocation2 + $0x8c] sm:$0x1]  ;;  %v8099_v39 = vld [vmem:[#allocation2 + $0x34] sm:$0xf]  ;;  %6977 = vst [vmem:[#allocation3 + $0x2b0] sm:$0xf] %v6781_v3  ;;  %v6789_v23 = vor.u32 %v6788_v42, %v6785_v45 }
 0x3d0   : > { %v13655_v47 = vld [vmem:[#allocation3 + $0x1f8] ss:$36 sps:$4 sm:$0xff]   ;;  %7251 = vst [vmem:[#allocation3 + $0x2fc] sm:$0xf] %v7162_v28  ;;  %v11869_v56 = vrot.slane %v7023_v43, 9  ;;  %v7165_v53 = vrot.slane %v7024_v14, 5  ;;  %v6799_v46 = vor.u32 %v6798_v58, %v6794_v0 }
 0x3d1   : > { %8131 = vst [vmem:[#allocation3 + $0xcc] sm:$0xf] %v8099_v39  ;;  %v13659_v55 = vld [vmem:[#allocation3 + $0x248] ss:$36 sps:$4 sm:$0xff]   ;;  %v7168_v61 = vrot.slane %v7025_v31, 5  ;;  %10487 = vmatmul.mubr.bf16.gmra.mxu1 %v13655_v47  ;;  %v6790_v5 = vrot.slane %v6789_v23, 4 }
 0x3d2   : > { %v13664_v60 = vld [vmem:[#allocation3 + $0x244] ss:$36 sps:$4 sm:$0xff]   ;;  %v7026_v49 = vld [vmem:[#allocation2 + $0x90] sm:$0xe]  ;;  %v6804_v26 = vrot.slane %v6802_v54, 5  ;;  %v7166_v33 = vsel %vm14224_vm10, %v11869_v56, %v7165_v53  ;;  %v7167_v1 = vrot.slane %v7165_v53, 4  ;;  %10656 = vmatmul.mubr.bf16.gmra.mxu0 %v13659_v55 }
 0x3d3   : > { %v13669_v21 = vld [vmem:[#allocation3 + $0x294] ss:$36 sps:$4 sm:$0xff]   ;;  %10494 = vmatprep.mubr.bf16.mxu1 %v13664_v60  ;;  %v6800_v2 = vrot.slane %v6799_v46, 4  ;;  %7252 = vst [vmem:[#allocation3 + $0x320] sm:$0xf] %v7166_v33  ;;  %v6807_v20 = vshrl.u32 %v6527_v52, 16  ;;  %v6795_v10 = vsel %vm14247_vm13, %v6790_v5, %v6794_v0  ;;  %v12683_v46 = vpop.f32.mrf.mxu1 }
 0x3d4   : > { %v6810_v51 = vshll.u32 %v6527_v52, 16  ;;  %v6816_v29 = vshll.u32 %v6528_v15, 16  ;;  %v7027_v7 = vld [vmem:[#allocation2 + $0x94] sm:$0xf]  ;;  %10663 = vmatprep.mubr.bf16.mxu0 %v13669_v21  ;;  %v7169_v18 = vsel %vm14224_vm10, %v7167_v1, %v7168_v61  ;;  %v6820_v32 = vshrl.u32 %v6528_v15, 16 }
 0x3d5   : > { %v6826_v30 = vshll.u32 %v6529_v40, 16  ;;  %v7028_v34 = vld [vmem:[#allocation2 + $0x98] sm:$0x1]  ;;  %v6805_v13 = vsel %vm14247_vm13, %v6800_v2, %v6804_v26  ;;  %6978 = vst [vmem:[#allocation3 + $0x2d4] sm:$0xf] %v6795_v10  ;;  %v6809_v11 = vrot.slane %v6807_v20, 4 }
 0x3d6   : > { %7253 = vst [vmem:[#allocation3 + $0x344] sm:$0xf] %v7169_v18  ;;  %v6812_v25 = vrot.slane %v6810_v51, 5  ;;  %v6818_v24 = vrot.slane %v6816_v29, 5  ;;  %v6530_v50 = vld [vmem:[#allocation2 + $0x90] sm:$0xf] }
 0x3d7   : > { %6979 = vst [vmem:[#allocation3 + $0x2f8] sm:$0xf] %v6805_v13  ;;  %v6822_v37 = vrot.slane %v6820_v32, 4  ;;  %v11870_v8 = vrot.slane %v7026_v49, 9  ;;  %v7172_v19 = vrot.slane %v7027_v7, 5  ;;  %v6828_v17 = vrot.slane %v6826_v30, 5 }
 0x3d8   : > { %v6531_v62 = vld [vmem:[#allocation2 + $0x94] sm:$0xf]  ;;  %v13667_v12 = vld [vmem:[#allocation3 + $0x290] ss:$36 sps:$4 sm:$0xff]   ;;  %v6813_v22 = vor.u32 %v6812_v25, %v6809_v11  ;;  %v6532_v16 = vld [vmem:[#allocation2 + $0x98] sm:$0x1] }
 0x3d9   : > { %v13662_v63 = vld [vmem:[#allocation3 + $0x240] ss:$36 sps:$4 sm:$0xff]   ;;  %v6823_v48 = vor.u32 %v6822_v37, %v6818_v24  ;;  %v7173_v43 = vsel %vm14224_vm10, %v11870_v8, %v7172_v19  ;;  %v7174_v14 = vrot.slane %v7172_v19, 4  ;;  %v7175_v4 = vrot.slane %v7028_v34, 5  ;;  %v13673_v38 = vld [vmem:[#allocation3 + $0x28c] ss:$36 sps:$4 sm:$0xff]   ;;  %v12684_v8 = vpop.f32.mrf.mxu1 }
 0x3da   : > { %v7029_v6 = vld [vmem:[#allocation2 + $0x9c] sm:$0xe]  ;;  %v6814_v9 = vrot.slane %v6813_v22, 4  ;;  %7254 = vst [vmem:[#allocation3 + $0x368] sm:$0xf] %v7173_v43  ;;  %v6831_v31 = vshrl.u32 %v6530_v50, 16  ;;  %10495 = vmatmul.mubr.bf16.gmra.mxu1 %v13662_v63  ;;  %10664 = vmatmul.mubr.bf16.gmra.mxu0 %v13667_v12 }
 0x3db   : > { %v6834_v41 = vshll.u32 %v6530_v50, 16  ;;  %v6840_v35 = vshll.u32 %v6531_v62, 16  ;;  %v7030_v44 = vld [vmem:[#allocation2 + $0xa0] sm:$0xf]  ;;  %v7031_v45 = vld [vmem:[#allocation2 + $0xa4] sm:$0x1]  ;;  %v7176_v52 = vsel %vm14224_vm10, %v7174_v14, %v7175_v4  ;;  %10502 = vmatprep.mubr.bf16.mxu1 %v13673_v38 }
 0x3dc   : > { %v6533_v36 = vld [vmem:[#allocation2 + $0x9c] sm:$0xf]  ;;  %v13677_v57 = vld [vmem:[#allocation3 + $0x2dc] ss:$36 sps:$4 sm:$0xff]   ;;  %v6824_v42 = vrot.slane %v6823_v48, 4  ;;  %v6844_v15 = vshrl.u32 %v6531_v62, 16  ;;  %v6819_v28 = vsel %vm14247_vm13, %v6814_v9, %v6818_v24 }
 0x3dd   : > { %v6850_v3 = vshll.u32 %v6532_v16, 16  ;;  %7255 = vst [vmem:[#allocation3 + $0x38c] sm:$0xf] %v7176_v52  ;;  %v6833_v0 = vrot.slane %v6831_v31, 4  ;;  %v6836_v58 = vrot.slane %v6834_v41, 5  ;;  %v6842_v40 = vrot.slane %v6840_v35, 5  ;;  %10671 = vmatprep.mubr.bf16.mxu0 %v13677_v57 }
 0x3de   : > { %v8100_v39 = vld [vmem:[#allocation2 + $0x3c] sm:$0xf]  ;;  %v6829_v47 = vsel %vm14247_vm13, %v6824_v42, %v6828_v17  ;;  %6980 = vst [vmem:[#allocation3 + $0x31c] sm:$0xf] %v6819_v28  ;;  %v6846_v23 = vrot.slane %v6844_v15, 4  ;;  %v11871_v55 = vrot.slane %v7029_v6, 9  ;;  %v15906_v16 = vadd.f32 %v12684_v8, %v12683_v46 }
 0x3df   : > { %v6534_v54 = vld [vmem:[#allocation2 + $0xa0] sm:$0xf]  ;;  %8132 = vst [vmem:[#allocation3 + $0xf0] sm:$0xf] %v8100_v39  ;;  %6981 = vst [vmem:[#allocation3 + $0x340] sm:$0xf] %v6829_v47  ;;  %v6837_v56 = vor.u32 %v6836_v58, %v6833_v0 }
 0x3e0   : > { %v6852_v53 = vrot.slane %v6850_v3, 5  ;;  %v6535_v60 = vld [vmem:[#allocation2 + $0xa4] sm:$0x1]  ;;  %v6847_v49 = vor.u32 %v6846_v23, %v6842_v40  ;;  %v7179_v21 = vrot.slane %v7030_v44, 5  ;;  %v7182_v5 = vrot.slane %v7031_v45, 5 }
 0x3e1   : > { %v13671_v61 = vld [vmem:[#allocation3 + $0x288] ss:$36 sps:$4 sm:$0xff]   ;;  %v6855_v26 = vshrl.u32 %v6533_v36, 16  ;;  %v7032_v33 = vld [vmem:[#allocation2 + $0xa8] sm:$0xe]  ;;  %v6838_v2 = vrot.slane %v6837_v56, 4 }
 0x3e2   : > { %v7033_v1 = vld [vmem:[#allocation2 + $0xac] sm:$0xf]  ;;  %v6858_v20 = vshll.u32 %v6533_v36, 16  ;;  %v6864_v51 = vshll.u32 %v6534_v54, 16  ;;  %v6868_v29 = vshrl.u32 %v6534_v54, 16  ;;  %v6848_v18 = vrot.slane %v6847_v49, 4  ;;  %10503 = vmatmul.mubr.bf16.gmra.mxu1 %v13671_v61 }
 0x3e3   : > { %v8101_v7 = vld [vmem:[#allocation2 + $0x40] sm:$0xf]  ;;  %v13675_v10 = vld [vmem:[#allocation3 + $0x2d8] ss:$36 sps:$4 sm:$0xff]   ;;  %v7180_v32 = vsel %vm14224_vm10, %v11871_v55, %v7179_v21  ;;  %v7181_v30 = vrot.slane %v7179_v21, 4  ;;  %v6857_v34 = vrot.slane %v6855_v26, 4  ;;  %v6843_v11 = vsel %vm14247_vm13, %v6838_v2, %v6842_v40 }
 0x3e4   : > { %8133 = vst [vmem:[#allocation3 + $0x114] sm:$0xf] %v8101_v7  ;;  %v13680_v13 = vld [vmem:[#allocation3 + $0x2d4] ss:$36 sps:$4 sm:$0xff]   ;;  %7256 = vst [vmem:[#allocation3 + $0x3b0] sm:$0xf] %v7180_v32  ;;  %v6853_v62 = vsel %vm14247_vm13, %v6848_v18, %v6852_v53  ;;  %10672 = vmatmul.mubr.bf16.gmra.mxu0 %v13675_v10 }
 0x3e5   : > { %v6860_v25 = vrot.slane %v6858_v20, 5  ;;  %v6866_v24 = vrot.slane %v6864_v51, 5  ;;  %v6870_v50 = vrot.slane %v6868_v29, 4  ;;  %v6536_v37 = vld [vmem:[#allocation2 + $0xa8] sm:$0xf]  ;;  %v7183_v12 = vsel %vm14224_vm10, %v7181_v30, %v7182_v5  ;;  %10510 = vmatprep.mubr.bf16.mxu1 %v13680_v13 }
 0x3e6   : > { %v13685_v19 = vld [vmem:[#allocation3 + $0x324] ss:$36 sps:$4 sm:$0xff]   ;;  %6982 = vst [vmem:[#allocation3 + $0x364] sm:$0xf] %v6843_v11  ;;  %v6874_v22 = vshll.u32 %v6535_v60, 16  ;;  %v11872_v43 = vrot.slane %v7032_v33, 9 }
 0x3e7   : > { %v7034_v17 = vld [vmem:[#allocation2 + $0xb0] sm:$0x1]  ;;  %6983 = vst [vmem:[#allocation3 + $0x388] sm:$0xf] %v6853_v62  ;;  %7257 = vst [vmem:[#allocation3 + $0x3d4] sm:$0xf] %v7183_v12  ;;  %v6861_v63 = vor.u32 %v6860_v25, %v6857_v34  ;;  %v6871_v48 = vor.u32 %v6870_v50, %v6866_v24  ;;  %10679 = vmatprep.mubr.bf16.mxu0 %v13685_v19 }
 0x3e8   : > { %v7186_v14 = vrot.slane %v7033_v1, 5  ;;  %v6537_v4 = vld [vmem:[#allocation2 + $0xac] sm:$0xf]  ;;  %v6876_v6 = vrot.slane %v6874_v22, 5  ;;  %v6538_v38 = vld [vmem:[#allocation2 + $0xb0] sm:$0x1] }
 0x3e9   : > { %v7035_v9 = vld [vmem:[#allocation2 + $0xb4] sm:$0xe]  ;;  %v6862_v31 = vrot.slane %v6861_v63, 4  ;;  %v6872_v41 = vrot.slane %v6871_v48, 4  ;;  %v7036_v45 = vld [vmem:[#allocation2 + $0xb8] sm:$0xf] }
 0x3ea   : > { %v7187_v35 = vsel %vm14224_vm10, %v11872_v43, %v7186_v14  ;;  %v7188_v44 = vrot.slane %v7186_v14, 4  ;;  %v7189_v36 = vrot.slane %v7034_v17, 5  ;;  %v6879_v57 = vshrl.u32 %v6536_v37, 16  ;;  %v7037_v15 = vld [vmem:[#allocation2 + $0xbc] sm:$0x1] }
 0x3eb   : > { %7258 = vst [vmem:[#allocation3 + $0x3f8] sm:$0xf] %v7187_v35  ;;  %v6882_v42 = vshll.u32 %v6536_v37, 16  ;;  %v6888_v52 = vshll.u32 %v6537_v4, 16  ;;  %v13683_v3 = vld [vmem:[#allocation3 + $0x320] ss:$36 sps:$4 sm:$0xff]   ;;  %v6867_v28 = vsel %vm14247_vm13, %v6862_v31, %v6866_v24  ;;  %v6877_v0 = vsel %vm14247_vm13, %v6872_v41, %v6876_v6 }
 0x3ec   : > { %v6892_v58 = vshrl.u32 %v6537_v4, 16  ;;  %v6898_v40 = vshll.u32 %v6538_v38, 16  ;;  %v6539_v39 = vld [vmem:[#allocation2 + $0xb4] sm:$0xf]  ;;  %v6540_v47 = vld [vmem:[#allocation2 + $0xb8] sm:$0xf]  ;;  %v7190_v54 = vsel %vm14224_vm10, %v7188_v44, %v7189_v36  ;;  %10680 = vmatmul.mubr.bf16.gmra.mxu0 %v13683_v3 }
 0x3ed   : > { %v13678_v23 = vld [vmem:[#allocation3 + $0x2d0] ss:$36 sps:$4 sm:$0xff]   ;;  %6984 = vst [vmem:[#allocation3 + $0x3ac] sm:$0xf] %v6867_v28  ;;  %6985 = vst [vmem:[#allocation3 + $0x3d0] sm:$0xf] %v6877_v0 }
 0x3ee   : > { %v6881_v56 = vrot.slane %v6879_v57, 4  ;;  %v6884_v53 = vrot.slane %v6882_v42, 5  ;;  %v6890_v55 = vrot.slane %v6888_v52, 5  ;;  %v13689_v60 = vld [vmem:[#allocation3 + $0x31c] ss:$36 sps:$4 sm:$0xff]   ;;  %v6894_v46 = vrot.slane %v6892_v58, 4  ;;  %10511 = vmatmul.mubr.bf16.gmra.mxu1 %v13678_v23 }
 0x3ef   : > { %7259 = vst [vmem:[#allocation3 + $0x41c] sm:$0xf] %v7190_v54  ;;  %v11873_v61 = vrot.slane %v7035_v9, 9  ;;  %v7193_v49 = vrot.slane %v7036_v45, 5  ;;  %v13693_v21 = vld [vmem:[#allocation3 + $0x36c] ss:$36 sps:$4 sm:$0xff]   ;;  %10518 = vmatprep.mubr.bf16.mxu1 %v13689_v60 }
 0x3f0   : > { %v6885_v5 = vor.u32 %v6884_v53, %v6881_v56  ;;  %v6900_v26 = vrot.slane %v6898_v40, 5  ;;  %v6541_v33 = vld [vmem:[#allocation2 + $0xbc] sm:$0x1]  ;;  %v6895_v1 = vor.u32 %v6894_v46, %v6890_v55  ;;  %v7196_v51 = vrot.slane %v7037_v15, 5  ;;  %v8158_v29 = vld [vmem:[#allocation2 + $0x18] sm:$0xf]  ;;  %10687 = vmatprep.mubr.bf16.mxu0 %v13693_v21 }
 0x3f1   : > { %v7194_v2 = vsel %vm14224_vm10, %v11873_v61, %v7193_v49  ;;  %v7195_v20 = vrot.slane %v7193_v49, 4  ;;  %v6903_v10 = vshrl.u32 %v6539_v39, 16  ;;  %v6906_v18 = vshll.u32 %v6539_v39, 16  ;;  %v8159_v30 = vld [vmem:[#allocation2 + $0x1c] sm:$0xf] }
 0x3f2   : > { %v6886_v7 = vrot.slane %v6885_v5, 4  ;;  %7260 = vst [vmem:[#allocation3 + $0x440] sm:$0xf] %v7194_v2  ;;  %v6912_v32 = vshll.u32 %v6540_v47, 16  ;;  %v6896_v34 = vrot.slane %v6895_v1, 4  ;;  %v6916_v11 = vshrl.u32 %v6540_v47, 16 }
 0x3f3   : > { %v7197_v13 = vsel %vm14224_vm10, %v7195_v20, %v7196_v51  ;;  %v6922_v25 = vshll.u32 %v6541_v33, 16  ;;  %v8160_v24 = vld [vmem:[#allocation2 + $0x20] sm:$0x1]  ;;  %v7326_v50 = vld [vmem:[#allocation2 + $0xc] sm:$0xf]  ;;  %v6905_v19 = vrot.slane %v6903_v10, 4 }
 0x3f4   : > { %v8102_v37 = vld [vmem:[#allocation2 + $0x48] sm:$0xf]  ;;  %v6891_v8 = vsel %vm14247_vm13, %v6886_v7, %v6890_v55  ;;  %7261 = vst [vmem:[#allocation3 + $0x464] sm:$0xf] %v7197_v13  ;;  %v6908_v62 = vrot.slane %v6906_v18, 5  ;;  %v6914_v12 = vrot.slane %v6912_v32, 5  ;;  %v6901_v63 = vsel %vm14247_vm13, %v6896_v34, %v6900_v26 }
 0x3f5   : > { %v8103_v22 = vld [vmem:[#allocation2 + $0x4c] sm:$0xf]  ;;  %8134 = vst [vmem:[#allocation3 + $0x138] sm:$0xf] %v8102_v37  ;;  %v13691_v17 = vld [vmem:[#allocation3 + $0x368] ss:$36 sps:$4 sm:$0xff]  }
 0x3f6   : > { %6986 = vst [vmem:[#allocation3 + $0x3f4] sm:$0xf] %v6891_v8  ;;  %v6918_v48 = vrot.slane %v6916_v11, 4  ;;  %8135 = vst [vmem:[#allocation3 + $0x15c] sm:$0xf] %v8103_v22  ;;  %v6909_v14 = vor.u32 %v6908_v62, %v6905_v19  ;;  %v6924_v4 = vrot.slane %v6922_v25, 5  ;;  %10688 = vmatmul.mubr.bf16.gmra.mxu0 %v13691_v17 }
 0x3f7   : > { %v13687_v43 = vld [vmem:[#allocation3 + $0x318] ss:$36 sps:$4 sm:$0xff]   ;;  %6987 = vst [vmem:[#allocation3 + $0x418] sm:$0xf] %v6901_v63  ;;  %v8207_v6 = vshrl.u32 %v8158_v29, 16  ;;  %v8210_v41 = vshll.u32 %v8158_v29, 16 }
 0x3f8   : > { %v7327_v38 = vld [vmem:[#allocation2 + $0x10] sm:$0xf]  ;;  %v13696_v9 = vld [vmem:[#allocation3 + $0x364] ss:$36 sps:$4 sm:$0xff]   ;;  %v6919_v31 = vor.u32 %v6918_v48, %v6914_v12  ;;  %v8216_v35 = vshll.u32 %v8159_v30, 16  ;;  %v8220_v44 = vshrl.u32 %v8159_v30, 16  ;;  %10519 = vmatmul.mubr.bf16.gmra.mxu1 %v13687_v43 }
 0x3f9   : > { %v7328_v45 = vld [vmem:[#allocation2 + $0x14] sm:$0x1]  ;;  %v13701_v36 = vld [vmem:[#allocation3 + $0x3b4] ss:$36 sps:$4 sm:$0xff]   ;;  %v6910_v57 = vrot.slane %v6909_v14, 4  ;;  %v8209_v42 = vrot.slane %v8207_v6, 4  ;;  %10526 = vmatprep.mubr.bf16.mxu1 %v13696_v9 }
 0x3fa   : > { %v8226_v52 = vshll.u32 %v8160_v24, 16  ;;  %v7375_v15 = vshrl.u32 %v7326_v50, 16  ;;  %v6920_v3 = vrot.slane %v6919_v31, 4  ;;  %v8212_v28 = vrot.slane %v8210_v41, 5  ;;  %10695 = vmatprep.mubr.bf16.mxu0 %v13701_v36  ;;  %v7822_v23 = vld [vmem:[#allocation2 + $0xc] sm:$0xe] }
 0x3fb   : > { %v8218_v0 = vrot.slane %v8216_v35, 5  ;;  %v8222_v58 = vrot.slane %v8220_v44, 4  ;;  %v6915_v40 = vsel %vm14247_vm13, %v6910_v57, %v6914_v12  ;;  %v7378_v47 = vshll.u32 %v7326_v50, 16  ;;  %v7823_v54 = vld [vmem:[#allocation2 + $0x10] sm:$0xf] }
 0x3fc   : > { %v7377_v39 = vrot.slane %v7375_v15, 4  ;;  %v6925_v56 = vsel %vm14247_vm13, %v6920_v3, %v6924_v4  ;;  %6988 = vst [vmem:[#allocation3 + $0x43c] sm:$0xf] %v6915_v40  ;;  %v8213_v53 = vor.u32 %v8212_v28, %v8209_v42  ;;  %v7384_v60 = vshll.u32 %v7327_v38, 16  ;;  %v7824_v46 = vld [vmem:[#allocation2 + $0x14] sm:$0x1] }
 0x3fd   : > { %v8223_v55 = vor.u32 %v8222_v58, %v8218_v0  ;;  %v8161_v61 = vld [vmem:[#allocation2 + $0x24] sm:$0xf]  ;;  %6989 = vst [vmem:[#allocation3 + $0x460] sm:$0xf] %v6925_v56  ;;  %v7380_v49 = vrot.slane %v7378_v47, 5  ;;  %v7388_v21 = vshrl.u32 %v7327_v38, 16 }
 0x3fe   : > { %v7394_v5 = vshll.u32 %v7328_v45, 16  ;;  %v8162_v26 = vld [vmem:[#allocation2 + $0x28] sm:$0xf]  ;;  %v13694_v33 = vld [vmem:[#allocation3 + $0x360] ss:$36 sps:$4 sm:$0xff]   ;;  %v8214_v1 = vrot.slane %v8213_v53, 4 }
 0x3ff   : > { %v8228_v2 = vrot.slane %v8226_v52, 5  ;;  %v11874_v20 = vrot.slane %v7822_v23, 9  ;;  %v13699_v51 = vld [vmem:[#allocation3 + $0x3b0] ss:$36 sps:$4 sm:$0xff]   ;;  %v8224_v29 = vrot.slane %v8223_v55, 4  ;;  %v7381_v7 = vor.u32 %v7380_v49, %v7377_v39 }
 0x400   : > { %v7386_v10 = vrot.slane %v7384_v60, 5  ;;  %v7390_v18 = vrot.slane %v7388_v21, 4  ;;  %v13705_v32 = vld [vmem:[#allocation3 + $0x3ac] ss:$36 sps:$4 sm:$0xff]   ;;  %v8219_v30 = vsel %vm14247_vm13, %v8214_v1, %v8218_v0  ;;  %v7396_v34 = vrot.slane %v7394_v5, 5  ;;  %10527 = vmatmul.mubr.bf16.gmra.mxu1 %v13694_v33  ;;  %10696 = vmatmul.mubr.bf16.gmra.mxu0 %v13699_v51 }
 0x401   : > { %v7920_v13 = vrot.slane %v7823_v54, 5  ;;  %v7923_v11 = vrot.slane %v7824_v46, 5  ;;  %v13709_v25 = vld [vmem:[#allocation3 + $0x3fc] ss:$36 sps:$4 sm:$0xff]   ;;  %v8229_v24 = vsel %vm14247_vm13, %v8224_v29, %v8228_v2  ;;  %8622 = vst [vmem:[#allocation3 + $0x1c] sm:$0xf] %v8219_v30  ;;  %10534 = vmatprep.mubr.bf16.mxu1 %v13705_v32 }
 0x402   : > { %v7382_v50 = vrot.slane %v7381_v7, 4  ;;  %v7391_v37 = vor.u32 %v7390_v18, %v7386_v10  ;;  %v8163_v8 = vld [vmem:[#allocation2 + $0x2c] sm:$0x1]  ;;  %v8231_v19 = vshrl.u32 %v8161_v61, 16  ;;  %8623 = vst [vmem:[#allocation3 + $0x40] sm:$0xf] %v8229_v24  ;;  %10703 = vmatprep.mubr.bf16.mxu0 %v13709_v25 }
 0x403   : > { %v7921_v62 = vsel %vm14224_vm10, %v11874_v20, %v7920_v13  ;;  %v7922_v12 = vrot.slane %v7920_v13, 4  ;;  %v8234_v22 = vshll.u32 %v8161_v61, 16  ;;  %v8240_v17 = vshll.u32 %v8162_v26, 16  ;;  %v7329_v63 = vld [vmem:[#allocation2 + $0x18] sm:$0xf] }
 0x404   : > { %v7387_v48 = vsel %vm14247_vm13, %v7382_v50, %v7386_v10  ;;  %v7392_v43 = vrot.slane %v7391_v37, 4  ;;  %8062 = vst [vmem:[#allocation3 + $0x14] sm:$0xf] %v7921_v62  ;;  %v8233_v14 = vrot.slane %v8231_v19, 4  ;;  %v8244_v4 = vshrl.u32 %v8162_v26, 16 }
 0x405   : > { %v7330_v6 = vld [vmem:[#allocation2 + $0x1c] sm:$0xf]  ;;  %7790 = vst [vmem:[#allocation3 + $0x10] sm:$0xf] %v7387_v48  ;;  %v7924_v38 = vsel %vm14224_vm10, %v7922_v12, %v7923_v11  ;;  %v8236_v9 = vrot.slane %v8234_v22, 5  ;;  %v8242_v44 = vrot.slane %v8240_v17, 5 }
 0x406   : > { %v7331_v31 = vld [vmem:[#allocation2 + $0x20] sm:$0x1]  ;;  %v7397_v35 = vsel %vm14247_vm13, %v7392_v43, %v7396_v34  ;;  %8063 = vst [vmem:[#allocation3 + $0x38] sm:$0xf] %v7924_v38  ;;  %v8246_v45 = vrot.slane %v8244_v4, 4  ;;  %v8250_v36 = vshll.u32 %v8163_v8, 16 }
 0x407   : > { %v13703_v41 = vld [vmem:[#allocation3 + $0x3a8] ss:$36 sps:$4 sm:$0xff]   ;;  %v13707_v57 = vld [vmem:[#allocation3 + $0x3f8] ss:$36 sps:$4 sm:$0xff]   ;;  %7791 = vst [vmem:[#allocation3 + $0x34] sm:$0xf] %v7397_v35  ;;  %v8237_v42 = vor.u32 %v8236_v9, %v8233_v14 }
 0x408   : > { %v7399_v52 = vshrl.u32 %v7329_v63, 16  ;;  %v7402_v15 = vshll.u32 %v7329_v63, 16  ;;  %v7408_v3 = vshll.u32 %v7330_v6, 16  ;;  %v7825_v28 = vld [vmem:[#allocation2 + $0x18] sm:$0xe]  ;;  %v8247_v39 = vor.u32 %v8246_v45, %v8242_v44  ;;  %10535 = vmatmul.mubr.bf16.gmra.mxu1 %v13703_v41  ;;  %10704 = vmatmul.mubr.bf16.gmra.mxu0 %v13707_v57 }
 0x409   : > { %v7826_v0 = vld [vmem:[#allocation2 + $0x1c] sm:$0xf]  ;;  %v8104_v58 = vld [vmem:[#allocation2 + $0x54] sm:$0xf]  ;;  %v13712_v40 = vld [vmem:[#allocation3 + $0x3f4] ss:$36 sps:$4 sm:$0xff]  }
 0x40a   : > { %v7412_v47 = vshrl.u32 %v7330_v6, 16  ;;  %v8164_v23 = vld [vmem:[#allocation2 + $0x30] sm:$0xf]  ;;  %v8105_v54 = vld [vmem:[#allocation2 + $0x58] sm:$0xf]  ;;  %v8238_v56 = vrot.slane %v8237_v42, 4  ;;  %10542 = vmatprep.mubr.bf16.mxu1 %v13712_v40 }
 0x40b   : > { %8136 = vst [vmem:[#allocation3 + $0x180] sm:$0xf] %v8104_v58  ;;  %v7401_v53 = vrot.slane %v7399_v52, 4  ;;  %v7404_v55 = vrot.slane %v7402_v15, 5  ;;  %v7410_v60 = vrot.slane %v7408_v3, 5  ;;  %v8248_v61 = vrot.slane %v8247_v39, 4 }
 0x40c   : > { %8137 = vst [vmem:[#allocation3 + $0x1a4] sm:$0xf] %v8105_v54  ;;  %v13718_v46 = vld [vmem:[#allocation3 + $0x444] ss:$36 sps:$4 sm:$0xff]   ;;  %v8252_v49 = vrot.slane %v8250_v36, 5  ;;  %v7418_v21 = vshll.u32 %v7331_v31, 16  ;;  %v8243_v5 = vsel %vm14247_vm13, %v8238_v56, %v8242_v44 }
 0x40d   : > { %v7405_v26 = vor.u32 %v7404_v55, %v7401_v53  ;;  %v7414_v33 = vrot.slane %v7412_v47, 4  ;;  %v7827_v1 = vld [vmem:[#allocation2 + $0x20] sm:$0x1]  ;;  %10711 = vmatprep.mubr.bf16.mxu0 %v13718_v46  ;;  %8624 = vst [vmem:[#allocation3 + $0x64] sm:$0xf] %v8243_v5  ;;  %v11875_v20 = vrot.slane %v7825_v28, 9 }
 0x40e   : > { %v8253_v2 = vsel %vm14247_vm13, %v8248_v61, %v8252_v49  ;;  %v7927_v51 = vrot.slane %v7826_v0, 5  ;;  %v8165_v29 = vld [vmem:[#allocation2 + $0x34] sm:$0xf]  ;;  %v8166_v18 = vld [vmem:[#allocation2 + $0x38] sm:$0x1]  ;;  %v8255_v32 = vshrl.u32 %v8164_v23, 16 }
 0x40f   : > { %8625 = vst [vmem:[#allocation3 + $0x88] sm:$0xf] %v8253_v2  ;;  %v7406_v7 = vrot.slane %v7405_v26, 4  ;;  %v7415_v10 = vor.u32 %v7414_v33, %v7410_v60  ;;  %v8258_v30 = vshll.u32 %v8164_v23, 16  ;;  %v7420_v34 = vrot.slane %v7418_v21, 5 }
 0x410   : > { %v7928_v13 = vsel %vm14224_vm10, %v11875_v20, %v7927_v51  ;;  %v7929_v11 = vrot.slane %v7927_v51, 4  ;;  %v7930_v25 = vrot.slane %v7827_v1, 5  ;;  %v7332_v24 = vld [vmem:[#allocation2 + $0x24] sm:$0xf]  ;;  %v8257_v8 = vrot.slane %v8255_v32, 4 }
 0x411   : > { %v7411_v50 = vsel %vm14247_vm13, %v7406_v7, %v7410_v60  ;;  %v7416_v37 = vrot.slane %v7415_v10, 4  ;;  %8064 = vst [vmem:[#allocation3 + $0x5c] sm:$0xf] %v7928_v13  ;;  %v8260_v19 = vrot.slane %v8258_v30, 5  ;;  %v7333_v62 = vld [vmem:[#allocation2 + $0x28] sm:$0xf] }
 0x412   : > { %v13710_v12 = vld [vmem:[#allocation3 + $0x3f0] ss:$36 sps:$4 sm:$0xff]   ;;  %7792 = vst [vmem:[#allocation3 + $0x58] sm:$0xf] %v7411_v50  ;;  %v7931_v22 = vsel %vm14224_vm10, %v7929_v11, %v7930_v25  ;;  %v8264_v17 = vshll.u32 %v8165_v29, 16  ;;  %v8268_v63 = vshrl.u32 %v8165_v29, 16 }
 0x413   : > { %v7334_v48 = vld [vmem:[#allocation2 + $0x2c] sm:$0x1]  ;;  %v13716_v43 = vld [vmem:[#allocation3 + $0x440] ss:$36 sps:$4 sm:$0xff]   ;;  %v7421_v4 = vsel %vm14247_vm13, %v7416_v37, %v7420_v34  ;;  %8065 = vst [vmem:[#allocation3 + $0x80] sm:$0xf] %v7931_v22  ;;  %v8261_v6 = vor.u32 %v8260_v19, %v8257_v8  ;;  %10543 = vmatmul.mubr.bf16.gmra.mxu1 %v13710_v12 }
 0x414   : > { %v13723_v14 = vld [vmem:[#allocation3 + $0x43c] ss:$36 sps:$4 sm:$0xff]   ;;  %v7423_v38 = vshrl.u32 %v7332_v24, 16  ;;  %v7426_v9 = vshll.u32 %v7332_v24, 16  ;;  %v7828_v31 = vld [vmem:[#allocation2 + $0x24] sm:$0xe]  ;;  %10712 = vmatmul.mubr.bf16.gmra.mxu0 %v13716_v43 }
 0x415   : > { %v7829_v41 = vld [vmem:[#allocation2 + $0x28] sm:$0xf]  ;;  %v13731_v35 = vld [vmem:[#allocation3 + $0x1c] ss:$36 sps:$4 sm:$0xff]   ;;  %7793 = vst [vmem:[#allocation3 + $0x7c] sm:$0xf] %v7421_v4  ;;  %10550 = vmatprep.mubr.bf16.mxu1 %v13723_v14 }
 0x416   : > { %v8266_v44 = vrot.slane %v8264_v17, 5  ;;  %v8270_v45 = vrot.slane %v8268_v63, 4  ;;  %v8274_v36 = vshll.u32 %v8166_v18, 16  ;;  %v7432_v57 = vshll.u32 %v7333_v62, 16  ;;  %10913 = vmatprep.mubr.bf16.mxu0 %v13731_v35  ;;  %v7830_v58 = vld [vmem:[#allocation2 + $0x2c] sm:$0x1] }
 0x417   : > { %v8262_v42 = vrot.slane %v8261_v6, 4  ;;  %v7425_v52 = vrot.slane %v7423_v38, 4  ;;  %v7428_v15 = vrot.slane %v7426_v9, 5  ;;  %v7436_v3 = vshrl.u32 %v7333_v62, 16  ;;  %v8167_v40 = vld [vmem:[#allocation2 + $0x3c] sm:$0xf]  ;;  %v12686_v38 = vpop.f32.mrf.mxu1 }
 0x418   : > { %v8271_v28 = vor.u32 %v8270_v45, %v8266_v44  ;;  %v7434_v0 = vrot.slane %v7432_v57, 5  ;;  %v7442_v54 = vshll.u32 %v7334_v48, 16  ;;  %v8168_v56 = vld [vmem:[#allocation2 + $0x40] sm:$0xf]  ;;  %v8107_v55 = vld [vmem:[#allocation2 + $0x64] sm:$0xf] }
 0x419   : > { %v8267_v39 = vsel %vm14247_vm13, %v8262_v42, %v8266_v44  ;;  %v7429_v47 = vor.u32 %v7428_v15, %v7425_v52  ;;  %v7438_v23 = vrot.slane %v7436_v3, 4  ;;  %v8106_v53 = vld [vmem:[#allocation2 + $0x60] sm:$0xf]  ;;  %v8276_v46 = vrot.slane %v8274_v36, 5  ;;  %v15954_v21 = vld [vmem:[#allocation2 + $0x44] sm:$0x1] }
 0x41a   : > { %v8272_v60 = vrot.slane %v8271_v28, 4  ;;  %8626 = vst [vmem:[#allocation3 + $0xac] sm:$0xf] %v8267_v39  ;;  %v11876_v61 = vrot.slane %v7828_v31, 9  ;;  %v7934_v49 = vrot.slane %v7829_v41, 5  ;;  %v7937_v1 = vrot.slane %v7830_v58, 5 }
 0x41b   : > { %v7335_v5 = vld [vmem:[#allocation2 + $0x30] sm:$0xf]  ;;  %8138 = vst [vmem:[#allocation3 + $0x1c8] sm:$0xf] %v8106_v53  ;;  %8139 = vst [vmem:[#allocation3 + $0x1ec] sm:$0xf] %v8107_v55  ;;  %v7439_v33 = vor.u32 %v7438_v23, %v7434_v0  ;;  %v12687_v55 = vpop.f32.mrf.mxu1 }
 0x41c   : > { %v7430_v26 = vrot.slane %v7429_v47, 4  ;;  %v8279_v2 = vshrl.u32 %v8167_v40, 16  ;;  %v7336_v20 = vld [vmem:[#allocation2 + $0x34] sm:$0xf]  ;;  %v8277_v7 = vsel %vm14247_vm13, %v8272_v60, %v8276_v46  ;;  %v7935_v10 = vsel %vm14224_vm10, %v11876_v61, %v7934_v49  ;;  %v13734_v30 = vld [vmem:[#allocation3 + $0x14] ss:$36 sps:$4 sm:$0xff]  }
 0x41d   : > { %v13721_v51 = vld [vmem:[#allocation3 + $0x438] ss:$36 sps:$4 sm:$0xff]   ;;  %v7936_v18 = vrot.slane %v7934_v49, 4  ;;  %v8282_v32 = vshll.u32 %v8167_v40, 16  ;;  %8627 = vst [vmem:[#allocation3 + $0xd0] sm:$0xf] %v8277_v7 }
 0x41e   : > { %v13729_v29 = vld [vmem:[#allocation3 + $0x18] ss:$36 sps:$4 sm:$0xff]   ;;  %v7435_v34 = vsel %vm14247_vm13, %v7430_v26, %v7434_v0  ;;  %v7440_v13 = vrot.slane %v7439_v33, 4  ;;  %v7444_v11 = vrot.slane %v7442_v54, 5  ;;  %8066 = vst [vmem:[#allocation3 + $0xa4] sm:$0xf] %v7935_v10  ;;  %10551 = vmatmul.mubr.bf16.gmra.mxu1 %v13721_v51 }
 0x41f   : > { %v15962_v25 = vld [vmem:[#allocation2 + $0x38] sm:$0x1]  ;;  %v13739_v24 = vld [vmem:[#allocation3 + $0x64] ss:$36 sps:$4 sm:$0xff]   ;;  %7794 = vst [vmem:[#allocation3 + $0xa0] sm:$0xf] %v7435_v34  ;;  %v7938_v50 = vsel %vm14224_vm10, %v7936_v18, %v7937_v1  ;;  %10752 = vmatprep.mubr.bf16.mxu1 %v13734_v30  ;;  %10914 = vmatmul.mubr.bf16.vlgmr.msra.gmra.mxu0 %v13729_v29  ;;  %v12795_v34 = vpop.f32.mrf.mxu0 }
 0x420   : > { %v8281_v37 = vrot.slane %v8279_v2, 4  ;;  %v8284_v8 = vrot.slane %v8282_v32, 5  ;;  %v8288_v19 = vshll.u32 %v8168_v56, 16  ;;  %v7445_v62 = vsel %vm14247_vm13, %v7440_v13, %v7444_v11  ;;  %8067 = vst [vmem:[#allocation3 + $0xc8] sm:$0xf] %v7938_v50  ;;  %10921 = vmatprep.mubr.bf16.mxu0 %v13739_v24  ;;  %v15970_v3 = vld [vmem:[#allocation9 + $0x230] sm:$0xff]  }
 0x421   : > { %v8292_v12 = vshrl.u32 %v8168_v56, 16  ;;  %v8298_v22 = vshll.u32 %v15954_v21, 16  ;;  %v7447_v17 = vshrl.u32 %v7335_v5, 16  ;;  %v7831_v63 = vld [vmem:[#allocation2 + $0x30] sm:$0xe]  ;;  %v7450_v14 = vshll.u32 %v7335_v5, 16 }
 0x422   : > { %7795 = vst [vmem:[#allocation3 + $0xc4] sm:$0xf] %v7445_v62  ;;  %v8285_v48 = vor.u32 %v8284_v8, %v8281_v37  ;;  %v8290_v43 = vrot.slane %v8288_v19, 5  ;;  %v7456_v4 = vshll.u32 %v7336_v20, 16  ;;  %v7832_v6 = vld [vmem:[#allocation2 + $0x34] sm:$0xf]  ;;  %v15978_v13 = vadd.f32 %v12687_v55, %v12686_v38 }
 0x423   : > { %v8294_v9 = vrot.slane %v8292_v12, 4  ;;  %v7449_v31 = vrot.slane %v7447_v17, 4  ;;  %v7460_v41 = vshrl.u32 %v7336_v20, 16  ;;  %v7833_v35 = vld [vmem:[#allocation2 + $0x38] sm:$0x1]  ;;  %v7452_v45 = vrot.slane %v7450_v14, 5 }
 0x424   : > { %v8286_v44 = vrot.slane %v8285_v48, 4  ;;  %v7458_v36 = vrot.slane %v7456_v4, 5  ;;  %v7466_v57 = vshll.u32 %v15962_v25, 16  ;;  %v8170_v42 = vld [vmem:[#allocation2 + $0x48] sm:$0xf]  ;;  %v11877_v0 = vrot.slane %v7831_v63, 9  ;;  %v12796_v63 = vpop.f32.mrf.mxu0 }
 0x425   : > { %v13732_v52 = vld [vmem:[#allocation3 + $0x10] ss:$36 sps:$4 sm:$0xff]   ;;  %v8295_v15 = vor.u32 %v8294_v9, %v8290_v43  ;;  %v7462_v28 = vrot.slane %v7460_v41, 4  ;;  %v7941_v58 = vrot.slane %v7832_v6, 5  ;;  %v13737_v40 = vld [vmem:[#allocation3 + $0x60] ss:$36 sps:$4 sm:$0xff]   ;;  %v7453_v54 = vor.u32 %v7452_v45, %v7449_v31 }
 0x426   : > { %v13743_v39 = vld [vmem:[#allocation3 + $0x5c] ss:$36 sps:$4 sm:$0xff]   ;;  %v8291_v47 = vsel %vm14247_vm13, %v8286_v44, %v8290_v43  ;;  %v8300_v23 = vrot.slane %v8298_v22, 5  ;;  %v8171_v56 = vld [vmem:[#allocation2 + $0x4c] sm:$0xf]  ;;  %10753 = vmatmul.mubr.bf16.vlgmr.msra.gmra.mxu1 %v13732_v52  ;;  %v7944_v1 = vrot.slane %v7833_v35, 5  ;;  %v12798_v44 = vpop.f32.mrf.mxu0 }
 0x427   : > { %v8172_v53 = vld [vmem:[#allocation2 + $0x50] sm:$0x1]  ;;  %v8296_v60 = vrot.slane %v8295_v15, 4  ;;  %8628 = vst [vmem:[#allocation3 + $0xf4] sm:$0xf] %v8291_v47  ;;  %v7463_v46 = vor.u32 %v7462_v28, %v7458_v36  ;;  %v7942_v61 = vsel %vm14224_vm10, %v11877_v0, %v7941_v58  ;;  %v7943_v49 = vrot.slane %v7941_v58, 4  ;;  %10760 = vmatprep.mubr.bf16.mxu1 %v13743_v39  ;;  %10922 = vmatmul.mubr.bf16.gmra.mxu0 %v13737_v40 }
 0x428   : > { %v7338_v21 = vld [vmem:[#allocation2 + $0x3c] sm:$0xf]  ;;  %v7339_v5 = vld [vmem:[#allocation2 + $0x40] sm:$0xf]  ;;  %v8108_v26 = vld [vmem:[#allocation2 + $0x6c] sm:$0xf]  ;;  %v12799_v39 = vpop.f32.mrf.mxu0 }
 0x429   : > { %v7454_v33 = vrot.slane %v7453_v54, 4  ;;  %8068 = vst [vmem:[#allocation3 + $0xec] sm:$0xf] %v7942_v61  ;;  %v8303_v2 = vshrl.u32 %v8170_v42, 16  ;;  %v8306_v20 = vshll.u32 %v8170_v42, 16  ;;  %v13853_v29 = vld [vmem:[#allocation9 + $0x238] sm:$0xff]   ;;  %v8301_v10 = vsel %vm14247_vm13, %v8296_v60, %v8300_v23 }
 0x42a   : > { %v8109_v51 = vld [vmem:[#allocation2 + $0x70] sm:$0xf]  ;;  %8140 = vst [vmem:[#allocation3 + $0x210] sm:$0xf] %v8108_v26  ;;  %13188 = vmatpush3.bf16.msra.mxu1 %v13853_v29  ;;  %v13746_v7 = vld [vmem:[#allocation3 + $0xac] ss:$36 sps:$4 sm:$0xff]   ;;  %v7945_v25 = vsel %vm14224_vm10, %v7943_v49, %v7944_v1 }
 0x42b   : > { %v7464_v18 = vrot.slane %v7463_v46, 4  ;;  %v7468_v32 = vrot.slane %v7466_v57, 5  ;;  %v13766_v30 = vld [vmem:[#allocation9 + $0x228] sm:$0xff]   ;;  %8141 = vst [vmem:[#allocation3 + $0x234] sm:$0xf] %v8109_v51  ;;  %13189 = vmatprep.subr.bf16.mxu1 %v15970_v3  ;;  %v7459_v11 = vsel %vm14247_vm13, %v7454_v33, %v7458_v36  ;;  %v8305_v24 = vrot.slane %v8303_v2, 4  ;;  %10929 = vmatprep.mubr.bf16.mxu0 %v13746_v7 }
 0x42c   : > { %8629 = vst [vmem:[#allocation3 + $0x118] sm:$0xf] %v8301_v10  ;;  %v8308_v50 = vrot.slane %v8306_v20, 5  ;;  %v7340_v37 = vld [vmem:[#allocation2 + $0x44] sm:$0x1]  ;;  %v8312_v62 = vshll.u32 %v8171_v56, 16 }
 0x42d   : > { %v7834_v8 = vld [vmem:[#allocation2 + $0x3c] sm:$0xe]  ;;  %v7469_v19 = vsel %vm14247_vm13, %v7464_v18, %v7468_v32  ;;  %7796 = vst [vmem:[#allocation3 + $0xe8] sm:$0xf] %v7459_v11  ;;  %8069 = vst [vmem:[#allocation3 + $0x110] sm:$0xf] %v7945_v25 }
 0x42e   : > { %v8316_v12 = vshrl.u32 %v8171_v56, 16  ;;  %v8322_v22 = vshll.u32 %v8172_v53, 16  ;;  %v7835_v17 = vld [vmem:[#allocation2 + $0x40] sm:$0xf]  ;;  %7797 = vst [vmem:[#allocation3 + $0x10c] sm:$0xf] %v7469_v19  ;;  %v8309_v48 = vor.u32 %v8308_v50, %v8305_v24  ;;  %13190 = vmatpush3.bf16.msra.mxu1 %v15970_v3 }
 0x42f   : > { %v7471_v43 = vshrl.u32 %v7338_v21, 16  ;;  %v7474_v14 = vshll.u32 %v7338_v21, 16  ;;  %v7480_v4 = vshll.u32 %v7339_v5, 16  ;;  %v7836_v6 = vld [vmem:[#allocation2 + $0x44] sm:$0x1]  ;;  %v8314_v9 = vrot.slane %v8312_v62, 5  ;;  %13191 = vmatprep.subr.bf16.mxu1 %v13766_v30 }
 0x430   : > { %v13741_v38 = vld [vmem:[#allocation3 + $0x58] ss:$36 sps:$4 sm:$0xff]   ;;  %v8318_v31 = vrot.slane %v8316_v12, 4  ;;  %v8324_v41 = vrot.slane %v8322_v22, 5  ;;  %v7484_v35 = vshrl.u32 %v7339_v5, 16  ;;  %v8310_v45 = vrot.slane %v8309_v48, 4 }
 0x431   : > { %v7473_v36 = vrot.slane %v7471_v43, 4  ;;  %v7476_v57 = vrot.slane %v7474_v14, 5  ;;  %v7482_v42 = vrot.slane %v7480_v4, 5  ;;  %v13779_v52 = vld [vmem:[#allocation9 + $0x220] sm:$0xff]   ;;  %v7490_v58 = vshll.u32 %v7340_v37, 16  ;;  %10761 = vmatmul.mubr.bf16.gmra.mxu1 %v13741_v38  ;;  %v15990_v55 = vld [vmem:[#allocation9 + $0x218] sm:$0xff]  }
 0x432   : > { %v13749_v15 = vld [vmem:[#allocation3 + $0xa4] ss:$36 sps:$4 sm:$0xff]   ;;  %v8319_v28 = vor.u32 %v8318_v31, %v8314_v9  ;;  %v7486_v0 = vrot.slane %v7484_v35, 4  ;;  %v11878_v40 = vrot.slane %v7834_v8, 9  ;;  %v8315_v3 = vsel %vm14247_vm13, %v8310_v45, %v8314_v9  ;;  %v8173_v53 = vld [vmem:[#allocation2 + $0x54] sm:$0xf]  ;;  %13192 = vmatpush3.bf16.msra.mxu1 %v13766_v30 }
 0x433   : > { %v13744_v47 = vld [vmem:[#allocation3 + $0xa8] ss:$36 sps:$4 sm:$0xff]   ;;  %v7477_v23 = vor.u32 %v7476_v57, %v7473_v36  ;;  %v7948_v54 = vrot.slane %v7835_v17, 5  ;;  %v7951_v56 = vrot.slane %v7836_v6, 5  ;;  %10768 = vmatprep.mubr.bf16.mxu1 %v13749_v15  ;;  %v13752_v60 = vld [vmem:[#allocation3 + $0xf4] ss:$36 sps:$4 sm:$0xff]   ;;  %v12797_v21 = vadd.f32 %v12796_v63, %v12795_v34  ;;  %13193 = vmatprep.subr.bf16.mxu1 %v13779_v52 }
 0x434   : > { %v8320_v46 = vrot.slane %v8319_v28, 4  ;;  %8630 = vst [vmem:[#allocation3 + $0x13c] sm:$0xf] %v8315_v3  ;;  %v7487_v61 = vor.u32 %v7486_v0, %v7482_v42  ;;  %v8174_v49 = vld [vmem:[#allocation2 + $0x58] sm:$0xf]  ;;  %v12800_v5 = vadd.f32 %v12799_v39, %v12798_v44  ;;  %10930 = vmatmul.mubr.bf16.gmra.mxu0 %v13744_v47  ;;  %v7492_v33 = vrot.slane %v7490_v58, 5 }
 0x435   : > { %v7478_v26 = vrot.slane %v7477_v23, 4  ;;  %v7949_v1 = vsel %vm14224_vm10, %v11878_v40, %v7948_v54  ;;  %v7950_v2 = vrot.slane %v7948_v54, 4  ;;  %v15994_v20 = vld [vmem:[#allocation2 + $0x5c] sm:$0x1]  ;;  %10937 = vmatprep.mubr.bf16.mxu0 %v13752_v60  ;;  %v7341_v7 = vld [vmem:[#allocation2 + $0x48] sm:$0xf]  ;;  %v15999_v18 = vadd.f32 %v12797_v21, %v15906_v16 }
 0x436   : > { %v8325_v51 = vsel %vm14247_vm13, %v8320_v46, %v8324_v41  ;;  %v7488_v29 = vrot.slane %v7487_v61, 4  ;;  %8070 = vst [vmem:[#allocation3 + $0x134] sm:$0xf] %v7949_v1  ;;  %v7342_v10 = vld [vmem:[#allocation2 + $0x4c] sm:$0xf]  ;;  %v16002_v32 = vadd.f32 %v12800_v5, %v15978_v13  ;;  %v8327_v11 = vshrl.u32 %v8173_v53, 16  ;;  %13194 = vmatpush3.bf16.msra.mxu1 %v13779_v52 }
 0x437   : > { %8631 = vst [vmem:[#allocation3 + $0x160] sm:$0xf] %v8325_v51  ;;  %v7483_v30 = vsel %vm14247_vm13, %v7478_v26, %v7482_v42  ;;  %v7952_v34 = vsel %vm14224_vm10, %v7950_v2, %v7951_v56  ;;  %v8330_v25 = vshll.u32 %v8173_v53, 16  ;;  %v8110_v24 = vld [vmem:[#allocation2 + $0x78] sm:$0xf]  ;;  %v13805_v37 = vld [vmem:[#allocation9 + $0x210] sm:$0xff]   ;;  %13195 = vmatprep.subr.bf16.mxu1 %v15990_v55 }
 0x438   : > { %v8111_v50 = vld [vmem:[#allocation2 + $0x7c] sm:$0xf]  ;;  %v7493_v8 = vsel %vm14247_vm13, %v7488_v29, %v7492_v33  ;;  %7798 = vst [vmem:[#allocation3 + $0x130] sm:$0xf] %v7483_v30  ;;  %8071 = vst [vmem:[#allocation3 + $0x158] sm:$0xf] %v7952_v34 }
 0x439   : > { %v8336_v16 = vshll.u32 %v8174_v49, 16  ;;  %v8340_v13 = vshrl.u32 %v8174_v49, 16  ;;  %v7343_v19 = vld [vmem:[#allocation2 + $0x50] sm:$0x1]  ;;  %v7838_v62 = vld [vmem:[#allocation2 + $0x4c] sm:$0xf] }
 0x43a   : > { %8142 = vst [vmem:[#allocation3 + $0x258] sm:$0xf] %v8110_v24  ;;  %8143 = vst [vmem:[#allocation3 + $0x27c] sm:$0xf] %v8111_v50  ;;  %v13747_v12 = vld [vmem:[#allocation3 + $0xa0] ss:$36 sps:$4 sm:$0xff]   ;;  %13196 = vmatpush3.bf16.msra.mxu1 %v15990_v55 }
 0x43b   : > { %7799 = vst [vmem:[#allocation3 + $0x154] sm:$0xf] %v7493_v8  ;;  %v8329_v22 = vrot.slane %v8327_v11, 4  ;;  %v8332_v17 = vrot.slane %v8330_v25, 5  ;;  %v7495_v63 = vshrl.u32 %v7341_v7, 16  ;;  %v7498_v48 = vshll.u32 %v7341_v7, 16  ;;  %10769 = vmatmul.mubr.bf16.gmra.mxu1 %v13747_v12  ;;  %13197 = vmatprep.subr.bf16.mxu1 %v13805_v37 }
 0x43c   : > { %v7837_v43 = vld [vmem:[#allocation2 + $0x48] sm:$0xe]  ;;  %v8338_v4 = vrot.slane %v8336_v16, 5  ;;  %v8342_v6 = vrot.slane %v8340_v13, 4  ;;  %v8346_v38 = vshll.u32 %v15994_v20, 16  ;;  %v7504_v9 = vshll.u32 %v7342_v10, 16 }
 0x43d   : > { %v13756_v14 = vld [vmem:[#allocation3 + $0xec] ss:$36 sps:$4 sm:$0xff]   ;;  %v8333_v41 = vor.u32 %v8332_v17, %v8329_v22  ;;  %v7497_v35 = vrot.slane %v7495_v63, 4  ;;  %v7500_v44 = vrot.slane %v7498_v48, 5  ;;  %v7508_v45 = vshrl.u32 %v7342_v10, 16  ;;  %v13828_v30 = vld [vmem:[#allocation9 + $0x200] sm:$0xff]  }
 0x43e   : > { %v13750_v31 = vld [vmem:[#allocation3 + $0xf0] ss:$36 sps:$4 sm:$0xff]   ;;  %10776 = vmatprep.mubr.bf16.mxu1 %v13756_v14  ;;  %v8343_v36 = vor.u32 %v8342_v6, %v8338_v4  ;;  %v7506_v57 = vrot.slane %v7504_v9, 5  ;;  %v7514_v42 = vshll.u32 %v7343_v19, 16  ;;  %v7839_v52 = vld [vmem:[#allocation2 + $0x50] sm:$0x1]  ;;  %13198 = vmatpush3.bf16.msra.mxu1 %v13805_v37 }
 0x43f   : > { %v8176_v15 = vld [vmem:[#allocation2 + $0x60] sm:$0xf]  ;;  %10938 = vmatmul.mubr.bf16.gmra.mxu0 %v13750_v31  ;;  %v8334_v28 = vrot.slane %v8333_v41, 4  ;;  %v7501_v0 = vor.u32 %v7500_v44, %v7497_v35  ;;  %v7510_v58 = vrot.slane %v7508_v45, 4  ;;  %v7955_v40 = vrot.slane %v7838_v62, 5 }
 0x440   : > { %v8177_v39 = vld [vmem:[#allocation2 + $0x64] sm:$0xf]  ;;  %v13759_v3 = vld [vmem:[#allocation3 + $0x13c] ss:$36 sps:$4 sm:$0xff]   ;;  %v8344_v23 = vrot.slane %v8343_v36, 4  ;;  %v8348_v54 = vrot.slane %v8346_v38, 5 }
 0x441   : > { %v13818_v47 = vld [vmem:[#allocation9 + $0x208] sm:$0xff]   ;;  %v11879_v56 = vrot.slane %v7837_v43, 9  ;;  %v8339_v53 = vsel %vm14247_vm13, %v8334_v28, %v8338_v4  ;;  %v7502_v60 = vrot.slane %v7501_v0, 4  ;;  %v7511_v46 = vor.u32 %v7510_v58, %v7506_v57  ;;  %v16015_v61 = vld [vmem:[#allocation2 + $0x68] sm:$0x1]  ;;  %10945 = vmatprep.mubr.bf16.mxu0 %v13759_v3 }
 0x442   : > { %v7344_v55 = vld [vmem:[#allocation2 + $0x54] sm:$0xf]  ;;  %v13754_v49 = vld [vmem:[#allocation3 + $0xe8] ss:$36 sps:$4 sm:$0xff]   ;;  %v8349_v21 = vsel %vm14247_vm13, %v8344_v23, %v8348_v54  ;;  %8632 = vst [vmem:[#allocation3 + $0x184] sm:$0xf] %v8339_v53  ;;  %13199 = vmatprep.subr.bf16.mxu1 %v13818_v47 }
 0x443   : > { %v7516_v5 = vrot.slane %v7514_v42, 5  ;;  %v7956_v26 = vsel %vm14224_vm10, %v11879_v56, %v7955_v40  ;;  %v7957_v33 = vrot.slane %v7955_v40, 4  ;;  %v7345_v1 = vld [vmem:[#allocation2 + $0x58] sm:$0xf]  ;;  %v13757_v2 = vld [vmem:[#allocation3 + $0x138] ss:$36 sps:$4 sm:$0xff]   ;;  %v7507_v20 = vsel %vm14247_vm13, %v7502_v60, %v7506_v57  ;;  %10777 = vmatmul.mubr.bf16.gmra.mxu1 %v13754_v49 }
 0x444   : > { %8633 = vst [vmem:[#allocation3 + $0x1a8] sm:$0xf] %v8349_v21  ;;  %v7512_v51 = vrot.slane %v7511_v46, 4  ;;  %v7958_v29 = vrot.slane %v7839_v52, 5  ;;  %8072 = vst [vmem:[#allocation3 + $0x17c] sm:$0xf] %v7956_v26  ;;  %13200 = vmatpush3.bf16.msra.mxu1 %v13818_v47 }
 0x445   : > { %v8351_v7 = vshrl.u32 %v8176_v15, 16  ;;  %v16023_v10 = vld [vmem:[#allocation2 + $0x5c] sm:$0x1]  ;;  %v13762_v34 = vld [vmem:[#allocation3 + $0x134] ss:$36 sps:$4 sm:$0xff]   ;;  %v8354_v11 = vshll.u32 %v8176_v15, 16  ;;  %13201 = vmatprep.subr.bf16.mxu1 %v13828_v30 }
 0x446   : > { %7800 = vst [vmem:[#allocation3 + $0x178] sm:$0xf] %v7507_v20  ;;  %v8360_v25 = vshll.u32 %v8177_v39, 16  ;;  %v8364_v24 = vshrl.u32 %v8177_v39, 16  ;;  %v7517_v50 = vsel %vm14247_vm13, %v7512_v51, %v7516_v5  ;;  %v7959_v37 = vsel %vm14224_vm10, %v7957_v33, %v7958_v29  ;;  %v8112_v13 = vld [vmem:[#allocation2 + $0x84] sm:$0xf]  ;;  %10784 = vmatprep.mubr.bf16.mxu1 %v13762_v34 }
 0x447   : > { %v8353_v8 = vrot.slane %v8351_v7, 4  ;;  %v7519_v16 = vshrl.u32 %v7344_v55, 16  ;;  %v8113_v19 = vld [vmem:[#allocation2 + $0x88] sm:$0xf]  ;;  %7801 = vst [vmem:[#allocation3 + $0x19c] sm:$0xf] %v7517_v50  ;;  %10946 = vmatmul.mubr.bf16.gmra.mxu0 %v13757_v2 }
 0x448   : > { %8073 = vst [vmem:[#allocation3 + $0x1a0] sm:$0xf] %v7959_v37  ;;  %v8356_v62 = vrot.slane %v8354_v11, 5  ;;  %v8362_v12 = vrot.slane %v8360_v25, 5  ;;  %v8366_v22 = vrot.slane %v8364_v24, 4  ;;  %v8370_v17 = vshll.u32 %v16015_v61, 16  ;;  %13202 = vmatpush3.bf16.msra.mxu1 %v13828_v30 }
 0x449   : > { %v7841_v63 = vld [vmem:[#allocation2 + $0x58] sm:$0xf]  ;;  %8144 = vst [vmem:[#allocation3 + $0x2a0] sm:$0xf] %v8112_v13  ;;  %8145 = vst [vmem:[#allocation3 + $0x2c4] sm:$0xf] %v8113_v19 }
 0x44a   : > { %v7521_v48 = vrot.slane %v7519_v16, 4  ;;  %v7522_v43 = vshll.u32 %v7344_v55, 16  ;;  %v7528_v14 = vshll.u32 %v7345_v1, 16  ;;  %v7532_v4 = vshrl.u32 %v7345_v1, 16  ;;  %v7840_v6 = vld [vmem:[#allocation2 + $0x54] sm:$0xe] }
 0x44b   : > { %v8357_v38 = vor.u32 %v8356_v62, %v8353_v8  ;;  %v8367_v9 = vor.u32 %v8366_v22, %v8362_v12  ;;  %v7538_v31 = vshll.u32 %v16023_v10, 16  ;;  %v7842_v41 = vld [vmem:[#allocation2 + $0x5c] sm:$0x1]  ;;  %v7962_v36 = vrot.slane %v7841_v63, 5  ;;  %v8179_v57 = vld [vmem:[#allocation2 + $0x6c] sm:$0xf] }
 0x44c   : > { %v7524_v35 = vrot.slane %v7522_v43, 5  ;;  %v7530_v44 = vrot.slane %v7528_v14, 5  ;;  %v7534_v45 = vrot.slane %v7532_v4, 4  ;;  %v13765_v42 = vld [vmem:[#allocation3 + $0x184] ss:$36 sps:$4 sm:$0xff]   ;;  %v11880_v15 = vrot.slane %v7840_v6, 9 }
 0x44d   : > { %v8358_v52 = vrot.slane %v8357_v38, 4  ;;  %v8180_v28 = vld [vmem:[#allocation2 + $0x70] sm:$0xf]  ;;  %v13760_v0 = vld [vmem:[#allocation3 + $0x130] ss:$36 sps:$4 sm:$0xff]   ;;  %v8368_v58 = vrot.slane %v8367_v9, 4  ;;  %10953 = vmatprep.mubr.bf16.mxu0 %v13765_v42  ;;  %v12801_v42 = vpop.f32.mrf.mxu0 }
 0x44e   : > { %v8372_v40 = vrot.slane %v8370_v17, 5  ;;  %v7525_v39 = vor.u32 %v7524_v35, %v7521_v48  ;;  %v7535_v47 = vor.u32 %v7534_v45, %v7530_v44  ;;  %v13763_v3 = vld [vmem:[#allocation3 + $0x180] ss:$36 sps:$4 sm:$0xff]   ;;  %v7963_v54 = vsel %vm14224_vm10, %v11880_v15, %v7962_v36  ;;  %v8181_v60 = vld [vmem:[#allocation2 + $0x74] sm:$0x1]  ;;  %10785 = vmatmul.mubr.bf16.gmra.mxu1 %v13760_v0 }
 0x44f   : > { %v8363_v23 = vsel %vm14247_vm13, %v8358_v52, %v8362_v12  ;;  %v7964_v56 = vrot.slane %v7962_v36, 4  ;;  %v7965_v53 = vrot.slane %v7842_v41, 5  ;;  %v7347_v46 = vld [vmem:[#allocation2 + $0x60] sm:$0xf]  ;;  %v13769_v61 = vld [vmem:[#allocation3 + $0x17c] ss:$36 sps:$4 sm:$0xff]   ;;  %10954 = vmatmul.mubr.bf16.gmra.mxu0 %v13763_v3 }
 0x450   : > { %v8373_v55 = vsel %vm14247_vm13, %v8368_v58, %v8372_v40  ;;  %8634 = vst [vmem:[#allocation3 + $0x1cc] sm:$0xf] %v8363_v23  ;;  %v7526_v49 = vrot.slane %v7525_v39, 4  ;;  %v7540_v21 = vrot.slane %v7538_v31, 5  ;;  %8074 = vst [vmem:[#allocation3 + $0x1c4] sm:$0xf] %v7963_v54  ;;  %10792 = vmatprep.mubr.bf16.mxu1 %v13769_v61 }
 0x451   : > { %v7348_v5 = vld [vmem:[#allocation2 + $0x64] sm:$0xf]  ;;  %8635 = vst [vmem:[#allocation3 + $0x1f0] sm:$0xf] %v8373_v55  ;;  %v7536_v26 = vrot.slane %v7535_v47, 4  ;;  %v7966_v33 = vsel %vm14224_vm10, %v7964_v56, %v7965_v53  ;;  %v8375_v1 = vshrl.u32 %v8179_v57, 16  ;;  %v12802_v56 = vpop.f32.mrf.mxu0 }
 0x452   : > { %v8378_v2 = vshll.u32 %v8179_v57, 16  ;;  %v16039_v20 = vld [vmem:[#allocation2 + $0x68] sm:$0x1]  ;;  %v7531_v51 = vsel %vm14247_vm13, %v7526_v49, %v7530_v44  ;;  %8075 = vst [vmem:[#allocation3 + $0x1e8] sm:$0xf] %v7966_v33  ;;  %v8384_v29 = vshll.u32 %v8180_v28, 16  ;;  %v16052_v61 = vadd.f32 %v12802_v56, %v12801_v42 }
 0x453   : > { %v8388_v7 = vshrl.u32 %v8180_v28, 16  ;;  %v7843_v10 = vld [vmem:[#allocation2 + $0x60] sm:$0xe]  ;;  %v7844_v30 = vld [vmem:[#allocation2 + $0x64] sm:$0xf]  ;;  %v7541_v34 = vsel %vm14247_vm13, %v7536_v26, %v7540_v21  ;;  %v8377_v11 = vrot.slane %v8375_v1, 4 }
 0x454   : > { %7802 = vst [vmem:[#allocation3 + $0x1c0] sm:$0xf] %v7531_v51  ;;  %v8380_v25 = vrot.slane %v8378_v2, 5  ;;  %v7543_v24 = vshrl.u32 %v7347_v46, 16  ;;  %v8114_v50 = vld [vmem:[#allocation2 + $0x90] sm:$0xf] }
 0x455   : > { %7803 = vst [vmem:[#allocation3 + $0x1e4] sm:$0xf] %v7541_v34  ;;  %v8386_v37 = vrot.slane %v8384_v29, 5  ;;  %v8390_v8 = vrot.slane %v8388_v7, 4  ;;  %v8394_v16 = vshll.u32 %v8181_v60, 16  ;;  %v7546_v13 = vshll.u32 %v7347_v46, 16 }
 0x456   : > { %v8115_v19 = vld [vmem:[#allocation2 + $0x94] sm:$0xf]  ;;  %8146 = vst [vmem:[#allocation3 + $0x2e8] sm:$0xf] %v8114_v50  ;;  %v8381_v62 = vor.u32 %v8380_v25, %v8377_v11  ;;  %v7545_v12 = vrot.slane %v7543_v24, 4  ;;  %v7552_v22 = vshll.u32 %v7348_v5, 16 }
 0x457   : > { %v7556_v17 = vshrl.u32 %v7348_v5, 16  ;;  %v7845_v63 = vld [vmem:[#allocation2 + $0x68] sm:$0x1]  ;;  %8147 = vst [vmem:[#allocation3 + $0x30c] sm:$0xf] %v8115_v19  ;;  %v8391_v43 = vor.u32 %v8390_v8, %v8386_v37  ;;  %v7548_v14 = vrot.slane %v7546_v13, 5 }
 0x458   : > { %v13767_v48 = vld [vmem:[#allocation3 + $0x178] ss:$36 sps:$4 sm:$0xff]   ;;  %v7562_v4 = vshll.u32 %v16039_v20, 16  ;;  %v11881_v6 = vrot.slane %v7843_v10, 9  ;;  %v8382_v38 = vrot.slane %v8381_v62, 4  ;;  %v7554_v9 = vrot.slane %v7552_v22, 5 }
 0x459   : > { %v7558_v31 = vrot.slane %v7556_v17, 4  ;;  %v7969_v41 = vrot.slane %v7844_v30, 5  ;;  %v8182_v35 = vld [vmem:[#allocation2 + $0x78] sm:$0xf]  ;;  %10793 = vmatmul.mubr.bf16.gmra.mxu1 %v13767_v48  ;;  %v13772_v44 = vld [vmem:[#allocation3 + $0x1cc] ss:$36 sps:$4 sm:$0xff]   ;;  %v7549_v57 = vor.u32 %v7548_v14, %v7545_v12 }
 0x45a   : > { %v8392_v45 = vrot.slane %v8391_v43, 4  ;;  %v8396_v36 = vrot.slane %v8394_v16, 5  ;;  %v13770_v52 = vld [vmem:[#allocation3 + $0x1c8] ss:$36 sps:$4 sm:$0xff]   ;;  %v8387_v15 = vsel %vm14247_vm13, %v8382_v38, %v8386_v37  ;;  %v8183_v58 = vld [vmem:[#allocation2 + $0x7c] sm:$0xf]  ;;  %10961 = vmatprep.mubr.bf16.mxu0 %v13772_v44 }
 0x45b   : > { %v7559_v28 = vor.u32 %v7558_v31, %v7554_v9  ;;  %v7970_v0 = vsel %vm14224_vm10, %v11881_v6, %v7969_v41  ;;  %v8184_v40 = vld [vmem:[#allocation2 + $0x80] sm:$0x1]  ;;  %8636 = vst [vmem:[#allocation3 + $0x214] sm:$0xf] %v8387_v15  ;;  %v7550_v47 = vrot.slane %v7549_v57, 4  ;;  %v7971_v3 = vrot.slane %v7969_v41, 4  ;;  %10962 = vmatmul.mubr.bf16.gmra.mxu0 %v13770_v52 }
 0x45c   : > { %v8397_v39 = vsel %vm14247_vm13, %v8392_v45, %v8396_v36  ;;  %v7972_v23 = vrot.slane %v7845_v63, 5  ;;  %8076 = vst [vmem:[#allocation3 + $0x20c] sm:$0xf] %v7970_v0  ;;  %v7350_v54 = vld [vmem:[#allocation2 + $0x6c] sm:$0xf]  ;;  %v7564_v46 = vrot.slane %v7562_v4, 5 }
 0x45d   : > { %v13775_v53 = vld [vmem:[#allocation3 + $0x1c4] ss:$36 sps:$4 sm:$0xff]   ;;  %8637 = vst [vmem:[#allocation3 + $0x238] sm:$0xf] %v8397_v39  ;;  %v7560_v60 = vrot.slane %v7559_v28, 4  ;;  %v7555_v55 = vsel %vm14247_vm13, %v7550_v47, %v7554_v9  ;;  %v8399_v21 = vshrl.u32 %v8182_v35, 16 }
 0x45e   : > { %v7973_v49 = vsel %vm14224_vm10, %v7971_v3, %v7972_v23  ;;  %v8402_v5 = vshll.u32 %v8182_v35, 16  ;;  %v7351_v26 = vld [vmem:[#allocation2 + $0x70] sm:$0xf]  ;;  %v7352_v33 = vld [vmem:[#allocation2 + $0x74] sm:$0x1]  ;;  %10800 = vmatprep.mubr.bf16.mxu1 %v13775_v53  ;;  %v8408_v2 = vshll.u32 %v8183_v58, 16 }
 0x45f   : > { %v7565_v1 = vsel %vm14247_vm13, %v7560_v60, %v7564_v46  ;;  %7804 = vst [vmem:[#allocation3 + $0x208] sm:$0xf] %v7555_v55  ;;  %8077 = vst [vmem:[#allocation3 + $0x230] sm:$0xf] %v7973_v49  ;;  %v8412_v20 = vshrl.u32 %v8183_v58, 16  ;;  %v8418_v51 = vshll.u32 %v8184_v40, 16 }
 0x460   : > { %v7846_v29 = vld [vmem:[#allocation2 + $0x6c] sm:$0xe]  ;;  %v13773_v7 = vld [vmem:[#allocation3 + $0x1c0] ss:$36 sps:$4 sm:$0xff]   ;;  %7805 = vst [vmem:[#allocation3 + $0x22c] sm:$0xf] %v7565_v1 }
 0x461   : > { %v8401_v10 = vrot.slane %v8399_v21, 4  ;;  %v8404_v30 = vrot.slane %v8402_v5, 5  ;;  %v7567_v34 = vshrl.u32 %v7350_v54, 16  ;;  %v7570_v11 = vshll.u32 %v7350_v54, 16  ;;  %v7847_v25 = vld [vmem:[#allocation2 + $0x70] sm:$0xf]  ;;  %10801 = vmatmul.mubr.bf16.gmra.mxu1 %v13773_v7  ;;  %v12804_v54 = vpop.f32.mrf.mxu0 }
 0x462   : > { %v8410_v24 = vrot.slane %v8408_v2, 5  ;;  %v8414_v50 = vrot.slane %v8412_v20, 4  ;;  %v7576_v37 = vshll.u32 %v7351_v26, 16  ;;  %v7848_v8 = vld [vmem:[#allocation2 + $0x74] sm:$0x1]  ;;  %v7580_v22 = vshrl.u32 %v7351_v26, 16 }
 0x463   : > { %v8185_v16 = vld [vmem:[#allocation2 + $0x84] sm:$0xf]  ;;  %v8116_v13 = vld [vmem:[#allocation2 + $0x9c] sm:$0xf]  ;;  %v8405_v19 = vor.u32 %v8404_v30, %v8401_v10  ;;  %v7569_v62 = vrot.slane %v7567_v34, 4  ;;  %v7572_v12 = vrot.slane %v7570_v11, 5 }
 0x464   : > { %v8117_v17 = vld [vmem:[#allocation2 + $0xa0] sm:$0xf]  ;;  %8148 = vst [vmem:[#allocation3 + $0x330] sm:$0xf] %v8116_v13  ;;  %v8415_v63 = vor.u32 %v8414_v50, %v8410_v24  ;;  %v7578_v48 = vrot.slane %v7576_v37, 5  ;;  %v7586_v43 = vshll.u32 %v7352_v33, 16 }
 0x465   : > { %v8186_v14 = vld [vmem:[#allocation2 + $0x88] sm:$0xf]  ;;  %8149 = vst [vmem:[#allocation3 + $0x354] sm:$0xf] %v8117_v17  ;;  %v13778_v4 = vld [vmem:[#allocation3 + $0x214] ss:$36 sps:$4 sm:$0xff]   ;;  %v7573_v9 = vor.u32 %v7572_v12, %v7569_v62 }
 0x466   : > { %v8406_v6 = vrot.slane %v8405_v19, 4  ;;  %v8420_v38 = vrot.slane %v8418_v51, 5  ;;  %v11882_v31 = vrot.slane %v7846_v29, 9  ;;  %v8187_v41 = vld [vmem:[#allocation2 + $0x8c] sm:$0x1]  ;;  %v8416_v44 = vrot.slane %v8415_v63, 4  ;;  %10969 = vmatprep.mubr.bf16.mxu0 %v13778_v4 }
 0x467   : > { %v13776_v35 = vld [vmem:[#allocation3 + $0x210] ss:$36 sps:$4 sm:$0xff]   ;;  %v7582_v45 = vrot.slane %v7580_v22, 4  ;;  %v7588_v36 = vrot.slane %v7586_v43, 5  ;;  %v7976_v57 = vrot.slane %v7847_v25, 5  ;;  %v7574_v52 = vrot.slane %v7573_v9, 4  ;;  %v12805_v25 = vpop.f32.mrf.mxu0 }
 0x468   : > { %v8411_v42 = vsel %vm14247_vm13, %v8406_v6, %v8410_v24  ;;  %v7979_v15 = vrot.slane %v7848_v8, 5  ;;  %v8423_v28 = vshrl.u32 %v8185_v16, 16  ;;  %v7353_v0 = vld [vmem:[#allocation2 + $0x78] sm:$0xf]  ;;  %v13782_v58 = vld [vmem:[#allocation3 + $0x20c] ss:$36 sps:$4 sm:$0xff]   ;;  %10970 = vmatmul.mubr.bf16.gmra.mxu0 %v13776_v35  ;;  %v8421_v40 = vsel %vm14247_vm13, %v8416_v44, %v8420_v38 }
 0x469   : > { %8638 = vst [vmem:[#allocation3 + $0x25c] sm:$0xf] %v8411_v42  ;;  %v7583_v39 = vor.u32 %v7582_v45, %v7578_v48  ;;  %v7977_v47 = vsel %vm14224_vm10, %v11882_v31, %v7976_v57  ;;  %v7978_v3 = vrot.slane %v7976_v57, 4  ;;  %v7354_v23 = vld [vmem:[#allocation2 + $0x7c] sm:$0xf]  ;;  %v7579_v53 = vsel %vm14247_vm13, %v7574_v52, %v7578_v48  ;;  %10808 = vmatprep.mubr.bf16.mxu1 %v13782_v58  ;;  %v12807_v35 = vpop.f32.mrf.mxu0 }
 0x46a   : > { %v13780_v56 = vld [vmem:[#allocation3 + $0x208] ss:$36 sps:$4 sm:$0xff]   ;;  %8639 = vst [vmem:[#allocation3 + $0x280] sm:$0xf] %v8421_v40  ;;  %8078 = vst [vmem:[#allocation3 + $0x254] sm:$0xf] %v7977_v47 }
 0x46b   : > { %v8425_v60 = vrot.slane %v8423_v28, 4  ;;  %v8426_v46 = vshll.u32 %v8185_v16, 16  ;;  %v8432_v55 = vshll.u32 %v8186_v14, 16  ;;  %v7584_v49 = vrot.slane %v7583_v39, 4  ;;  %7806 = vst [vmem:[#allocation3 + $0x250] sm:$0xf] %v7579_v53  ;;  %10809 = vmatmul.mubr.bf16.gmra.mxu1 %v13780_v56  ;;  %v12808_v47 = vpop.f32.mrf.mxu0 }
 0x46c   : > { %v7980_v21 = vsel %vm14224_vm10, %v7978_v3, %v7979_v15  ;;  %v8436_v5 = vshrl.u32 %v8186_v14, 16  ;;  %v8442_v26 = vshll.u32 %v8187_v41, 16  ;;  %v7355_v33 = vld [vmem:[#allocation2 + $0x80] sm:$0x1]  ;;  %v7591_v20 = vshrl.u32 %v7353_v0, 16  ;;  %v12689_v14 = vpop.f32.mrf.mxu1 }
 0x46d   : > { %8079 = vst [vmem:[#allocation3 + $0x278] sm:$0xf] %v7980_v21  ;;  %v8428_v1 = vrot.slane %v8426_v46, 5  ;;  %v8434_v2 = vrot.slane %v8432_v55, 5  ;;  %v7594_v51 = vshll.u32 %v7353_v0, 16  ;;  %v7589_v7 = vsel %vm14247_vm13, %v7584_v49, %v7588_v36 }
 0x46e   : > { %v7849_v29 = vld [vmem:[#allocation2 + $0x78] sm:$0xe]  ;;  %v8438_v10 = vrot.slane %v8436_v5, 4  ;;  %v8444_v30 = vrot.slane %v8442_v26, 5  ;;  %v7600_v34 = vshll.u32 %v7354_v23, 16  ;;  %v7593_v50 = vrot.slane %v7591_v20, 4  ;;  %v12690_v42 = vpop.f32.mrf.mxu1 }
 0x46f   : > { %v7850_v11 = vld [vmem:[#allocation2 + $0x7c] sm:$0xf]  ;;  %7807 = vst [vmem:[#allocation3 + $0x274] sm:$0xf] %v7589_v7  ;;  %v8429_v24 = vor.u32 %v8428_v1, %v8425_v60  ;;  %v7596_v37 = vrot.slane %v7594_v51, 5  ;;  %v7604_v8 = vshrl.u32 %v7354_v23, 16  ;;  %v16072_v41 = vadd.f32 %v12805_v25, %v12804_v54  ;;  %v12810_v25 = vpop.f32.mrf.mxu0 }
 0x470   : > { %v7851_v16 = vld [vmem:[#allocation2 + $0x80] sm:$0x1]  ;;  %v8439_v13 = vor.u32 %v8438_v10, %v8434_v2  ;;  %v7602_v19 = vrot.slane %v7600_v34, 5  ;;  %v7610_v62 = vshll.u32 %v7355_v33, 16  ;;  %v11883_v12 = vrot.slane %v7849_v29, 9  ;;  %v12692_v60 = vpop.f32.mrf.mxu1 }
 0x471   : > { %v8188_v22 = vld [vmem:[#allocation2 + $0x90] sm:$0xf]  ;;  %v8430_v17 = vrot.slane %v8429_v24, 4  ;;  %v7597_v63 = vor.u32 %v7596_v37, %v7593_v50  ;;  %v7606_v48 = vrot.slane %v7604_v8, 4  ;;  %v7983_v43 = vrot.slane %v7850_v11, 5 }
 0x472   : > { %v8189_v4 = vld [vmem:[#allocation2 + $0x94] sm:$0xf]  ;;  %v8118_v6 = vld [vmem:[#allocation2 + $0xa8] sm:$0xf]  ;;  %v8440_v31 = vrot.slane %v8439_v13, 4  ;;  %v7612_v57 = vrot.slane %v7610_v62, 5  ;;  %v12691_v5 = vadd.f32 %v12690_v42, %v12689_v14  ;;  %v16084_v26 = vadd.f32 %v12808_v47, %v12807_v35  ;;  %v12693_v29 = vpop.f32.mrf.mxu1 }
 0x473   : > { %v13783_v38 = vld [vmem:[#allocation3 + $0x258] ss:$36 sps:$4 sm:$0xff]   ;;  %8150 = vst [vmem:[#allocation3 + $0x378] sm:$0xf] %v8118_v6  ;;  %v8435_v44 = vsel %vm14247_vm13, %v8430_v17, %v8434_v2  ;;  %v7598_v45 = vrot.slane %v7597_v63, 4  ;;  %v7607_v36 = vor.u32 %v7606_v48, %v7602_v19  ;;  %v7984_v28 = vsel %vm14224_vm10, %v11883_v12, %v7983_v43 }
 0x474   : > { %v13785_v9 = vld [vmem:[#allocation3 + $0x25c] ss:$36 sps:$4 sm:$0xff]   ;;  %v8119_v52 = vld [vmem:[#allocation2 + $0xac] sm:$0xf]  ;;  %v8445_v15 = vsel %vm14247_vm13, %v8440_v31, %v8444_v30  ;;  %8640 = vst [vmem:[#allocation3 + $0x2a4] sm:$0xf] %v8435_v44  ;;  %v12695_v13 = vpop.f32.mrf.mxu1  ;;  %v16089_v31 = vadd.f32 %v16052_v61, %v12691_v5  ;;  %v12694_v35 = vadd.f32 %v12693_v29, %v12692_v60 }
 0x475   : > { %10977 = vmatprep.mubr.bf16.mxu0 %v13785_v9  ;;  %v7985_v0 = vrot.slane %v7983_v43, 4  ;;  %v7986_v58 = vrot.slane %v7851_v16, 5  ;;  %v8190_v40 = vld [vmem:[#allocation2 + $0x98] sm:$0x1]  ;;  %v7356_v39 = vld [vmem:[#allocation2 + $0x84] sm:$0xf]  ;;  %v7603_v3 = vsel %vm14247_vm13, %v7598_v45, %v7602_v19 }
 0x476   : > { %8151 = vst [vmem:[#allocation3 + $0x39c] sm:$0xf] %v8119_v52  ;;  %10978 = vmatmul.mubr.bf16.gmra.mxu0 %v13783_v38  ;;  %8641 = vst [vmem:[#allocation3 + $0x2c8] sm:$0xf] %v8445_v15  ;;  %v7608_v23 = vrot.slane %v7607_v36, 4  ;;  %v8447_v54 = vshrl.u32 %v8188_v22, 16  ;;  %v12696_v45 = vpop.f32.mrf.mxu1  ;;  %v12811_v36 = vpop.f32.mrf.mxu0  ;;  %v16094_v61 = vadd.f32 %v16072_v41, %v12694_v35 }
 0x477   : > { %8080 = vst [vmem:[#allocation3 + $0x29c] sm:$0xf] %v7984_v28  ;;  %v8450_v56 = vshll.u32 %v8188_v22, 16  ;;  %v7357_v53 = vld [vmem:[#allocation2 + $0x88] sm:$0xf]  ;;  %v7987_v55 = vsel %vm14224_vm10, %v7985_v0, %v7986_v58  ;;  %v8456_v49 = vshll.u32 %v8189_v4, 16  ;;  %v12697_v60 = vadd.f32 %v12696_v45, %v12695_v13 }
 0x478   : > { %v13788_v46 = vld [vmem:[#allocation3 + $0x254] ss:$36 sps:$4 sm:$0xff]   ;;  %7808 = vst [vmem:[#allocation3 + $0x298] sm:$0xf] %v7603_v3  ;;  %v7613_v1 = vsel %vm14247_vm13, %v7608_v23, %v7612_v57  ;;  %8081 = vst [vmem:[#allocation3 + $0x2c0] sm:$0xf] %v7987_v55 }
 0x479   : > { %v7358_v21 = vld [vmem:[#allocation2 + $0x8c] sm:$0x1]  ;;  %v8449_v2 = vrot.slane %v8447_v54, 4  ;;  %v8452_v20 = vrot.slane %v8450_v56, 5  ;;  %v8460_v51 = vshrl.u32 %v8189_v4, 16  ;;  %10816 = vmatprep.mubr.bf16.mxu1 %v13788_v46  ;;  %v8458_v7 = vrot.slane %v8456_v49, 5 }
 0x47a   : > { %v13786_v33 = vld [vmem:[#allocation3 + $0x250] ss:$36 sps:$4 sm:$0xff]   ;;  %7809 = vst [vmem:[#allocation3 + $0x2bc] sm:$0xf] %v7613_v1  ;;  %v8466_v10 = vshll.u32 %v8190_v40, 16  ;;  %v7615_v30 = vshrl.u32 %v7356_v39, 16  ;;  %v16098_v46 = vadd.f32 %v12811_v36, %v12810_v25  ;;  %v16104_v1 = vpop.f32.mrf.mxu0 }
 0x47b   : > { %v7618_v34 = vshll.u32 %v7356_v39, 16  ;;  %v7852_v11 = vld [vmem:[#allocation2 + $0x84] sm:$0xe]  ;;  %10817 = vmatmul.mubr.bf16.gmra.mxu1 %v13786_v33  ;;  %v8453_v24 = vor.u32 %v8452_v20, %v8449_v2  ;;  %v8462_v50 = vrot.slane %v8460_v51, 4  ;;  %v7624_v37 = vshll.u32 %v7357_v53, 16  ;;  %v12698_v33 = vpop.f32.mrf.mxu1 }
 0x47c   : > { %v7628_v8 = vshrl.u32 %v7357_v53, 16  ;;  %v7853_v16 = vld [vmem:[#allocation2 + $0x88] sm:$0xf]  ;;  %v8468_v19 = vrot.slane %v8466_v10, 5  ;;  %v7617_v62 = vrot.slane %v7615_v30, 4  ;;  %v7634_v22 = vshll.u32 %v7358_v21, 16 }
 0x47d   : > { %v7620_v12 = vrot.slane %v7618_v34, 5  ;;  %v7854_v17 = vld [vmem:[#allocation2 + $0x8c] sm:$0x1]  ;;  %v8454_v63 = vrot.slane %v8453_v24, 4  ;;  %v8463_v48 = vor.u32 %v8462_v50, %v8458_v7  ;;  %v7626_v43 = vrot.slane %v7624_v37, 5  ;;  %v12814_v50 = vpop.f32.mrf.mxu0 }
 0x47e   : > { %v7630_v14 = vrot.slane %v7628_v8, 4  ;;  %v8191_v4 = vld [vmem:[#allocation2 + $0x9c] sm:$0xf]  ;;  %v7636_v9 = vrot.slane %v7634_v22, 5  ;;  %v8192_v44 = vld [vmem:[#allocation2 + $0xa0] sm:$0xf] }
 0x47f   : > { %v13791_v6 = vld [vmem:[#allocation3 + $0x2a4] ss:$36 sps:$4 sm:$0xff]   ;;  %v7621_v38 = vor.u32 %v7620_v12, %v7617_v62  ;;  %v8459_v42 = vsel %vm14247_vm13, %v8454_v63, %v8458_v7  ;;  %v8464_v52 = vrot.slane %v8463_v48, 4  ;;  %v11884_v28 = vrot.slane %v7852_v11, 9  ;;  %v8193_v0 = vld [vmem:[#allocation2 + $0xa4] sm:$0x1]  ;;  %v12699_v63 = vpop.f32.mrf.mxu1  ;;  %v16110_v36 = vpop.f32.mrf.mxu0 }
 0x480   : > { %v13789_v57 = vld [vmem:[#allocation3 + $0x2a0] ss:$36 sps:$4 sm:$0xff]   ;;  %v7631_v15 = vor.u32 %v7630_v14, %v7626_v43  ;;  %v7359_v58 = vld [vmem:[#allocation2 + $0x90] sm:$0xf]  ;;  %10985 = vmatprep.mubr.bf16.mxu0 %v13791_v6  ;;  %8642 = vst [vmem:[#allocation3 + $0x2ec] sm:$0xf] %v8459_v42 }
 0x481   : > { %v7622_v40 = vrot.slane %v7621_v38, 4  ;;  %v7990_v39 = vrot.slane %v7853_v16, 5  ;;  %v7993_v47 = vrot.slane %v7854_v17, 5  ;;  %v8120_v3 = vld [vmem:[#allocation2 + $0xb4] sm:$0xf]  ;;  %10986 = vmatmul.mubr.bf16.gmra.mxu0 %v13789_v57  ;;  %v8469_v54 = vsel %vm14247_vm13, %v8464_v52, %v8468_v19 }
 0x482   : > { %v13795_v23 = vld [vmem:[#allocation3 + $0x29c] ss:$36 sps:$4 sm:$0xff]   ;;  %v7632_v56 = vrot.slane %v7631_v15, 4  ;;  %8152 = vst [vmem:[#allocation3 + $0x3c0] sm:$0xf] %v8120_v3  ;;  %v8471_v5 = vshrl.u32 %v8191_v4, 16  ;;  %v16113_v15 = vadd.f32 %v16084_v26, %v12697_v60 }
 0x483   : > { %v7360_v53 = vld [vmem:[#allocation2 + $0x94] sm:$0xf]  ;;  %8643 = vst [vmem:[#allocation3 + $0x310] sm:$0xf] %v8469_v54  ;;  %v7627_v49 = vsel %vm14247_vm13, %v7622_v40, %v7626_v43  ;;  %v7991_v41 = vsel %vm14224_vm10, %v11884_v28, %v7990_v39  ;;  %v7992_v21 = vrot.slane %v7990_v39, 4  ;;  %10824 = vmatprep.mubr.bf16.mxu1 %v13795_v23  ;;  %v8474_v51 = vshll.u32 %v8191_v4, 16 }
 0x484   : > { %v13793_v55 = vld [vmem:[#allocation3 + $0x298] ss:$36 sps:$4 sm:$0xff]   ;;  %v8121_v2 = vld [vmem:[#allocation2 + $0xb8] sm:$0xf]  ;;  %v7637_v20 = vsel %vm14247_vm13, %v7632_v56, %v7636_v9  ;;  %7810 = vst [vmem:[#allocation3 + $0x2e0] sm:$0xf] %v7627_v49  ;;  %v12700_v28 = vadd.f32 %v12699_v63, %v12698_v33 }
 0x485   : > { %8082 = vst [vmem:[#allocation3 + $0x2e4] sm:$0xf] %v7991_v41  ;;  %v8480_v29 = vshll.u32 %v8192_v44, 16  ;;  %v8484_v7 = vshrl.u32 %v8192_v44, 16  ;;  %v7361_v10 = vld [vmem:[#allocation2 + $0x98] sm:$0x1]  ;;  %10825 = vmatmul.mubr.bf16.gmra.mxu1 %v13793_v55  ;;  %v7994_v30 = vsel %vm14224_vm10, %v7992_v21, %v7993_v47 }
 0x486   : > { %8153 = vst [vmem:[#allocation3 + $0x3e4] sm:$0xf] %v8121_v2  ;;  %7811 = vst [vmem:[#allocation3 + $0x304] sm:$0xf] %v7637_v20  ;;  %v8473_v34 = vrot.slane %v8471_v5, 4  ;;  %v8490_v11 = vshll.u32 %v8193_v0, 16  ;;  %v16122_v33 = vadd.f32 %v16098_v46, %v12700_v28  ;;  %v16125_v2 = vadd.f32 %v12814_v50, %v16104_v1  ;;  %v12817_v20 = vpop.f32.mrf.mxu0  ;;  %v12701_v50 = vpop.f32.mrf.mxu1 }
 0x487   : > { %v7639_v25 = vshrl.u32 %v7359_v58, 16  ;;  %v7855_v24 = vld [vmem:[#allocation2 + $0x90] sm:$0xe]  ;;  %8083 = vst [vmem:[#allocation3 + $0x308] sm:$0xf] %v7994_v30  ;;  %v8476_v37 = vrot.slane %v8474_v51, 5 }
 0x488   : > { %v8482_v8 = vrot.slane %v8480_v29, 5  ;;  %v8486_v16 = vrot.slane %v8484_v7, 4  ;;  %v7642_v13 = vshll.u32 %v7359_v58, 16  ;;  %v7856_v19 = vld [vmem:[#allocation2 + $0x94] sm:$0xf]  ;;  %v8492_v62 = vrot.slane %v8490_v11, 5 }
 0x489   : > { %v7641_v12 = vrot.slane %v7639_v25, 4  ;;  %v7648_v22 = vshll.u32 %v7360_v53, 16  ;;  %v7652_v17 = vshrl.u32 %v7360_v53, 16  ;;  %v8477_v48 = vor.u32 %v8476_v37, %v8473_v34  ;;  %v7857_v6 = vld [vmem:[#allocation2 + $0x98] sm:$0x1] }
 0x48a   : > { %v8487_v43 = vor.u32 %v8486_v16, %v8482_v8  ;;  %v7644_v14 = vrot.slane %v7642_v13, 5  ;;  %v7658_v4 = vshll.u32 %v7361_v10, 16  ;;  %v11885_v35 = vrot.slane %v7855_v24, 9  ;;  %v8194_v45 = vld [vmem:[#allocation2 + $0xa8] sm:$0xf] }
 0x48b   : > { %v7650_v38 = vrot.slane %v7648_v22, 5  ;;  %v7654_v9 = vrot.slane %v7652_v17, 4  ;;  %v7997_v44 = vrot.slane %v7856_v19, 5  ;;  %v13798_v57 = vld [vmem:[#allocation3 + $0x2ec] ss:$36 sps:$4 sm:$0xff]   ;;  %v8478_v42 = vrot.slane %v8477_v48, 4  ;;  %v12819_v48 = vpop.f32.mrf.mxu0 }
 0x48c   : > { %v7645_v52 = vor.u32 %v7644_v14, %v7641_v12  ;;  %v8195_v0 = vld [vmem:[#allocation2 + $0xac] sm:$0xf]  ;;  %v8196_v58 = vld [vmem:[#allocation2 + $0xb0] sm:$0x1]  ;;  %v13796_v40 = vld [vmem:[#allocation3 + $0x2e8] ss:$36 sps:$4 sm:$0xff]   ;;  %10993 = vmatprep.mubr.bf16.mxu0 %v13798_v57 }
 0x48d   : > { %v8488_v39 = vrot.slane %v8487_v43, 4  ;;  %v7655_v47 = vor.u32 %v7654_v9, %v7650_v38  ;;  %v7660_v3 = vrot.slane %v7658_v4, 5  ;;  %v7998_v23 = vsel %vm14224_vm10, %v11885_v35, %v7997_v44  ;;  %v7362_v54 = vld [vmem:[#allocation2 + $0x9c] sm:$0xf]  ;;  %v7363_v26 = vld [vmem:[#allocation2 + $0xa0] sm:$0xf]  ;;  %10994 = vmatmul.mubr.bf16.gmra.mxu0 %v13796_v40 }
 0x48e   : > { %v8483_v56 = vsel %vm14247_vm13, %v8478_v42, %v8482_v8  ;;  %v7646_v53 = vrot.slane %v7645_v52, 4  ;;  %v7999_v55 = vrot.slane %v7997_v44, 4  ;;  %v8000_v49 = vrot.slane %v7857_v6, 5  ;;  %8084 = vst [vmem:[#allocation3 + $0x32c] sm:$0xf] %v7998_v23  ;;  %v12820_v42 = vpop.f32.mrf.mxu0 }
 0x48f   : > { %v13799_v60 = vld [vmem:[#allocation3 + $0x2e0] ss:$36 sps:$4 sm:$0xff]   ;;  %v8493_v21 = vsel %vm14247_vm13, %v8488_v39, %v8492_v62  ;;  %8644 = vst [vmem:[#allocation3 + $0x334] sm:$0xf] %v8483_v56  ;;  %v7656_v5 = vrot.slane %v7655_v47, 4  ;;  %v8495_v7 = vshrl.u32 %v8194_v45, 16 }
 0x490   : > { %v13801_v41 = vld [vmem:[#allocation3 + $0x2e4] ss:$36 sps:$4 sm:$0xff]   ;;  %8645 = vst [vmem:[#allocation3 + $0x358] sm:$0xf] %v8493_v21  ;;  %v7651_v51 = vsel %vm14247_vm13, %v7646_v53, %v7650_v38  ;;  %v8001_v29 = vsel %vm14224_vm10, %v7999_v55, %v8000_v49  ;;  %v8498_v10 = vshll.u32 %v8194_v45, 16  ;;  %v8504_v1 = vshll.u32 %v8195_v0, 16  ;;  %v12702_v38 = vpop.f32.mrf.mxu1  ;;  %v16136_v55 = vpop.f32.mrf.mxu0 }
 0x491   : > { %v8122_v30 = vld [vmem:[#allocation2 + $0xc0] sm:$0xf]  ;;  %v8123_v34 = vld [vmem:[#allocation2 + $0xc4] sm:$0xf]  ;;  %10832 = vmatprep.mubr.bf16.mxu1 %v13801_v41  ;;  %v7661_v46 = vsel %vm14247_vm13, %v7656_v5, %v7660_v3  ;;  %7812 = vst [vmem:[#allocation3 + $0x328] sm:$0xf] %v7651_v51  ;;  %v12703_v23 = vadd.f32 %v12702_v38, %v12701_v50  ;;  %v16134_v53 = vadd.f32 %v12820_v42, %v12819_v48 }
 0x492   : > { %8085 = vst [vmem:[#allocation3 + $0x350] sm:$0xf] %v8001_v29  ;;  %v8508_v11 = vshrl.u32 %v8195_v0, 16  ;;  %v8514_v25 = vshll.u32 %v8196_v58, 16  ;;  %v7364_v24 = vld [vmem:[#allocation2 + $0xa4] sm:$0x1]  ;;  %10833 = vmatmul.mubr.bf16.gmra.mxu1 %v13799_v60  ;;  %v12704_v40 = vpop.f32.mrf.mxu1 }
 0x493   : > { %8154 = vst [vmem:[#allocation3 + $0x408] sm:$0xf] %v8122_v30  ;;  %8155 = vst [vmem:[#allocation3 + $0x42c] sm:$0xf] %v8123_v34  ;;  %v8497_v37 = vrot.slane %v8495_v7, 4  ;;  %v8500_v8 = vrot.slane %v8498_v10, 5  ;;  %v16145_v7 = vadd.f32 %v16125_v2, %v12703_v23  ;;  %v12823_v30 = vpop.f32.mrf.mxu0 }
 0x494   : > { %7813 = vst [vmem:[#allocation3 + $0x34c] sm:$0xf] %v7661_v46  ;;  %v7663_v16 = vshrl.u32 %v7362_v54, 16  ;;  %v7666_v13 = vshll.u32 %v7362_v54, 16  ;;  %v7858_v19 = vld [vmem:[#allocation2 + $0x9c] sm:$0xe]  ;;  %v12818_v54 = vadd.f32 %v12817_v20, %v16110_v36  ;;  %v12705_v5 = vpop.f32.mrf.mxu1 }
 0x495   : > { %v8506_v62 = vrot.slane %v8504_v1, 5  ;;  %v8510_v12 = vrot.slane %v8508_v11, 4  ;;  %v8516_v22 = vrot.slane %v8514_v25, 5  ;;  %v7672_v17 = vshll.u32 %v7363_v26, 16  ;;  %v7859_v63 = vld [vmem:[#allocation2 + $0xa0] sm:$0xf] }
 0x496   : > { %v8501_v43 = vor.u32 %v8500_v8, %v8497_v37  ;;  %v7665_v14 = vrot.slane %v7663_v16, 4  ;;  %v7668_v4 = vrot.slane %v7666_v13, 5  ;;  %v7676_v6 = vshrl.u32 %v7363_v26, 16  ;;  %v7860_v45 = vld [vmem:[#allocation2 + $0xa4] sm:$0x1] }
 0x497   : > { %v8511_v9 = vor.u32 %v8510_v12, %v8506_v62  ;;  %v7674_v35 = vrot.slane %v7672_v17, 5  ;;  %v7682_v44 = vshll.u32 %v7364_v24, 16  ;;  %v11886_v57 = vrot.slane %v7858_v19, 9  ;;  %v8197_v39 = vld [vmem:[#allocation2 + $0xb4] sm:$0xf]  ;;  %v12707_v24 = vpop.f32.mrf.mxu1  ;;  %v16149_v19 = vpop.f32.mrf.mxu0 }
 0x498   : > { %v8502_v52 = vrot.slane %v8501_v43, 4  ;;  %v7669_v28 = vor.u32 %v7668_v4, %v7665_v14  ;;  %v7678_v0 = vrot.slane %v7676_v6, 4  ;;  %v8004_v58 = vrot.slane %v7859_v63, 5  ;;  %v13804_v47 = vld [vmem:[#allocation3 + $0x334] ss:$36 sps:$4 sm:$0xff]  }
 0x499   : > { %v8512_v3 = vrot.slane %v8511_v9, 4  ;;  %v8198_v56 = vld [vmem:[#allocation2 + $0xb8] sm:$0xf]  ;;  %v13802_v49 = vld [vmem:[#allocation3 + $0x330] ss:$36 sps:$4 sm:$0xff]   ;;  %v7684_v21 = vrot.slane %v7682_v44, 5  ;;  %11001 = vmatprep.mubr.bf16.mxu0 %v13804_v47  ;;  %v12706_v25 = vadd.f32 %v12705_v5, %v12704_v40  ;;  %v12708_v48 = vpop.f32.mrf.mxu1  ;;  %v16157_v9 = vpop.f32.mrf.mxu0 }
 0x49a   : > { %v8507_v26 = vsel %vm14247_vm13, %v8502_v52, %v8506_v62  ;;  %v7670_v60 = vrot.slane %v7669_v28, 4  ;;  %v7679_v41 = vor.u32 %v7678_v0, %v7674_v35  ;;  %v13808_v51 = vld [vmem:[#allocation3 + $0x32c] ss:$36 sps:$4 sm:$0xff]   ;;  %v8005_v36 = vsel %vm14224_vm10, %v11886_v57, %v8004_v58  ;;  %v8199_v10 = vld [vmem:[#allocation2 + $0xbc] sm:$0x1]  ;;  %11002 = vmatmul.mubr.bf16.gmra.mxu0 %v13802_v49 }
 0x49b   : > { %v8517_v29 = vsel %vm14247_vm13, %v8512_v3, %v8516_v22  ;;  %8646 = vst [vmem:[#allocation3 + $0x37c] sm:$0xf] %v8507_v26  ;;  %v8006_v20 = vrot.slane %v8004_v58, 4  ;;  %v13806_v34 = vld [vmem:[#allocation3 + $0x328] ss:$36 sps:$4 sm:$0xff]   ;;  %v8007_v11 = vrot.slane %v7860_v45, 5  ;;  %10840 = vmatprep.mubr.bf16.mxu1 %v13808_v51  ;;  %v16155_v22 = vadd.f32 %v12818_v54, %v12706_v25  ;;  %v12710_v42 = vpop.f32.mrf.mxu1  ;;  %v16159_v47 = vpop.f32.mrf.mxu0 }
 0x49c   : > { %8647 = vst [vmem:[#allocation3 + $0x3a0] sm:$0xf] %v8517_v29  ;;  %v7675_v46 = vsel %vm14247_vm13, %v7670_v60, %v7674_v35  ;;  %v7680_v1 = vrot.slane %v7679_v41, 4  ;;  %8086 = vst [vmem:[#allocation3 + $0x374] sm:$0xf] %v8005_v36  ;;  %v8519_v37 = vshrl.u32 %v8197_v39, 16  ;;  %10841 = vmatmul.mubr.bf16.gmra.mxu1 %v13806_v34  ;;  %v12709_v41 = vadd.f32 %v12708_v48, %v12707_v24 }
 0x49d   : > { %v7365_v50 = vld [vmem:[#allocation2 + $0xa8] sm:$0xf]  ;;  %7814 = vst [vmem:[#allocation3 + $0x370] sm:$0xf] %v7675_v46  ;;  %v8522_v8 = vshll.u32 %v8197_v39, 16  ;;  %v8528_v2 = vshll.u32 %v8198_v56, 16  ;;  %v8008_v12 = vsel %vm14224_vm10, %v8006_v20, %v8007_v11  ;;  %v12711_v49 = vpop.f32.mrf.mxu1  ;;  %v16162_v29 = vpop.f32.mrf.mxu0 }
 0x49e   : > { %v8532_v16 = vshrl.u32 %v8198_v56, 16  ;;  %v7366_v13 = vld [vmem:[#allocation2 + $0xac] sm:$0xf]  ;;  %v7685_v62 = vsel %vm14247_vm13, %v7680_v1, %v7684_v21  ;;  %v8538_v17 = vshll.u32 %v8199_v10, 16  ;;  %v7367_v63 = vld [vmem:[#allocation2 + $0xb0] sm:$0x1]  ;;  %v12824_v21 = vadd.f32 %v12823_v30, %v16136_v55 }
 0x49f   : > { %7815 = vst [vmem:[#allocation3 + $0x394] sm:$0xf] %v7685_v62  ;;  %8087 = vst [vmem:[#allocation3 + $0x398] sm:$0xf] %v8008_v12  ;;  %v8521_v43 = vrot.slane %v8519_v37, 4  ;;  %v8524_v14 = vrot.slane %v8522_v8, 5  ;;  %v12712_v5 = vadd.f32 %v12711_v49, %v12710_v42  ;;  %v16164_v1 = vpop.f32.mrf.mxu1  ;;  %v16169_v24 = vadd.f32 %v16134_v53, %v12709_v41  ;;  %v16171_v37 = vpop.f32.mrf.mxu0 }
 0x4a0   : > { %v8530_v4 = vrot.slane %v8528_v2, 5  ;;  %v8534_v6 = vrot.slane %v8532_v16, 4  ;;  %v7861_v38 = vld [vmem:[#allocation2 + $0xa8] sm:$0xe]  ;;  %v8540_v35 = vrot.slane %v8538_v17, 5  ;;  %v7687_v44 = vshrl.u32 %v7365_v50, 16 }
 0x4a1   : > { %v7690_v45 = vshll.u32 %v7365_v50, 16  ;;  %v7696_v57 = vshll.u32 %v7366_v13, 16  ;;  %v8525_v52 = vor.u32 %v8524_v14, %v8521_v43  ;;  %v7700_v0 = vshrl.u32 %v7366_v13, 16  ;;  %v7862_v40 = vld [vmem:[#allocation2 + $0xac] sm:$0xf]  ;;  %v12714_v17 = vpop.f32.mrf.mxu1 }
 0x4a2   : > { %v8535_v28 = vor.u32 %v8534_v6, %v8530_v4  ;;  %v7706_v58 = vshll.u32 %v7367_v63, 16  ;;  %v7863_v39 = vld [vmem:[#allocation2 + $0xb0] sm:$0x1]  ;;  %v7689_v3 = vrot.slane %v7687_v44, 4  ;;  %v11887_v56 = vrot.slane %v7861_v38, 9 }
 0x4a3   : > { %v7692_v23 = vrot.slane %v7690_v45, 5  ;;  %v7698_v54 = vrot.slane %v7696_v57, 5  ;;  %v13811_v26 = vld [vmem:[#allocation3 + $0x37c] ss:$36 sps:$4 sm:$0xff]   ;;  %v8526_v60 = vrot.slane %v8525_v52, 4  ;;  %v7702_v34 = vrot.slane %v7700_v0, 4  ;;  %v12716_v57 = vpop.f32.mrf.mxu1 }
 0x4a4   : > { %v8200_v51 = vld [vmem:[#allocation2 + $0xc0] sm:$0xf]  ;;  %v13809_v36 = vld [vmem:[#allocation3 + $0x378] ss:$36 sps:$4 sm:$0xff]   ;;  %v8536_v20 = vrot.slane %v8535_v28, 4  ;;  %v7708_v46 = vrot.slane %v7706_v58, 5  ;;  %11009 = vmatprep.mubr.bf16.mxu0 %v13811_v26  ;;  %v16175_v62 = vadd.f32 %v12824_v21, %v12712_v5 }
 0x4a5   : > { %v7693_v10 = vor.u32 %v7692_v23, %v7689_v3  ;;  %v8531_v11 = vsel %vm14247_vm13, %v8526_v60, %v8530_v4  ;;  %v8011_v25 = vrot.slane %v7862_v40, 5  ;;  %v8014_v50 = vrot.slane %v7863_v39, 5  ;;  %v8201_v55 = vld [vmem:[#allocation2 + $0xc4] sm:$0xf]  ;;  %v8202_v30 = vld [vmem:[#allocation2 + $0xc8] sm:$0x1]  ;;  %11010 = vmatmul.mubr.bf16.gmra.mxu0 %v13809_v36  ;;  %v16179_v4 = vpop.f32.mrf.mxu0  ;;  %v12717_v49 = vpop.f32.mrf.mxu1 }
 0x4a6   : > { %v13814_v8 = vld [vmem:[#allocation3 + $0x374] ss:$36 sps:$4 sm:$0xff]   ;;  %v8541_v2 = vsel %vm14247_vm13, %v8536_v20, %v8540_v35  ;;  %8648 = vst [vmem:[#allocation3 + $0x3c4] sm:$0xf] %v8531_v11  ;;  %v7703_v13 = vor.u32 %v7702_v34, %v7698_v54  ;;  %v7368_v12 = vld [vmem:[#allocation2 + $0xb4] sm:$0xf] }
 0x4a7   : > { %v7694_v16 = vrot.slane %v7693_v10, 4  ;;  %v13812_v63 = vld [vmem:[#allocation3 + $0x370] ss:$36 sps:$4 sm:$0xff]   ;;  %8649 = vst [vmem:[#allocation3 + $0x3e8] sm:$0xf] %v8541_v2  ;;  %v8012_v53 = vsel %vm14224_vm10, %v11887_v56, %v8011_v25  ;;  %v8013_v48 = vrot.slane %v8011_v25, 4  ;;  %10848 = vmatprep.mubr.bf16.mxu1 %v13814_v8  ;;  %v16185_v40 = vpop.f32.mrf.mxu0  ;;  %v12719_v11 = vpop.f32.mrf.mxu1  ;;  %v12715_v2 = vadd.f32 %v12714_v17, %v16164_v1 }
 0x4a8   : > { %v8543_v43 = vshrl.u32 %v8200_v51, 16  ;;  %v8546_v14 = vshll.u32 %v8200_v51, 16  ;;  %v7704_v38 = vrot.slane %v7703_v13, 4  ;;  %8088 = vst [vmem:[#allocation3 + $0x3bc] sm:$0xf] %v8012_v53  ;;  %v8552_v35 = vshll.u32 %v8201_v55, 16  ;;  %10849 = vmatmul.mubr.bf16.gmra.mxu1 %v13812_v63 }
 0x4a9   : > { %v7699_v6 = vsel %vm14247_vm13, %v7694_v16, %v7698_v54  ;;  %v8556_v44 = vshrl.u32 %v8201_v55, 16  ;;  %v7369_v45 = vld [vmem:[#allocation2 + $0xb8] sm:$0xf]  ;;  %v8015_v42 = vsel %vm14224_vm10, %v8013_v48, %v8014_v50  ;;  %v8562_v0 = vshll.u32 %v8202_v30, 16  ;;  %v7370_v58 = vld [vmem:[#allocation2 + $0xbc] sm:$0x1]  ;;  %v16191_v51 = vpop.f32.mrf.mxu0 }
 0x4aa   : > { %7816 = vst [vmem:[#allocation3 + $0x3b8] sm:$0xf] %v7699_v6  ;;  %v8545_v52 = vrot.slane %v8543_v43, 4  ;;  %v8548_v28 = vrot.slane %v8546_v14, 5  ;;  %v7709_v39 = vsel %vm14247_vm13, %v7704_v38, %v7708_v46  ;;  %8089 = vst [vmem:[#allocation3 + $0x3e0] sm:$0xf] %v8015_v42  ;;  %v12827_v54 = vadd.f32 %v16157_v9, %v16149_v19 }
 0x4ab   : > { %v8554_v3 = vrot.slane %v8552_v35, 5  ;;  %v8558_v23 = vrot.slane %v8556_v44, 4  ;;  %v7864_v56 = vld [vmem:[#allocation2 + $0xb4] sm:$0xe]  ;;  %7817 = vst [vmem:[#allocation3 + $0x3dc] sm:$0xf] %v7709_v39  ;;  %v16193_v9 = vpop.f32.mrf.mxu0  ;;  %v12830_v16 = vadd.f32 %v16162_v29, %v16159_v47  ;;  %v12718_v13 = vadd.f32 %v12717_v49, %v12716_v57 }
 0x4ac   : > { %v8549_v26 = vor.u32 %v8548_v28, %v8545_v52  ;;  %v8564_v60 = vrot.slane %v8562_v0, 5  ;;  %v7711_v41 = vshrl.u32 %v7368_v12, 16  ;;  %v7714_v21 = vshll.u32 %v7368_v12, 16  ;;  %v7865_v5 = vld [vmem:[#allocation2 + $0xb8] sm:$0xf]  ;;  %v12720_v12 = vpop.f32.mrf.mxu1 }
 0x4ad   : > { %v8559_v36 = vor.u32 %v8558_v23, %v8554_v3  ;;  %v7720_v20 = vshll.u32 %v7369_v45, 16  ;;  %v7724_v10 = vshrl.u32 %v7369_v45, 16  ;;  %v7730_v34 = vshll.u32 %v7370_v58, 16  ;;  %v7866_v46 = vld [vmem:[#allocation2 + $0xbc] sm:$0x1]  ;;  %v16200_v38 = vpop.f32.mrf.mxu0 }
 0x4ae   : > { %v8550_v25 = vrot.slane %v8549_v26, 4  ;;  %v7713_v50 = vrot.slane %v7711_v41, 4  ;;  %v7716_v55 = vrot.slane %v7714_v21, 5  ;;  %v11888_v19 = vrot.slane %v7864_v56, 9  ;;  %v13817_v30 = vld [vmem:[#allocation3 + $0x3c4] ss:$36 sps:$4 sm:$0xff]   ;;  %v12722_v44 = vpop.f32.mrf.mxu1 }
 0x4af   : > { %v8560_v8 = vrot.slane %v8559_v36, 4  ;;  %v13815_v63 = vld [vmem:[#allocation3 + $0x3c0] ss:$36 sps:$4 sm:$0xff]   ;;  %v7722_v43 = vrot.slane %v7720_v20, 5  ;;  %v7726_v14 = vrot.slane %v7724_v10, 4  ;;  %11017 = vmatprep.mubr.bf16.mxu0 %v13817_v30  ;;  %v7732_v1 = vrot.slane %v7730_v34, 5  ;;  %v16208_v58 = vpop.f32.mrf.mxu0 }
 0x4b0   : > { %v8555_v53 = vsel %vm14247_vm13, %v8550_v25, %v8554_v3  ;;  %v7717_v48 = vor.u32 %v7716_v55, %v7713_v50  ;;  %v7371_v6 = vld [vmem:[#allocation2 + $0xc0] sm:$0xf]  ;;  %v8018_v17 = vrot.slane %v7865_v5, 5  ;;  %v8021_v47 = vrot.slane %v7866_v46, 5  ;;  %v7372_v29 = vld [vmem:[#allocation2 + $0xc4] sm:$0xf]  ;;  %11018 = vmatmul.mubr.bf16.gmra.mxu0 %v13815_v63 }
 0x4b1   : > { %v8565_v35 = vsel %vm14247_vm13, %v8560_v8, %v8564_v60  ;;  %8650 = vst [vmem:[#allocation3 + $0x40c] sm:$0xf] %v8555_v53  ;;  %v7727_v57 = vor.u32 %v7726_v14, %v7722_v43  ;;  %v16204_v42 = vadd.f32 %v12827_v54, %v12715_v2  ;;  %v16206_v52 = vadd.f32 %v12830_v16, %v12718_v13  ;;  %v7373_v28 = vld [vmem:[#allocation2 + $0xc8] sm:$0x1]  ;;  %v7867_v0 = vld [vmem:[#allocation2 + $0xc0] sm:$0xe]  ;;  %v12723_v60 = vpop.f32.mrf.mxu1  ;;  %v16216_v20 = vpop.f32.mrf.mxu0 }
 0x4b2   : > { %8651 = vst [vmem:[#allocation3 + $0x430] sm:$0xf] %v8565_v35  ;;  %v7718_v45 = vrot.slane %v7717_v48, 4  ;;  %v13821_v39 = vld [vmem:[#allocation3 + $0x3bc] ss:$36 sps:$4 sm:$0xff]   ;;  %v8019_v3 = vsel %vm14224_vm10, %v11888_v19, %v8018_v17  ;;  %v8020_v23 = vrot.slane %v8018_v17, 4  ;;  %v12833_v56 = vadd.f32 %v16179_v4, %v16171_v37 }
 0x4b3   : > { %v7868_v49 = vld [vmem:[#allocation2 + $0xc4] sm:$0xf]  ;;  %v12721_v26 = vadd.f32 %v12720_v12, %v12719_v11  ;;  %v13819_v41 = vld [vmem:[#allocation3 + $0x3b8] ss:$36 sps:$4 sm:$0xff]   ;;  %v7728_v21 = vrot.slane %v7727_v57, 4  ;;  %v7735_v5 = vshrl.u32 %v7371_v6, 16  ;;  %10856 = vmatprep.mubr.bf16.mxu1 %v13821_v39  ;;  %v12725_v11 = vpop.f32.mrf.mxu1  ;;  %v12843_v8 = vpop.f32.mrf.mxu0 }
 0x4b4   : > { %v7723_v54 = vsel %vm14247_vm13, %v7718_v45, %v7722_v43  ;;  %8090 = vst [vmem:[#allocation3 + $0x404] sm:$0xf] %v8019_v3  ;;  %v7738_v36 = vshll.u32 %v7371_v6, 16  ;;  %v8022_v10 = vsel %vm14224_vm10, %v8020_v23, %v8021_v47  ;;  %v7744_v34 = vshll.u32 %v7372_v29, 16  ;;  %v7869_v46 = vld [vmem:[#allocation2 + $0xc8] sm:$0x1]  ;;  %10857 = vmatmul.mubr.bf16.gmra.mxu1 %v13819_v41 }
 0x4b5   : > { %7818 = vst [vmem:[#allocation3 + $0x400] sm:$0xf] %v7723_v54  ;;  %v7748_v37 = vshrl.u32 %v7372_v29, 16  ;;  %v7754_v4 = vshll.u32 %v7373_v28, 16  ;;  %v7733_v25 = vsel %vm14247_vm13, %v7728_v21, %v7732_v1  ;;  %8091 = vst [vmem:[#allocation3 + $0x428] sm:$0xf] %v8022_v10  ;;  %v12726_v53 = vpop.f32.mrf.mxu1  ;;  %v16222_v14 = vadd.f32 %v12833_v56, %v12721_v26  ;;  %v12844_v17 = vpop.f32.mrf.mxu0 }
 0x4b6   : > { %v7737_v50 = vrot.slane %v7735_v5, 4  ;;  %v7740_v55 = vrot.slane %v7738_v36, 5  ;;  %v11889_v19 = vrot.slane %v7867_v0, 9  ;;  %v8654_v30 = vld [vmem:[#allocation2 + $0x18] sm:$0xe]  ;;  %v7746_v2 = vrot.slane %v7744_v34, 5 }
 0x4b7   : > { %7819 = vst [vmem:[#allocation3 + $0x424] sm:$0xf] %v7733_v25  ;;  %v7750_v16 = vrot.slane %v7748_v37, 4  ;;  %v7756_v13 = vrot.slane %v7754_v4, 5  ;;  %v8025_v12 = vrot.slane %v7868_v49, 5  ;;  %v8028_v43 = vrot.slane %v7869_v46, 5  ;;  %v12728_v0 = vpop.f32.mrf.mxu1 }
 0x4b8   : > { %v8655_v63 = vld [vmem:[#allocation2 + $0x1c] sm:$0xf]  ;;  %v7741_v48 = vor.u32 %v7740_v55, %v7737_v50  ;;  %v12836_v6 = vadd.f32 %v16191_v51, %v16185_v40  ;;  %v13834_v35 = vld [vmem:[#allocation3 + $0x454] ss:$36 sps:$4 sm:$0xff]   ;;  %v8656_v1 = vld [vmem:[#allocation2 + $0x20] sm:$0x1]  ;;  %v12724_v28 = vadd.f32 %v12723_v60, %v12722_v44  ;;  %v12839_v56 = vadd.f32 %v16200_v38, %v16193_v9  ;;  %v12846_v51 = vpop.f32.mrf.mxu0 }
 0x4b9   : > { %v13824_v47 = vld [vmem:[#allocation3 + $0x40c] ss:$36 sps:$4 sm:$0xff]   ;;  %v7751_v29 = vor.u32 %v7750_v16, %v7746_v2  ;;  %v8026_v45 = vsel %vm14224_vm10, %v11889_v19, %v8025_v12  ;;  %v8027_v57 = vrot.slane %v8025_v12, 4  ;;  %v11890_v49 = vrot.slane %v8654_v30, 9  ;;  %v12729_v44 = vpop.f32.mrf.mxu1  ;;  %v8660_v10 = vld [vmem:[#allocation2 + $0x30] sm:$0xe] }
 0x4ba   : > { %v8657_v39 = vld [vmem:[#allocation2 + $0x24] sm:$0xe]  ;;  %v7742_v23 = vrot.slane %v7741_v48, 4  ;;  %8092 = vst [vmem:[#allocation3 + $0x44c] sm:$0xf] %v8026_v45  ;;  %v8752_v40 = vrot.slane %v8655_v63, 5  ;;  %11025 = vmatprep.mubr.bf16.mxu0 %v13824_v47  ;;  %v16232_v54 = vadd.f32 %v12836_v6, %v12724_v28  ;;  %v12727_v36 = vadd.f32 %v12726_v53, %v12725_v11  ;;  %v12847_v37 = vpop.f32.mrf.mxu0 }
 0x4bb   : > { %v13822_v3 = vld [vmem:[#allocation3 + $0x408] ss:$36 sps:$4 sm:$0xff]   ;;  %v7752_v26 = vrot.slane %v7751_v29, 4  ;;  %v8029_v41 = vsel %vm14224_vm10, %v8027_v57, %v8028_v43  ;;  %v8755_v21 = vrot.slane %v8656_v1, 5  ;;  %v8658_v60 = vld [vmem:[#allocation2 + $0x28] sm:$0xf]  ;;  %v12842_v46 = vadd.f32 %v16216_v20, %v16208_v58  ;;  %v12731_v50 = vpop.f32.mrf.mxu1 }
 0x4bc   : > { %11026 = vmatmul.mubr.bf16.gmra.mxu0 %v13822_v3  ;;  %v7747_v5 = vsel %vm14247_vm13, %v7742_v23, %v7746_v2  ;;  %8093 = vst [vmem:[#allocation3 + $0x470] sm:$0xf] %v8029_v41  ;;  %v8753_v9 = vsel %vm14224_vm10, %v11890_v49, %v8752_v40  ;;  %v8754_v38 = vrot.slane %v8752_v40, 4  ;;  %v8661_v34 = vld [vmem:[#allocation2 + $0x34] sm:$0xf]  ;;  %v12730_v25 = vadd.f32 %v12729_v44, %v12728_v0  ;;  %v12849_v63 = vpop.f32.mrf.mxu0 }
 0x4bd   : > { %v7757_v4 = vsel %vm14247_vm13, %v7752_v26, %v7756_v13  ;;  %7820 = vst [vmem:[#allocation3 + $0x448] sm:$0xf] %v7747_v5  ;;  %11033 = vmatprep.mubr.bf16.mxu0 %v13834_v35  ;;  %8894 = vst [vmem:[#allocation3 + $0x20] sm:$0xf] %v8753_v9  ;;  %v8659_v55 = vld [vmem:[#allocation2 + $0x2c] sm:$0x1]  ;;  %v16244_v12 = vadd.f32 %v12839_v56, %v12727_v36  ;;  %v12845_v13 = vadd.f32 %v12844_v17, %v12843_v8  ;;  %v12732_v6 = vpop.f32.mrf.mxu1 }
 0x4be   : > { %v11891_v19 = vrot.slane %v8657_v39, 9  ;;  %v8662_v30 = vld [vmem:[#allocation2 + $0x38] sm:$0x1]  ;;  %v13827_v2 = vld [vmem:[#allocation3 + $0x404] ss:$36 sps:$4 sm:$0xff]   ;;  %v8756_v16 = vsel %vm14224_vm10, %v8754_v38, %v8755_v21  ;;  %v8759_v27 = vrot.slane %v8658_v60, 5  ;;  %v16246_v58 = vadd.f32 %v12842_v46, %v12730_v25  ;;  %v12850_v57 = vpop.f32.mrf.mxu0 }
 0x4bf   : > { %7821 = vst [vmem:[#allocation3 + $0x46c] sm:$0xf] %v7757_v4  ;;  %v13832_v11 = vld [vmem:[#allocation3 + $0x450] ss:$36 sps:$4 sm:$0xff]   ;;  %v8663_v53 = vld [vmem:[#allocation2 + $0x3c] sm:$0xe]  ;;  %10864 = vmatprep.mubr.bf16.mxu1 %v13827_v2  ;;  %v12733_v45 = vadd.f32 %v12732_v6, %v12731_v50  ;;  %v12734_v3 = vpop.f32.mrf.mxu1  ;;  %v12848_v23 = vadd.f32 %v12847_v37, %v12846_v51  ;;  %v12851_v36 = vadd.f32 %v12850_v57, %v12849_v63 }
 0x4c0   : > { %v13825_v48 = vld [vmem:[#allocation3 + $0x400] ss:$36 sps:$4 sm:$0xff]   ;;  %8895 = vst [vmem:[#allocation3 + $0x44] sm:$0xf] %v8756_v16  ;;  %v11892_v20 = vrot.slane %v8660_v10, 9  ;;  %v8766_v43 = vrot.slane %v8661_v34, 5  ;;  %v8760_v1 = vsel %vm14224_vm10, %v11891_v19, %v8759_v27  ;;  %v12852_v44 = vpop.f32.mrf.mxu0 }
 0x4c1   : > { %v8664_v35 = vld [vmem:[#allocation2 + $0x40] sm:$0xf]  ;;  %v8761_v47 = vrot.slane %v8759_v27, 4  ;;  %v8762_v29 = vrot.slane %v8659_v55, 5  ;;  %v8666_v28 = vld [vmem:[#allocation2 + $0x48] sm:$0xe]  ;;  %10865 = vmatmul.mubr.bf16.gmra.mxu1 %v13825_v48  ;;  %v16254_v26 = vadd.f32 %v12845_v13, %v12733_v45  ;;  %v12735_v38 = vpop.f32.mrf.mxu1 }
 0x4c2   : > { %v8667_v8 = vld [vmem:[#allocation2 + $0x4c] sm:$0xf]  ;;  %8896 = vst [vmem:[#allocation3 + $0x68] sm:$0xf] %v8760_v1  ;;  %v8767_v17 = vsel %vm14224_vm10, %v11892_v20, %v8766_v43  ;;  %v8768_v0 = vrot.slane %v8766_v43, 4  ;;  %v8769_v39 = vrot.slane %v8662_v30, 5  ;;  %v12736_v46 = vadd.f32 %v12735_v38, %v12734_v3  ;;  %v12853_v19 = vpop.f32.mrf.mxu0 }
 0x4c3   : > { %v8665_v56 = vld [vmem:[#allocation2 + $0x44] sm:$0x1]  ;;  %v8668_v49 = vld [vmem:[#allocation2 + $0x50] sm:$0x1]  ;;  %v8763_v40 = vsel %vm14224_vm10, %v8761_v47, %v8762_v29  ;;  %8898 = vst [vmem:[#allocation3 + $0xb0] sm:$0xf] %v8767_v17  ;;  %v12737_v16 = vpop.f32.mrf.mxu1 }
 0x4c4   : > { %v11893_v41 = vrot.slane %v8663_v53, 9  ;;  %v8773_v21 = vrot.slane %v8664_v35, 5  ;;  %v8669_v60 = vld [vmem:[#allocation2 + $0x54] sm:$0xe]  ;;  %v8670_v5 = vld [vmem:[#allocation2 + $0x58] sm:$0xf]  ;;  %v8770_v9 = vsel %vm14224_vm10, %v8768_v0, %v8769_v39  ;;  %11034 = vmatmul.mubr.bf16.gmra.mxu0 %v13832_v11  ;;  %v16262_v53 = vadd.f32 %v12853_v19, %v12852_v44  ;;  %v12855_v6 = vpop.f32.mrf.mxu0 }
 0x4c5   : > { %8897 = vst [vmem:[#allocation3 + $0x8c] sm:$0xf] %v8763_v40  ;;  %v11894_v51 = vrot.slane %v8666_v28, 9  ;;  %v8780_v10 = vrot.slane %v8667_v8, 5  ;;  %v8671_v34 = vld [vmem:[#allocation2 + $0x5c] sm:$0x1]  ;;  %v16264_v20 = vadd.f32 %v12848_v23, %v12736_v46  ;;  %v12738_v57 = vpop.f32.mrf.mxu1 }
 0x4c6   : > { %v8672_v37 = vld [vmem:[#allocation2 + $0x60] sm:$0xe]  ;;  %v8673_v4 = vld [vmem:[#allocation2 + $0x64] sm:$0xf]  ;;  %8899 = vst [vmem:[#allocation3 + $0xd4] sm:$0xf] %v8770_v9  ;;  %v8774_v25 = vsel %vm14224_vm10, %v11893_v41, %v8773_v21  ;;  %v12739_v3 = vadd.f32 %v12738_v57, %v12737_v16  ;;  %v12856_v40 = vpop.f32.mrf.mxu0 }
 0x4c7   : > { %v8775_v50 = vrot.slane %v8773_v21, 4  ;;  %v8776_v55 = vrot.slane %v8665_v56, 5  ;;  %v8674_v30 = vld [vmem:[#allocation2 + $0x68] sm:$0x1]  ;;  %8900 = vst [vmem:[#allocation3 + $0xf8] sm:$0xf] %v8774_v25  ;;  %v8781_v27 = vsel %vm14224_vm10, %v11894_v51, %v8780_v10  ;;  %v12740_v21 = vpop.f32.mrf.mxu1  ;;  %v16272_v44 = vadd.f32 %v12856_v40, %v12855_v6 }
 0x4c8   : > { %v13831_v2 = vld [vmem:[#allocation3 + $0x44c] ss:$36 sps:$4 sm:$0xff]   ;;  %v8782_v13 = vrot.slane %v8780_v10, 4  ;;  %v8783_v63 = vrot.slane %v8668_v49, 5  ;;  %v8675_v11 = vld [vmem:[#allocation2 + $0x6c] sm:$0xe]  ;;  %v16276_v10 = vadd.f32 %v12851_v36, %v12739_v3 }
 0x4c9   : > { %v8676_v48 = vld [vmem:[#allocation2 + $0x70] sm:$0xf]  ;;  %v8777_v43 = vsel %vm14224_vm10, %v8775_v50, %v8776_v55  ;;  %8902 = vst [vmem:[#allocation3 + $0x140] sm:$0xf] %v8781_v27  ;;  %v11895_v35 = vrot.slane %v8669_v60, 9  ;;  %v8787_v1 = vrot.slane %v8670_v5, 5  ;;  %10872 = vmatprep.mubr.bf16.mxu1 %v13831_v2  ;;  %v12741_v50 = vpop.f32.mrf.mxu1 }
 0x4ca   : > { %v8678_v47 = vld [vmem:[#allocation2 + $0x78] sm:$0xe]  ;;  %v13829_v29 = vld [vmem:[#allocation3 + $0x448] ss:$36 sps:$4 sm:$0xff]   ;;  %8901 = vst [vmem:[#allocation3 + $0x11c] sm:$0xf] %v8777_v43  ;;  %v8784_v45 = vsel %vm14224_vm10, %v8782_v13, %v8783_v63  ;;  %v12742_v27 = vadd.f32 %v12741_v50, %v12740_v21 }
 0x4cb   : > { %v11896_v28 = vrot.slane %v8672_v37, 9  ;;  %v8794_v8 = vrot.slane %v8673_v4, 5  ;;  %v8677_v17 = vld [vmem:[#allocation2 + $0x74] sm:$0x1]  ;;  %v8679_v0 = vld [vmem:[#allocation2 + $0x7c] sm:$0xf]  ;;  %v8788_v23 = vsel %vm14224_vm10, %v11895_v35, %v8787_v1  ;;  %10873 = vmatmul.mubr.bf16.gmra.mxu1 %v13829_v29  ;;  %v12858_v37 = vpop.f32.mrf.mxu0 }
 0x4cc   : > { %v13835_v39 = vld [vmem:[#allocation3 + $0x20] ss:$36 sps:$4 sm:$0xff]   ;;  %8903 = vst [vmem:[#allocation3 + $0x164] sm:$0xf] %v8784_v45  ;;  %v8789_v56 = vrot.slane %v8787_v1, 4  ;;  %v8790_v49 = vrot.slane %v8671_v34, 5  ;;  %v16289_v57 = vadd.f32 %v16262_v53, %v12742_v27 }
 0x4cd   : > { %v8680_v41 = vld [vmem:[#allocation2 + $0x80] sm:$0x1]  ;;  %8904 = vst [vmem:[#allocation3 + $0x188] sm:$0xf] %v8788_v23  ;;  %v8795_v60 = vsel %vm14224_vm10, %v11896_v28, %v8794_v8  ;;  %v8796_v5 = vrot.slane %v8794_v8, 4  ;;  %v8797_v9 = vrot.slane %v8674_v30, 5  ;;  %13203 = vmatprep.mubr.bf16.mxu1 %v13835_v39  ;;  %v12859_v36 = vpop.f32.mrf.mxu0 }
 0x4ce   : > { %v8681_v38 = vld [vmem:[#allocation2 + $0x84] sm:$0xe]  ;;  %v8682_v51 = vld [vmem:[#allocation2 + $0x88] sm:$0xf]  ;;  %v8791_v34 = vsel %vm14224_vm10, %v8789_v56, %v8790_v49  ;;  %8906 = vst [vmem:[#allocation3 + $0x1d0] sm:$0xf] %v8795_v60  ;;  %v16284_v6 = vadd.f32 %v12859_v36, %v12858_v37 }
 0x4cf   : > { %v11897_v4 = vrot.slane %v8675_v11, 9  ;;  %v8801_v46 = vrot.slane %v8676_v48, 5  ;;  %v8684_v25 = vld [vmem:[#allocation2 + $0x90] sm:$0xe]  ;;  %8905 = vst [vmem:[#allocation3 + $0x1ac] sm:$0xf] %v8791_v34  ;;  %v8798_v55 = vsel %vm14224_vm10, %v8796_v5, %v8797_v9  ;;  %v12743_v48 = vpop.f32.mrf.mxu1  ;;  %v12861_v28 = vpop.f32.mrf.mxu0 }
 0x4d0   : > { %v11898_v19 = vrot.slane %v8678_v47, 9  ;;  %v8808_v30 = vrot.slane %v8679_v0, 5  ;;  %v8683_v2 = vld [vmem:[#allocation2 + $0x8c] sm:$0x1]  ;;  %v8685_v16 = vld [vmem:[#allocation2 + $0x94] sm:$0xf] }
 0x4d1   : > { %8907 = vst [vmem:[#allocation3 + $0x1f4] sm:$0xf] %v8798_v55  ;;  %v8802_v13 = vsel %vm14224_vm10, %v11897_v4, %v8801_v46  ;;  %v8803_v63 = vrot.slane %v8801_v46, 4  ;;  %v8804_v43 = vrot.slane %v8677_v17, 5  ;;  %v8686_v11 = vld [vmem:[#allocation2 + $0x98] sm:$0x1]  ;;  %v12744_v56 = vpop.f32.mrf.mxu1  ;;  %v12862_v5 = vpop.f32.mrf.mxu0 }
 0x4d2   : > { %8908 = vst [vmem:[#allocation3 + $0x218] sm:$0xf] %v8802_v13  ;;  %v8809_v35 = vsel %vm14224_vm10, %v11898_v19, %v8808_v30  ;;  %v8810_v1 = vrot.slane %v8808_v30, 4  ;;  %v8811_v47 = vrot.slane %v8680_v41, 5  ;;  %v8687_v29 = vld [vmem:[#allocation2 + $0x9c] sm:$0xe]  ;;  %v12745_v60 = vadd.f32 %v12744_v56, %v12743_v48 }
 0x4d3   : > { %v8688_v45 = vld [vmem:[#allocation2 + $0xa0] sm:$0xf]  ;;  %v8805_v8 = vsel %vm14224_vm10, %v8803_v63, %v8804_v43  ;;  %8910 = vst [vmem:[#allocation3 + $0x260] sm:$0xf] %v8809_v35  ;;  %v11899_v17 = vrot.slane %v8681_v38, 9  ;;  %v8815_v0 = vrot.slane %v8682_v51, 5  ;;  %v12746_v37 = vpop.f32.mrf.mxu1  ;;  %v12863_v4 = vadd.f32 %v12862_v5, %v12861_v28  ;;  %v12864_v30 = vpop.f32.mrf.mxu0 }
 0x4d4   : > { %v8690_v39 = vld [vmem:[#allocation2 + $0xa8] sm:$0xe]  ;;  %v8691_v3 = vld [vmem:[#allocation2 + $0xac] sm:$0xf]  ;;  %v13836_v23 = vld [vmem:[#allocation3 + $0x68] ss:$36 sps:$4 sm:$0xff]   ;;  %v8812_v49 = vsel %vm14224_vm10, %v8810_v1, %v8811_v47  ;;  %v16300_v19 = vadd.f32 %v16272_v44, %v12745_v60 }
 0x4d5   : > { %8909 = vst [vmem:[#allocation3 + $0x23c] sm:$0xf] %v8805_v8  ;;  %v11900_v40 = vrot.slane %v8684_v25, 9  ;;  %v8822_v41 = vrot.slane %v8685_v16, 5  ;;  %v8689_v21 = vld [vmem:[#allocation2 + $0xa4] sm:$0x1]  ;;  %v8816_v9 = vsel %vm14224_vm10, %v11899_v17, %v8815_v0  ;;  %13204 = vmatmul.mubr.bf16.vlgmr.msra.gmra.mxu1 %v13836_v23  ;;  %v12747_v13 = vpop.f32.mrf.mxu1  ;;  %v12865_v1 = vpop.f32.mrf.mxu0 }
 0x4d6   : > { %v13837_v53 = vld [vmem:[#allocation3 + $0xb0] ss:$36 sps:$4 sm:$0xff]   ;;  %8911 = vst [vmem:[#allocation3 + $0x284] sm:$0xf] %v8812_v49  ;;  %v8817_v38 = vrot.slane %v8815_v0, 4  ;;  %v8818_v51 = vrot.slane %v8683_v2, 5  ;;  %v12748_v35 = vadd.f32 %v12747_v13, %v12746_v37 }
 0x4d7   : > { %v8692_v34 = vld [vmem:[#allocation2 + $0xb0] sm:$0x1]  ;;  %8912 = vst [vmem:[#allocation3 + $0x2a8] sm:$0xf] %v8816_v9  ;;  %v8823_v46 = vsel %vm14224_vm10, %v11900_v40, %v8822_v41  ;;  %v8824_v25 = vrot.slane %v8822_v41, 4  ;;  %v8825_v50 = vrot.slane %v8686_v11, 5  ;;  %13207 = vmatprep.mubr.bf16.mxu1 %v13837_v53  ;;  %v12867_v56 = vpop.f32.mrf.mxu0 }
 0x4d8   : > { %v8693_v55 = vld [vmem:[#allocation2 + $0xb4] sm:$0xe]  ;;  %v8819_v16 = vsel %vm14224_vm10, %v8817_v38, %v8818_v51  ;;  %8914 = vst [vmem:[#allocation3 + $0x2f0] sm:$0xf] %v8823_v46  ;;  %v11901_v2 = vrot.slane %v8687_v29, 9  ;;  %v8829_v27 = vrot.slane %v8688_v45, 5  ;;  %v12749_v29 = vpop.f32.mrf.mxu1  ;;  %v12866_v45 = vadd.f32 %v12865_v1, %v12864_v30 }
 0x4d9   : > { %v8694_v36 = vld [vmem:[#allocation2 + $0xb8] sm:$0xf]  ;;  %8913 = vst [vmem:[#allocation3 + $0x2cc] sm:$0xf] %v8819_v16  ;;  %v8826_v63 = vsel %vm14224_vm10, %v8824_v25, %v8825_v50  ;;  %v11902_v43 = vrot.slane %v8690_v39, 9  ;;  %v8836_v11 = vrot.slane %v8691_v3, 5  ;;  %v16311_v3 = vadd.f32 %v16284_v6, %v12748_v35  ;;  %v12868_v6 = vpop.f32.mrf.mxu0 }
 0x4da   : > { %v8696_v48 = vld [vmem:[#allocation2 + $0xc0] sm:$0xe]  ;;  %8915 = vst [vmem:[#allocation3 + $0x314] sm:$0xf] %v8826_v63  ;;  %v8830_v44 = vsel %vm14224_vm10, %v11901_v2, %v8829_v27  ;;  %v8831_v47 = vrot.slane %v8829_v27, 4  ;;  %v8832_v28 = vrot.slane %v8689_v21, 5  ;;  %v12750_v60 = vpop.f32.mrf.mxu1 }
 0x4db   : > { %v8697_v8 = vld [vmem:[#allocation2 + $0xc4] sm:$0xf]  ;;  %8916 = vst [vmem:[#allocation3 + $0x338] sm:$0xf] %v8830_v44  ;;  %v8837_v17 = vsel %vm14224_vm10, %v11902_v43, %v8836_v11  ;;  %v8838_v0 = vrot.slane %v8836_v11, 4  ;;  %v8839_v23 = vrot.slane %v8692_v34, 5  ;;  %v12751_v34 = vadd.f32 %v12750_v60, %v12749_v29 }
 0x4dc   : > { %v8695_v39 = vld [vmem:[#allocation2 + $0xbc] sm:$0x1]  ;;  %v8833_v49 = vsel %vm14224_vm10, %v8831_v47, %v8832_v28  ;;  %8918 = vst [vmem:[#allocation3 + $0x380] sm:$0xf] %v8837_v17  ;;  %v11903_v40 = vrot.slane %v8693_v55, 9  ;;  %v8843_v41 = vrot.slane %v8694_v36, 5  ;;  %v12752_v50 = vpop.f32.mrf.mxu1  ;;  %v12869_v55 = vadd.f32 %v12868_v6, %v12867_v56  ;;  %v12870_v36 = vpop.f32.mrf.mxu0 }
 0x4dd   : > { %v8698_v21 = vld [vmem:[#allocation2 + $0xc8] sm:$0x1]  ;;  %v13838_v53 = vld [vmem:[#allocation3 + $0xf8] ss:$36 sps:$4 sm:$0xff]   ;;  %8917 = vst [vmem:[#allocation3 + $0x35c] sm:$0xf] %v8833_v49  ;;  %v8840_v5 = vsel %vm14224_vm10, %v8838_v0, %v8839_v23  ;;  %v16321_v27 = vadd.f32 %v12863_v4, %v12751_v34 }
 0x4de   : > { %v11904_v9 = vrot.slane %v8696_v48, 9  ;;  %v8850_v38 = vrot.slane %v8697_v8, 5  ;;  %v13839_v51 = vld [vmem:[#allocation3 + $0x140] ss:$36 sps:$4 sm:$0xff]   ;;  %8919 = vst [vmem:[#allocation3 + $0x3a4] sm:$0xf] %v8840_v5  ;;  %v8844_v37 = vsel %vm14224_vm10, %v11903_v40, %v8843_v41  ;;  %13208 = vmatmul.mubr.bf16.gmra.mxu1 %v13838_v53  ;;  %v12753_v63 = vpop.f32.mrf.mxu1  ;;  %v12871_v48 = vpop.f32.mrf.mxu0 }
 0x4df   : > { %v8845_v46 = vrot.slane %v8843_v41, 4  ;;  %v8846_v25 = vrot.slane %v8695_v39, 5  ;;  %8920 = vst [vmem:[#allocation3 + $0x3c8] sm:$0xf] %v8844_v37  ;;  %v8853_v2 = vrot.slane %v8698_v21, 5  ;;  %13211 = vmatprep.mubr.bf16.mxu1 %v13839_v51  ;;  %v12754_v11 = vadd.f32 %v12753_v63, %v12752_v50 }
 0x4e0   : > { %v8851_v30 = vsel %vm14224_vm10, %v11904_v9, %v8850_v38  ;;  %v8852_v16 = vrot.slane %v8850_v38, 4  ;;  %v12755_v35 = vpop.f32.mrf.mxu1  ;;  %v12872_v1 = vadd.f32 %v12871_v48, %v12870_v36  ;;  %v12873_v47 = vpop.f32.mrf.mxu0  ;;  %v13840_v4 = vld [vmem:[#allocation3 + $0x188] ss:$36 sps:$4 sm:$0xff]   ;;  %v13841_v8 = vld [vmem:[#allocation3 + $0x1d0] ss:$36 sps:$4 sm:$0xff]  }
 0x4e1   : > { %v8847_v13 = vsel %vm14224_vm10, %v8845_v46, %v8846_v25  ;;  %8922 = vst [vmem:[#allocation3 + $0x410] sm:$0xf] %v8851_v30  ;;  %v16327_v44 = vadd.f32 %v12866_v45, %v12754_v11  ;;  %v13842_v60 = vld [vmem:[#allocation3 + $0x218] ss:$36 sps:$4 sm:$0xff]   ;;  %v13843_v9 = vld [vmem:[#allocation3 + $0x260] ss:$36 sps:$4 sm:$0xff]  }
 0x4e2   : > { %8921 = vst [vmem:[#allocation3 + $0x3ec] sm:$0xf] %v8847_v13  ;;  %v8854_v43 = vsel %vm14224_vm10, %v8852_v16, %v8853_v2  ;;  %v12756_v28 = vpop.f32.mrf.mxu1  ;;  %v12874_v17 = vpop.f32.mrf.mxu0  ;;  %v13844_v13 = vld [vmem:[#allocation3 + $0x2a8] ss:$36 sps:$4 sm:$0xff]  }
 0x4e3   : > { %8923 = vst [vmem:[#allocation3 + $0x434] sm:$0xf] %v8854_v43  ;;  %v12757_v29 = vadd.f32 %v12756_v28, %v12755_v35  ;;  %v12875_v23 = vadd.f32 %v12874_v17, %v12873_v47  ;;  %v13845_v43 = vld [vmem:[#allocation3 + $0x2f0] ss:$36 sps:$4 sm:$0xff]  }
 0x4e4   : > { %v12758_v0 = vpop.f32.mrf.mxu1  ;;  %v12876_v59 = vpop.f32.mrf.mxu0 }
 0x4e5   : > { %v16329_v39 = vadd.f32 %v12869_v55, %v12757_v29 }
 0x4e6   : > { %13212 = vmatmul.mubr.bf16.gmra.mxu1 %v13840_v4  ;;  %v12759_v56 = vpop.f32.mrf.mxu1  ;;  %v12877_v40 = vpop.f32.mrf.mxu0 }
 0x4e7   : > { %13215 = vmatprep.mubr.bf16.mxu1 %v13841_v8  ;;  %v12760_v49 = vadd.f32 %v12759_v56, %v12758_v0  ;;  %v12878_v21 = vadd.f32 %v12877_v40, %v12876_v59  ;;  %v13846_v56 = vld [vmem:[#allocation3 + $0x338] ss:$36 sps:$4 sm:$0xff]   ;;  %v13847_v40 = vld [vmem:[#allocation3 + $0x380] ss:$36 sps:$4 sm:$0xff]  }
 0x4e8   : > { %v12761_v41 = vpop.f32.mrf.mxu1  ;;  %v12879_v53 = vpop.f32.mrf.mxu0 }
 0x4e9   : > { %v16331_v45 = vadd.f32 %v12872_v1, %v12760_v49 }
 0x4ea   : > { %v12762_v5 = vpop.f32.mrf.mxu1  ;;  %v12880_v51 = vpop.f32.mrf.mxu0 }
 0x4eb   : > { %v12763_v38 = vadd.f32 %v12762_v5, %v12761_v41  ;;  %v12881_v6 = vadd.f32 %v12880_v51, %v12879_v53 }
 0x4ec   : > { %v12764_v34 = vpop.f32.mrf.mxu1  ;;  %v12882_v46 = vpop.f32.mrf.mxu0 }
 0x4ed   : > { %v16333_v37 = vadd.f32 %v12875_v23, %v12763_v38 }
 0x4ee   : > { %13216 = vmatmul.mubr.bf16.gmra.mxu1 %v13842_v60  ;;  %v12765_v25 = vpop.f32.mrf.mxu1  ;;  %v12883_v55 = vpop.f32.mrf.mxu0 }
 0x4ef   : > { %13219 = vmatprep.mubr.bf16.mxu1 %v13843_v9  ;;  %v12766_v50 = vadd.f32 %v12765_v25, %v12764_v34  ;;  %v12884_v16 = vadd.f32 %v12883_v55, %v12882_v46 }
 0x4f0   : > { %v12767_v30 = vpop.f32.mrf.mxu1  ;;  %v12885_v36 = vpop.f32.mrf.mxu0 }
 0x4f1   : > { %v16335_v2 = vadd.f32 %v12878_v21, %v12766_v50  ;;  %v13848_v50 = vld [vmem:[#allocation3 + $0x3c8] ss:$36 sps:$4 sm:$0xff]  }
 0x4f2   : > { %v12768_v63 = vpop.f32.mrf.mxu1  ;;  %v12886_v48 = vpop.f32.mrf.mxu0 }
 0x4f3   : > { %v12769_v11 = vadd.f32 %v12768_v63, %v12767_v30  ;;  %v12887_v1 = vadd.f32 %v12886_v48, %v12885_v36 }
 0x4f4   : > { %v12770_v35 = vpop.f32.mrf.mxu1  ;;  %v12888_v4 = vpop.f32.mrf.mxu0 }
 0x4f5   : > { %v16337_v47 = vadd.f32 %v12881_v6, %v12769_v11 }
 0x4f6   : > { %13220 = vmatmul.mubr.bf16.gmra.mxu1 %v13844_v13  ;;  %v12771_v28 = vpop.f32.mrf.mxu1  ;;  %v12889_v29 = vpop.f32.mrf.mxu0 }
 0x4f7   : > { %13223 = vmatprep.mubr.bf16.mxu1 %v13845_v43  ;;  %v12772_v8 = vadd.f32 %v12771_v28, %v12770_v35  ;;  %v12890_v0 = vadd.f32 %v12889_v29, %v12888_v4 }
 0x4f8   : > { %v12773_v17 = vpop.f32.mrf.mxu1  ;;  %v13019_v59 = vpop.f32.mrf.mxu0 }
 0x4f9   : > { %v16339_v23 = vadd.f32 %v12884_v16, %v12772_v8  ;;  %v13849_v16 = vld [vmem:[#allocation3 + $0x410] ss:$36 sps:$4 sm:$0xff]  }
 0x4fa   : > { %v12774_v49 = vpop.f32.mrf.mxu1  ;;  %v13020_v21 = vpop.f32.mrf.mxu0 }
 0x4fb   : > { %v12775_v41 = vadd.f32 %v12774_v49, %v12773_v17  ;;  %v13021_v60 = vadd.f32 %v13020_v21, %v13019_v59 }
 0x4fc   : > { %v12776_v53 = vpop.f32.mrf.mxu1  ;;  %v13022_v9 = vpop.f32.mrf.mxu0 }
 0x4fd   : > { %v16341_v5 = vadd.f32 %v12887_v1, %v12775_v41  ;;  %v13850_v1 = vld [vmem:[#allocation3 + $0x458] ss:$36 sps:$4 sm:$0xff]  }
 0x4fe   : > { %13224 = vmatmul.mubr.bf16.gmra.mxu1 %v13846_v56  ;;  %v12777_v38 = vpop.f32.mrf.mxu1  ;;  %v13023_v34 = vpop.f32.mrf.mxu0 }
 0x4ff   : > { %13227 = vmatprep.mubr.bf16.mxu1 %v13847_v40  ;;  %16973 = vst [vmem:[#allocation35_spill] sm:$0xff] %v16341_v5  ;;  %v12778_v51 = vadd.f32 %v12777_v38, %v12776_v53  ;;  %v13024_v46 = vadd.f32 %v13023_v34, %v13022_v9 }
 0x500   : > { %v12907_v6 = vpop.f32.mrf.mxu1  ;;  %v16345_v30 = vpop.f32.mrf.mxu0 }
 0x501   : > { %v16343_v25 = vadd.f32 %v12890_v0, %v12778_v51 }
 0x502   : > { %v12908_v55 = vpop.f32.mrf.mxu1  ;;  %v16347_v63 = vpop.f32.mrf.mxu0 }
 0x503   : > { %16974 = vst [vmem:[#allocation37_spill] sm:$0xff] %v16343_v25  ;;  %v12909_v36 = vadd.f32 %v12908_v55, %v12907_v6 }
 0x504   : > { %v12910_v13 = vpop.f32.mrf.mxu1  ;;  %v16350_v48 = vpop.f32.mrf.mxu0 }
 0x505   : > { %v10755_v43 = vadd.f32 %v12909_v36, %v15999_v18 }
 0x506   : > { %13228 = vmatmul.mubr.bf16.gmra.mxu1 %v13848_v50  ;;  %v12911_v11 = vpop.f32.mrf.mxu1  ;;  %v16352_v28 = vpop.f32.mrf.mxu0 }
 0x507   : > { %13231 = vmatprep.mubr.bf16.mxu1 %v13849_v16  ;;  %v12912_v35 = vadd.f32 %v12911_v11, %v12910_v13 }
 0x508   : > { %v12913_v4 = vpop.f32.mrf.mxu1  ;;  %v16355_v17 = vpop.f32.mrf.mxu0 }
 0x509   : > { %v10758_v8 = vadd.f32 %v12912_v35, %v16002_v32 }
 0x50a   : > { %v12914_v29 = vpop.f32.mrf.mxu1  ;;  %v16357_v56 = vpop.f32.mrf.mxu0 }
 0x50b   : > { %v12915_v0 = vadd.f32 %v12914_v29, %v12913_v4 }
 0x50c   : > { %v12916_v59 = vpop.f32.mrf.mxu1  ;;  %v16362_v40 = vpop.f32.mrf.mxu0 }
 0x50d   : > { %v16360_v18 = vadd.f32 %v12915_v0, %v16089_v31 }
 0x50e   : > { %13232 = vmatmul.mubr.bf16.gmra.mxu1 %v13850_v1  ;;  %v12917_v49 = vpop.f32.mrf.mxu1  ;;  %v16364_v53 = vpop.f32.mrf.mxu0 }
 0x50f   : > { %v12918_v41 = vadd.f32 %v12917_v49, %v12916_v59 }
 0x510   : > { %v12919_v21 = vpop.f32.mrf.mxu1  ;;  %v16369_v38 = vpop.f32.mrf.mxu0 }
 0x511   : > { %v16367_v32 = vadd.f32 %v12918_v41, %v16094_v61  ;;  %v16392_v41 = vadd.f32 %v13021_v60, %v10755_v43 }
 0x512   : > { %v12920_v9 = vpop.f32.mrf.mxu1  ;;  %v16371_v6 = vpop.f32.mrf.mxu0 }
 0x513   : > { %v12921_v51 = vadd.f32 %v12920_v9, %v12919_v21 }
 0x514   : > { %v12922_v34 = vpop.f32.mrf.mxu1  ;;  %v16376_v55 = vpop.f32.mrf.mxu0 }
 0x515   : > { %v16374_v31 = vadd.f32 %v12921_v51, %v16113_v15 }
 0x516   : > { %v12923_v50 = vpop.f32.mrf.mxu1  ;;  %v16378_v13 = vpop.f32.mrf.mxu0 }
 0x517   : > { %v12924_v16 = vadd.f32 %v12923_v50, %v12922_v34 }
 0x518   : > { %v12925_v36 = vpop.f32.mrf.mxu1  ;;  %v16383_v35 = vpop.f32.mrf.mxu0 }
 0x519   : > { %v16381_v61 = vadd.f32 %v12924_v16, %v16122_v33  ;;  %v16401_v16 = vadd.f32 %v13024_v46, %v10758_v8 }
 0x51a   : > { %v12926_v11 = vpop.f32.mrf.mxu1  ;;  %v16385_v29 = vpop.f32.mrf.mxu0 }
 0x51b   : > { %v12927_v1 = vadd.f32 %v12926_v11, %v12925_v36 }
 0x51c   : > { %v12928_v4 = vpop.f32.mrf.mxu1  ;;  %v16390_v59 = vpop.f32.mrf.mxu0 }
 0x51d   : > { %v16388_v15 = vadd.f32 %v12927_v1, %v16145_v7 }
 0x51e   : > { %v12929_v0 = vpop.f32.mrf.mxu1  ;;  %v16394_v9 = vpop.f32.mrf.mxu0 }
 0x51f   : > { %v12930_v49 = vadd.f32 %v12929_v0, %v12928_v4 }
 0x520   : > { %v12931_v21 = vpop.f32.mrf.mxu1  ;;  %v16399_v34 = vpop.f32.mrf.mxu0 }
 0x521   : > { %v16397_v33 = vadd.f32 %v12930_v49, %v16155_v22 }
 0x522   : > { %v12932_v51 = vpop.f32.mrf.mxu1  ;;  %v16403_v36 = vpop.f32.mrf.mxu0 }
 0x523   : > { %v12933_v50 = vadd.f32 %v12932_v51, %v12931_v21 }
 0x524   : > { %v12934_v7 = vpop.f32.mrf.mxu1  ;;  %v16408_v43 = vpop.f32.mrf.mxu0 }
 0x525   : > { %v16406_v11 = vadd.f32 %v12933_v50, %v16169_v24 }
 0x526   : > { %v12935_v60 = vpop.f32.mrf.mxu1  ;;  %v16413_v0 = vpop.f32.mrf.mxu0 }
 0x527   : > { %v12936_v1 = vadd.f32 %v12935_v60, %v12934_v7 }
 0x528   : > { %v12937_v4 = vpop.f32.mrf.mxu1  ;;  %v16418_v51 = vpop.f32.mrf.mxu0 }
 0x529   : > { %v16411_v22 = vadd.f32 %v12936_v1, %v16175_v62  ;;  %16976 = vst [vmem:[#allocation25_spill] sm:$0xff] %v16418_v51 }
 0x52a   : > { %v12938_v49 = vpop.f32.mrf.mxu1  ;;  %v16423_v7 = vpop.f32.mrf.mxu0 }
 0x52b   : > { %16975 = vst [vmem:[#allocation23_spill] sm:$0xff] %v16411_v22  ;;  %v12939_v21 = vadd.f32 %v12938_v49, %v12937_v4  ;;  %16977 = vst [vmem:[#allocation26_spill] sm:$0xff] %v16423_v7 }
 0x52c   : > { %v12940_v46 = vpop.f32.mrf.mxu1  ;;  %v16428_v4 = vpop.f32.mrf.mxu0 }
 0x52d   : > { %v16416_v8 = vadd.f32 %v12939_v21, %v16204_v42  ;;  %16978 = vst [vmem:[#allocation38_spill] sm:$0xff] %v16428_v4 }
 0x52e   : > { %v12941_v24 = vpop.f32.mrf.mxu1  ;;  %v16430_v51 = vpop.f32.mrf.mxu0 }
 0x52f   : > { %v12942_v50 = vadd.f32 %v12941_v24, %v12940_v46  ;;  %16979 = vst [vmem:[#allocation28_spill] sm:$0xff] %v16430_v51 }
 0x530   : > { %v12943_v25 = vpop.f32.mrf.mxu1  ;;  %v16435_v7 = vpop.f32.mrf.mxu0 }
 0x531   : > { %v16421_v5 = vadd.f32 %v12942_v50, %v16206_v52 }
 0x532   : > { %v12944_v62 = vpop.f32.mrf.mxu1 }
 0x533   : > { %v12945_v60 = vadd.f32 %v12944_v62, %v12943_v25 }
 0x534   : > { %v12946_v1 = vpop.f32.mrf.mxu1 }
 0x535   : > { %v16426_v22 = vadd.f32 %v12945_v60, %v16222_v14  ;;  %v16440_v60 = vpop.f32.mrf.mxu0 }
 0x536   : > { %v12947_v42 = vpop.f32.mrf.mxu1 }
 0x537   : > { %v12948_v49 = vadd.f32 %v12947_v42, %v12946_v1  ;;  %v16445_v51 = vpop.f32.mrf.mxu0 }
 0x538   : > { %v12949_v21 = vpop.f32.mrf.mxu1  ;;  %16982 = vst [vmem:[#allocation43_spill] sm:$0xff] %v16445_v51 }
 0x539   : > { %v16433_v46 = vadd.f32 %v12948_v49, %v16232_v54 }
 0x53a   : > { %v12950_v52 = vpop.f32.mrf.mxu1 }
 0x53b   : > { %16980 = vst [vmem:[#allocation27_spill] sm:$0xff] %v16433_v46  ;;  %v12951_v24 = vadd.f32 %v12950_v52, %v12949_v21  ;;  %v16447_v21 = vpop.f32.mrf.mxu0 }
 0x53c   : > { %v12952_v50 = vpop.f32.mrf.mxu1  ;;  %16983 = vst [vmem:[#allocation44_spill] sm:$0xff] %v16447_v21 }
 0x53d   : > { %v16438_v25 = vadd.f32 %v12951_v24, %v16244_v12  ;;  %v16452_v4 = vpop.f32.mrf.mxu0 }
 0x53e   : > { %v12953_v14 = vpop.f32.mrf.mxu1 }
 0x53f   : > { %v12954_v62 = vadd.f32 %v12953_v14, %v12952_v50 }
 0x540   : > { %v12955_v42 = vpop.f32.mrf.mxu1 }
 0x541   : > { %v16443_v1 = vadd.f32 %v12954_v62, %v16246_v58 }
 0x542   : > { %v12956_v54 = vpop.f32.mrf.mxu1 }
 0x543   : > { %16981 = vst [vmem:[#allocation41_spill] sm:$0xff] %v16443_v1  ;;  %v12957_v49 = vadd.f32 %v12956_v54, %v12955_v42  ;;  %v16457_v1 = vpop.f32.mrf.mxu0 }
 0x544   : > { %v12958_v46 = vpop.f32.mrf.mxu1 }
 0x545   : > { %v16450_v52 = vadd.f32 %v12957_v49, %v16254_v26  ;;  %v16462_v26 = vpop.f32.mrf.mxu0 }
 0x546   : > { %v12959_v12 = vpop.f32.mrf.mxu1  ;;  %16986 = vst [vmem:[#allocation30_spill] sm:$0xff] %v16462_v26 }
 0x547   : > { %16984 = vst [vmem:[#allocation29_spill] sm:$0xff] %v16450_v52  ;;  %v12960_v24 = vadd.f32 %v12959_v12, %v12958_v46  ;;  %v16467_v12 = vpop.f32.mrf.mxu0 }
 0x548   : > { %v12961_v58 = vpop.f32.mrf.mxu1  ;;  %16988 = vst [vmem:[#allocation31_spill] sm:$0xff] %v16467_v12 }
 0x549   : > { %v16455_v50 = vadd.f32 %v12960_v24, %v16264_v20 }
 0x54a   : > { %v12962_v14 = vpop.f32.mrf.mxu1 }
 0x54b   : > { %16985 = vst [vmem:[#allocation32_spill] sm:$0xff] %v16455_v50  ;;  %v12963_v62 = vadd.f32 %v12962_v14, %v12961_v58  ;;  %v16469_v58 = vpop.f32.mrf.mxu0 }
 0x54c   : > { %v12964_v51 = vpop.f32.mrf.mxu1 }
 0x54d   : > { %v16460_v42 = vadd.f32 %v12963_v62, %v16276_v10  ;;  %v16474_v52 = vpop.f32.mrf.mxu0 }
 0x54e   : > { %v12965_v54 = vpop.f32.mrf.mxu1 }
 0x54f   : > { %v12966_v21 = vadd.f32 %v12965_v54, %v12964_v51  ;;  %v16479_v54 = vpop.f32.mrf.mxu0 }
 0x551   : > { %v16465_v46 = vadd.f32 %v12966_v21, %v16289_v57 }
 0x552   : > { %v12967_v49 = vpop.f32.mrf.mxu1 }
 0x553   : > { %16987 = vst [vmem:[#allocation33_spill] sm:$0xff] %v16465_v46  ;;  %v16484_v46 = vpop.f32.mrf.mxu0 }
 0x554   : > { %v12968_v20 = vpop.f32.mrf.mxu1 }
 0x555   : > { %v12969_v24 = vadd.f32 %v12968_v20, %v12967_v49 }
 0x556   : > { %v12970_v50 = vpop.f32.mrf.mxu1 }
 0x557   : > { %v16472_v14 = vadd.f32 %v12969_v24, %v16300_v19  ;;  %v16489_v24 = vpop.f32.mrf.mxu0 }
 0x558   : > { %v12971_v10 = vpop.f32.mrf.mxu1 }
 0x559   : > { %16989 = vst [vmem:[#allocation46_spill] sm:$0xff] %v16472_v14  ;;  %v12972_v62 = vadd.f32 %v12971_v10, %v12970_v50 }
 0x55b   : > { %v16477_v51 = vadd.f32 %v12972_v62, %v16311_v3 }
 0x55c   : > { %v12973_v57 = vpop.f32.mrf.mxu1 }
 0x55d   : > { %16990 = vst [vmem:[#allocation47_spill] sm:$0xff] %v16477_v51  ;;  %v16491_v51 = vpop.f32.mrf.mxu0 }
 0x55e   : > { %v12974_v21 = vpop.f32.mrf.mxu1 }
 0x55f   : > { %v12975_v12 = vadd.f32 %v12974_v21, %v12973_v57  ;;  %v16496_v21 = vpop.f32.mrf.mxu0 }
 0x560   : > { %v12976_v26 = vpop.f32.mrf.mxu1 }
 0x561   : > { %v16482_v49 = vadd.f32 %v12975_v12, %v16321_v27 }
 0x562   : > { %v12977_v20 = vpop.f32.mrf.mxu1 }
 0x563   : > { %16991 = vst [vmem:[#allocation24_spill] sm:$0xff] %v16482_v49  ;;  %v12978_v19 = vadd.f32 %v12977_v20, %v12976_v26 }
 0x565   : > { %v16487_v50 = vadd.f32 %v12978_v19, %v16327_v44  ;;  %v16501_v44 = vpop.f32.mrf.mxu0 }
 0x566   : > { %16995 = vst [vmem:[#allocation51_spill] sm:$0xff] %v16501_v44 }
 0x567   : > { %16992 = vst [vmem:[#allocation34_spill] sm:$0xff] %v16487_v50  ;;  %v16503_v49 = vpop.f32.mrf.mxu0 }
 0x568   : > { %v12979_v3 = vpop.f32.mrf.mxu1 }
 0x56a   : > { %v12980_v10 = vpop.f32.mrf.mxu1 }
 0x56b   : > { %v12981_v62 = vadd.f32 %v12980_v10, %v12979_v3 }
 0x56c   : > { %v12982_v14 = vpop.f32.mrf.mxu1 }
 0x56d   : > { %v16494_v57 = vadd.f32 %v12981_v62, %v16329_v39 }
 0x56e   : > { %v12983_v27 = vpop.f32.mrf.mxu1 }
 0x56f   : > { %16993 = vst [vmem:[#allocation49_spill] sm:$0xff] %v16494_v57  ;;  %v12984_v12 = vadd.f32 %v12983_v27, %v12982_v14  ;;  %v16508_v57 = vpop.f32.mrf.mxu0 }
 0x571   : > { %v16499_v26 = vadd.f32 %v12984_v12, %v16331_v45  ;;  %v16513_v27 = vpop.f32.mrf.mxu0 }
 0x573   : > { %16994 = vst [vmem:[#allocation50_spill] sm:$0xff] %v16499_v26 }
 0x574   : > { %v12985_v20 = vpop.f32.mrf.mxu1 }
 0x576   : > { %v12986_v19 = vpop.f32.mrf.mxu1 }
 0x577   : > { %v12987_v50 = vadd.f32 %v12986_v19, %v12985_v20  ;;  %v16515_v20 = vpop.f32.mrf.mxu0 }
 0x578   : > { %v12988_v3 = vpop.f32.mrf.mxu1 }
 0x579   : > { %v16506_v10 = vadd.f32 %v12987_v50, %v16333_v37 }
 0x57a   : > { %v12989_v39 = vpop.f32.mrf.mxu1 }
 0x57b   : > { %16996 = vst [vmem:[#allocation39_spill] sm:$0xff] %v16506_v10  ;;  %v12990_v62 = vadd.f32 %v12989_v39, %v12988_v3  ;;  %v16522_v3 = vpop.f32.mrf.mxu0 }
 0x57d   : > { %v16511_v14 = vadd.f32 %v12990_v62, %v16335_v2 }
 0x57f   : > { %16997 = vst [vmem:[#allocation36_spill] sm:$0xff] %v16511_v14  ;;  %v13033_v14 = vadd.f32 %v16357_v56, %v16355_v17 }
 0x581   : > { %v12991_v45 = vpop.f32.mrf.mxu1 }
 0x583   : > { %v12992_v12 = vpop.f32.mrf.mxu1 }
 0x584   : > { %v12993_v26 = vadd.f32 %v12992_v12, %v12991_v45  ;;  %v13027_v45 = vadd.f32 %v16347_v63, %v16345_v30  ;;  %v16533_v12 = vpop.f32.mrf.mxu0  ;;  %v16550_v30 = vld [vmem:[%s16845_s6] ss:$0 sm:$0xff] }
 0x585   : > { %v12994_v44 = vpop.f32.mrf.mxu1 }
 0x586   : > { %v16518_v19 = vadd.f32 %v12993_v26, %v16337_v47  ;;  %v10924_v26 = vadd.f32 %v13027_v45, %v16360_v18 }
 0x587   : > { %v12995_v37 = vpop.f32.mrf.mxu1 }
 0x588   : > { %16998 = vst [vmem:[#allocation40_spill] sm:$0xff] %v16518_v19  ;;  %v12996_v50 = vadd.f32 %v12995_v37, %v12994_v44  ;;  %v13030_v37 = vadd.f32 %v16352_v28, %v16350_v48 }
 0x58a   : > { %v16525_v2 = vadd.f32 %v12996_v50, %v16339_v23  ;;  %v16541_v23 = vld [vmem:[%s16844_s5] ss:$0 sm:$0xff]  ;;  %v16545_v50 = vpop.f32.mrf.mxu0  ;;  %v10927_v19 = vadd.f32 %v13030_v37, %v16367_v32 }
 0x58b   : > { %v16520_v10 = vpop.f32.mrf.mxu1 }
 0x58c   : > { %16999 = vst [vmem:[#allocation42_spill] sm:$0xff] %v16520_v10  ;;  %17000 = vst [vmem:[#allocation52_spill] sm:$0xff] %v16525_v2  ;;  %v16556_v48 = vpop.f32.mrf.mxu0 }
 0x58d   : > { %v16527_v39 = vpop.f32.mrf.mxu1 }
 0x58e   : > { %17001 = vst [vmem:[#allocation45_spill] sm:$0xff] %v16527_v39  ;;  %v11281_v39 = vld [vmem:[%s14188_s17] sm:$0xff] }
 0x58f   : > { %v16529_v62 = vpop.f32.mrf.mxu1 }
 0x590   : > { %17002 = vst [vmem:[#allocation48_spill] sm:$0xff] %v16529_v62 }
 0x591   : > { %v16535_v47 = vpop.f32.mrf.mxu1 }
 0x592   : > { %17003 = vst [vmem:[#allocation19_spill] sm:$0xff] %v16535_v47  ;;  %v11283_v47 = vld [vmem:[%s14188_s17 + $0x10] sm:$0xff] }
 0x595   : > { %v13205_v44 = vpop.f32.mrf.mxu1 }
 0x596   : > { %v11085_v2 = vadd.f32 %v13205_v44, %v10924_v26 }
 0x597   : > { %v11076_v63 = vpop.f32.mrf.mxu1 }
 0x598   : > { %v11212_v18 = vmul.f32 %v16541_v23, %v11085_v2  ;;  %v11077_v45 = vadd.f32 %v11076_v63, %v16392_v41  ;;  %v13039_v2 = vadd.f32 %v16371_v6, %v16369_v38  ;;  %v10932_v38 = vadd.f32 %v13033_v14, %v16374_v31  ;;  %v16573_v6 = vpop.f32.mrf.mxu0 }
 0x599   : > { %v13206_v62 = vpop.f32.mrf.mxu1 }
 0x59a   : > { %v11251_v28 = vadd.f32 %v16550_v30, %v11212_v18  ;;  %v11210_v26 = vmul.f32 %v16541_v23, %v11077_v45  ;;  %v11088_v44 = vadd.f32 %v13206_v62, %v10927_v19  ;;  %v13042_v19 = vadd.f32 %v16378_v13, %v16376_v55  ;;  %v11284_v62 = vld [vmem:[%s14188_s17 + $0x18] sm:$0xff] }
 0x59b   : > { %v11079_v41 = vpop.f32.mrf.mxu1  ;;  %v10940_v17 = vadd.f32 %v13039_v2, %v16388_v15  ;;  %v16591_v2 = vpop.f32.mrf.mxu0 }
 0x59c   : > { %v11315_v32 = vadd.f32 %v11283_v47, %v11251_v28  ;;  %v11249_v37 = vadd.f32 %v16550_v30, %v11210_v26  ;;  %v11213_v63 = vmul.f32 %v16541_v23, %v11088_v44  ;;  %v11080_v10 = vadd.f32 %v11079_v41, %v16401_v16  ;;  %v11282_v26 = vld [vmem:[%s14188_s17 + $0x8] sm:$0xff] }
 0x59d   : > { %v13036_v16 = vadd.f32 %v16364_v53, %v16362_v40  ;;  %v10943_v13 = vadd.f32 %v13042_v19, %v16397_v33  ;;  %v13051_v40 = vadd.f32 %v16403_v36, %v16399_v34 }
 0x59e   : > { %v13209_v56 = vpop.f32.mrf.mxu1  ;;  %v11347_v18 = vmax.f32 %v11315_v32, 0.0  ;;  %v11313_v47 = vadd.f32 %v11281_v39, %v11249_v37  ;;  %v11252_v45 = vadd.f32 %v16550_v30, %v11213_v63  ;;  %v11211_v28 = vmul.f32 %v16541_v23, %v11080_v10  ;;  %v11287_v37 = vld [vmem:[%s14188_s17 + $0x30] sm:$0xff] }
 0x59f   : > { %v11101_v44 = vadd.f32 %v13209_v56, %v10940_v17  ;;  %v10935_v33 = vadd.f32 %v13036_v16, %v16381_v61  ;;  %v11285_v17 = vld [vmem:[%s14188_s17 + $0x20] sm:$0xff]  ;;  %v10956_v36 = vadd.f32 %v13051_v40, %v16416_v8  ;;  %v11288_v16 = vld [vmem:[%s14188_s17 + $0x38] sm:$0xff] }
 0x5a0   : > { %v11092_v55 = vpop.f32.mrf.mxu1  ;;  %11379 = vst [vmem:[%s16583_s30 + $0x10] sm:$0xff] %v11347_v18  ;;  %v11345_v31 = vmax.f32 %v11313_v47, 0.0  ;;  %v11316_v15 = vadd.f32 %v11284_v62, %v11252_v45  ;;  %v11250_v10 = vadd.f32 %v16550_v30, %v11211_v28  ;;  %v13045_v47 = vadd.f32 %v16385_v29, %v16383_v35 }
 0x5a1   : > { %v11093_v14 = vadd.f32 %v11092_v55, %v10932_v38  ;;  %v11216_v53 = vmul.f32 %v16541_v23, %v11101_v44  ;;  %v13054_v45 = vadd.f32 %v16413_v0, %v16408_v43  ;;  %v16607_v44 = vpop.f32.mrf.mxu0  ;;  %v13048_v35 = vadd.f32 %v16394_v9, %v16390_v59  ;;  %v11286_v43 = vld [vmem:[%s14188_s17 + $0x28] sm:$0xff]  ;;  %v11291_v59 = vld [vmem:[%s14188_s17 + $0x50] sm:$0xff] }
 0x5a2   : > { %v13210_v39 = vpop.f32.mrf.mxu1  ;;  %11377 = vst [vmem:[%s16583_s30] sm:$0xff] %v11345_v31  ;;  %v11348_v41 = vmax.f32 %v11316_v15, 0.0  ;;  %v11314_v32 = vadd.f32 %v11282_v26, %v11250_v10  ;;  %v10948_v0 = vadd.f32 %v13045_v47, %v16406_v11 }
 0x5a3   : > { %v11214_v63 = vmul.f32 %v16541_v23, %v11093_v14  ;;  %v11104_v19 = vadd.f32 %v13210_v39, %v10943_v13  ;;  %v11255_v62 = vadd.f32 %v16550_v30, %v11216_v53  ;;  %v10959_v10 = vadd.f32 %v13054_v45, %v16421_v5 }
 0x5a4   : > { %v11095_v34 = vpop.f32.mrf.mxu1  ;;  %11380 = vst [vmem:[%s16583_s30 + $0x18] sm:$0xff] %v11348_v41  ;;  %v11346_v56 = vmax.f32 %v11314_v32, 0.0  ;;  %v17004_v32 = vld [vmem:[#allocation23_spill] sm:$0xff] }
 0x5a5   : > { %v11253_v61 = vadd.f32 %v16550_v30, %v11214_v63  ;;  %v11217_v38 = vmul.f32 %v16541_v23, %v11104_v19  ;;  %v11096_v18 = vadd.f32 %v11095_v34, %v10935_v33  ;;  %v11319_v28 = vadd.f32 %v11287_v37, %v11255_v62  ;;  %v16624_v37 = vpop.f32.mrf.mxu0  ;;  %v17006_v34 = vld [vmem:[#allocation26_spill] sm:$0xff] }
 0x5a6   : > { %v13213_v26 = vpop.f32.mrf.mxu1  ;;  %11378 = vst [vmem:[%s16583_s30 + $0x8] sm:$0xff] %v11346_v56  ;;  %v13063_v33 = vadd.f32 %v16440_v60, %v16435_v7  ;;  %v10951_v11 = vadd.f32 %v13048_v35, %v17004_v32 }
 0x5a7   : > { %v11317_v8 = vadd.f32 %v11285_v17, %v11253_v61  ;;  %v11256_v55 = vadd.f32 %v16550_v30, %v11217_v38  ;;  %v11215_v13 = vmul.f32 %v16541_v23, %v11096_v18  ;;  %v11117_v31 = vadd.f32 %v13213_v26, %v10956_v36  ;;  %v17005_v17 = vld [vmem:[#allocation25_spill] sm:$0xff]  ;;  %v11289_v18 = vld [vmem:[%s14188_s17 + $0x40] sm:$0xff] }
 0x5a8   : > { %v11351_v29 = vmax.f32 %v11319_v28, 0.0  ;;  %v11108_v15 = vpop.f32.mrf.mxu1  ;;  %v13057_v7 = vadd.f32 %v17006_v34, %v17005_v17  ;;  %v10972_v56 = vadd.f32 %v13063_v33, %v16438_v25 }
 0x5a9   : > { %v11349_v14 = vmax.f32 %v11317_v8, 0.0  ;;  %v11320_v40 = vadd.f32 %v11288_v16, %v11256_v55  ;;  %v11254_v53 = vadd.f32 %v16550_v30, %v11215_v13  ;;  %v11220_v39 = vmul.f32 %v16541_v23, %v11117_v31  ;;  %v11292_v16 = vld [vmem:[%s14188_s17 + $0x58] sm:$0xff]  ;;  %v16638_v55 = vpop.f32.mrf.mxu0 }
 0x5aa   : > { %11383 = vst [vmem:[%s16583_s30 + $0x30] sm:$0xff] %v11351_v29  ;;  %v11109_v9 = vadd.f32 %v11108_v15, %v10948_v0  ;;  %v13214_v41 = vpop.f32.mrf.mxu1  ;;  %v10964_v8 = vadd.f32 %v13057_v7, %v16426_v22  ;;  %v17007_v29 = vld [vmem:[#allocation38_spill] sm:$0xff]  ;;  %v17009_v15 = vld [vmem:[#allocation43_spill] sm:$0xff] }
 0x5ab   : > { %11381 = vst [vmem:[%s16583_s30 + $0x20] sm:$0xff] %v11349_v14  ;;  %v11352_v5 = vmax.f32 %v11320_v40, 0.0  ;;  %v11318_v63 = vadd.f32 %v11286_v43, %v11254_v53  ;;  %v11259_v19 = vadd.f32 %v16550_v30, %v11220_v39  ;;  %v11120_v62 = vadd.f32 %v13214_v41, %v10959_v10  ;;  %v17008_v43 = vld [vmem:[#allocation28_spill] sm:$0xff]  ;;  %v11290_v53 = vld [vmem:[%s14188_s17 + $0x48] sm:$0xff]  ;;  %v16656_v34 = vpop.f32.mrf.mxu0 }
 0x5ac   : > { %v11218_v60 = vmul.f32 %v16541_v23, %v11109_v9  ;;  %v11111_v36 = vpop.f32.mrf.mxu1  ;;  %v13060_v0 = vadd.f32 %v17008_v43, %v17007_v29  ;;  %v17010_v10 = vld [vmem:[#allocation44_spill] sm:$0xff]  ;;  %v13075_v41 = vadd.f32 %v16474_v52, %v16469_v58  ;;  %v11293_v52 = vld [vmem:[%s14188_s17 + $0x60] sm:$0xff] }
 0x5ad   : > { %11384 = vst [vmem:[%s16583_s30 + $0x38] sm:$0xff] %v11352_v5  ;;  %v11350_v61 = vmax.f32 %v11318_v63, 0.0  ;;  %v11323_v38 = vadd.f32 %v11291_v59, %v11259_v19  ;;  %v11221_v47 = vmul.f32 %v16541_v23, %v11120_v62  ;;  %v11112_v45 = vadd.f32 %v11111_v36, %v10951_v11  ;;  %v11295_v11 = vld [vmem:[%s14188_s17 + $0x70] sm:$0xff]  ;;  %v17011_v5 = vld [vmem:[#allocation41_spill] sm:$0xff]  ;;  %v17012_v62 = vld [vmem:[#allocation27_spill] sm:$0xff] }
 0x5ae   : > { %v11257_v28 = vadd.f32 %v16550_v30, %v11218_v60  ;;  %v13217_v26 = vpop.f32.mrf.mxu1  ;;  %v13066_v14 = vadd.f32 %v17010_v10, %v17009_v15  ;;  %v10967_v17 = vadd.f32 %v13060_v0, %v17012_v62  ;;  %v11294_v15 = vld [vmem:[%s14188_s17 + $0x68] sm:$0xff] }
 0x5af   : > { %11382 = vst [vmem:[%s16583_s30 + $0x28] sm:$0xff] %v11350_v61  ;;  %v11355_v13 = vmax.f32 %v11323_v38, 0.0  ;;  %v11260_v25 = vadd.f32 %v16550_v30, %v11221_v47  ;;  %v11219_v31 = vmul.f32 %v16541_v23, %v11112_v45  ;;  %v11133_v35 = vadd.f32 %v13217_v26, %v10972_v56 }
 0x5b0   : > { %v11321_v40 = vadd.f32 %v11289_v18, %v11257_v28  ;;  %v11124_v39 = vpop.f32.mrf.mxu1  ;;  %v10975_v63 = vadd.f32 %v13066_v14, %v17011_v5  ;;  %v13069_v61 = vadd.f32 %v16457_v1, %v16452_v4  ;;  %v10988_v18 = vadd.f32 %v13075_v41, %v16460_v42 }
 0x5b1   : > { %11387 = vst [vmem:[%s16583_s30 + $0x50] sm:$0xff] %v11355_v13  ;;  %v11324_v22 = vadd.f32 %v11292_v16, %v11260_v25  ;;  %v11258_v33 = vadd.f32 %v16550_v30, %v11219_v31  ;;  %v11224_v59 = vmul.f32 %v16541_v23, %v11133_v35  ;;  %v11125_v9 = vadd.f32 %v11124_v39, %v10964_v8  ;;  %v17013_v8 = vld [vmem:[#allocation29_spill] sm:$0xff]  ;;  %v16671_v25 = vpop.f32.mrf.mxu0 }
 0x5b2   : > { %v11353_v32 = vmax.f32 %v11321_v40, 0.0  ;;  %v13218_v19 = vpop.f32.mrf.mxu1  ;;  %v13078_v26 = vadd.f32 %v16484_v46, %v16479_v54  ;;  %v10980_v13 = vadd.f32 %v13069_v61, %v17013_v8  ;;  %v11296_v35 = vld [vmem:[%s14188_s17 + $0x78] sm:$0xff]  ;;  %v17018_v61 = vld [vmem:[#allocation24_spill] sm:$0xff] }
 0x5b3   : > { %v11356_v7 = vmax.f32 %v11324_v22, 0.0  ;;  %v11322_v60 = vadd.f32 %v11290_v53, %v11258_v33  ;;  %v11263_v36 = vadd.f32 %v16550_v30, %v11224_v59  ;;  %v11222_v56 = vmul.f32 %v16541_v23, %v11125_v9  ;;  %v17014_v54 = vld [vmem:[#allocation33_spill] sm:$0xff]  ;;  %v17015_v22 = vld [vmem:[#allocation30_spill] sm:$0xff]  ;;  %v17016_v33 = vld [vmem:[#allocation31_spill] sm:$0xff]  ;;  %v16687_v5 = vpop.f32.mrf.mxu0 }
 0x5b4   : > { %11385 = vst [vmem:[%s16583_s30 + $0x40] sm:$0xff] %v11353_v32  ;;  %v11136_v58 = vadd.f32 %v13218_v19, %v10975_v63  ;;  %v11127_v38 = vpop.f32.mrf.mxu1  ;;  %v10991_v10 = vadd.f32 %v13078_v26, %v17014_v54  ;;  %v13072_v59 = vadd.f32 %v17016_v33, %v17015_v22  ;;  %v13087_v9 = vadd.f32 %v16508_v57, %v16503_v49  ;;  %v11299_v32 = vld [vmem:[%s14188_s17 + $0x90] sm:$0xff]  ;;  %v11297_v49 = vld [vmem:[%s14188_s17 + $0x80] sm:$0xff]  ;;  %v11298_v54 = vld [vmem:[%s14188_s17 + $0x88] sm:$0xff] }
 0x5b5   : > { %11388 = vst [vmem:[%s16583_s30 + $0x58] sm:$0xff] %v11356_v7  ;;  %v11354_v47 = vmax.f32 %v11322_v60, 0.0  ;;  %v11327_v45 = vadd.f32 %v11295_v11, %v11263_v36  ;;  %v11261_v28 = vadd.f32 %v16550_v30, %v11222_v56  ;;  %v11128_v16 = vadd.f32 %v11127_v38, %v10967_v17  ;;  %v17017_v57 = vld [vmem:[#allocation32_spill] sm:$0xff]  ;;  %v17019_v26 = vld [vmem:[#allocation46_spill] sm:$0xff]  ;;  %v17022_v33 = vld [vmem:[#allocation47_spill] sm:$0xff] }
 0x5b6   : > { %v11225_v4 = vmul.f32 %v16541_v23, %v11136_v58  ;;  %v13221_v1 = vpop.f32.mrf.mxu1  ;;  %v13081_v7 = vadd.f32 %v16491_v51, %v16489_v24  ;;  %v10983_v36 = vadd.f32 %v13072_v59, %v17017_v57  ;;  %v13109_v58 = vpop.f32.mrf.mxu0  ;;  %v11300_v51 = vld [vmem:[%s14188_s17 + $0x98] sm:$0xff] }
 0x5b7   : > { %11386 = vst [vmem:[%s16583_s30 + $0x48] sm:$0xff] %v11354_v47  ;;  %v11359_v42 = vmax.f32 %v11327_v45, 0.0  ;;  %v11325_v31 = vadd.f32 %v11293_v52, %v11261_v28  ;;  %v11223_v29 = vmul.f32 %v16541_v23, %v11128_v16  ;;  %v11149_v43 = vadd.f32 %v13221_v1, %v10988_v18 }
 0x5b8   : > { %v11264_v0 = vadd.f32 %v16550_v30, %v11225_v4  ;;  %v11140_v46 = vpop.f32.mrf.mxu1  ;;  %v11004_v52 = vadd.f32 %v13087_v9, %v17018_v61  ;;  %v13090_v28 = vadd.f32 %v16515_v20, %v16513_v27  ;;  %v10996_v4 = vadd.f32 %v13081_v7, %v17019_v26  ;;  %v17026_v61 = vld [vmem:[#allocation49_spill] sm:$0xff] }
 0x5b9   : > { %11391 = vst [vmem:[%s16583_s30 + $0x70] sm:$0xff] %v11359_v42  ;;  %v11357_v14 = vmax.f32 %v11325_v31, 0.0  ;;  %v11262_v40 = vadd.f32 %v16550_v30, %v11223_v29  ;;  %v11228_v53 = vmul.f32 %v16541_v23, %v11149_v43  ;;  %v11141_v39 = vadd.f32 %v11140_v46, %v10980_v13  ;;  %v17020_v31 = vld [vmem:[#allocation51_spill] sm:$0xff]  ;;  %v17021_v29 = vld [vmem:[#allocation34_spill] sm:$0xff] }
 0x5ba   : > { %v11328_v41 = vadd.f32 %v11296_v35, %v11264_v0  ;;  %v13222_v11 = vpop.f32.mrf.mxu1  ;;  %v13084_v35 = vadd.f32 %v17020_v31, %v16496_v21  ;;  %v11007_v43 = vadd.f32 %v13090_v28, %v17021_v29  ;;  %v13110_v0 = vpop.f32.mrf.mxu0  ;;  %v13096_v21 = vadd.f32 %v16556_v48, %v16545_v50  ;;  %v17023_v50 = vld [vmem:[#allocation42_spill] sm:$0xff]  ;;  %v17024_v48 = vld [vmem:[#allocation45_spill] sm:$0xff] }
 0x5bb   : > { %11389 = vst [vmem:[%s16583_s30 + $0x60] sm:$0xff] %v11357_v14  ;;  %v11326_v63 = vadd.f32 %v11294_v15, %v11262_v40  ;;  %v11267_v19 = vadd.f32 %v16550_v30, %v11228_v53  ;;  %v11226_v62 = vmul.f32 %v16541_v23, %v11141_v39  ;;  %v11152_v17 = vadd.f32 %v13222_v11, %v10991_v10  ;;  %v11303_v39 = vld [vmem:[%s14188_s17 + $0xb0] sm:$0xff] }
 0x5bc   : > { %v11360_v60 = vmax.f32 %v11328_v41, 0.0  ;;  %v11143_v56 = vpop.f32.mrf.mxu1  ;;  %v13093_v40 = vadd.f32 %v16533_v12, %v16522_v3  ;;  %v10999_v59 = vadd.f32 %v13084_v35, %v17022_v33  ;;  %v13099_v3 = vadd.f32 %v16591_v2, %v16573_v6  ;;  %v13112_v7 = vpop.f32.mrf.mxu0  ;;  %v11304_v2 = vld [vmem:[%s14188_s17 + $0xb8] sm:$0xff] }
 0x5bd   : > { %v11358_v38 = vmax.f32 %v11326_v63, 0.0  ;;  %v11331_v18 = vadd.f32 %v11299_v32, %v11267_v19  ;;  %v11265_v47 = vadd.f32 %v16550_v30, %v11226_v62  ;;  %v11229_v45 = vmul.f32 %v16541_v23, %v11152_v17  ;;  %v11301_v62 = vld [vmem:[%s14188_s17 + $0xa0] sm:$0xff] }
 0x5be   : > { %11392 = vst [vmem:[%s16583_s30 + $0x78] sm:$0xff] %v11360_v60  ;;  %v11144_v24 = vadd.f32 %v11143_v56, %v10983_v36  ;;  %v13225_v16 = vpop.f32.mrf.mxu1  ;;  %v13102_v12 = vadd.f32 %v16624_v37, %v16607_v44  ;;  %v12999_v63 = vadd.f32 %v17024_v48, %v17023_v50  ;;  %v17025_v56 = vld [vmem:[#allocation39_spill] sm:$0xff]  ;;  %v13111_v26 = vadd.f32 %v13110_v0, %v13109_v58  ;;  %v13113_v35 = vpop.f32.mrf.mxu0  ;;  %v17031_v0 = vld [vmem:[#allocation50_spill] sm:$0xff] }
 0x5bf   : > { %11390 = vst [vmem:[%s16583_s30 + $0x68] sm:$0xff] %v11358_v38  ;;  %v11363_v1 = vmax.f32 %v11331_v18, 0.0  ;;  %v11329_v8 = vadd.f32 %v11297_v49, %v11265_v47  ;;  %v11268_v13 = vadd.f32 %v16550_v30, %v11229_v45  ;;  %v11165_v42 = vadd.f32 %v13225_v16, %v11004_v52  ;;  %v17027_v38 = vld [vmem:[#allocation36_spill] sm:$0xff] }
 0x5c0   : > { %v11227_v27 = vmul.f32 %v16541_v23, %v11144_v24  ;;  %v11156_v20 = vpop.f32.mrf.mxu1  ;;  %v11020_v44 = vadd.f32 %v13099_v3, %v17025_v56  ;;  %v11012_v52 = vadd.f32 %v13093_v40, %v17026_v61  ;;  %v11023_v18 = vadd.f32 %v13102_v12, %v17027_v38  ;;  %v17028_v24 = vld [vmem:[#allocation35_spill] sm:$0xff] }
 0x5c1   : > { %11395 = vst [vmem:[%s16583_s30 + $0x90] sm:$0xff] %v11363_v1  ;;  %v11361_v15 = vmax.f32 %v11329_v8, 0.0  ;;  %v11332_v46 = vadd.f32 %v11300_v51, %v11268_v13  ;;  %v11232_v10 = vmul.f32 %v16541_v23, %v11165_v42  ;;  %v11157_v14 = vadd.f32 %v11156_v20, %v10996_v4  ;;  %v17029_v4 = vld [vmem:[#allocation48_spill] sm:$0xff]  ;;  %v17030_v1 = vld [vmem:[#allocation19_spill] sm:$0xff] }
 0x5c2   : > { %v11266_v53 = vadd.f32 %v16550_v30, %v11227_v27  ;;  %v13226_v22 = vpop.f32.mrf.mxu1  ;;  %v10875_v16 = vadd.f32 %v12999_v63, %v17028_v24  ;;  %v13002_v8 = vadd.f32 %v17030_v1, %v17029_v4  ;;  %v11302_v13 = vld [vmem:[%s14188_s17 + $0xa8] sm:$0xff]  ;;  %v13114_v33 = vadd.f32 %v13113_v35, %v13112_v7  ;;  %v11308_v63 = vld [vmem:[%s14188_s17 + $0xd8] sm:$0xff]  ;;  %v11309_v1 = vld [vmem:[%s14188_s17 + $0xe0] sm:$0xff] }
 0x5c3   : > { %11393 = vst [vmem:[%s16583_s30 + $0x80] sm:$0xff] %v11361_v15  ;;  %v11364_v9 = vmax.f32 %v11332_v46, 0.0  ;;  %v11271_v41 = vadd.f32 %v16550_v30, %v11232_v10  ;;  %v11230_v32 = vmul.f32 %v16541_v23, %v11157_v14  ;;  %v11168_v11 = vadd.f32 %v13226_v22, %v11007_v43  ;;  %v11307_v14 = vld [vmem:[%s14188_s17 + $0xd0] sm:$0xff] }
 0x5c4   : > { %v11330_v19 = vadd.f32 %v11298_v54, %v11266_v53  ;;  %v11159_v17 = vpop.f32.mrf.mxu1  ;;  %v11015_v46 = vadd.f32 %v13096_v21, %v17031_v0  ;;  %v13105_v50 = vadd.f32 %v16656_v34, %v16638_v55 }
 0x5c5   : > { %11396 = vst [vmem:[%s16583_s30 + $0x98] sm:$0xff] %v11364_v9  ;;  %v11335_v60 = vadd.f32 %v11303_v39, %v11271_v41  ;;  %v11269_v49 = vadd.f32 %v16550_v30, %v11230_v32  ;;  %v11233_v57 = vmul.f32 %v16541_v23, %v11168_v11  ;;  %v11160_v36 = vadd.f32 %v11159_v17, %v10999_v59  ;;  %v17032_v39 = vld [vmem:[#allocation37_spill] sm:$0xff]  ;;  %v11305_v9 = vld [vmem:[%s14188_s17 + $0xc0] sm:$0xff] }
 0x5c6   : > { %v11362_v6 = vmax.f32 %v11330_v19, 0.0  ;;  %v13229_v37 = vpop.f32.mrf.mxu1  ;;  %v10878_v22 = vadd.f32 %v13002_v8, %v17032_v39  ;;  %v11036_v32 = vadd.f32 %v13111_v26, %v10875_v16 }
 0x5c7   : > { %v11367_v47 = vmax.f32 %v11335_v60, 0.0  ;;  %v11333_v45 = vadd.f32 %v11301_v62, %v11269_v49  ;;  %v11272_v28 = vadd.f32 %v16550_v30, %v11233_v57  ;;  %v11231_v51 = vmul.f32 %v16541_v23, %v11160_v36  ;;  %v11306_v36 = vld [vmem:[%s14188_s17 + $0xc8] sm:$0xff] }
 0x5c8   : > { %11394 = vst [vmem:[%s16583_s30 + $0x88] sm:$0xff] %v11362_v6  ;;  %v11181_v42 = vadd.f32 %v13229_v37, %v11020_v44  ;;  %v11172_v31 = vpop.f32.mrf.mxu1  ;;  %v13108_v49 = vadd.f32 %v16687_v5, %v16671_v25  ;;  %v17033_v6 = vld [vmem:[#allocation40_spill] sm:$0xff] }
 0x5c9   : > { %11399 = vst [vmem:[%s16583_s30 + $0xb0] sm:$0xff] %v11367_v47  ;;  %v11365_v27 = vmax.f32 %v11333_v45, 0.0  ;;  %v11336_v20 = vadd.f32 %v11304_v2, %v11272_v28  ;;  %v11270_v29 = vadd.f32 %v16550_v30, %v11231_v51  ;;  %v11173_v43 = vadd.f32 %v11172_v31, %v11012_v52  ;;  %v11311_v52 = vld [vmem:[%s14188_s17 + $0xf0] sm:$0xff]  ;;  %v11312_v31 = vld [vmem:[%s14188_s17 + $0xf8] sm:$0xff] }
 0x5ca   : > { %v11236_v15 = vmul.f32 %v16541_v23, %v11181_v42  ;;  %v13230_v58 = vpop.f32.mrf.mxu1  ;;  %v11028_v55 = vadd.f32 %v13105_v50, %v17033_v6  ;;  %v11039_v2 = vadd.f32 %v13114_v33, %v10878_v22  ;;  %v17034_v47 = vld [vmem:[#allocation52_spill] sm:$0xff] }
 0x5cb   : > { %11397 = vst [vmem:[%s16583_s30 + $0xa0] sm:$0xff] %v11365_v27  ;;  %v11368_v54 = vmax.f32 %v11336_v20, 0.0  ;;  %v11334_v10 = vadd.f32 %v11302_v13, %v11270_v29  ;;  %v11234_v40 = vmul.f32 %v16541_v23, %v11173_v43  ;;  %v11184_v53 = vadd.f32 %v13230_v58, %v11023_v18  ;;  %v11310_v43 = vld [vmem:[%s14188_s17 + $0xe8] sm:$0xff]  ;;  %s11410_s17 = scalar_lea.sflag [#allocation6], %s14182_s15 }
 0x5cc   : > { %v11275_v59 = vadd.f32 %v16550_v30, %v11236_v15  ;;  %v11175_v41 = vpop.f32.mrf.mxu1  ;;  %v11031_v25 = vadd.f32 %v13108_v49, %v17034_v47 }
 0x5cd   : > { %11400 = vst [vmem:[%s16583_s30 + $0xb8] sm:$0xff] %v11368_v54  ;;  %v11366_v21 = vmax.f32 %v11334_v10, 0.0  ;;  %v11273_v11 = vadd.f32 %v16550_v30, %v11234_v40  ;;  %v11237_v3 = vmul.f32 %v16541_v23, %v11184_v53  ;;  %v11176_v12 = vadd.f32 %v11175_v41, %v11015_v46 }
 0x5ce   : > { %v11339_v48 = vadd.f32 %v11307_v14, %v11275_v59  ;;  %v13233_v19 = vpop.f32.mrf.mxu1 }
 0x5cf   : > { %11398 = vst [vmem:[%s16583_s30 + $0xa8] sm:$0xff] %v11366_v21  ;;  %v11337_v62 = vadd.f32 %v11305_v9, %v11273_v11  ;;  %v11276_v17 = vadd.f32 %v16550_v30, %v11237_v3  ;;  %v11235_v7 = vmul.f32 %v16541_v23, %v11176_v12  ;;  %v11197_v60 = vadd.f32 %v13233_v19, %v11036_v32 }
 0x5d0   : > { %v11371_v57 = vmax.f32 %v11339_v48, 0.0  ;;  %v11188_v34 = vpop.f32.mrf.mxu1 }
 0x5d1   : > { %v11369_v56 = vmax.f32 %v11337_v62, 0.0  ;;  %v11340_v44 = vadd.f32 %v11308_v63, %v11276_v17  ;;  %v11274_v37 = vadd.f32 %v16550_v30, %v11235_v7  ;;  %v11240_v61 = vmul.f32 %v16541_v23, %v11197_v60 }
 0x5d2   : > { %11403 = vst [vmem:[%s16583_s30 + $0xd0] sm:$0xff] %v11371_v57  ;;  %v11189_v38 = vadd.f32 %v11188_v34, %v11028_v55  ;;  %v13234_v18 = vpop.f32.mrf.mxu1 }
 0x5d3   : > { %11401 = vst [vmem:[%s16583_s30 + $0xc0] sm:$0xff] %v11369_v56  ;;  %v11372_v5 = vmax.f32 %v11340_v44, 0.0  ;;  %v11338_v45 = vadd.f32 %v11306_v36, %v11274_v37  ;;  %v11279_v28 = vadd.f32 %v16550_v30, %v11240_v61  ;;  %v11200_v51 = vadd.f32 %v13234_v18, %v11039_v2 }
 0x5d4   : > { %v11238_v24 = vmul.f32 %v16541_v23, %v11189_v38  ;;  %v11191_v16 = vpop.f32.mrf.mxu1 }
 0x5d5   : > { %11404 = vst [vmem:[%s16583_s30 + $0xd8] sm:$0xff] %v11372_v5  ;;  %v11370_v26 = vmax.f32 %v11338_v45, 0.0  ;;  %v11343_v4 = vadd.f32 %v11311_v52, %v11279_v28  ;;  %v11241_v8 = vmul.f32 %v16541_v23, %v11200_v51  ;;  %v11192_v13 = vadd.f32 %v11191_v16, %v11031_v25 }
 0x5d6   : > { %v11277_v42 = vadd.f32 %v16550_v30, %v11238_v24 }
 0x5d7   : > { %11402 = vst [vmem:[%s16583_s30 + $0xc8] sm:$0xff] %v11370_v26  ;;  %v11375_v35 = vmax.f32 %v11343_v4, 0.0  ;;  %v11280_v27 = vadd.f32 %v16550_v30, %v11241_v8  ;;  %v11239_v20 = vmul.f32 %v16541_v23, %v11192_v13 }
 0x5d8   : > { %v11341_v29 = vadd.f32 %v11309_v1, %v11277_v42 }
 0x5d9   : > { %11407 = vst [vmem:[%s16583_s30 + $0xf0] sm:$0xff] %v11375_v35  ;;  %v11344_v15 = vadd.f32 %v11312_v31, %v11280_v27  ;;  %v11278_v58 = vadd.f32 %v16550_v30, %v11239_v20 }
 0x5da   : > { %v11373_v0 = vmax.f32 %v11341_v29, 0.0 }
 0x5db   : > { %v11376_v46 = vmax.f32 %v11344_v15, 0.0  ;;  %v11342_v54 = vadd.f32 %v11310_v43, %v11278_v58 }
 0x5dc   : > { %11405 = vst [vmem:[%s16583_s30 + $0xe0] sm:$0xff] %v11373_v0 }
 0x5dd   : > { %11408 = vst [vmem:[%s16583_s30 + $0xf8] sm:$0xff] %v11376_v46  ;;  %v11374_v23 = vmax.f32 %v11342_v54, 0.0 }
 0x5df   : > { %11406 = vst [vmem:[%s16583_s30 + $0xe8] sm:$0xff] %v11374_v23 }
 0x5e0   : > { %13947 = shalt.err (!%p13944_p9)
}
 0x5e1   : > { %s13948_s10 = scalar_lea.hbm %s16792_s21, 4096  ;;  %s13952_s16 = scalar_lea.hbm %s16846_s7, 8192 }
 0x5e2   : > { %p13949_p13 = scmp.ne.s32.totalorder %s16792_s21, %s13948_s10  ;;  %p13953_p4 = scmp.lt.s32.totalorder %s16792_s21, %s16846_s7 }
 0x5e3   : > { %p13954_p8 = scmp.lt.s32.totalorder %s13952_s16, %s13948_s10 }
 0x5e4   : > { %p13950_p5 = pnand %p13949_p13, %p17035_p10 }
 0x5e5   : > { %p13955_p3 = por %p13954_p8, %p13953_p4 }
 0x5e6   : > { %p13951_p0 = pneg %p13950_p5 }
 0x5e8   : > { %p13956_p11 = pnand %p13955_p3, %p13951_p0 }
 0x5ea   : > { %13959 = shalt.err (!%p13956_p11)
}
 0x5eb   : > { %s14013_s18 = smov 128   ;;  %s14014_s20 = smov 8  }
 0x5ec   : > { %13245 = dma.vmem_to_hbm [thread:$0]  (%p17035_p10), %s16794_s9, 4096, %s16792_s21, %s11410_s17, %s14013_s18, %s14013_s18, %s14014_s20  }
 0x5ed PF: > { %s11438_s28 = sand.u32 1, %s13990_s24   ;;  %p17036_p1 = scmp.ne.s32.totalorder %s16863_s8, 0 }
 0x5ee   : > { %p17037_p2 = scmp.ge.s32.totalorder %s14002_s27, 2  ;;  %s11439_s22 = scalar_lea.sflag [#allocation6], %s11438_s28 }
 0x5f0   : > { %p13259_p6 = pnand %p17037_p2, %p17036_p1 }
 0x5f2   : > { %p13260_p12 = pneg %p13259_p6 }
 0x5f4   : > { %13985 = dma.done.wait (%p13260_p12), %s11439_s22, 4096  }
 0x5f5   : > { %13987 = vsyncadd (%p13260_p12), %s11439_s22, 4294963200  ;;  %p21_p7 = scmp.ge.s32.totalorder %s14127_s23, 4   ;;  %s17038_s24 = smov %s13994_s25 }
 0x5f6   : > { %s17039_s25 = smov %s13998_s26  ;;  %s17040_s26 = smov %s14143_s12 }
 0x5f7   : > { %s17041_s27 = smov %s14127_s23  ;;  %23 = sbr.rel (!%p21_p7) target bundleno = 8 (0x8), region = 104 }
 0x5fc   :  { %11444 = vsyncpa [#allocation5], 1 }
 0x5fd   :  { %11446 = vsyncpa [#allocation5 + $0x1], 1 }
 0x5fe   :  { %11447 = vsyncpa [#allocation8], 1 }
 0x5ff   :  { %11448 = vsyncpa [#allocation6], 1 }
 0x600   :  { %11450 = vsyncpa [#allocation6 + $0x1], 1 }

</bundles_post_ra>
